<compile_context>
chip_gen: v5e
topology: v5e:2x2
jax: 0.10.0
libtpu: 0.0.40
codegen_flags: <defaults>
</compile_context>

<pallas_src>
import numpy as np
import jax
import jax.numpy as jnp
from jax import lax
from jax.experimental import pallas as pl
from jax.experimental.pallas import tpu as pltpu

# --- small synthetic configuration consistent with the module ---------------
H = W = 16                      # BEV spatial size
HW = H * W
IN_CH = 256                     # module hardcodes input_channels = 256
HID_CH = 128                    # module hardcodes hidden_channels = 128
NUM_CLASSES = 3
ANCHOR_SIZES = [(1.6, 3.9, 1.56), (0.6, 0.8, 1.73)]
NUM_ANCHORS = len(ANCHOR_SIZES)
BEV = dict(x_range=(-16.0, 16.0), y_range=(-16.0, 16.0), resolution=2.0)
BN_EPS = 1e-5                   # BatchNorm2d eval-mode epsilon

# fused head output-channel layout (channel-major rows of the head result,
# lane-padded to 128 so the MXU N dim / weight slab stay lane-dense):
#   rows 0..5   cls, class-major      (c * NUM_ANCHORS + a)
#   rows 6..7   objectness            (a)                  -> cls|obj = one 8-row tile
#   rows 8..21  reg, component-major  (8 + comp * NUM_ANCHORS + a)
HEAD_PAD = 128
NUM_CLS = NUM_ANCHORS * NUM_CLASSES      # 6
NUM_REG = NUM_ANCHORS * 7                # 14
CLS_OFF = 0
OBJ_OFF = NUM_CLS                        # 6
REG_OFF = 8

# packed f32 output slab rows: 0:6 cls, 6:8 obj, 8:14 xyz, 14:20 wlh,
# 20:22 yaw, 22:24 padding (all stores are aligned 8-row groups).
OUT_ROWS = 24

_VMEM = pl.BlockSpec(memory_space=pltpu.MemorySpace.VMEM)


# --- the fused Pallas kernel --------------------------------------------------
def _fused_det_head_kernel(x_ref, w1_ref, s1_ref, t1_ref,
                           w2_ref, s2_ref, t2_ref,
                           wht_ref, bh_ref, anch_ref,
                           out_ref, labels_ref,
                           pad1, pad2):

    def shifted_slabs(pad_ref, cin):
        """Left / center / right W-shifted views of the H-padded activation.

        The column halo is realized as the zero fill of the shifted slabs, so
        the pad buffer needs no W-halo columns and every interior store / tap
        extraction stays tile-aligned.  Built once per conv, reused across the
        three kh taps.
        """
        zcol = jnp.zeros((H + 2, 1, cin), jnp.bfloat16)
        c = pad_ref[...]                                          # (H+2, W, cin)
        left = jnp.concatenate([zcol, c[:, :W - 1, :]], axis=1)   # col j-1 (0 at j=0)
        right = jnp.concatenate([c[:, 1:, :], zcol], axis=1)      # col j+1 (0 at j=W-1)
        return (left, c, right)

    def conv3x3(pad_ref, w_ref, cin, cout):
        """3x3 SAME conv = 9 accumulating per-tap MXU matmuls -> (HW, cout) f32."""
        acc = jnp.zeros((HW, cout), jnp.float32)
        slabs = shifted_slabs(pad_ref, cin)
        for kw in range(3):
            slab = slabs[kw]
            for kh in range(3):
                tap = slab[kh:kh + H].reshape(HW, cin)            # aligned slice
                acc = acc + jnp.dot(tap, w_ref[kh * 3 + kw],
                                    preferred_element_type=jnp.float32)
        return acc

    # halo-only zeroing: just the top / bottom padded rows (the interior is
    # overwritten immediately below; pad2's halo rows persist for the head).
    pad1[0:1] = jnp.zeros((1, W, IN_CH), jnp.bfloat16)
    pad1[H + 1:H + 2] = jnp.zeros((1, W, IN_CH), jnp.bfloat16)
    pad2[0:1] = jnp.zeros((1, W, HID_CH), jnp.bfloat16)
    pad2[H + 1:H + 2] = jnp.zeros((1, W, HID_CH), jnp.bfloat16)

    # ---- conv1 + BN1 + ReLU (256 -> 128) -----------------------------------
    pad1[1:H + 1] = x_ref[...]
    h1 = conv3x3(pad1, w1_ref, IN_CH, HID_CH)
    h1 = jnp.maximum(h1 * s1_ref[...] + t1_ref[...], 0.0)

    # ---- conv2 + BN2 + ReLU (128 -> 128) -----------------------------------
    pad2[1:H + 1] = h1.astype(jnp.bfloat16).reshape(H, W, HID_CH)
    h2 = conv3x3(pad2, w2_ref, HID_CH, HID_CH)
    h2 = jnp.maximum(h2 * s2_ref[...] + t2_ref[...], 0.0)

    # ---- fused cls|obj|reg head conv (128 -> 128 lane-padded) --------------
    # Accumulated channel-major (HEAD_PAD, HW) via NT matmuls (contract last
    # dims of both operands, q@k.T-style) so no output transpose is needed.
    pad2[1:H + 1] = h2.astype(jnp.bfloat16).reshape(H, W, HID_CH)
    acc = jnp.zeros((HEAD_PAD, HW), jnp.float32)
    slabs = shifted_slabs(pad2, HID_CH)
    for kw in range(3):
        slab = slabs[kw]
        for kh in range(3):
            tap = slab[kh:kh + H].reshape(HW, HID_CH)
            acc = acc + lax.dot_general(
                wht_ref[kh * 3 + kw], tap, (((1,), (1,)), ((), ())),
                preferred_element_type=jnp.float32)
    heads = acc + bh_ref[...]                                     # (HEAD_PAD, HW)

    # ---- lane-dense post-processing (channel-major rows, HW = 256 lanes) ---
    sig = jax.nn.sigmoid(heads[0:8, :])                           # cls(6)|obj(2): one tile

    # argmax over classes for BOTH anchors at once (class-major cls rows);
    # strict > keeps the first maximum, matching torch.argmax tie behavior.
    best = sig[0:NUM_ANCHORS, :]
    lab = jnp.zeros((NUM_ANCHORS, HW), jnp.int32)
    for c in range(1, NUM_CLASSES):
        sc = sig[c * NUM_ANCHORS:(c + 1) * NUM_ANCHORS, :]
        m = sc > best
        lab = jnp.where(m, jnp.int32(c), lab)
        best = jnp.where(m, sc, best)
    # TODO(synk): torch.argmax returns int64; TPU-native int32 used here.
    labels_ref[...] = lab

    # anchor box decode, both anchors at once on component-major (6, HW) slabs
    reg = heads[REG_OFF:REG_OFF + NUM_REG, :]                     # (14, HW)
    anc = anch_ref[...]                                           # (14, HW)
    xyz = anc[0:6, :] + reg[0:6, :] * anc[6:12, :]                # x,y,z (scaled by w,l,h)
    wlh = anc[6:12, :] * jnp.exp(reg[6:12, :])
    yaw = anc[12:14, :] + reg[12:14, :]

    out_ref[0:8] = sig                                            # cls | obj
    out_ref[8:OUT_ROWS] = jnp.concatenate(
        [xyz, wlh, yaw, jnp.zeros((2, HW), jnp.float32)], axis=0)


# --- anchors (replicates _generate_anchors) ----------------------------------
def generate_anchors():
    res = BEV['resolution']
    x0, x1 = BEV['x_range']
    y0, y1 = BEV['y_range']
    nx = int((x1 - x0) / res)
    ny = int((y1 - y0) / res)
    xs = jnp.linspace(x0 + res / 2, x1 - res / 2, nx)
    ys = jnp.linspace(y0 + res / 2, y1 - res / 2, ny)
    gx, gy = jnp.meshgrid(xs, ys, indexing='ij')
    anchors = []
    for (aw, al, ah) in ANCHOR_SIZES:
        a = jnp.stack([gx, gy, jnp.zeros_like(gx),
                       jnp.full_like(gx, aw), jnp.full_like(gx, al),
                       jnp.full_like(gx, ah), jnp.zeros_like(gx)], axis=-1)
        anchors.append(a)
    return jnp.stack(anchors, axis=0).astype(jnp.float32)   # (A, H, W, 7)


# --- parameters (deterministic synthetic init, BatchNorm in eval mode) -------
def init_params(key):
    ks = jax.random.split(key, 16)

    def conv_w(k, cin, cout):
        return 0.02 * jax.random.normal(k, (3, 3, cin, cout), jnp.float32)

    def vec(k, c, scale=0.02, base=0.0):
        return base + scale * jax.random.normal(k, (c,), jnp.float32)

    p = dict(
        w1=conv_w(ks[0], IN_CH, HID_CH), b1=vec(ks[1], HID_CH),
        bn1_gamma=vec(ks[2], HID_CH, 0.1, 1.0), bn1_beta=vec(ks[3], HID_CH, 0.05),
        bn1_mean=vec(ks[4], HID_CH, 0.05),
        bn1_var=1.0 + 0.1 * jnp.abs(jax.random.normal(ks[5], (HID_CH,), jnp.float32)),
        w2=conv_w(ks[6], HID_CH, HID_CH), b2=vec(ks[7], HID_CH),
        bn2_gamma=vec(ks[8], HID_CH, 0.1, 1.0), bn2_beta=vec(ks[9], HID_CH, 0.05),
        bn2_mean=vec(ks[10], HID_CH, 0.05),
        bn2_var=1.0 + 0.1 * jnp.abs(jax.random.normal(ks[11], (HID_CH,), jnp.float32)),
        w_cls=conv_w(ks[12], HID_CH, NUM_ANCHORS * NUM_CLASSES),
        b_cls=vec(ks[12], NUM_ANCHORS * NUM_CLASSES),
        w_reg=conv_w(ks[13], HID_CH, NUM_ANCHORS * 7),
        b_reg=vec(ks[13], NUM_ANCHORS * 7),
        w_obj=conv_w(ks[14], HID_CH, NUM_ANCHORS),
        b_obj=vec(ks[14], NUM_ANCHORS),
    )
    return p


def _fold_bn(bias, gamma, beta, mean, var):
    s = gamma / jnp.sqrt(var + BN_EPS)
    return s, (bias - mean) * s + beta


# --- full forward pass --------------------------------------------------------
def detection_forward(params, features_chw, anchors_packed):
    """features_chw: (256, H, W) f32; anchors_packed: (14, H*W) f32 comp-major."""
    x = jnp.transpose(features_chw, (1, 2, 0)).astype(jnp.bfloat16)   # (H, W, 256)

    s1, t1 = _fold_bn(params['b1'], params['bn1_gamma'], params['bn1_beta'],
                      params['bn1_mean'], params['bn1_var'])
    s2, t2 = _fold_bn(params['b2'], params['bn2_gamma'], params['bn2_beta'],
                      params['bn2_mean'], params['bn2_var'])

    # per-tap weights (9, Cin, Cout), bf16 for the MXU
    w1 = params['w1'].reshape(9, IN_CH, HID_CH).astype(jnp.bfloat16)
    w2 = params['w2'].reshape(9, HID_CH, HID_CH).astype(jnp.bfloat16)

    # fused, lane-padded head weights in the kernel's output-channel layout
    w_cls_cm = jnp.transpose(
        params['w_cls'].reshape(3, 3, HID_CH, NUM_ANCHORS, NUM_CLASSES),
        (0, 1, 2, 4, 3)).reshape(3, 3, HID_CH, NUM_CLS)            # class-major
    w_reg_cm = jnp.transpose(
        params['w_reg'].reshape(3, 3, HID_CH, NUM_ANCHORS, 7),
        (0, 1, 2, 4, 3)).reshape(3, 3, HID_CH, NUM_REG)            # component-major
    wh = jnp.zeros((3, 3, HID_CH, HEAD_PAD), jnp.float32)
    wh = wh.at[..., CLS_OFF:CLS_OFF + NUM_CLS].set(w_cls_cm)
    wh = wh.at[..., OBJ_OFF:OBJ_OFF + NUM_ANCHORS].set(params['w_obj'])
    wh = wh.at[..., REG_OFF:REG_OFF + NUM_REG].set(w_reg_cm)
    # per-tap transposed (head-ch, in-ch) so the kernel's NT matmul produces a
    # channel-major (HEAD_PAD, HW) result directly.
    wht = jnp.transpose(wh, (0, 1, 3, 2)).reshape(9, HEAD_PAD, HID_CH).astype(jnp.bfloat16)

    bh = jnp.zeros((HEAD_PAD,), jnp.float32)
    bh = bh.at[CLS_OFF:CLS_OFF + NUM_CLS].set(
        params['b_cls'].reshape(NUM_ANCHORS, NUM_CLASSES).T.reshape(-1))
    bh = bh.at[OBJ_OFF:OBJ_OFF + NUM_ANCHORS].set(params['b_obj'])
    bh = bh.at[REG_OFF:REG_OFF + NUM_REG].set(
        params['b_reg'].reshape(NUM_ANCHORS, 7).T.reshape(-1))
    bh = bh.reshape(HEAD_PAD, 1)

    slab, labels = pl.pallas_call(
        _fused_det_head_kernel,
        out_shape=(
            jax.ShapeDtypeStruct((OUT_ROWS, HW), jnp.float32),     # cls|obj|boxes
            jax.ShapeDtypeStruct((NUM_ANCHORS, HW), jnp.int32),    # labels
        ),
        in_specs=[_VMEM] * 10,
        out_specs=(_VMEM, _VMEM),
        scratch_shapes=[
            pltpu.VMEM((H + 2, W, IN_CH), jnp.bfloat16),           # conv1 H-halo buf
            pltpu.VMEM((H + 2, W, HID_CH), jnp.bfloat16),          # conv2/head H-halo buf
        ],
    )(x, w1, s1.reshape(1, HID_CH), t1.reshape(1, HID_CH),
      w2, s2.reshape(1, HID_CH), t2.reshape(1, HID_CH),
      wht, bh, anchors_packed)

    scores = jnp.transpose(
        slab[0:NUM_CLS].reshape(NUM_CLASSES, NUM_ANCHORS, H, W), (1, 0, 2, 3))
    obj = slab[OBJ_OFF:OBJ_OFF + NUM_ANCHORS].reshape(NUM_ANCHORS, H, W)
    boxes = jnp.transpose(
        slab[REG_OFF:REG_OFF + NUM_REG].reshape(7, NUM_ANCHORS, H, W), (1, 2, 3, 0))
    return {
        'boxes_3d': boxes,                                         # (A, H, W, 7)
        'scores': scores,                                          # (A, C, H, W)
        'labels': labels.reshape(NUM_ANCHORS, H, W),               # (A, H, W) int32
        'objectness': obj,                                         # (A, H, W)
    }


# --- pure-JAX reference (mirrors the PyTorch graph) ---------------------------
def reference_forward(params, features_chw, anchors):
    def conv(x_chw, w, b):
        w_oihw = jnp.transpose(w, (3, 2, 0, 1))
        y = jax.lax.conv_general_dilated(
            x_chw[None], w_oihw, window_strides=(1, 1), padding='SAME',
            dimension_numbers=('NCHW', 'OIHW', 'NCHW'))[0]
        return y + b[:, None, None]

    def bn(x, g, be, m, v):
        return ((x - m[:, None, None]) / jnp.sqrt(v[:, None, None] + BN_EPS)
                * g[:, None, None] + be[:, None, None])

    h = jnp.maximum(bn(conv(features_chw, params['w1'], params['b1']),
                       params['bn1_gamma'], params['bn1_beta'],
                       params['bn1_mean'], params['bn1_var']), 0.0)
    h = jnp.maximum(bn(conv(h, params['w2'], params['b2']),
                       params['bn2_gamma'], params['bn2_beta'],
                       params['bn2_mean'], params['bn2_var']), 0.0)
    cls = conv(h, params['w_cls'], params['b_cls']).reshape(NUM_ANCHORS, NUM_CLASSES, H, W)
    reg = conv(h, params['w_reg'], params['b_reg']).reshape(NUM_ANCHORS, 7, H, W)
    obj = conv(h, params['w_obj'], params['b_obj']).reshape(NUM_ANCHORS, H, W)
    cls_s = jax.nn.sigmoid(cls)
    obj_s = jax.nn.sigmoid(obj)
    A = anchors
    dx, dy, dz, dw, dl, dh, dyaw = [reg[:, i] for i in range(7)]
    boxes = jnp.stack([A[..., 0] + dx * A[..., 3],
                       A[..., 1] + dy * A[..., 4],
                       A[..., 2] + dz * A[..., 5],
                       A[..., 3] * jnp.exp(dw),
                       A[..., 4] * jnp.exp(dl),
                       A[..., 5] * jnp.exp(dh),
                       A[..., 6] + dyaw], axis=-1)
    return {'boxes_3d': boxes, 'scores': cls_s,
            'labels': jnp.argmax(cls_s, axis=1).astype(jnp.int32),
            'objectness': obj_s}


if __name__ == "__main__":
    key = jax.random.PRNGKey(0)
    kp, kx = jax.random.split(key)
    params = init_params(kp)
    features = jax.random.normal(kx, (IN_CH, H, W), jnp.float32)
    anchors = generate_anchors()
    assert anchors.shape == (NUM_ANCHORS, H, W, 7)
    # anchors are static: precompute the lane-dense component-major layout
    # (row = comp * NUM_ANCHORS + a) once.
    anchors_packed = jnp.transpose(anchors, (3, 0, 1, 2)).reshape(7 * NUM_ANCHORS, HW)

    fwd = jax.jit(detection_forward)
    out = jax.block_until_ready(fwd(params, features, anchors_packed))

    ref = reference_forward(params, features, anchors)
    # loose tolerances: bf16 MXU path with f32 accumulation vs XLA f32 conv
    np.testing.assert_allclose(np.asarray(out['scores']), np.asarray(ref['scores']),
                               rtol=5e-2, atol=5e-2)
    np.testing.assert_allclose(np.asarray(out['objectness']), np.asarray(ref['objectness']),
                               rtol=5e-2, atol=5e-2)
    np.testing.assert_allclose(np.asarray(out['boxes_3d']), np.asarray(ref['boxes_3d']),
                               rtol=5e-2, atol=5e-2)
    # labels not asserted elementwise: near-tie argmax can flip under bf16 matmul.
    assert out['labels'].shape == (NUM_ANCHORS, H, W)
    assert out['labels'].dtype == jnp.int32

    print("KERNEL_OK")
</pallas_src>

<mosaic_0001>
module attributes {stable_mosaic.version = 11 : i64} {
  func.func @_fused_det_head_kernel(%arg0: memref<16x16x256xbf16, #tpu.memory_space<vmem>>, %arg1: memref<9x256x128xbf16, #tpu.memory_space<vmem>>, %arg2: memref<1x128xf32, #tpu.memory_space<vmem>>, %arg3: memref<1x128xf32, #tpu.memory_space<vmem>>, %arg4: memref<9x128x128xbf16, #tpu.memory_space<vmem>>, %arg5: memref<1x128xf32, #tpu.memory_space<vmem>>, %arg6: memref<1x128xf32, #tpu.memory_space<vmem>>, %arg7: memref<9x128x128xbf16, #tpu.memory_space<vmem>>, %arg8: memref<128x1xf32, #tpu.memory_space<vmem>>, %arg9: memref<14x256xf32, #tpu.memory_space<vmem>>, %arg10: memref<24x256xf32, #tpu.memory_space<vmem>>, %arg11: memref<2x256xi32, #tpu.memory_space<vmem>>, %arg12: memref<18x16x256xbf16, #tpu.memory_space<vmem>>, %arg13: memref<18x16x128xbf16, #tpu.memory_space<vmem>>) attributes {dimension_semantics = [], scalar_prefetch = 0 : i64, scratch_operands = 2 : i64, tpu.core_type = #tpu.core_type<tc>} {
    %cst = arith.constant 0.000000e+00 : bf16
    %0 = vector.broadcast %cst : bf16 to vector<1x16x256xbf16>
    %c0 = arith.constant 0 : index
    %c0_0 = arith.constant 0 : index
    %c0_1 = arith.constant 0 : index
    %1 = vector.load %arg12[%c0, %c0_0, %c0_1] : memref<18x16x256xbf16, #tpu.memory_space<vmem>>, vector<1x16x256xbf16>
    tpu.vector_store %arg12[%c0, %c0_0, %c0_1], %0 {strides = array<i32>} : memref<18x16x256xbf16, #tpu.memory_space<vmem>>, vector<1x16x256xbf16>,
    %cst_2 = arith.constant 0.000000e+00 : bf16
    %2 = vector.broadcast %cst_2 : bf16 to vector<1x16x256xbf16>
    %c17 = arith.constant 17 : index
    %c0_3 = arith.constant 0 : index
    %c0_4 = arith.constant 0 : index
    %3 = vector.load %arg12[%c17, %c0_3, %c0_4] : memref<18x16x256xbf16, #tpu.memory_space<vmem>>, vector<1x16x256xbf16>
    tpu.vector_store %arg12[%c17, %c0_3, %c0_4], %2 {strides = array<i32>} : memref<18x16x256xbf16, #tpu.memory_space<vmem>>, vector<1x16x256xbf16>,
    %cst_5 = arith.constant 0.000000e+00 : bf16
    %4 = vector.broadcast %cst_5 : bf16 to vector<1x16x128xbf16>
    %c0_6 = arith.constant 0 : index
    %c0_7 = arith.constant 0 : index
    %c0_8 = arith.constant 0 : index
    %5 = vector.load %arg13[%c0_6, %c0_7, %c0_8] : memref<18x16x128xbf16, #tpu.memory_space<vmem>>, vector<1x16x128xbf16>
    tpu.vector_store %arg13[%c0_6, %c0_7, %c0_8], %4 {strides = array<i32>} : memref<18x16x128xbf16, #tpu.memory_space<vmem>>, vector<1x16x128xbf16>,
    %cst_9 = arith.constant 0.000000e+00 : bf16
    %6 = vector.broadcast %cst_9 : bf16 to vector<1x16x128xbf16>
    %c17_10 = arith.constant 17 : index
    %c0_11 = arith.constant 0 : index
    %c0_12 = arith.constant 0 : index
    %7 = vector.load %arg13[%c17_10, %c0_11, %c0_12] : memref<18x16x128xbf16, #tpu.memory_space<vmem>>, vector<1x16x128xbf16>
    tpu.vector_store %arg13[%c17_10, %c0_11, %c0_12], %6 {strides = array<i32>} : memref<18x16x128xbf16, #tpu.memory_space<vmem>>, vector<1x16x128xbf16>,
    %c0_13 = arith.constant 0 : index
    %c0_14 = arith.constant 0 : index
    %c0_15 = arith.constant 0 : index
    %8 = vector.load %arg0[%c0_13, %c0_14, %c0_15] : memref<16x16x256xbf16, #tpu.memory_space<vmem>>, vector<16x16x256xbf16>
    %c1 = arith.constant 1 : index
    %c0_16 = arith.constant 0 : index
    %c0_17 = arith.constant 0 : index
    %9 = vector.load %arg12[%c1, %c0_16, %c0_17] : memref<18x16x256xbf16, #tpu.memory_space<vmem>>, vector<16x16x256xbf16>
    tpu.vector_store %arg12[%c1, %c0_16, %c0_17], %8 {strides = array<i32>} : memref<18x16x256xbf16, #tpu.memory_space<vmem>>, vector<16x16x256xbf16>,
    %cst_18 = arith.constant 0.000000e+00 : f32
    %10 = vector.broadcast %cst_18 : f32 to vector<256x128xf32>
    %cst_19 = arith.constant 0.000000e+00 : bf16
    %11 = vector.broadcast %cst_19 : bf16 to vector<18x1x256xbf16>
    %c0_20 = arith.constant 0 : index
    %c0_21 = arith.constant 0 : index
    %c0_22 = arith.constant 0 : index
    %12 = vector.load %arg12[%c0_20, %c0_21, %c0_22] : memref<18x16x256xbf16, #tpu.memory_space<vmem>>, vector<18x16x256xbf16>
    %13 = vector.extract_strided_slice %12 {offsets = [0, 0, 0], sizes = [18, 15, 256], strides = [1, 1, 1]} : vector<18x16x256xbf16> to vector<18x15x256xbf16>
    %14 = tpu.concatenate %11, %13 in 1 : vector<18x1x256xbf16>, vector<18x15x256xbf16> -> vector<18x16x256xbf16>
    %15 = vector.extract_strided_slice %12 {offsets = [0, 1, 0], sizes = [18, 15, 256], strides = [1, 1, 1]} : vector<18x16x256xbf16> to vector<18x15x256xbf16>
    %16 = tpu.concatenate %15, %11 in 1 : vector<18x15x256xbf16>, vector<18x1x256xbf16> -> vector<18x16x256xbf16>
    %17 = vector.extract_strided_slice %14 {offsets = [0, 0, 0], sizes = [16, 16, 256], strides = [1, 1, 1]} : vector<18x16x256xbf16> to vector<16x16x256xbf16>
    %18 = vector.shape_cast %17 : vector<16x16x256xbf16> to vector<256x256xbf16>
    %c0_23 = arith.constant 0 : index
    %c0_24 = arith.constant 0 : index
    %c0_25 = arith.constant 0 : index
    %19 = vector.load %arg1[%c0_23, %c0_24, %c0_25] : memref<9x256x128xbf16, #tpu.memory_space<vmem>>, vector<1x256x128xbf16>
    %20 = vector.shape_cast %19 : vector<1x256x128xbf16> to vector<256x128xbf16>
    %cst_26 = arith.constant dense<0.000000e+00> : vector<256x128xf32>
    %21 = tpu.matmul %18, %20, %cst_26 {dimension_numbers = #tpu.dot_dimension_numbers<[1], [0], [0], [1], [0, 0, 1, 1], [], []>} : vector<256x256xbf16>, vector<256x128xbf16>, vector<256x128xf32> -> vector<256x128xf32>
    %22 = arith.addf %10, %21 : vector<256x128xf32>
    %23 = vector.extract_strided_slice %14 {offsets = [1, 0, 0], sizes = [16, 16, 256], strides = [1, 1, 1]} : vector<18x16x256xbf16> to vector<16x16x256xbf16>
    %24 = vector.shape_cast %23 : vector<16x16x256xbf16> to vector<256x256xbf16>
    %c3 = arith.constant 3 : index
    %c0_27 = arith.constant 0 : index
    %c0_28 = arith.constant 0 : index
    %25 = vector.load %arg1[%c3, %c0_27, %c0_28] : memref<9x256x128xbf16, #tpu.memory_space<vmem>>, vector<1x256x128xbf16>
    %26 = vector.shape_cast %25 : vector<1x256x128xbf16> to vector<256x128xbf16>
    %cst_29 = arith.constant dense<0.000000e+00> : vector<256x128xf32>
    %27 = tpu.matmul %24, %26, %cst_29 {dimension_numbers = #tpu.dot_dimension_numbers<[1], [0], [0], [1], [0, 0, 1, 1], [], []>} : vector<256x256xbf16>, vector<256x128xbf16>, vector<256x128xf32> -> vector<256x128xf32>
    %28 = arith.addf %22, %27 : vector<256x128xf32>
    %29 = vector.extract_strided_slice %14 {offsets = [2, 0, 0], sizes = [16, 16, 256], strides = [1, 1, 1]} : vector<18x16x256xbf16> to vector<16x16x256xbf16>
    %30 = vector.shape_cast %29 : vector<16x16x256xbf16> to vector<256x256xbf16>
    %c6 = arith.constant 6 : index
    %c0_30 = arith.constant 0 : index
    %c0_31 = arith.constant 0 : index
    %31 = vector.load %arg1[%c6, %c0_30, %c0_31] : memref<9x256x128xbf16, #tpu.memory_space<vmem>>, vector<1x256x128xbf16>
    %32 = vector.shape_cast %31 : vector<1x256x128xbf16> to vector<256x128xbf16>
    %cst_32 = arith.constant dense<0.000000e+00> : vector<256x128xf32>
    %33 = tpu.matmul %30, %32, %cst_32 {dimension_numbers = #tpu.dot_dimension_numbers<[1], [0], [0], [1], [0, 0, 1, 1], [], []>} : vector<256x256xbf16>, vector<256x128xbf16>, vector<256x128xf32> -> vector<256x128xf32>
    %34 = arith.addf %28, %33 : vector<256x128xf32>
    %35 = vector.extract_strided_slice %12 {offsets = [0, 0, 0], sizes = [16, 16, 256], strides = [1, 1, 1]} : vector<18x16x256xbf16> to vector<16x16x256xbf16>
    %36 = vector.shape_cast %35 : vector<16x16x256xbf16> to vector<256x256xbf16>
    %c1_33 = arith.constant 1 : index
    %c0_34 = arith.constant 0 : index
    %c0_35 = arith.constant 0 : index
    %37 = vector.load %arg1[%c1_33, %c0_34, %c0_35] : memref<9x256x128xbf16, #tpu.memory_space<vmem>>, vector<1x256x128xbf16>
    %38 = vector.shape_cast %37 : vector<1x256x128xbf16> to vector<256x128xbf16>
    %cst_36 = arith.constant dense<0.000000e+00> : vector<256x128xf32>
    %39 = tpu.matmul %36, %38, %cst_36 {dimension_numbers = #tpu.dot_dimension_numbers<[1], [0], [0], [1], [0, 0, 1, 1], [], []>} : vector<256x256xbf16>, vector<256x128xbf16>, vector<256x128xf32> -> vector<256x128xf32>
    %40 = arith.addf %34, %39 : vector<256x128xf32>
    %41 = vector.extract_strided_slice %12 {offsets = [1, 0, 0], sizes = [16, 16, 256], strides = [1, 1, 1]} : vector<18x16x256xbf16> to vector<16x16x256xbf16>
    %42 = vector.shape_cast %41 : vector<16x16x256xbf16> to vector<256x256xbf16>
    %c4 = arith.constant 4 : index
    %c0_37 = arith.constant 0 : index
    %c0_38 = arith.constant 0 : index
    %43 = vector.load %arg1[%c4, %c0_37, %c0_38] : memref<9x256x128xbf16, #tpu.memory_space<vmem>>, vector<1x256x128xbf16>
    %44 = vector.shape_cast %43 : vector<1x256x128xbf16> to vector<256x128xbf16>
    %cst_39 = arith.constant dense<0.000000e+00> : vector<256x128xf32>
    %45 = tpu.matmul %42, %44, %cst_39 {dimension_numbers = #tpu.dot_dimension_numbers<[1], [0], [0], [1], [0, 0, 1, 1], [], []>} : vector<256x256xbf16>, vector<256x128xbf16>, vector<256x128xf32> -> vector<256x128xf32>
    %46 = arith.addf %40, %45 : vector<256x128xf32>
    %47 = vector.extract_strided_slice %12 {offsets = [2, 0, 0], sizes = [16, 16, 256], strides = [1, 1, 1]} : vector<18x16x256xbf16> to vector<16x16x256xbf16>
    %48 = vector.shape_cast %47 : vector<16x16x256xbf16> to vector<256x256xbf16>
    %c7 = arith.constant 7 : index
    %c0_40 = arith.constant 0 : index
    %c0_41 = arith.constant 0 : index
    %49 = vector.load %arg1[%c7, %c0_40, %c0_41] : memref<9x256x128xbf16, #tpu.memory_space<vmem>>, vector<1x256x128xbf16>
    %50 = vector.shape_cast %49 : vector<1x256x128xbf16> to vector<256x128xbf16>
    %cst_42 = arith.constant dense<0.000000e+00> : vector<256x128xf32>
    %51 = tpu.matmul %48, %50, %cst_42 {dimension_numbers = #tpu.dot_dimension_numbers<[1], [0], [0], [1], [0, 0, 1, 1], [], []>} : vector<256x256xbf16>, vector<256x128xbf16>, vector<256x128xf32> -> vector<256x128xf32>
    %52 = arith.addf %46, %51 : vector<256x128xf32>
    %53 = vector.extract_strided_slice %16 {offsets = [0, 0, 0], sizes = [16, 16, 256], strides = [1, 1, 1]} : vector<18x16x256xbf16> to vector<16x16x256xbf16>
    %54 = vector.shape_cast %53 : vector<16x16x256xbf16> to vector<256x256xbf16>
    %c2 = arith.constant 2 : index
    %c0_43 = arith.constant 0 : index
    %c0_44 = arith.constant 0 : index
    %55 = vector.load %arg1[%c2, %c0_43, %c0_44] : memref<9x256x128xbf16, #tpu.memory_space<vmem>>, vector<1x256x128xbf16>
    %56 = vector.shape_cast %55 : vector<1x256x128xbf16> to vector<256x128xbf16>
    %cst_45 = arith.constant dense<0.000000e+00> : vector<256x128xf32>
    %57 = tpu.matmul %54, %56, %cst_45 {dimension_numbers = #tpu.dot_dimension_numbers<[1], [0], [0], [1], [0, 0, 1, 1], [], []>} : vector<256x256xbf16>, vector<256x128xbf16>, vector<256x128xf32> -> vector<256x128xf32>
    %58 = arith.addf %52, %57 : vector<256x128xf32>
    %59 = vector.extract_strided_slice %16 {offsets = [1, 0, 0], sizes = [16, 16, 256], strides = [1, 1, 1]} : vector<18x16x256xbf16> to vector<16x16x256xbf16>
    %60 = vector.shape_cast %59 : vector<16x16x256xbf16> to vector<256x256xbf16>
    %c5 = arith.constant 5 : index
    %c0_46 = arith.constant 0 : index
    %c0_47 = arith.constant 0 : index
    %61 = vector.load %arg1[%c5, %c0_46, %c0_47] : memref<9x256x128xbf16, #tpu.memory_space<vmem>>, vector<1x256x128xbf16>
    %62 = vector.shape_cast %61 : vector<1x256x128xbf16> to vector<256x128xbf16>
    %cst_48 = arith.constant dense<0.000000e+00> : vector<256x128xf32>
    %63 = tpu.matmul %60, %62, %cst_48 {dimension_numbers = #tpu.dot_dimension_numbers<[1], [0], [0], [1], [0, 0, 1, 1], [], []>} : vector<256x256xbf16>, vector<256x128xbf16>, vector<256x128xf32> -> vector<256x128xf32>
    %64 = arith.addf %58, %63 : vector<256x128xf32>
    %65 = vector.extract_strided_slice %16 {offsets = [2, 0, 0], sizes = [16, 16, 256], strides = [1, 1, 1]} : vector<18x16x256xbf16> to vector<16x16x256xbf16>
    %66 = vector.shape_cast %65 : vector<16x16x256xbf16> to vector<256x256xbf16>
    %c8 = arith.constant 8 : index
    %c0_49 = arith.constant 0 : index
    %c0_50 = arith.constant 0 : index
    %67 = vector.load %arg1[%c8, %c0_49, %c0_50] : memref<9x256x128xbf16, #tpu.memory_space<vmem>>, vector<1x256x128xbf16>
    %68 = vector.shape_cast %67 : vector<1x256x128xbf16> to vector<256x128xbf16>
    %cst_51 = arith.constant dense<0.000000e+00> : vector<256x128xf32>
    %69 = tpu.matmul %66, %68, %cst_51 {dimension_numbers = #tpu.dot_dimension_numbers<[1], [0], [0], [1], [0, 0, 1, 1], [], []>} : vector<256x256xbf16>, vector<256x128xbf16>, vector<256x128xf32> -> vector<256x128xf32>
    %70 = arith.addf %64, %69 : vector<256x128xf32>
    %c0_52 = arith.constant 0 : index
    %c0_53 = arith.constant 0 : index
    %71 = vector.load %arg2[%c0_52, %c0_53] : memref<1x128xf32, #tpu.memory_space<vmem>>, vector<1x128xf32>
    %72 = vector.broadcast %71 : vector<1x128xf32> to vector<256x128xf32>
    %73 = arith.mulf %70, %72 : vector<256x128xf32>
    %c0_54 = arith.constant 0 : index
    %c0_55 = arith.constant 0 : index
    %74 = vector.load %arg3[%c0_54, %c0_55] : memref<1x128xf32, #tpu.memory_space<vmem>>, vector<1x128xf32>
    %75 = vector.broadcast %74 : vector<1x128xf32> to vector<256x128xf32>
    %76 = arith.addf %73, %75 : vector<256x128xf32>
    %cst_56 = arith.constant 0.000000e+00 : f32
    %77 = vector.broadcast %cst_56 : f32 to vector<256x128xf32>
    %78 = arith.maximumf %76, %77 : vector<256x128xf32>
    %79 = arith.truncf %78 : vector<256x128xf32> to vector<256x128xbf16>
    %80 = vector.shape_cast %79 : vector<256x128xbf16> to vector<16x16x128xbf16>
    %c1_57 = arith.constant 1 : index
    %c0_58 = arith.constant 0 : index
    %c0_59 = arith.constant 0 : index
    %81 = vector.load %arg13[%c1_57, %c0_58, %c0_59] : memref<18x16x128xbf16, #tpu.memory_space<vmem>>, vector<16x16x128xbf16>
    tpu.vector_store %arg13[%c1_57, %c0_58, %c0_59], %80 {strides = array<i32>} : memref<18x16x128xbf16, #tpu.memory_space<vmem>>, vector<16x16x128xbf16>,
    %cst_60 = arith.constant 0.000000e+00 : f32
    %82 = vector.broadcast %cst_60 : f32 to vector<256x128xf32>
    %cst_61 = arith.constant 0.000000e+00 : bf16
    %83 = vector.broadcast %cst_61 : bf16 to vector<18x1x128xbf16>
    %c0_62 = arith.constant 0 : index
    %c0_63 = arith.constant 0 : index
    %c0_64 = arith.constant 0 : index
    %84 = vector.load %arg13[%c0_62, %c0_63, %c0_64] : memref<18x16x128xbf16, #tpu.memory_space<vmem>>, vector<18x16x128xbf16>
    %85 = vector.extract_strided_slice %84 {offsets = [0, 0, 0], sizes = [18, 15, 128], strides = [1, 1, 1]} : vector<18x16x128xbf16> to vector<18x15x128xbf16>
    %86 = tpu.concatenate %83, %85 in 1 : vector<18x1x128xbf16>, vector<18x15x128xbf16> -> vector<18x16x128xbf16>
    %87 = vector.extract_strided_slice %84 {offsets = [0, 1, 0], sizes = [18, 15, 128], strides = [1, 1, 1]} : vector<18x16x128xbf16> to vector<18x15x128xbf16>
    %88 = tpu.concatenate %87, %83 in 1 : vector<18x15x128xbf16>, vector<18x1x128xbf16> -> vector<18x16x128xbf16>
    %89 = vector.extract_strided_slice %86 {offsets = [0, 0, 0], sizes = [16, 16, 128], strides = [1, 1, 1]} : vector<18x16x128xbf16> to vector<16x16x128xbf16>
    %90 = vector.shape_cast %89 : vector<16x16x128xbf16> to vector<256x128xbf16>
    %c0_65 = arith.constant 0 : index
    %c0_66 = arith.constant 0 : index
    %c0_67 = arith.constant 0 : index
    %91 = vector.load %arg4[%c0_65, %c0_66, %c0_67] : memref<9x128x128xbf16, #tpu.memory_space<vmem>>, vector<1x128x128xbf16>
    %92 = vector.shape_cast %91 : vector<1x128x128xbf16> to vector<128x128xbf16>
    %cst_68 = arith.constant dense<0.000000e+00> : vector<256x128xf32>
    %93 = tpu.matmul %90, %92, %cst_68 {dimension_numbers = #tpu.dot_dimension_numbers<[1], [0], [0], [1], [0, 0, 1, 1], [], []>} : vector<256x128xbf16>, vector<128x128xbf16>, vector<256x128xf32> -> vector<256x128xf32>
    %94 = arith.addf %82, %93 : vector<256x128xf32>
    %95 = vector.extract_strided_slice %86 {offsets = [1, 0, 0], sizes = [16, 16, 128], strides = [1, 1, 1]} : vector<18x16x128xbf16> to vector<16x16x128xbf16>
    %96 = vector.shape_cast %95 : vector<16x16x128xbf16> to vector<256x128xbf16>
    %c3_69 = arith.constant 3 : index
    %c0_70 = arith.constant 0 : index
    %c0_71 = arith.constant 0 : index
    %97 = vector.load %arg4[%c3_69, %c0_70, %c0_71] : memref<9x128x128xbf16, #tpu.memory_space<vmem>>, vector<1x128x128xbf16>
    %98 = vector.shape_cast %97 : vector<1x128x128xbf16> to vector<128x128xbf16>
    %cst_72 = arith.constant dense<0.000000e+00> : vector<256x128xf32>
    %99 = tpu.matmul %96, %98, %cst_72 {dimension_numbers = #tpu.dot_dimension_numbers<[1], [0], [0], [1], [0, 0, 1, 1], [], []>} : vector<256x128xbf16>, vector<128x128xbf16>, vector<256x128xf32> -> vector<256x128xf32>
    %100 = arith.addf %94, %99 : vector<256x128xf32>
    %101 = vector.extract_strided_slice %86 {offsets = [2, 0, 0], sizes = [16, 16, 128], strides = [1, 1, 1]} : vector<18x16x128xbf16> to vector<16x16x128xbf16>
    %102 = vector.shape_cast %101 : vector<16x16x128xbf16> to vector<256x128xbf16>
    %c6_73 = arith.constant 6 : index
    %c0_74 = arith.constant 0 : index
    %c0_75 = arith.constant 0 : index
    %103 = vector.load %arg4[%c6_73, %c0_74, %c0_75] : memref<9x128x128xbf16, #tpu.memory_space<vmem>>, vector<1x128x128xbf16>
    %104 = vector.shape_cast %103 : vector<1x128x128xbf16> to vector<128x128xbf16>
    %cst_76 = arith.constant dense<0.000000e+00> : vector<256x128xf32>
    %105 = tpu.matmul %102, %104, %cst_76 {dimension_numbers = #tpu.dot_dimension_numbers<[1], [0], [0], [1], [0, 0, 1, 1], [], []>} : vector<256x128xbf16>, vector<128x128xbf16>, vector<256x128xf32> -> vector<256x128xf32>
    %106 = arith.addf %100, %105 : vector<256x128xf32>
    %107 = vector.extract_strided_slice %84 {offsets = [0, 0, 0], sizes = [16, 16, 128], strides = [1, 1, 1]} : vector<18x16x128xbf16> to vector<16x16x128xbf16>
    %108 = vector.shape_cast %107 : vector<16x16x128xbf16> to vector<256x128xbf16>
    %c1_77 = arith.constant 1 : index
    %c0_78 = arith.constant 0 : index
    %c0_79 = arith.constant 0 : index
    %109 = vector.load %arg4[%c1_77, %c0_78, %c0_79] : memref<9x128x128xbf16, #tpu.memory_space<vmem>>, vector<1x128x128xbf16>
    %110 = vector.shape_cast %109 : vector<1x128x128xbf16> to vector<128x128xbf16>
    %cst_80 = arith.constant dense<0.000000e+00> : vector<256x128xf32>
    %111 = tpu.matmul %108, %110, %cst_80 {dimension_numbers = #tpu.dot_dimension_numbers<[1], [0], [0], [1], [0, 0, 1, 1], [], []>} : vector<256x128xbf16>, vector<128x128xbf16>, vector<256x128xf32> -> vector<256x128xf32>
    %112 = arith.addf %106, %111 : vector<256x128xf32>
    %113 = vector.extract_strided_slice %84 {offsets = [1, 0, 0], sizes = [16, 16, 128], strides = [1, 1, 1]} : vector<18x16x128xbf16> to vector<16x16x128xbf16>
    %114 = vector.shape_cast %113 : vector<16x16x128xbf16> to vector<256x128xbf16>
    %c4_81 = arith.constant 4 : index
    %c0_82 = arith.constant 0 : index
    %c0_83 = arith.constant 0 : index
    %115 = vector.load %arg4[%c4_81, %c0_82, %c0_83] : memref<9x128x128xbf16, #tpu.memory_space<vmem>>, vector<1x128x128xbf16>
    %116 = vector.shape_cast %115 : vector<1x128x128xbf16> to vector<128x128xbf16>
    %cst_84 = arith.constant dense<0.000000e+00> : vector<256x128xf32>
    %117 = tpu.matmul %114, %116, %cst_84 {dimension_numbers = #tpu.dot_dimension_numbers<[1], [0], [0], [1], [0, 0, 1, 1], [], []>} : vector<256x128xbf16>, vector<128x128xbf16>, vector<256x128xf32> -> vector<256x128xf32>
    %118 = arith.addf %112, %117 : vector<256x128xf32>
    %119 = vector.extract_strided_slice %84 {offsets = [2, 0, 0], sizes = [16, 16, 128], strides = [1, 1, 1]} : vector<18x16x128xbf16> to vector<16x16x128xbf16>
    %120 = vector.shape_cast %119 : vector<16x16x128xbf16> to vector<256x128xbf16>
    %c7_85 = arith.constant 7 : index
    %c0_86 = arith.constant 0 : index
    %c0_87 = arith.constant 0 : index
    %121 = vector.load %arg4[%c7_85, %c0_86, %c0_87] : memref<9x128x128xbf16, #tpu.memory_space<vmem>>, vector<1x128x128xbf16>
    %122 = vector.shape_cast %121 : vector<1x128x128xbf16> to vector<128x128xbf16>
    %cst_88 = arith.constant dense<0.000000e+00> : vector<256x128xf32>
    %123 = tpu.matmul %120, %122, %cst_88 {dimension_numbers = #tpu.dot_dimension_numbers<[1], [0], [0], [1], [0, 0, 1, 1], [], []>} : vector<256x128xbf16>, vector<128x128xbf16>, vector<256x128xf32> -> vector<256x128xf32>
    %124 = arith.addf %118, %123 : vector<256x128xf32>
    %125 = vector.extract_strided_slice %88 {offsets = [0, 0, 0], sizes = [16, 16, 128], strides = [1, 1, 1]} : vector<18x16x128xbf16> to vector<16x16x128xbf16>
    %126 = vector.shape_cast %125 : vector<16x16x128xbf16> to vector<256x128xbf16>
    %c2_89 = arith.constant 2 : index
    %c0_90 = arith.constant 0 : index
    %c0_91 = arith.constant 0 : index
    %127 = vector.load %arg4[%c2_89, %c0_90, %c0_91] : memref<9x128x128xbf16, #tpu.memory_space<vmem>>, vector<1x128x128xbf16>
    %128 = vector.shape_cast %127 : vector<1x128x128xbf16> to vector<128x128xbf16>
    %cst_92 = arith.constant dense<0.000000e+00> : vector<256x128xf32>
    %129 = tpu.matmul %126, %128, %cst_92 {dimension_numbers = #tpu.dot_dimension_numbers<[1], [0], [0], [1], [0, 0, 1, 1], [], []>} : vector<256x128xbf16>, vector<128x128xbf16>, vector<256x128xf32> -> vector<256x128xf32>
    %130 = arith.addf %124, %129 : vector<256x128xf32>
    %131 = vector.extract_strided_slice %88 {offsets = [1, 0, 0], sizes = [16, 16, 128], strides = [1, 1, 1]} : vector<18x16x128xbf16> to vector<16x16x128xbf16>
    %132 = vector.shape_cast %131 : vector<16x16x128xbf16> to vector<256x128xbf16>
    %c5_93 = arith.constant 5 : index
    %c0_94 = arith.constant 0 : index
    %c0_95 = arith.constant 0 : index
    %133 = vector.load %arg4[%c5_93, %c0_94, %c0_95] : memref<9x128x128xbf16, #tpu.memory_space<vmem>>, vector<1x128x128xbf16>
    %134 = vector.shape_cast %133 : vector<1x128x128xbf16> to vector<128x128xbf16>
    %cst_96 = arith.constant dense<0.000000e+00> : vector<256x128xf32>
    %135 = tpu.matmul %132, %134, %cst_96 {dimension_numbers = #tpu.dot_dimension_numbers<[1], [0], [0], [1], [0, 0, 1, 1], [], []>} : vector<256x128xbf16>, vector<128x128xbf16>, vector<256x128xf32> -> vector<256x128xf32>
    %136 = arith.addf %130, %135 : vector<256x128xf32>
    %137 = vector.extract_strided_slice %88 {offsets = [2, 0, 0], sizes = [16, 16, 128], strides = [1, 1, 1]} : vector<18x16x128xbf16> to vector<16x16x128xbf16>
    %138 = vector.shape_cast %137 : vector<16x16x128xbf16> to vector<256x128xbf16>
    %c8_97 = arith.constant 8 : index
    %c0_98 = arith.constant 0 : index
    %c0_99 = arith.constant 0 : index
    %139 = vector.load %arg4[%c8_97, %c0_98, %c0_99] : memref<9x128x128xbf16, #tpu.memory_space<vmem>>, vector<1x128x128xbf16>
    %140 = vector.shape_cast %139 : vector<1x128x128xbf16> to vector<128x128xbf16>
    %cst_100 = arith.constant dense<0.000000e+00> : vector<256x128xf32>
    %141 = tpu.matmul %138, %140, %cst_100 {dimension_numbers = #tpu.dot_dimension_numbers<[1], [0], [0], [1], [0, 0, 1, 1], [], []>} : vector<256x128xbf16>, vector<128x128xbf16>, vector<256x128xf32> -> vector<256x128xf32>
    %142 = arith.addf %136, %141 : vector<256x128xf32>
    %c0_101 = arith.constant 0 : index
    %c0_102 = arith.constant 0 : index
    %143 = vector.load %arg5[%c0_101, %c0_102] : memref<1x128xf32, #tpu.memory_space<vmem>>, vector<1x128xf32>
    %144 = vector.broadcast %143 : vector<1x128xf32> to vector<256x128xf32>
    %145 = arith.mulf %142, %144 : vector<256x128xf32>
    %c0_103 = arith.constant 0 : index
    %c0_104 = arith.constant 0 : index
    %146 = vector.load %arg6[%c0_103, %c0_104] : memref<1x128xf32, #tpu.memory_space<vmem>>, vector<1x128xf32>
    %147 = vector.broadcast %146 : vector<1x128xf32> to vector<256x128xf32>
    %148 = arith.addf %145, %147 : vector<256x128xf32>
    %cst_105 = arith.constant 0.000000e+00 : f32
    %149 = vector.broadcast %cst_105 : f32 to vector<256x128xf32>
    %150 = arith.maximumf %148, %149 : vector<256x128xf32>
    %151 = arith.truncf %150 : vector<256x128xf32> to vector<256x128xbf16>
    %152 = vector.shape_cast %151 : vector<256x128xbf16> to vector<16x16x128xbf16>
    %c1_106 = arith.constant 1 : index
    %c0_107 = arith.constant 0 : index
    %c0_108 = arith.constant 0 : index
    %153 = vector.load %arg13[%c1_106, %c0_107, %c0_108] : memref<18x16x128xbf16, #tpu.memory_space<vmem>>, vector<16x16x128xbf16>
    tpu.vector_store %arg13[%c1_106, %c0_107, %c0_108], %152 {strides = array<i32>} : memref<18x16x128xbf16, #tpu.memory_space<vmem>>, vector<16x16x128xbf16>,
    %cst_109 = arith.constant 0.000000e+00 : f32
    %154 = vector.broadcast %cst_109 : f32 to vector<128x256xf32>
    %cst_110 = arith.constant 0.000000e+00 : bf16
    %155 = vector.broadcast %cst_110 : bf16 to vector<18x1x128xbf16>
    %c0_111 = arith.constant 0 : index
    %c0_112 = arith.constant 0 : index
    %c0_113 = arith.constant 0 : index
    %156 = vector.load %arg13[%c0_111, %c0_112, %c0_113] : memref<18x16x128xbf16, #tpu.memory_space<vmem>>, vector<18x16x128xbf16>
    %157 = vector.extract_strided_slice %156 {offsets = [0, 0, 0], sizes = [18, 15, 128], strides = [1, 1, 1]} : vector<18x16x128xbf16> to vector<18x15x128xbf16>
    %158 = tpu.concatenate %155, %157 in 1 : vector<18x1x128xbf16>, vector<18x15x128xbf16> -> vector<18x16x128xbf16>
    %159 = vector.extract_strided_slice %156 {offsets = [0, 1, 0], sizes = [18, 15, 128], strides = [1, 1, 1]} : vector<18x16x128xbf16> to vector<18x15x128xbf16>
    %160 = tpu.concatenate %159, %155 in 1 : vector<18x15x128xbf16>, vector<18x1x128xbf16> -> vector<18x16x128xbf16>
    %161 = vector.extract_strided_slice %158 {offsets = [0, 0, 0], sizes = [16, 16, 128], strides = [1, 1, 1]} : vector<18x16x128xbf16> to vector<16x16x128xbf16>
    %162 = vector.shape_cast %161 : vector<16x16x128xbf16> to vector<256x128xbf16>
    %c0_114 = arith.constant 0 : index
    %c0_115 = arith.constant 0 : index
    %c0_116 = arith.constant 0 : index
    %163 = vector.load %arg7[%c0_114, %c0_115, %c0_116] : memref<9x128x128xbf16, #tpu.memory_space<vmem>>, vector<1x128x128xbf16>
    %164 = vector.shape_cast %163 : vector<1x128x128xbf16> to vector<128x128xbf16>
    %cst_117 = arith.constant dense<0.000000e+00> : vector<128x256xf32>
    %165 = tpu.matmul %164, %162, %cst_117 {dimension_numbers = #tpu.dot_dimension_numbers<[1], [1], [0], [0], [0, 0, 1, 0], [], []>} : vector<128x128xbf16>, vector<256x128xbf16>, vector<128x256xf32> -> vector<128x256xf32>
    %166 = arith.addf %154, %165 : vector<128x256xf32>
    %167 = vector.extract_strided_slice %158 {offsets = [1, 0, 0], sizes = [16, 16, 128], strides = [1, 1, 1]} : vector<18x16x128xbf16> to vector<16x16x128xbf16>
    %168 = vector.shape_cast %167 : vector<16x16x128xbf16> to vector<256x128xbf16>
    %c3_118 = arith.constant 3 : index
    %c0_119 = arith.constant 0 : index
    %c0_120 = arith.constant 0 : index
    %169 = vector.load %arg7[%c3_118, %c0_119, %c0_120] : memref<9x128x128xbf16, #tpu.memory_space<vmem>>, vector<1x128x128xbf16>
    %170 = vector.shape_cast %169 : vector<1x128x128xbf16> to vector<128x128xbf16>
    %cst_121 = arith.constant dense<0.000000e+00> : vector<128x256xf32>
    %171 = tpu.matmul %170, %168, %cst_121 {dimension_numbers = #tpu.dot_dimension_numbers<[1], [1], [0], [0], [0, 0, 1, 0], [], []>} : vector<128x128xbf16>, vector<256x128xbf16>, vector<128x256xf32> -> vector<128x256xf32>
    %172 = arith.addf %166, %171 : vector<128x256xf32>
    %173 = vector.extract_strided_slice %158 {offsets = [2, 0, 0], sizes = [16, 16, 128], strides = [1, 1, 1]} : vector<18x16x128xbf16> to vector<16x16x128xbf16>
    %174 = vector.shape_cast %173 : vector<16x16x128xbf16> to vector<256x128xbf16>
    %c6_122 = arith.constant 6 : index
    %c0_123 = arith.constant 0 : index
    %c0_124 = arith.constant 0 : index
    %175 = vector.load %arg7[%c6_122, %c0_123, %c0_124] : memref<9x128x128xbf16, #tpu.memory_space<vmem>>, vector<1x128x128xbf16>
    %176 = vector.shape_cast %175 : vector<1x128x128xbf16> to vector<128x128xbf16>
    %cst_125 = arith.constant dense<0.000000e+00> : vector<128x256xf32>
    %177 = tpu.matmul %176, %174, %cst_125 {dimension_numbers = #tpu.dot_dimension_numbers<[1], [1], [0], [0], [0, 0, 1, 0], [], []>} : vector<128x128xbf16>, vector<256x128xbf16>, vector<128x256xf32> -> vector<128x256xf32>
    %178 = arith.addf %172, %177 : vector<128x256xf32>
    %179 = vector.extract_strided_slice %156 {offsets = [0, 0, 0], sizes = [16, 16, 128], strides = [1, 1, 1]} : vector<18x16x128xbf16> to vector<16x16x128xbf16>
    %180 = vector.shape_cast %179 : vector<16x16x128xbf16> to vector<256x128xbf16>
    %c1_126 = arith.constant 1 : index
    %c0_127 = arith.constant 0 : index
    %c0_128 = arith.constant 0 : index
    %181 = vector.load %arg7[%c1_126, %c0_127, %c0_128] : memref<9x128x128xbf16, #tpu.memory_space<vmem>>, vector<1x128x128xbf16>
    %182 = vector.shape_cast %181 : vector<1x128x128xbf16> to vector<128x128xbf16>
    %cst_129 = arith.constant dense<0.000000e+00> : vector<128x256xf32>
    %183 = tpu.matmul %182, %180, %cst_129 {dimension_numbers = #tpu.dot_dimension_numbers<[1], [1], [0], [0], [0, 0, 1, 0], [], []>} : vector<128x128xbf16>, vector<256x128xbf16>, vector<128x256xf32> -> vector<128x256xf32>
    %184 = arith.addf %178, %183 : vector<128x256xf32>
    %185 = vector.extract_strided_slice %156 {offsets = [1, 0, 0], sizes = [16, 16, 128], strides = [1, 1, 1]} : vector<18x16x128xbf16> to vector<16x16x128xbf16>
    %186 = vector.shape_cast %185 : vector<16x16x128xbf16> to vector<256x128xbf16>
    %c4_130 = arith.constant 4 : index
    %c0_131 = arith.constant 0 : index
    %c0_132 = arith.constant 0 : index
    %187 = vector.load %arg7[%c4_130, %c0_131, %c0_132] : memref<9x128x128xbf16, #tpu.memory_space<vmem>>, vector<1x128x128xbf16>
    %188 = vector.shape_cast %187 : vector<1x128x128xbf16> to vector<128x128xbf16>
    %cst_133 = arith.constant dense<0.000000e+00> : vector<128x256xf32>
    %189 = tpu.matmul %188, %186, %cst_133 {dimension_numbers = #tpu.dot_dimension_numbers<[1], [1], [0], [0], [0, 0, 1, 0], [], []>} : vector<128x128xbf16>, vector<256x128xbf16>, vector<128x256xf32> -> vector<128x256xf32>
    %190 = arith.addf %184, %189 : vector<128x256xf32>
    %191 = vector.extract_strided_slice %156 {offsets = [2, 0, 0], sizes = [16, 16, 128], strides = [1, 1, 1]} : vector<18x16x128xbf16> to vector<16x16x128xbf16>
    %192 = vector.shape_cast %191 : vector<16x16x128xbf16> to vector<256x128xbf16>
    %c7_134 = arith.constant 7 : index
    %c0_135 = arith.constant 0 : index
    %c0_136 = arith.constant 0 : index
    %193 = vector.load %arg7[%c7_134, %c0_135, %c0_136] : memref<9x128x128xbf16, #tpu.memory_space<vmem>>, vector<1x128x128xbf16>
    %194 = vector.shape_cast %193 : vector<1x128x128xbf16> to vector<128x128xbf16>
    %cst_137 = arith.constant dense<0.000000e+00> : vector<128x256xf32>
    %195 = tpu.matmul %194, %192, %cst_137 {dimension_numbers = #tpu.dot_dimension_numbers<[1], [1], [0], [0], [0, 0, 1, 0], [], []>} : vector<128x128xbf16>, vector<256x128xbf16>, vector<128x256xf32> -> vector<128x256xf32>
    %196 = arith.addf %190, %195 : vector<128x256xf32>
    %197 = vector.extract_strided_slice %160 {offsets = [0, 0, 0], sizes = [16, 16, 128], strides = [1, 1, 1]} : vector<18x16x128xbf16> to vector<16x16x128xbf16>
    %198 = vector.shape_cast %197 : vector<16x16x128xbf16> to vector<256x128xbf16>
    %c2_138 = arith.constant 2 : index
    %c0_139 = arith.constant 0 : index
    %c0_140 = arith.constant 0 : index
    %199 = vector.load %arg7[%c2_138, %c0_139, %c0_140] : memref<9x128x128xbf16, #tpu.memory_space<vmem>>, vector<1x128x128xbf16>
    %200 = vector.shape_cast %199 : vector<1x128x128xbf16> to vector<128x128xbf16>
    %cst_141 = arith.constant dense<0.000000e+00> : vector<128x256xf32>
    %201 = tpu.matmul %200, %198, %cst_141 {dimension_numbers = #tpu.dot_dimension_numbers<[1], [1], [0], [0], [0, 0, 1, 0], [], []>} : vector<128x128xbf16>, vector<256x128xbf16>, vector<128x256xf32> -> vector<128x256xf32>
    %202 = arith.addf %196, %201 : vector<128x256xf32>
    %203 = vector.extract_strided_slice %160 {offsets = [1, 0, 0], sizes = [16, 16, 128], strides = [1, 1, 1]} : vector<18x16x128xbf16> to vector<16x16x128xbf16>
    %204 = vector.shape_cast %203 : vector<16x16x128xbf16> to vector<256x128xbf16>
    %c5_142 = arith.constant 5 : index
    %c0_143 = arith.constant 0 : index
    %c0_144 = arith.constant 0 : index
    %205 = vector.load %arg7[%c5_142, %c0_143, %c0_144] : memref<9x128x128xbf16, #tpu.memory_space<vmem>>, vector<1x128x128xbf16>
    %206 = vector.shape_cast %205 : vector<1x128x128xbf16> to vector<128x128xbf16>
    %cst_145 = arith.constant dense<0.000000e+00> : vector<128x256xf32>
    %207 = tpu.matmul %206, %204, %cst_145 {dimension_numbers = #tpu.dot_dimension_numbers<[1], [1], [0], [0], [0, 0, 1, 0], [], []>} : vector<128x128xbf16>, vector<256x128xbf16>, vector<128x256xf32> -> vector<128x256xf32>
    %208 = arith.addf %202, %207 : vector<128x256xf32>
    %209 = vector.extract_strided_slice %160 {offsets = [2, 0, 0], sizes = [16, 16, 128], strides = [1, 1, 1]} : vector<18x16x128xbf16> to vector<16x16x128xbf16>
    %210 = vector.shape_cast %209 : vector<16x16x128xbf16> to vector<256x128xbf16>
    %c8_146 = arith.constant 8 : index
    %c0_147 = arith.constant 0 : index
    %c0_148 = arith.constant 0 : index
    %211 = vector.load %arg7[%c8_146, %c0_147, %c0_148] : memref<9x128x128xbf16, #tpu.memory_space<vmem>>, vector<1x128x128xbf16>
    %212 = vector.shape_cast %211 : vector<1x128x128xbf16> to vector<128x128xbf16>
    %cst_149 = arith.constant dense<0.000000e+00> : vector<128x256xf32>
    %213 = tpu.matmul %212, %210, %cst_149 {dimension_numbers = #tpu.dot_dimension_numbers<[1], [1], [0], [0], [0, 0, 1, 0], [], []>} : vector<128x128xbf16>, vector<256x128xbf16>, vector<128x256xf32> -> vector<128x256xf32>
    %214 = arith.addf %208, %213 : vector<128x256xf32>
    %c0_150 = arith.constant 0 : index
    %c0_151 = arith.constant 0 : index
    %215 = vector.load %arg8[%c0_150, %c0_151] : memref<128x1xf32, #tpu.memory_space<vmem>>, vector<128x1xf32>
    %216 = vector.broadcast %215 : vector<128x1xf32> to vector<128x256xf32>
    %217 = arith.addf %214, %216 : vector<128x256xf32>
    %218 = vector.extract_strided_slice %217 {offsets = [0, 0], sizes = [8, 256], strides = [1, 1]} : vector<128x256xf32> to vector<8x256xf32>
    %219 = arith.negf %218 : vector<8x256xf32>
    %220 = math.exp %219 : vector<8x256xf32>
    %cst_152 = arith.constant 1.000000e+00 : f32
    %221 = vector.broadcast %cst_152 : f32 to vector<8x256xf32>
    %222 = arith.addf %221, %220 : vector<8x256xf32>
    %223 = arith.divf %221, %222 : vector<8x256xf32>
    %224 = vector.extract_strided_slice %223 {offsets = [0, 0], sizes = [2, 256], strides = [1, 1]} : vector<8x256xf32> to vector<2x256xf32>
    %c0_i32 = arith.constant 0 : i32
    %225 = vector.broadcast %c0_i32 : i32 to vector<2x256xi32>
    %226 = vector.extract_strided_slice %223 {offsets = [2, 0], sizes = [2, 256], strides = [1, 1]} : vector<8x256xf32> to vector<2x256xf32>
    %227 = arith.cmpf ogt, %226, %224 : vector<2x256xf32>
    %c1_i32 = arith.constant 1 : i32
    %228 = vector.broadcast %c1_i32 : i32 to vector<2x256xi32>
    %229 = arith.select %227, %228, %225 : vector<2x256xi1>, vector<2x256xi32>
    %230 = arith.select %227, %226, %224 : vector<2x256xi1>, vector<2x256xf32>
    %231 = vector.extract_strided_slice %223 {offsets = [4, 0], sizes = [2, 256], strides = [1, 1]} : vector<8x256xf32> to vector<2x256xf32>
    %232 = arith.cmpf ogt, %231, %230 : vector<2x256xf32>
    %c2_i32 = arith.constant 2 : i32
    %233 = vector.broadcast %c2_i32 : i32 to vector<2x256xi32>
    %234 = arith.select %232, %233, %229 : vector<2x256xi1>, vector<2x256xi32>
    %c0_153 = arith.constant 0 : index
    %c0_154 = arith.constant 0 : index
    %235 = vector.load %arg11[%c0_153, %c0_154] : memref<2x256xi32, #tpu.memory_space<vmem>>, vector<2x256xi32>
    tpu.vector_store %arg11[%c0_153, %c0_154], %234 {strides = array<i32>} : memref<2x256xi32, #tpu.memory_space<vmem>>, vector<2x256xi32>,
    %236 = vector.extract_strided_slice %217 {offsets = [8, 0], sizes = [14, 256], strides = [1, 1]} : vector<128x256xf32> to vector<14x256xf32>
    %c0_155 = arith.constant 0 : index
    %c0_156 = arith.constant 0 : index
    %237 = vector.load %arg9[%c0_155, %c0_156] : memref<14x256xf32, #tpu.memory_space<vmem>>, vector<14x256xf32>
    %238 = vector.extract_strided_slice %237 {offsets = [0, 0], sizes = [6, 256], strides = [1, 1]} : vector<14x256xf32> to vector<6x256xf32>
    %239 = vector.extract_strided_slice %236 {offsets = [0, 0], sizes = [6, 256], strides = [1, 1]} : vector<14x256xf32> to vector<6x256xf32>
    %240 = vector.extract_strided_slice %237 {offsets = [6, 0], sizes = [6, 256], strides = [1, 1]} : vector<14x256xf32> to vector<6x256xf32>
    %241 = arith.mulf %239, %240 : vector<6x256xf32>
    %242 = arith.addf %238, %241 : vector<6x256xf32>
    %243 = vector.extract_strided_slice %237 {offsets = [6, 0], sizes = [6, 256], strides = [1, 1]} : vector<14x256xf32> to vector<6x256xf32>
    %244 = vector.extract_strided_slice %236 {offsets = [6, 0], sizes = [6, 256], strides = [1, 1]} : vector<14x256xf32> to vector<6x256xf32>
    %245 = math.exp %244 : vector<6x256xf32>
    %246 = arith.mulf %243, %245 : vector<6x256xf32>
    %247 = vector.extract_strided_slice %237 {offsets = [12, 0], sizes = [2, 256], strides = [1, 1]} : vector<14x256xf32> to vector<2x256xf32>
    %248 = vector.extract_strided_slice %236 {offsets = [12, 0], sizes = [2, 256], strides = [1, 1]} : vector<14x256xf32> to vector<2x256xf32>
    %249 = arith.addf %247, %248 : vector<2x256xf32>
    %c0_157 = arith.constant 0 : index
    %c0_158 = arith.constant 0 : index
    %250 = vector.load %arg10[%c0_157, %c0_158] : memref<24x256xf32, #tpu.memory_space<vmem>>, vector<8x256xf32>
    tpu.vector_store %arg10[%c0_157, %c0_158], %223 {strides = array<i32>} : memref<24x256xf32, #tpu.memory_space<vmem>>, vector<8x256xf32>,
    %cst_159 = arith.constant 0.000000e+00 : f32
    %251 = vector.broadcast %cst_159 : f32 to vector<2x256xf32>
    %252 = tpu.concatenate %242, %246, %249, %251 in 0 : vector<6x256xf32>, vector<6x256xf32>, vector<2x256xf32>, vector<2x256xf32> -> vector<16x256xf32>
    %c8_160 = arith.constant 8 : index
    %c0_161 = arith.constant 0 : index
    %253 = vector.load %arg10[%c8_160, %c0_161] : memref<24x256xf32, #tpu.memory_space<vmem>>, vector<16x256xf32>
    tpu.vector_store %arg10[%c8_160, %c0_161], %252 {strides = array<i32>} : memref<24x256xf32, #tpu.memory_space<vmem>>, vector<16x256xf32>,
    return
  }
}

</mosaic_0001>

<bundles_post_ra>
// kernel: detection_forward.1
= control target key start
LH: loop header
LB: loop body
LE: loop exit
PB: predicated region body
PF: predicated region fallthrough
CT: control target
= control target key end

     0   :  { %v10453_v3 = vmov 0   ;;  %vm581_vm0 = vcmask 1040384   ;;  %vm582_vm1 = vsmask.f32 256  ;;  %vm728_vm3 = vcmask 1047552   ;;  %s14700_s1 = inlined_call_operand.vmem [shape: bf16[9,256,128], index: 1, kind: input, shape index: {}]   ;;  %s14701_s0 = inlined_call_operand.vmem [shape: bf16[16,16,256], index: 0, kind: input, shape index: {}]   ;;  %s14702_s2 = inlined_call_operand.vmem [shape: f32[1,128], index: 2, kind: input, shape index: {}]   ;;  %s14703_s3 = inlined_call_operand.vmem [shape: f32[1,128], index: 3, kind: input, shape index: {}]   ;;  %s14704_s4 = inlined_call_operand.vmem [shape: bf16[9,128,128], index: 4, kind: input, shape index: {}]   ;;  %s14705_s5 = inlined_call_operand.vmem [shape: f32[1,128], index: 5, kind: input, shape index: {}]   ;;  %s14706_s6 = inlined_call_operand.vmem [shape: f32[1,128], index: 6, kind: input, shape index: {}]   ;;  %s14707_s7 = inlined_call_operand.vmem [shape: bf16[9,128,128], index: 7, kind: input, shape index: {}]   ;;  %s14708_s8 = inlined_call_operand.vmem [shape: f32[128,1], index: 8, kind: input, shape index: {}]   ;;  %s14709_s9 = inlined_call_operand.vmem [shape: f32[14,256], index: 9, kind: input, shape index: {}]   ;;  %s14710_s10 = inlined_call_operand.vmem [shape: f32[24,256], index: 10, kind: output, shape index: {0}]   ;;  %s14711_s11 = inlined_call_operand.vmem [shape: s32[2,256], index: 11, kind: output, shape index: {1}]  }
   0x1   :  { %v9926_v0 = vld [vmem:[%s14700_s1 + $0x1b8] sm:$0xff]  ;;  %38 = vst [vmem:[#allocation2] sm:$0xff] %v10453_v3  ;;  %10418 = vset.pattern.permute.xlu0 %v10453_v3  ;;  %10419 = vset.pattern.permute.xlu1 %v10453_v3  ;;  %v9925_v5 = vld [vmem:[%s14700_s1 + $0x1b0] sm:$0xff]  ;;  %v9924_v9 = vld [vmem:[%s14700_s1 + $0x1a8] sm:$0xff]  ;;  %vm729_vm4 = vsmask.f32 7424 }
   0x2   :  { %v9934_v1 = vld [vmem:[%s14700_s1 + $0x1f8] sm:$0xff]  ;;  %39 = vst [vmem:[#allocation2 + $0x8] sm:$0xff] %v10453_v3  ;;  %928 = vmatpush.bf16.msra.mxu0 %v9926_v0  ;;  %v9933_v6 = vld [vmem:[%s14700_s1 + $0x1f0] sm:$0xff]  ;;  %v9932_v10 = vld [vmem:[%s14700_s1 + $0x1e8] sm:$0xff]  ;;  %v14867_v0 = vmov 0  ;;  %vm7864_vm6 = vcmask 1041408  }
   0x3   :  { %v9910_v2 = vld [vmem:[%s14700_s1 + $0x38] sm:$0xff]  ;;  %1017 = vmatpush.bf16.msra.mxu1 %v9934_v1  ;;  %41 = vst [vmem:[#allocation2 + $0x110] sm:$0xff] %v10453_v3  ;;  %v9909_v7 = vld [vmem:[%s14700_s1 + $0x30] sm:$0xff]  ;;  %v9908_v11 = vld [vmem:[%s14700_s1 + $0x28] sm:$0xff]  ;;  %vm7893_vm7 = vcmask 1045504   ;;  %vm7896_vm10 = vcmask 1043456  }
   0x4   :  { %v9918_v4 = vld [vmem:[%s14700_s1 + $0x78] sm:$0xff]  ;;  %1202 = vmatpush.bf16.msra.mxu2 %v9910_v2  ;;  %v9917_v8 = vld [vmem:[%s14700_s1 + $0x70] sm:$0xff]  ;;  %42 = vst [vmem:[#allocation2 + $0x118] sm:$0xff] %v10453_v3  ;;  %v9916_v12 = vld [vmem:[%s14700_s1 + $0x68] sm:$0xff] }
   0x5   :  { %1291 = vmatpush.bf16.msra.mxu3 %v9918_v4  ;;  %43 = vst [vmem:[#allocation3] sm:$0xf] %v10453_v3  ;;  %v9923_v13 = vld [vmem:[%s14700_s1 + $0x1a0] sm:$0xff]  ;;  %v49_v18 = vld [vmem:[%s14701_s0 + $0x8] sm:$0xff]  ;;  %v50_v22 = vld [vmem:[%s14701_s0 + $0x10] sm:$0xff] }
   0x6   :  { %44 = vst [vmem:[#allocation3 + $0x4] sm:$0xf] %v10453_v3  ;;  %929 = vmatpush.bf16.msra.mxu0 %v9925_v5  ;;  %v9931_v14 = vld [vmem:[%s14700_s1 + $0x1e0] sm:$0xff]  ;;  %v51_v24 = vld [vmem:[%s14701_s0 + $0x18] sm:$0xff]  ;;  %v53_v32 = vld [vmem:[%s14701_s0 + $0x28] sm:$0xff] }
   0x7   :  { %1018 = vmatpush.bf16.msra.mxu1 %v9933_v6  ;;  %46 = vst [vmem:[#allocation3 + $0x88] sm:$0xf] %v10453_v3  ;;  %v9907_v15 = vld [vmem:[%s14700_s1 + $0x20] sm:$0xff]  ;;  %v9922_v25 = vld [vmem:[%s14700_s1 + $0x198] sm:$0xff]  ;;  %v9921_v33 = vld [vmem:[%s14700_s1 + $0x190] sm:$0xff] }
   0x8   :  { %1203 = vmatpush.bf16.msra.mxu2 %v9909_v7  ;;  %47 = vst [vmem:[#allocation3 + $0x8c] sm:$0xf] %v10453_v3  ;;  %v48_v16 = vld [vmem:[%s14701_s0] sm:$0xff]  ;;  %v7915_v19 = vld [vmem:[#allocation2] sm:$0xf]  ;;  %v9930_v26 = vld [vmem:[%s14700_s1 + $0x1d8] sm:$0xff] }
   0x9   :  { %1292 = vmatpush.bf16.msra.mxu3 %v9917_v8  ;;  %v9915_v17 = vld [vmem:[%s14700_s1 + $0x60] sm:$0xff]  ;;  %81 = vst [vmem:[#allocation2 + $0x10] sm:$0xff] %v48_v16  ;;  %v9868_v20 = vld [vmem:[#allocation2 + $0x4] sm:$0xf0]  ;;  %v9867_v21 = vld [vmem:[#allocation2 + $0x4] sm:$0xf] }
   0xa   :  { %930 = vmatpush.bf16.msra.mxu0 %v9924_v9  ;;  %82 = vst [vmem:[#allocation2 + $0x18] sm:$0xff] %v49_v18  ;;  %v7917_v23 = vld [vmem:[#allocation2 + $0x8] sm:$0xf0]  ;;  %v10580_v27 = vor.u32 %v9868_v20, %v7915_v19  ;;  %v9906_v28 = vld [vmem:[%s14700_s1 + $0x18] sm:$0xff]  ;;  %v52_v31 = vld [vmem:[%s14701_s0 + $0x20] sm:$0xff] }
   0xb   :  { %1019 = vmatpush.bf16.msra.mxu1 %v9932_v10  ;;  %83 = vst [vmem:[#allocation2 + $0x20] sm:$0xff] %v50_v22  ;;  %v9914_v29 = vld [vmem:[%s14700_s1 + $0x58] sm:$0xff]  ;;  %v10588_v30 = vor.u32 %v9867_v21, %v7917_v23  ;;  %v9929_v34 = vld [vmem:[%s14700_s1 + $0x1d0] sm:$0xff]  ;;  %v9920_v45 = vld [vmem:[%s14700_s1 + $0x188] sm:$0xff] }
   0xc   :  { %1204 = vmatpush.bf16.msra.mxu2 %v9908_v11  ;;  %14865 = vst [vmem:[#allocation4_spill] sm:$0xff] %v10580_v27  ;;  %v9905_v35 = vld [vmem:[%s14700_s1 + $0x10] sm:$0xff]  ;;  %v14749_v39 = vshrl.u32 %v10580_v27, 16  ;;  %v9928_v46 = vld [vmem:[%s14700_s1 + $0x1c8] sm:$0xff]  ;;  %v14756_v54 = vshll.u32 %v10580_v27, 16  ;;  %v9919_v59 = vld [vmem:[%s14700_s1 + $0x180] sm:$0xff] }
   0xd   :  { %1293 = vmatpush.bf16.msra.mxu3 %v9916_v12  ;;  %84 = vst [vmem:[#allocation2 + $0x28] sm:$0xff] %v51_v24  ;;  %v9913_v36 = vld [vmem:[%s14700_s1 + $0x50] sm:$0xff]  ;;  %v14747_v42 = vshrl.u32 %v10588_v30, 16  ;;  %v9904_v51 = vld [vmem:[%s14700_s1 + $0x8] sm:$0xff]  ;;  %v14755_v56 = vshll.u32 %v10588_v30, 16  ;;  %v9927_v60 = vld [vmem:[%s14700_s1 + $0x1c0] sm:$0xff] }
   0xe   :  { %931 = vmatpush.bf16.msra.mxu0 %v9923_v13  ;;  %14866 = vst [vmem:[#allocation5_spill] sm:$0xff] %v10588_v30  ;;  %v9912_v52 = vld [vmem:[%s14700_s1 + $0x48] sm:$0xff]  ;;  %v296_v53 = vrot.slane %v14749_v39, 7  ;;  %v9903_v61 = vld [vmem:[%s14700_s1] sm:$0xff]  ;;  %vm10656_vm2 = vmand %vm581_vm0, %vm582_vm1 }
   0xf   :  { %1020 = vmatpush.bf16.msra.mxu1 %v9931_v14  ;;  %85 = vst [vmem:[#allocation2 + $0x30] sm:$0xff] %v52_v31  ;;  %v303_v55 = vrot.slane %v14747_v42, 7  ;;  %v9911_v62 = vld [vmem:[%s14700_s1 + $0x40] sm:$0xff]  ;;  %v14868_v0 = vsel %vm10656_vm2, 4294967295, %v14867_v0  ;;  %v54_v14 = vld [vmem:[%s14701_s0 + $0x30] sm:$0xff]  ;;  %vm11822_vm5 = vmand %vm728_vm3, %vm729_vm4 }
  0x10   :  { %1205 = vmatpush.bf16.msra.mxu2 %v9907_v15  ;;  %v7923_v37 = vld [vmem:[#allocation2 + $0x10] sm:$0xf]  ;;  %v9869_v38 = vld [vmem:[#allocation2 + $0x14] sm:$0xf]  ;;  %86 = vst [vmem:[#allocation2 + $0x38] sm:$0xff] %v53_v32  ;;  %v299_v3 = vor.u32 %v14756_v54, %v296_v53 }
  0x11   :  { %1294 = vmatpush.bf16.msra.mxu3 %v9915_v17  ;;  %v9870_v40 = vld [vmem:[#allocation2 + $0x14] sm:$0xf0]  ;;  %v7925_v41 = vld [vmem:[#allocation2 + $0x18] sm:$0xf0]  ;;  %14869 = vst [vmem:[#allocation6_spill] sm:$0xff] %v14868_v0  ;;  %v306_v4 = vor.u32 %v14755_v56, %v303_v55  ;;  %v55_v15 = vld [vmem:[%s14701_s0 + $0x38] sm:$0xff] }
  0x12   :  { %932 = vmatpush.bf16.msra.mxu0 %v9922_v25  ;;  %v10610_v43 = vor.u32 %v9870_v40, %v7923_v37  ;;  %v10612_v44 = vor.u32 %v9869_v38, %v7925_v41  ;;  %v7931_v2 = vld [vmem:[#allocation2 + $0x20] sm:$0xf]  ;;  %v9871_v6 = vld [vmem:[#allocation2 + $0x24] sm:$0xf]  ;;  %v584_v12 = vsel %vm10656_vm2, 0, %v299_v3  ;;  %87 = vst [vmem:[#allocation2 + $0x40] sm:$0xff] %v54_v14 }
  0x13   :  { %1021 = vmatpush.bf16.msra.mxu1 %v9930_v26  ;;  %v585_v13 = vsel %vm10656_vm2, 0, %v306_v4  ;;  %88 = vst [vmem:[#allocation2 + $0x48] sm:$0xff] %v55_v15 }
  0x14   :  { %1206 = vmatpush.bf16.msra.mxu2 %v9906_v28  ;;  %v14745_v47 = vshrl.u32 %v10610_v43, 16  ;;  %v14754_v48 = vshll.u32 %v10610_v43, 16  ;;  %v14744_v49 = vshrl.u32 %v10612_v44, 16  ;;  %v14750_v50 = vshll.u32 %v10612_v44, 16  ;;  %v9872_v5 = vld [vmem:[#allocation2 + $0x24] sm:$0xf0] }
  0x15   :  { %1295 = vmatpush.bf16.msra.mxu3 %v9914_v29  ;;  %v7933_v7 = vld [vmem:[#allocation2 + $0x28] sm:$0xf0]  ;;  %v10670_v10 = vor.u32 %v9872_v5, %v7931_v2 }
  0x16   :  { %933 = vmatpush.bf16.msra.mxu0 %v9921_v33  ;;  %v310_v57 = vrot.slane %v14745_v47, 7  ;;  %v317_v58 = vrot.slane %v14744_v49, 7  ;;  %v10672_v11 = vor.u32 %v9871_v6, %v7933_v7  ;;  %v7939_v24 = vld [vmem:[#allocation2 + $0x30] sm:$0xf]  ;;  %v9873_v26 = vld [vmem:[#allocation2 + $0x34] sm:$0xf] }
  0x17   :  { %1022 = vmatpush.bf16.msra.mxu1 %v9929_v34  ;;  %v14741_v16 = vshrl.u32 %v10670_v10, 16  ;;  %v14743_v19 = vshll.u32 %v10670_v10, 16  ;;  %v9874_v25 = vld [vmem:[#allocation2 + $0x34] sm:$0xf0]  ;;  %v7941_v28 = vld [vmem:[#allocation2 + $0x38] sm:$0xf0] }
  0x18   :  { %1207 = vmatpush.bf16.msra.mxu2 %v9905_v35  ;;  %v313_v63 = vor.u32 %v14754_v48, %v310_v57  ;;  %v320_v1 = vor.u32 %v14750_v50, %v317_v58  ;;  %v14740_v17 = vshrl.u32 %v10672_v11, 16  ;;  %v14742_v21 = vshll.u32 %v10672_v11, 16  ;;  %v56_v34 = vld [vmem:[%s14701_s0 + $0x40] sm:$0xff]  ;;  %v57_v35 = vld [vmem:[%s14701_s0 + $0x48] sm:$0xff] }
  0x19   :  { %1296 = vmatpush.bf16.msra.mxu3 %v9913_v36  ;;  %v324_v18 = vrot.slane %v14741_v16, 7  ;;  %v10704_v32 = vor.u32 %v9874_v25, %v7939_v24  ;;  %v10706_v33 = vor.u32 %v9873_v26, %v7941_v28  ;;  %89 = vst [vmem:[#allocation2 + $0x50] sm:$0xff] %v56_v34  ;;  %v9875_v55 = vld [vmem:[#allocation2 + $0x44] sm:$0xf] }
  0x1a   :  { %934 = vmatpush.bf16.msra.mxu0 %v9920_v45  ;;  %v586_v8 = vsel %vm10656_vm2, 0, %v313_v63  ;;  %v587_v9 = vsel %vm10656_vm2, 0, %v320_v1  ;;  %v331_v20 = vrot.slane %v14740_v17, 7  ;;  %90 = vst [vmem:[#allocation2 + $0x58] sm:$0xff] %v57_v35  ;;  %v9876_v53 = vld [vmem:[#allocation2 + $0x44] sm:$0xf0] }
  0x1b   :  { %1023 = vmatpush.bf16.msra.mxu1 %v9928_v46  ;;  %v327_v22 = vor.u32 %v14743_v19, %v324_v18  ;;  %v14735_v36 = vshrl.u32 %v10704_v32, 16  ;;  %v14732_v37 = vshrl.u32 %v10706_v33, 16  ;;  %v14739_v40 = vshll.u32 %v10704_v32, 16  ;;  %v7949_v57 = vld [vmem:[#allocation2 + $0x48] sm:$0xf0]  ;;  %v59_v63 = vld [vmem:[%s14701_s0 + $0x58] sm:$0xff] }
  0x1c   :  { %1208 = vmatpush.bf16.msra.mxu2 %v9904_v51  ;;  %v334_v23 = vor.u32 %v14742_v21, %v331_v20  ;;  %v14738_v45 = vshll.u32 %v10706_v33, 16  ;;  %92 = vst [vmem:[#allocation2 + $0x68] sm:$0xff] %v59_v63  ;;  %v61_v24 = vld [vmem:[%s14701_s0 + $0x68] sm:$0xff] }
  0x1d   :  { %1297 = vmatpush.bf16.msra.mxu3 %v9912_v52  ;;  %v10698_v29 = vsel %vm10656_vm2, 0, %v327_v22  ;;  %v338_v38 = vrot.slane %v14735_v36, 7  ;;  %v345_v41 = vrot.slane %v14732_v37, 7  ;;  %v7947_v52 = vld [vmem:[#allocation2 + $0x40] sm:$0xf]  ;;  %94 = vst [vmem:[#allocation2 + $0x78] sm:$0xff] %v61_v24 }
  0x1e   :  { %935 = vmatpush.bf16.msra.mxu0 %v9919_v59  ;;  %v10702_v31 = vsel %vm10656_vm2, 0, %v334_v23  ;;  %v60_v23 = vld [vmem:[%s14701_s0 + $0x60] sm:$0xff] }
  0x1f   :  { %1024 = vmatpush.bf16.msra.mxu1 %v9927_v60  ;;  %v341_v46 = vor.u32 %v14739_v40, %v338_v38  ;;  %v348_v51 = vor.u32 %v14738_v45, %v345_v41  ;;  %v10736_v60 = vor.u32 %v9876_v53, %v7947_v52  ;;  %93 = vst [vmem:[#allocation2 + $0x70] sm:$0xff] %v60_v23 }
  0x20   :  { %1209 = vmatpush.bf16.msra.mxu2 %v9903_v61  ;;  %v10738_v61 = vor.u32 %v9875_v55, %v7949_v57 }
  0x21   :  { %1298 = vmatpush.bf16.msra.mxu3 %v9911_v62  ;;  %936 = vmatmul.bf16.vlgmr.msra.gmra.mxu0 %v586_v8  ;;  %v10730_v58 = vsel %vm10656_vm2, 0, %v341_v46  ;;  %v10734_v59 = vsel %vm10656_vm2, 0, %v348_v51  ;;  %v58_v62 = vld [vmem:[%s14701_s0 + $0x50] sm:$0xff]  ;;  %v14729_v1 = vshrl.u32 %v10736_v60, 16  ;;  %v14731_v4 = vshll.u32 %v10736_v60, 16 }
  0x22   :  { %1025 = vmatmul.bf16.vlgmr.msra.gmra.mxu1 %v587_v9  ;;  %91 = vst [vmem:[#allocation2 + $0x60] sm:$0xff] %v58_v62  ;;  %v14726_v2 = vshrl.u32 %v10738_v61, 16  ;;  %v14730_v6 = vshll.u32 %v10738_v61, 16  ;;  %v7957_v14 = vld [vmem:[#allocation2 + $0x58] sm:$0xf0] }
  0x23   :  { %1210 = vmatmul.bf16.vlgmr.msra.gmra.mxu2 %v584_v12  ;;  %v352_v3 = vrot.slane %v14729_v1, 7  ;;  %v9878_v12 = vld [vmem:[#allocation2 + $0x54] sm:$0xf0]  ;;  %v9880_v52 = vld [vmem:[#allocation2 + $0x64] sm:$0xf0] }
  0x24   :  { %1299 = vmatmul.bf16.vlgmr.msra.gmra.mxu3 %v585_v13  ;;  %v359_v5 = vrot.slane %v14726_v2, 7  ;;  %v9877_v13 = vld [vmem:[#allocation2 + $0x54] sm:$0xf]  ;;  %v7965_v55 = vld [vmem:[#allocation2 + $0x68] sm:$0xf0] }
  0x25   :  { %v355_v7 = vor.u32 %v14731_v4, %v352_v3  ;;  %v10772_v22 = vor.u32 %v9877_v13, %v7957_v14 }
  0x27   :  { %v10764_v15 = vsel %vm10656_vm2, 0, %v355_v7  ;;  %v14718_v26 = vshrl.u32 %v10772_v22, 16  ;;  %v14722_v38 = vshll.u32 %v10772_v22, 16  ;;  %v63_v7 = vld [vmem:[%s14701_s0 + $0x78] sm:$0xff] }
  0x28   :  { %96 = vst [vmem:[#allocation2 + $0x88] sm:$0xff] %v63_v7  ;;  %v64_v7 = vld [vmem:[%s14701_s0 + $0x80] sm:$0xff] }
  0x29   :  { %v373_v35 = vrot.slane %v14718_v26, 7  ;;  %v7963_v51 = vld [vmem:[#allocation2 + $0x60] sm:$0xf]  ;;  %v9879_v53 = vld [vmem:[#allocation2 + $0x64] sm:$0xf]  ;;  %97 = vst [vmem:[#allocation2 + $0x90] sm:$0xff] %v64_v7 }
  0x2a   :  { %v10804_v63 = vor.u32 %v9880_v52, %v7963_v51  ;;  %v10806_v3 = vor.u32 %v9879_v53, %v7965_v55  ;;  %v7973_v51 = vld [vmem:[#allocation2 + $0x78] sm:$0xf0] }
  0x2b   :  { %v376_v46 = vor.u32 %v14722_v38, %v373_v35  ;;  %v7971_v35 = vld [vmem:[#allocation2 + $0x70] sm:$0xf] }
  0x2c   :  { %v14716_v13 = vshll.u32 %v10804_v63, 16  ;;  %v14714_v23 = vshll.u32 %v10806_v3, 16 }
  0x2d   :  { %v10802_v62 = vsel %vm10656_vm2, 0, %v376_v46  ;;  %v9881_v46 = vld [vmem:[#allocation2 + $0x74] sm:$0xf] }
  0x30   :  { %v9885_v38 = vld [vmem:[#allocation2 + $0x94] sm:$0xf] }
  0x31   :  { %941 = vmatmul.bf16.gmra.mxu0 %v10698_v29 }
  0x32   :  { %1030 = vmatmul.bf16.gmra.mxu1 %v10702_v31 }
  0x33   :  { %1215 = vmatmul.bf16.gmra.mxu2 %v586_v8  ;;  %v362_v8 = vor.u32 %v14730_v6, %v359_v5  ;;  %v62_v5 = vld [vmem:[%s14701_s0 + $0x70] sm:$0xff] }
  0x34   :  { %1304 = vmatmul.bf16.gmra.mxu3 %v587_v9  ;;  %v7955_v9 = vld [vmem:[#allocation2 + $0x50] sm:$0xf]  ;;  %95 = vst [vmem:[#allocation2 + $0x80] sm:$0xff] %v62_v5  ;;  %v10840_v5 = vor.u32 %v9881_v46, %v7973_v51 }
  0x35   :  { %v10768_v18 = vsel %vm10656_vm2, 0, %v362_v8  ;;  %v10770_v20 = vor.u32 %v9878_v12, %v7955_v9  ;;  %v14713_v8 = vshrl.u32 %v10804_v63, 16  ;;  %v14712_v9 = vshrl.u32 %v10806_v3, 16 }
  0x36   :  { %v14719_v46 = vshll.u32 %v10840_v5, 16 }
  0x37   :  { %v14721_v25 = vshrl.u32 %v10770_v20, 16  ;;  %v14724_v34 = vshll.u32 %v10770_v20, 16  ;;  %v380_v12 = vrot.slane %v14713_v8, 7  ;;  %v387_v14 = vrot.slane %v14712_v9, 7  ;;  %v9884_v8 = vld [vmem:[#allocation2 + $0x84] sm:$0xf0] }
  0x39   :  { %v366_v28 = vrot.slane %v14721_v25, 7  ;;  %v383_v24 = vor.u32 %v14716_v13, %v380_v12  ;;  %v65_v12 = vld [vmem:[%s14701_s0 + $0x88] sm:$0xff] }
  0x3a   :  { %98 = vst [vmem:[#allocation2 + $0x98] sm:$0xff] %v65_v12  ;;  %v7981_v12 = vld [vmem:[#allocation2 + $0x88] sm:$0xf0] }
  0x3b   :  { %v369_v41 = vor.u32 %v14724_v34, %v366_v28  ;;  %v390_v28 = vor.u32 %v14714_v23, %v387_v14  ;;  %v10832_v52 = vsel %vm10656_vm2, 0, %v383_v24  ;;  %v14717_v24 = vshrl.u32 %v10840_v5, 16  ;;  %v7979_v9 = vld [vmem:[#allocation2 + $0x80] sm:$0xf]  ;;  %v9883_v23 = vld [vmem:[#allocation2 + $0x84] sm:$0xf] }
  0x3c   :  { %v10874_v26 = vor.u32 %v9883_v23, %v7981_v12 }
  0x3d   :  { %v10798_v57 = vsel %vm10656_vm2, 0, %v369_v41  ;;  %v9882_v41 = vld [vmem:[#allocation2 + $0x74] sm:$0xf0]  ;;  %v10836_v53 = vsel %vm10656_vm2, 0, %v390_v28 }
  0x3e   :  { %v10838_v55 = vor.u32 %v9882_v41, %v7971_v35  ;;  %v401_v41 = vrot.slane %v14717_v24, 7  ;;  %v10872_v24 = vor.u32 %v9884_v8, %v7979_v9  ;;  %v14725_v9 = vshrl.u32 %v10874_v26, 16 }
  0x3f   :  { %v14727_v12 = vshll.u32 %v10874_v26, 16 }
  0x40   :  { %v14715_v14 = vshrl.u32 %v10838_v55, 16  ;;  %v14720_v35 = vshll.u32 %v10838_v55, 16  ;;  %v404_v7 = vor.u32 %v14719_v46, %v401_v41  ;;  %v67_v41 = vld [vmem:[%s14701_s0 + $0x98] sm:$0xff]  ;;  %v14723_v8 = vshrl.u32 %v10872_v24, 16 }
  0x41   :  { %946 = vmatmul.bf16.gmra.mxu0 %v10730_v58  ;;  %100 = vst [vmem:[#allocation2 + $0xa8] sm:$0xff] %v67_v41  ;;  %v9886_v25 = vld [vmem:[#allocation2 + $0x94] sm:$0xf0]  ;;  %v7989_v41 = vld [vmem:[#allocation2 + $0x98] sm:$0xf0] }
  0x42   :  { %1035 = vmatmul.bf16.gmra.mxu1 %v10734_v59  ;;  %v394_v28 = vrot.slane %v14715_v14, 7  ;;  %v10870_v13 = vsel %vm10656_vm2, 0, %v404_v7  ;;  %v408_v23 = vrot.slane %v14723_v8, 7  ;;  %v415_v7 = vrot.slane %v14725_v9, 7 }
  0x43   :  { %1220 = vmatmul.bf16.gmra.mxu2 %v10698_v29  ;;  %v10908_v2 = vor.u32 %v9885_v38, %v7989_v41 }
  0x44   :  { %1309 = vmatmul.bf16.gmra.mxu3 %v10702_v31  ;;  %v397_v51 = vor.u32 %v14720_v35, %v394_v28  ;;  %v66_v28 = vld [vmem:[%s14701_s0 + $0x90] sm:$0xff]  ;;  %v418_v46 = vor.u32 %v14727_v12, %v415_v7  ;;  %v7987_v35 = vld [vmem:[#allocation2 + $0x90] sm:$0xf]  ;;  %v69_v7 = vld [vmem:[%s14701_s0 + $0xa8] sm:$0xff] }
  0x45   :  { %99 = vst [vmem:[#allocation2 + $0xa0] sm:$0xff] %v66_v28  ;;  %v10906_v9 = vor.u32 %v9886_v25, %v7987_v35  ;;  %v14734_v38 = vshrl.u32 %v10908_v2, 16  ;;  %v14737_v41 = vshll.u32 %v10908_v2, 16 }
  0x46   :  { %v10866_v14 = vsel %vm10656_vm2, 0, %v397_v51  ;;  %v14728_v51 = vshll.u32 %v10872_v24, 16  ;;  %v10904_v34 = vsel %vm10656_vm2, 0, %v418_v46  ;;  %14871 = vst [vmem:[#allocation8_spill] sm:$0xff] %v10908_v2 }
  0x47   :  { %14870 = vst [vmem:[#allocation7_spill] sm:$0xff] %v10906_v9  ;;  %v14733_v25 = vshrl.u32 %v10906_v9, 16  ;;  %v14736_v46 = vshll.u32 %v10906_v9, 16 }
  0x48   :  { %v411_v28 = vor.u32 %v14728_v51, %v408_v23  ;;  %v68_v23 = vld [vmem:[%s14701_s0 + $0xa0] sm:$0xff]  ;;  %102 = vst [vmem:[#allocation2 + $0xb8] sm:$0xff] %v69_v7  ;;  %v9888_v1 = vld [vmem:[#allocation2 + $0xa4] sm:$0xf0]  ;;  %v7997_v7 = vld [vmem:[#allocation2 + $0xa8] sm:$0xf0] }
  0x49   :  { %101 = vst [vmem:[#allocation2 + $0xb0] sm:$0xff] %v68_v23  ;;  %v422_v35 = vrot.slane %v14733_v25, 7 }
  0x4a   :  { %v10900_v8 = vsel %vm10656_vm2, 0, %v411_v28  ;;  %v429_v28 = vrot.slane %v14734_v38, 7 }
  0x4b   :  { %v425_v23 = vor.u32 %v14736_v46, %v422_v35 }
  0x4c   :  { %v432_v12 = vor.u32 %v14737_v41, %v429_v28  ;;  %v7995_v51 = vld [vmem:[#allocation2 + $0xa0] sm:$0xf]  ;;  %v9887_v6 = vld [vmem:[#allocation2 + $0xa4] sm:$0xf]  ;;  %v70_v28 = vld [vmem:[%s14701_s0 + $0xb0] sm:$0xff] }
  0x4d   :  { %v10934_v25 = vsel %vm10656_vm2, 0, %v425_v23  ;;  %v10940_v36 = vor.u32 %v9888_v1, %v7995_v51  ;;  %v10942_v35 = vor.u32 %v9887_v6, %v7997_v7  ;;  %v71_v41 = vld [vmem:[%s14701_s0 + $0xb8] sm:$0xff]  ;;  %103 = vst [vmem:[#allocation2 + $0xc0] sm:$0xff] %v70_v28 }
  0x4e   :  { %v10938_v38 = vsel %vm10656_vm2, 0, %v432_v12  ;;  %104 = vst [vmem:[#allocation2 + $0xc8] sm:$0xff] %v71_v41 }
  0x4f   :  { %14872 = vst [vmem:[#allocation9_spill] sm:$0xff] %v10940_v36  ;;  %v14746_v1 = vshrl.u32 %v10940_v36, 16  ;;  %v14752_v51 = vshll.u32 %v10940_v36, 16  ;;  %v14751_v40 = vshll.u32 %v10942_v35, 16  ;;  %v8005_v49 = vld [vmem:[#allocation2 + $0xb8] sm:$0xf0] }
  0x50   :  { %14873 = vst [vmem:[#allocation10_spill] sm:$0xff] %v10942_v35  ;;  %v9889_v19 = vld [vmem:[#allocation2 + $0xb4] sm:$0xf] }
  0x51   :  { %951 = vmatmul.bf16.gmra.mxu0 %v10764_v15  ;;  %v436_v45 = vrot.slane %v14746_v1, 7 }
  0x52   :  { %1040 = vmatmul.bf16.gmra.mxu1 %v10768_v18 }
  0x53   :  { %1225 = vmatmul.bf16.gmra.mxu2 %v10730_v58  ;;  %v439_v41 = vor.u32 %v14752_v51, %v436_v45 }
  0x54   :  { %1314 = vmatmul.bf16.gmra.mxu3 %v10734_v59  ;;  %v9891_v56 = vld [vmem:[#allocation2 + $0xc4] sm:$0xf] }
  0x55   :  { %v9892_v48 = vld [vmem:[#allocation2 + $0xc4] sm:$0xf0] }
  0x61   :  { %956 = vmatmul.bf16.gmra.mxu0 %v10798_v57 }
  0x62   :  { %1045 = vmatmul.bf16.gmra.mxu1 %v10802_v62 }
  0x63   :  { %1230 = vmatmul.bf16.gmra.mxu2 %v10764_v15 }
  0x64   :  { %1319 = vmatmul.bf16.gmra.mxu3 %v10768_v18 }
  0x71   :  { %961 = vmatmul.bf16.gmra.mxu0 %v10832_v52 }
  0x72   :  { %1050 = vmatmul.bf16.gmra.mxu1 %v10836_v53 }
  0x73   :  { %1235 = vmatmul.bf16.gmra.mxu2 %v10798_v57 }
  0x74   :  { %1324 = vmatmul.bf16.gmra.mxu3 %v10802_v62 }
  0x81   :  { %966 = vmatmul.bf16.gmra.mxu0 %v10866_v14 }
  0x82   :  { %1055 = vmatmul.bf16.gmra.mxu1 %v10870_v13 }
  0x83   :  { %1240 = vmatmul.bf16.gmra.mxu2 %v10832_v52 }
  0x84   :  { %1329 = vmatmul.bf16.gmra.mxu3 %v10836_v53 }
  0x91   :  { %971 = vmatmul.bf16.gmra.mxu0 %v10900_v8 }
  0x92   :  { %1060 = vmatmul.bf16.gmra.mxu1 %v10904_v34 }
  0x93   :  { %1245 = vmatmul.bf16.gmra.mxu2 %v10866_v14 }
  0x94   :  { %1334 = vmatmul.bf16.gmra.mxu3 %v10870_v13 }
  0x9e   :  { %v937_v4 = vpop.f32.mrf.mxu0 }
  0x9f   :  { %v1026_v37 = vpop.f32.mrf.mxu1 }
  0xa0   :  { %v1027_v46 = vadd.f32 %v1026_v37, %v937_v4  ;;  %v14748_v37 = vshrl.u32 %v10942_v35, 16 }
  0xa1   :  { %976 = vmatmul.bf16.gmra.mxu0 %v10934_v25 }
  0xa2   :  { %1065 = vmatmul.bf16.gmra.mxu1 %v10938_v38  ;;  %v443_v28 = vrot.slane %v14748_v37, 7 }
  0xa3   :  { %1250 = vmatmul.bf16.gmra.mxu2 %v10900_v8 }
  0xa4   :  { %1339 = vmatmul.bf16.gmra.mxu3 %v10904_v34  ;;  %v446_v21 = vor.u32 %v14751_v40, %v443_v28  ;;  %v72_v28 = vld [vmem:[%s14701_s0 + $0xc0] sm:$0xff] }
  0xa5   :  { %105 = vst [vmem:[#allocation2 + $0xd0] sm:$0xff] %v72_v28 }
  0xa6   :  { %v1211_v4 = vpop.f32.mrf.mxu2  ;;  %v939_v23 = vpop.f32.mrf.mxu0  ;;  %v10976_v45 = vsel %vm10656_vm2, 0, %v446_v21 }
  0xa7   :  { %v1300_v6 = vpop.f32.mrf.mxu3  ;;  %v1212_v12 = vadd.f32 %v1211_v4, %v1027_v46  ;;  %v1028_v7 = vpop.f32.mrf.mxu1  ;;  %v8003_v46 = vld [vmem:[#allocation2 + $0xb0] sm:$0xf]  ;;  %v9890_v4 = vld [vmem:[#allocation2 + $0xb4] sm:$0xf0] }
  0xa8   :  { %v1029_v17 = vadd.f32 %v1028_v7, %v939_v23  ;;  %v10968_v42 = vor.u32 %v9890_v4, %v8003_v46 }
  0xa9   :  { %v10962_v16 = vadd.f32 %v1300_v6, %v1212_v12  ;;  %v10972_v6 = vsel %vm10656_vm2, 0, %v439_v41  ;;  %v10978_v12 = vor.u32 %v9889_v19, %v8005_v49 }
  0xaa   :  { %14874 = vst [vmem:[#allocation11_spill] sm:$0xff] %v10968_v42  ;;  %v14761_v21 = vshll.u32 %v10968_v42, 16 }
  0xab   :  { %14875 = vst [vmem:[#allocation12_spill] sm:$0xff] %v10978_v12  ;;  %v14760_v4 = vshll.u32 %v10978_v12, 16 }
  0xae   :  { %v1213_v47 = vpop.f32.mrf.mxu2  ;;  %v942_v39 = vpop.f32.mrf.mxu0 }
  0xaf   :  { %v1302_v1 = vpop.f32.mrf.mxu3  ;;  %v1214_v37 = vadd.f32 %v1213_v47, %v1029_v17  ;;  %v1031_v50 = vpop.f32.mrf.mxu1  ;;  %v73_v47 = vld [vmem:[%s14701_s0 + $0xc8] sm:$0xff]  ;;  %v14753_v17 = vshrl.u32 %v10968_v42, 16 }
  0xb0   :  { %v1032_v23 = vadd.f32 %v1031_v50, %v942_v39  ;;  %v14757_v39 = vshrl.u32 %v10978_v12, 16  ;;  %106 = vst [vmem:[#allocation2 + $0xd8] sm:$0xff] %v73_v47 }
  0xb1   :  { %v10980_v7 = vadd.f32 %v1302_v1, %v1214_v37  ;;  %981 = vmatmul.bf16.gmra.mxu0 %v10972_v6  ;;  %v450_v19 = vrot.slane %v14753_v17, 7  ;;  %v8011_v17 = vld [vmem:[#allocation2 + $0xc0] sm:$0xf] }
  0xb2   :  { %1070 = vmatmul.bf16.gmra.mxu1 %v10976_v45  ;;  %v457_v46 = vrot.slane %v14757_v39, 7 }
  0xb3   :  { %14876 = vst [vmem:[#allocation13_spill] sm:$0xff] %v10980_v7  ;;  %1255 = vmatmul.bf16.gmra.mxu2 %v10934_v25  ;;  %v453_v47 = vor.u32 %v14761_v21, %v450_v19  ;;  %v11014_v19 = vor.u32 %v9892_v48, %v8011_v17  ;;  %v74_v21 = vld [vmem:[%s14701_s0 + $0xd0] sm:$0xff] }
  0xb4   :  { %1344 = vmatmul.bf16.gmra.mxu3 %v10938_v38  ;;  %v460_v51 = vor.u32 %v14760_v4, %v457_v46  ;;  %107 = vst [vmem:[#allocation2 + $0xe0] sm:$0xff] %v74_v21 }
  0xb5   :  { %v11008_v39 = vsel %vm10656_vm2, 0, %v453_v47  ;;  %14878 = vst [vmem:[#allocation15_spill] sm:$0xff] %v11014_v19  ;;  %v14770_v48 = vshrl.u32 %v11014_v19, 16  ;;  %v14775_v21 = vshll.u32 %v11014_v19, 16 }
  0xb6   :  { %v1216_v49 = vpop.f32.mrf.mxu2  ;;  %v944_v37 = vpop.f32.mrf.mxu0 }
  0xb7   :  { %v1305_v50 = vpop.f32.mrf.mxu3  ;;  %v1217_v1 = vadd.f32 %v1216_v49, %v1032_v23  ;;  %v1033_v41 = vpop.f32.mrf.mxu1  ;;  %v8013_v23 = vld [vmem:[#allocation2 + $0xc8] sm:$0xf0] }
  0xb8   :  { %v1034_v28 = vadd.f32 %v1033_v41, %v944_v37  ;;  %v11016_v41 = vor.u32 %v9891_v56, %v8013_v23  ;;  %v9942_v56 = vld [vmem:[%s14700_s1 + $0x338] sm:$0xff] }
  0xb9   :  { %v11000_v40 = vadd.f32 %v1305_v50, %v1217_v1  ;;  %v11012_v1 = vsel %vm10656_vm2, 0, %v460_v51  ;;  %1509 = vmatpush.bf16.msrb.mxu0 %v9942_v56 }
  0xba   :  { %14879 = vst [vmem:[#allocation16_spill] sm:$0xff] %v11016_v41  ;;  %v14774_v12 = vshll.u32 %v11016_v41, 16 }
  0xbb   :  { %14877 = vst [vmem:[#allocation14_spill] sm:$0xff] %v11000_v40  ;;  %v9895_v19 = vld [vmem:[#allocation2 + $0xe4] sm:$0xf] }
  0xbe   :  { %v1218_v49 = vpop.f32.mrf.mxu2  ;;  %v947_v37 = vpop.f32.mrf.mxu0 }
  0xbf   :  { %v1307_v54 = vpop.f32.mrf.mxu3  ;;  %v1219_v35 = vadd.f32 %v1218_v49, %v1034_v28  ;;  %v1036_v50 = vpop.f32.mrf.mxu1  ;;  %v75_v28 = vld [vmem:[%s14701_s0 + $0xd8] sm:$0xff] }
  0xc0   :  { %v1037_v46 = vadd.f32 %v1036_v50, %v947_v37  ;;  %108 = vst [vmem:[#allocation2 + $0xe8] sm:$0xff] %v75_v28  ;;  %v464_v37 = vrot.slane %v14770_v48, 7 }
  0xc1   :  { %v11018_v4 = vadd.f32 %v1307_v54, %v1219_v35  ;;  %986 = vmatmul.bf16.gmra.mxu0 %v11008_v39  ;;  %v14773_v54 = vshrl.u32 %v11016_v41, 16  ;;  %v9950_v35 = vld [vmem:[%s14700_s1 + $0x378] sm:$0xff] }
  0xc2   :  { %1075 = vmatmul.bf16.gmra.mxu1 %v11012_v1  ;;  %v467_v28 = vor.u32 %v14775_v21, %v464_v37 }
  0xc3   :  { %14880 = vst [vmem:[#allocation17_spill] sm:$0xff] %v11018_v4  ;;  %1260 = vmatmul.bf16.gmra.mxu2 %v10972_v6  ;;  %1598 = vmatpush.bf16.msrb.mxu1 %v9950_v35  ;;  %v471_v50 = vrot.slane %v14773_v54, 7  ;;  %v9894_v35 = vld [vmem:[#allocation2 + $0xd4] sm:$0xf0]  ;;  %v8021_v4 = vld [vmem:[#allocation2 + $0xd8] sm:$0xf0] }
  0xc4   :  { %1349 = vmatmul.bf16.gmra.mxu3 %v10976_v45 }
  0xc5   :  { %v474_v56 = vor.u32 %v14774_v12, %v471_v50  ;;  %v76_v50 = vld [vmem:[%s14701_s0 + $0xe0] sm:$0xff] }
  0xc6   :  { %v1221_v51 = vpop.f32.mrf.mxu2  ;;  %v949_v23 = vpop.f32.mrf.mxu0  ;;  %109 = vst [vmem:[#allocation2 + $0xf0] sm:$0xff] %v76_v50 }
  0xc7   :  { %v1310_v17 = vpop.f32.mrf.mxu3  ;;  %v1222_v47 = vadd.f32 %v1221_v51, %v1037_v46  ;;  %v1038_v49 = vpop.f32.mrf.mxu1  ;;  %v8019_v46 = vld [vmem:[#allocation2 + $0xd0] sm:$0xf]  ;;  %v9893_v51 = vld [vmem:[#allocation2 + $0xd4] sm:$0xf]  ;;  %v9896_v41 = vld [vmem:[#allocation2 + $0xe4] sm:$0xf0] }
  0xc8   :  { %v1039_v42 = vadd.f32 %v1038_v49, %v949_v23  ;;  %v11050_v9 = vor.u32 %v9894_v35, %v8019_v46  ;;  %v11060_v23 = vor.u32 %v9893_v51, %v8021_v4 }
  0xc9   :  { %v11044_v36 = vadd.f32 %v1310_v17, %v1222_v47  ;;  %v11054_v17 = vsel %vm10656_vm2, 0, %v467_v28  ;;  %v11058_v47 = vsel %vm10656_vm2, 0, %v474_v56 }
  0xca   :  { %14882 = vst [vmem:[#allocation19_spill] sm:$0xff] %v11050_v9  ;;  %v14782_v51 = vshll.u32 %v11060_v23, 16 }
  0xcb   :  { %14881 = vst [vmem:[#allocation18_spill] sm:$0xff] %v11044_v36 }
  0xcc   :  { %14883 = vst [vmem:[#allocation20_spill] sm:$0xff] %v11058_v47 }
  0xcd   :  { %14884 = vst [vmem:[#allocation21_spill] sm:$0xff] %v11060_v23 }
  0xce   :  { %v1223_v2 = vpop.f32.mrf.mxu2  ;;  %v952_v40 = vpop.f32.mrf.mxu0 }
  0xcf   :  { %v1312_v48 = vpop.f32.mrf.mxu3  ;;  %v1224_v54 = vadd.f32 %v1223_v2, %v1039_v42  ;;  %v1041_v7 = vpop.f32.mrf.mxu1  ;;  %v77_v42 = vld [vmem:[%s14701_s0 + $0xe8] sm:$0xff]  ;;  %v14776_v2 = vshrl.u32 %v11050_v9, 16 }
  0xd0   :  { %v1042_v49 = vadd.f32 %v1041_v7, %v952_v40  ;;  %v14781_v40 = vshrl.u32 %v11060_v23, 16  ;;  %110 = vst [vmem:[#allocation2 + $0xf8] sm:$0xff] %v77_v42 }
  0xd1   :  { %v11062_v37 = vadd.f32 %v1312_v48, %v1224_v54  ;;  %991 = vmatmul.bf16.gmra.mxu0 %v11054_v17  ;;  %v478_v48 = vrot.slane %v14776_v2, 7  ;;  %v14783_v54 = vshll.u32 %v11050_v9, 16  ;;  %v8027_v2 = vld [vmem:[#allocation2 + $0xe0] sm:$0xf] }
  0xd2   :  { %1080 = vmatmul.bf16.gmra.mxu1 %v11058_v47  ;;  %v485_v35 = vrot.slane %v14781_v40, 7  ;;  %v9940_v9 = vld [vmem:[%s14700_s1 + $0x328] sm:$0xff] }
  0xd3   :  { %14885 = vst [vmem:[#allocation22_spill] sm:$0xff] %v11062_v37  ;;  %1265 = vmatmul.bf16.gmra.mxu2 %v11008_v39  ;;  %v481_v42 = vor.u32 %v14783_v54, %v478_v48  ;;  %v11096_v48 = vor.u32 %v9896_v41, %v8027_v2  ;;  %v78_v54 = vld [vmem:[%s14701_s0 + $0xf0] sm:$0xff] }
  0xd4   :  { %1354 = vmatmul.bf16.gmra.mxu3 %v11012_v1  ;;  %v488_v21 = vor.u32 %v14782_v51, %v485_v35  ;;  %111 = vst [vmem:[#allocation2 + $0x100] sm:$0xff] %v78_v54  ;;  %v9949_v2 = vld [vmem:[%s14700_s1 + $0x370] sm:$0xff] }
  0xd5   :  { %v11090_v40 = vsel %vm10656_vm2, 0, %v481_v42  ;;  %14889 = vst [vmem:[#allocation26_spill] sm:$0xff] %v11096_v48  ;;  %1599 = vmatpush.bf16.msrb.mxu1 %v9949_v2 }
  0xd6   :  { %v1226_v7 = vpop.f32.mrf.mxu2  ;;  %v954_v56 = vpop.f32.mrf.mxu0  ;;  %14887 = vst [vmem:[#allocation24_spill] sm:$0xff] %v11090_v40 }
  0xd7   :  { %v1315_v4 = vpop.f32.mrf.mxu3  ;;  %v1227_v28 = vadd.f32 %v1226_v7, %v1042_v49  ;;  %v1043_v46 = vpop.f32.mrf.mxu1  ;;  %v8029_v49 = vld [vmem:[#allocation2 + $0xe8] sm:$0xf0] }
  0xd8   :  { %v1044_v50 = vadd.f32 %v1043_v46, %v954_v56  ;;  %v11098_v46 = vor.u32 %v9895_v19, %v8029_v49  ;;  %v9958_v19 = vld [vmem:[%s14700_s1 + $0xb8] sm:$0xff] }
  0xd9   :  { %v11082_v12 = vadd.f32 %v1315_v4, %v1227_v28  ;;  %v11094_v28 = vsel %vm10656_vm2, 0, %v488_v21  ;;  %1880 = vmatpush.bf16.msrb.mxu2 %v9958_v19 }
  0xda   :  { %14888 = vst [vmem:[#allocation25_spill] sm:$0xff] %v11094_v28  ;;  %v14790_v2 = vshll.u32 %v11098_v46, 16 }
  0xdb   :  { %14886 = vst [vmem:[#allocation23_spill] sm:$0xff] %v11082_v12 }
  0xdc   :  { %14890 = vst [vmem:[#allocation27_spill] sm:$0xff] %v11098_v46 }
  0xde   :  { %v1228_v7 = vpop.f32.mrf.mxu2  ;;  %v957_v56 = vpop.f32.mrf.mxu0 }
  0xdf   :  { %v1317_v37 = vpop.f32.mrf.mxu3  ;;  %v1229_v36 = vadd.f32 %v1228_v7, %v1044_v50  ;;  %v1046_v4 = vpop.f32.mrf.mxu1  ;;  %v79_v50 = vld [vmem:[%s14701_s0 + $0xf8] sm:$0xff]  ;;  %v9957_v7 = vld [vmem:[%s14700_s1 + $0xb0] sm:$0xff] }
  0xe0   :  { %v1047_v35 = vadd.f32 %v1046_v4, %v957_v56  ;;  %112 = vst [vmem:[#allocation2 + $0x108] sm:$0xff] %v79_v50  ;;  %v9965_v56 = vld [vmem:[%s14700_s1 + $0xf0] sm:$0xff]  ;;  %v14892_v50 = vshrl.u32 %v11096_v48, 16  ;;  %1881 = vmatpush.bf16.msrb.mxu2 %v9957_v7 }
  0xe1   :  { %v11100_v51 = vadd.f32 %v1317_v37, %v1229_v36  ;;  %996 = vmatmul.bf16.gmra.mxu0 %v11090_v40  ;;  %v9966_v36 = vld [vmem:[%s14700_s1 + $0xf8] sm:$0xff]  ;;  %v9941_v37 = vld [vmem:[%s14700_s1 + $0x330] sm:$0xff] }
  0xe2   :  { %1085 = vmatmul.bf16.gmra.mxu1 %v11094_v28  ;;  %1969 = vmatpush.bf16.msrb.mxu3 %v9966_v36  ;;  %v492_v19 = vrot.slane %v14892_v50, 7  ;;  %v14893_v36 = vshrl.u32 %v11098_v46, 16  ;;  %v9897_v50 = vld [vmem:[#allocation2 + $0xf4] sm:$0xf] }
  0xe3   :  { %14891 = vst [vmem:[#allocation28_spill] sm:$0xff] %v11100_v51  ;;  %1270 = vmatmul.bf16.gmra.mxu2 %v11054_v17  ;;  %1510 = vmatpush.bf16.msrb.mxu0 %v9941_v37 }
  0xe4   :  { %1359 = vmatmul.bf16.gmra.mxu3 %v11058_v47  ;;  %v499_v37 = vrot.slane %v14893_v36, 7  ;;  %v8037_v36 = vld [vmem:[#allocation2 + $0xf8] sm:$0xf0] }
  0xe6   :  { %v1231_v54 = vpop.f32.mrf.mxu2  ;;  %v959_v21 = vpop.f32.mrf.mxu0  ;;  %1970 = vmatpush.bf16.msrb.mxu3 %v9965_v56  ;;  %v502_v7 = vor.u32 %v14790_v2, %v499_v37  ;;  %v8035_v56 = vld [vmem:[#allocation2 + $0xf0] sm:$0xf] }
  0xe7   :  { %v1320_v42 = vpop.f32.mrf.mxu3  ;;  %v1232_v4 = vadd.f32 %v1231_v54, %v1047_v35  ;;  %v1048_v41 = vpop.f32.mrf.mxu1  ;;  %v9948_v35 = vld [vmem:[%s14700_s1 + $0x368] sm:$0xff]  ;;  %1511 = vmatpush.bf16.msrb.mxu0 %v9940_v9  ;;  %v9955_v9 = vld [vmem:[%s14700_s1 + $0xa0] sm:$0xff] }
  0xe8   :  { %v1049_v49 = vadd.f32 %v1048_v41, %v959_v21  ;;  %v9956_v54 = vld [vmem:[%s14700_s1 + $0xa8] sm:$0xff]  ;;  %v14895_v21 = vshll.u32 %v11096_v48, 16  ;;  %1600 = vmatpush.bf16.msrb.mxu1 %v9948_v35  ;;  %v9939_v48 = vld [vmem:[%s14700_s1 + $0x320] sm:$0xff] }
  0xe9   :  { %v11138_v23 = vadd.f32 %v1320_v42, %v1232_v4  ;;  %v9964_v41 = vld [vmem:[%s14700_s1 + $0xe8] sm:$0xff]  ;;  %v9898_v4 = vld [vmem:[#allocation2 + $0xf4] sm:$0xf0]  ;;  %1882 = vmatpush.bf16.msrb.mxu2 %v9956_v54 }
  0xea   :  { %v495_v42 = vor.u32 %v14895_v21, %v492_v19  ;;  %1971 = vmatpush.bf16.msrb.mxu3 %v9964_v41  ;;  %v11156_v12 = vor.u32 %v9898_v4, %v8035_v56  ;;  %v9947_v19 = vld [vmem:[%s14700_s1 + $0x360] sm:$0xff]  ;;  %v11173_v21 = vsel %vm10656_vm2, 0, %v502_v7  ;;  %v11175_v56 = vor.u32 %v9897_v50, %v8037_v36  ;;  %v9946_v7 = vld [vmem:[%s14700_s1 + $0x358] sm:$0xff] }
  0xeb   :  { %14894 = vst [vmem:[#allocation29_spill] sm:$0xff] %v11138_v23  ;;  %v9963_v4 = vld [vmem:[%s14700_s1 + $0xe0] sm:$0xff]  ;;  %1512 = vmatpush.bf16.msrb.mxu0 %v9939_v48  ;;  %v9962_v50 = vld [vmem:[%s14700_s1 + $0xd8] sm:$0xff] }
  0xec   :  { %14896 = vst [vmem:[#allocation30_spill] sm:$0xff] %v11156_v12  ;;  %v11169_v41 = vsel %vm10656_vm2, 0, %v495_v42  ;;  %1601 = vmatpush.bf16.msrb.mxu1 %v9947_v19  ;;  %v9938_v42 = vld [vmem:[%s14700_s1 + $0x318] sm:$0xff]  ;;  %v14794_v48 = vshrl.u32 %v11175_v56, 16 }
  0xed   :  { %14897 = vst [vmem:[#allocation31_spill] sm:$0xff] %v11169_v41  ;;  %1883 = vmatpush.bf16.msrb.mxu2 %v9955_v9 }
  0xee   :  { %v1233_v23 = vpop.f32.mrf.mxu2  ;;  %v962_v35 = vpop.f32.mrf.mxu0  ;;  %14898 = vst [vmem:[#allocation32_spill] sm:$0xff] %v11173_v21  ;;  %1972 = vmatpush.bf16.msrb.mxu3 %v9963_v4  ;;  %v9953_v4 = vld [vmem:[%s14700_s1 + $0x90] sm:$0xff] }
  0xef   :  { %v1322_v51 = vpop.f32.mrf.mxu3  ;;  %v1234_v37 = vadd.f32 %v1233_v23, %v1049_v49  ;;  %v1051_v54 = vpop.f32.mrf.mxu1  ;;  %14899 = vst [vmem:[#allocation33_spill] sm:$0xff] %v11175_v56  ;;  %v14791_v49 = vshrl.u32 %v11156_v12, 16  ;;  %1513 = vmatpush.bf16.msrb.mxu0 %v9938_v42 }
  0xf0   :  { %v1052_v2 = vadd.f32 %v1051_v54, %v962_v35  ;;  %1602 = vmatpush.bf16.msrb.mxu1 %v9946_v7  ;;  %v9937_v35 = vld [vmem:[%s14700_s1 + $0x310] sm:$0xff] }
  0xf1   :  { %v11180_v23 = vadd.f32 %v1322_v51, %v1234_v37  ;;  %1001 = vmatmul.bf16.gmra.mxu0 %v11169_v41  ;;  %v9954_v51 = vld [vmem:[%s14700_s1 + $0x98] sm:$0xff]  ;;  %v506_v9 = vrot.slane %v14791_v49, 7  ;;  %v9945_v54 = vld [vmem:[%s14700_s1 + $0x350] sm:$0xff]  ;;  %v14796_v49 = vshll.u32 %v11175_v56, 16 }
  0xf2   :  { %1090 = vmatmul.bf16.gmra.mxu1 %v11173_v21  ;;  %1884 = vmatpush.bf16.msrb.mxu2 %v9954_v51  ;;  %v9961_v37 = vld [vmem:[%s14700_s1 + $0xd0] sm:$0xff] }
  0xf3   :  { %14900 = vst [vmem:[#allocation34_spill] sm:$0xff] %v11180_v23  ;;  %1275 = vmatmul.bf16.gmra.mxu2 %v11090_v40  ;;  %1973 = vmatpush.bf16.msrb.mxu3 %v9962_v50  ;;  %v513_v50 = vrot.slane %v14794_v48, 7  ;;  %v9952_v48 = vld [vmem:[%s14700_s1 + $0x88] sm:$0xff] }
  0xf4   :  { %1364 = vmatmul.bf16.gmra.mxu3 %v11094_v28  ;;  %1514 = vmatpush.bf16.msrb.mxu0 %v9937_v35 }
  0xf5   :  { %1603 = vmatpush.bf16.msrb.mxu1 %v9945_v54  ;;  %v8043_v54 = vld [vmem:[#allocation2 + $0x100] sm:$0xf] }
  0xf6   :  { %v1236_v36 = vpop.f32.mrf.mxu2  ;;  %v964_v7 = vpop.f32.mrf.mxu0  ;;  %1885 = vmatpush.bf16.msrb.mxu2 %v9953_v4  ;;  %v9900_v4 = vld [vmem:[#allocation2 + $0x104] sm:$0xf0] }
  0xf7   :  { %v1325_v19 = vpop.f32.mrf.mxu3  ;;  %v1237_v42 = vadd.f32 %v1236_v36, %v1052_v2  ;;  %v1053_v51 = vpop.f32.mrf.mxu1  ;;  %1974 = vmatpush.bf16.msrb.mxu3 %v9961_v37  ;;  %v9936_v2 = vld [vmem:[%s14700_s1 + $0x308] sm:$0xff]  ;;  %v516_v37 = vor.u32 %v14796_v49, %v513_v50  ;;  %v9943_v50 = vld [vmem:[%s14700_s1 + $0x340] sm:$0xff] }
  0xf8   :  { %v1054_v46 = vadd.f32 %v1053_v51, %v964_v7  ;;  %v9944_v36 = vld [vmem:[%s14700_s1 + $0x348] sm:$0xff]  ;;  %v14902_v7 = vshll.u32 %v11156_v12, 16  ;;  %v8045_v51 = vld [vmem:[#allocation2 + $0x108] sm:$0xf0]  ;;  %1515 = vmatpush.bf16.msrb.mxu0 %v9936_v2  ;;  %v9951_v2 = vld [vmem:[%s14700_s1 + $0x80] sm:$0xff] }
  0xf9   :  { %v11218_v23 = vadd.f32 %v1325_v19, %v1237_v42  ;;  %v9960_v19 = vld [vmem:[%s14700_s1 + $0xc8] sm:$0xff]  ;;  %1604 = vmatpush.bf16.msrb.mxu1 %v9944_v36  ;;  %v11251_v49 = vsel %vm10656_vm2, 0, %v516_v37  ;;  %v9959_v12 = vld [vmem:[%s14700_s1 + $0xc0] sm:$0xff] }
  0xfa   :  { %v509_v35 = vor.u32 %v14902_v7, %v506_v9  ;;  %v9899_v42 = vld [vmem:[#allocation2 + $0x104] sm:$0xf]  ;;  %1886 = vmatpush.bf16.msrb.mxu2 %v9952_v48  ;;  %v9935_v7 = vld [vmem:[%s14700_s1 + $0x300] sm:$0xff] }
  0xfb   :  { %14901 = vst [vmem:[#allocation35_spill] sm:$0xff] %v11218_v23  ;;  %1975 = vmatpush.bf16.msrb.mxu3 %v9960_v19  ;;  %v11255_v56 = vor.u32 %v9899_v42, %v8045_v51 }
  0xfc   :  { %v11238_v9 = vsel %vm10656_vm2, 0, %v509_v35  ;;  %v11253_v35 = vor.u32 %v9900_v4, %v8043_v54  ;;  %1516 = vmatpush.bf16.msrb.mxu0 %v9935_v7 }
  0xfd   :  { %14904 = vst [vmem:[#allocation37_spill] sm:$0xff] %v11255_v56  ;;  %1605 = vmatpush.bf16.msrb.mxu1 %v9943_v50  ;;  %v14807_v50 = vshll.u32 %v11255_v56, 16 }
  0xfe   :  { %v1238_v23 = vpop.f32.mrf.mxu2  ;;  %v967_v36 = vpop.f32.mrf.mxu0  ;;  %14903 = vst [vmem:[#allocation36_spill] sm:$0xff] %v11253_v35  ;;  %1887 = vmatpush.bf16.msrb.mxu2 %v9951_v2  ;;  %v14808_v4 = vshll.u32 %v11253_v35, 16 }
  0xff   :  { %v1327_v28 = vpop.f32.mrf.mxu3  ;;  %v1239_v48 = vadd.f32 %v1238_v23, %v1054_v46  ;;  %v1056_v19 = vpop.f32.mrf.mxu1  ;;  %1976 = vmatpush.bf16.msrb.mxu3 %v9959_v12  ;;  %v14805_v46 = vshrl.u32 %v11253_v35, 16  ;;  %v14806_v23 = vshrl.u32 %v11255_v56, 16  ;;  %v14914_v35 = vld [vmem:[#allocation18_spill] sm:$0xff] }
 0x100   :  { %v1057_v40 = vadd.f32 %v1056_v19, %v967_v36 }
 0x101   :  { %v11260_v47 = vadd.f32 %v1327_v28, %v1239_v48  ;;  %1006 = vmatmul.bf16.gmra.mxu0 %v11238_v9  ;;  %v520_v12 = vrot.slane %v14805_v46, 7  ;;  %v527_v7 = vrot.slane %v14806_v23, 7 }
 0x102   :  { %1095 = vmatmul.bf16.gmra.mxu1 %v11251_v49 }
 0x103   :  { %14905 = vst [vmem:[#allocation38_spill] sm:$0xff] %v11260_v47  ;;  %1280 = vmatmul.bf16.gmra.mxu2 %v11169_v41  ;;  %v523_v36 = vor.u32 %v14808_v4, %v520_v12  ;;  %v530_v19 = vor.u32 %v14807_v50, %v527_v7 }
 0x104   :  { %1369 = vmatmul.bf16.gmra.mxu3 %v11173_v21 }
 0x105   :  { %v11282_v46 = vsel %vm10656_vm2, 0, %v523_v36 }
 0x106   :  { %v1241_v37 = vpop.f32.mrf.mxu2  ;;  %v969_v42 = vpop.f32.mrf.mxu0 }
 0x107   :  { %v1330_v54 = vpop.f32.mrf.mxu3  ;;  %v1242_v28 = vadd.f32 %v1241_v37, %v1057_v40  ;;  %v1058_v51 = vpop.f32.mrf.mxu1 }
 0x108   :  { %v1059_v2 = vadd.f32 %v1058_v51, %v969_v42  ;;  %v11286_v42 = vsel %vm10656_vm2, 0, %v530_v19 }
 0x109   :  { %v11274_v48 = vadd.f32 %v1330_v54, %v1242_v28 }
 0x10e   :  { %v1243_v40 = vpop.f32.mrf.mxu2  ;;  %v972_v21 = vpop.f32.mrf.mxu0 }
 0x10f   :  { %v1332_v37 = vpop.f32.mrf.mxu3  ;;  %v1244_v47 = vadd.f32 %v1243_v40, %v1059_v2  ;;  %v1061_v41 = vpop.f32.mrf.mxu1 }
 0x110   :  { %v1062_v54 = vadd.f32 %v1061_v41, %v972_v21 }
 0x111   :  { %v11288_v28 = vadd.f32 %v1332_v37, %v1244_v47  ;;  %1011 = vmatmul.bf16.gmra.mxu0 %v11282_v46 }
 0x112   :  { %1100 = vmatmul.bf16.gmra.mxu1 %v11286_v42 }
 0x113   :  { %1285 = vmatmul.bf16.gmra.mxu2 %v11238_v9 }
 0x114   :  { %1374 = vmatmul.bf16.gmra.mxu3 %v11251_v49 }
 0x116   :  { %v1246_v51 = vpop.f32.mrf.mxu2  ;;  %v974_v2 = vpop.f32.mrf.mxu0 }
 0x117   :  { %v1335_v12 = vpop.f32.mrf.mxu3  ;;  %v1247_v7 = vadd.f32 %v1246_v51, %v1062_v54  ;;  %v1063_v36 = vpop.f32.mrf.mxu1 }
 0x118   :  { %v1064_v40 = vadd.f32 %v1063_v36, %v974_v2 }
 0x119   :  { %v11294_v23 = vadd.f32 %v1335_v12, %v1247_v7 }
 0x11e   :  { %v1248_v19 = vpop.f32.mrf.mxu2  ;;  %v977_v21 = vpop.f32.mrf.mxu0 }
 0x11f   :  { %v1337_v41 = vpop.f32.mrf.mxu3  ;;  %v1249_v47 = vadd.f32 %v1248_v19, %v1064_v40  ;;  %v1066_v37 = vpop.f32.mrf.mxu1 }
 0x120   :  { %v1067_v50 = vadd.f32 %v1066_v37, %v977_v21 }
 0x121   :  { %v11296_v4 = vadd.f32 %v1337_v41, %v1249_v47  ;;  %1517 = vmatmul.bf16.vlgmr.msrb.gmra.mxu0 %v10698_v29 }
 0x122   :  { %1606 = vmatmul.bf16.vlgmr.msrb.gmra.mxu1 %v10702_v31 }
 0x123   :  { %1888 = vmatmul.bf16.vlgmr.msrb.gmra.mxu2 %v10580_v27 }
 0x124   :  { %1977 = vmatmul.bf16.vlgmr.msrb.gmra.mxu3 %v10588_v30  ;;  %v14908_v30 = vld [vmem:[#allocation14_spill] sm:$0xff] }
 0x126   :  { %v1251_v54 = vpop.f32.mrf.mxu2  ;;  %v979_v7 = vpop.f32.mrf.mxu0 }
 0x127   :  { %v1340_v51 = vpop.f32.mrf.mxu3  ;;  %v1252_v12 = vadd.f32 %v1251_v54, %v1067_v50  ;;  %v1068_v2 = vpop.f32.mrf.mxu1 }
 0x128   :  { %v1069_v36 = vadd.f32 %v1068_v2, %v979_v7 }
 0x129   :  { %v11302_v40 = vadd.f32 %v1340_v51, %v1252_v12 }
 0x12e   :  { %v1253_v19 = vpop.f32.mrf.mxu2  ;;  %v982_v47 = vpop.f32.mrf.mxu0 }
 0x12f   :  { %v1342_v21 = vpop.f32.mrf.mxu3  ;;  %v1254_v41 = vadd.f32 %v1253_v19, %v1069_v36  ;;  %v1071_v37 = vpop.f32.mrf.mxu1 }
 0x130   :  { %v1072_v29 = vadd.f32 %v1071_v37, %v982_v47 }
 0x131   :  { %v11304_v56 = vadd.f32 %v1342_v21, %v1254_v41  ;;  %1522 = vmatmul.bf16.gmra.mxu0 %v10730_v58 }
 0x132   :  { %1611 = vmatmul.bf16.gmra.mxu1 %v10734_v59 }
 0x133   :  { %1893 = vmatmul.bf16.gmra.mxu2 %v10610_v43 }
 0x134   :  { %1982 = vmatmul.bf16.gmra.mxu3 %v10612_v44 }
 0x136   :  { %v1256_v31 = vpop.f32.mrf.mxu2  ;;  %v984_v51 = vpop.f32.mrf.mxu0 }
 0x137   :  { %v1345_v50 = vpop.f32.mrf.mxu3  ;;  %v1257_v54 = vadd.f32 %v1256_v31, %v1072_v29  ;;  %v1073_v12 = vpop.f32.mrf.mxu1 }
 0x138   :  { %v1074_v7 = vadd.f32 %v1073_v12, %v984_v51 }
 0x139   :  { %v11310_v2 = vadd.f32 %v1345_v50, %v1257_v54 }
 0x13e   :  { %v1258_v36 = vpop.f32.mrf.mxu2  ;;  %v987_v41 = vpop.f32.mrf.mxu0 }
 0x13f   :  { %v1347_v19 = vpop.f32.mrf.mxu3  ;;  %v1259_v21 = vadd.f32 %v1258_v36, %v1074_v7  ;;  %v1076_v47 = vpop.f32.mrf.mxu1 }
 0x140   :  { %v1077_v58 = vadd.f32 %v1076_v47, %v987_v41 }
 0x141   :  { %v11312_v37 = vadd.f32 %v1347_v19, %v1259_v21  ;;  %1527 = vmatmul.bf16.gmra.mxu0 %v10764_v15 }
 0x142   :  { %1616 = vmatmul.bf16.gmra.mxu1 %v10768_v18 }
 0x143   :  { %1898 = vmatmul.bf16.gmra.mxu2 %v10670_v10 }
 0x144   :  { %1987 = vmatmul.bf16.gmra.mxu3 %v10672_v11 }
 0x146   :  { %v1261_v59 = vpop.f32.mrf.mxu2  ;;  %v989_v50 = vpop.f32.mrf.mxu0 }
 0x147   :  { %v1350_v29 = vpop.f32.mrf.mxu3  ;;  %v1262_v31 = vadd.f32 %v1261_v59, %v1077_v58  ;;  %v1078_v54 = vpop.f32.mrf.mxu1 }
 0x148   :  { %v1079_v51 = vadd.f32 %v1078_v54, %v989_v50 }
 0x149   :  { %v11318_v12 = vadd.f32 %v1350_v29, %v1262_v31 }
 0x14e   :  { %v1263_v7 = vpop.f32.mrf.mxu2  ;;  %v992_v21 = vpop.f32.mrf.mxu0 }
 0x14f   :  { %v1352_v36 = vpop.f32.mrf.mxu3  ;;  %v1264_v19 = vadd.f32 %v1263_v7, %v1079_v51  ;;  %v1081_v41 = vpop.f32.mrf.mxu1 }
 0x150   :  { %v1082_v15 = vadd.f32 %v1081_v41, %v992_v21 }
 0x151   :  { %v11320_v47 = vadd.f32 %v1352_v36, %v1264_v19  ;;  %1532 = vmatmul.bf16.gmra.mxu0 %v10798_v57 }
 0x152   :  { %1621 = vmatmul.bf16.gmra.mxu1 %v10802_v62 }
 0x153   :  { %1903 = vmatmul.bf16.gmra.mxu2 %v10704_v32 }
 0x154   :  { %1992 = vmatmul.bf16.gmra.mxu3 %v10706_v33 }
 0x156   :  { %v1266_v18 = vpop.f32.mrf.mxu2  ;;  %v994_v29 = vpop.f32.mrf.mxu0 }
 0x157   :  { %v1355_v58 = vpop.f32.mrf.mxu3  ;;  %v1267_v59 = vadd.f32 %v1266_v18, %v1082_v15  ;;  %v1083_v31 = vpop.f32.mrf.mxu1 }
 0x158   :  { %v1084_v50 = vadd.f32 %v1083_v31, %v994_v29 }
 0x159   :  { %v11326_v54 = vadd.f32 %v1355_v58, %v1267_v59 }
 0x15e   :  { %v1268_v51 = vpop.f32.mrf.mxu2  ;;  %v997_v19 = vpop.f32.mrf.mxu0 }
 0x15f   :  { %v1357_v7 = vpop.f32.mrf.mxu3  ;;  %v1269_v36 = vadd.f32 %v1268_v51, %v1084_v50  ;;  %v1086_v21 = vpop.f32.mrf.mxu1 }
 0x160   :  { %v1087_v57 = vadd.f32 %v1086_v21, %v997_v19 }
 0x161   :  { %v11328_v41 = vadd.f32 %v1357_v7, %v1269_v36  ;;  %1537 = vmatmul.bf16.gmra.mxu0 %v10832_v52 }
 0x162   :  { %1626 = vmatmul.bf16.gmra.mxu1 %v10836_v53 }
 0x163   :  { %1908 = vmatmul.bf16.gmra.mxu2 %v10736_v60 }
 0x164   :  { %1997 = vmatmul.bf16.gmra.mxu3 %v10738_v61 }
 0x166   :  { %v1271_v62 = vpop.f32.mrf.mxu2  ;;  %v999_v58 = vpop.f32.mrf.mxu0 }
 0x167   :  { %v1360_v15 = vpop.f32.mrf.mxu3  ;;  %v1272_v18 = vadd.f32 %v1271_v62, %v1087_v57  ;;  %v1088_v59 = vpop.f32.mrf.mxu1 }
 0x168   :  { %v1089_v29 = vadd.f32 %v1088_v59, %v999_v58 }
 0x169   :  { %v11334_v31 = vadd.f32 %v1360_v15, %v1272_v18 }
 0x16e   :  { %v1273_v50 = vpop.f32.mrf.mxu2  ;;  %v1002_v36 = vpop.f32.mrf.mxu0 }
 0x16f   :  { %v1362_v51 = vpop.f32.mrf.mxu3  ;;  %v1274_v7 = vadd.f32 %v1273_v50, %v1089_v29  ;;  %v1091_v19 = vpop.f32.mrf.mxu1 }
 0x170   :  { %v1092_v52 = vadd.f32 %v1091_v19, %v1002_v36 }
 0x171   :  { %v11336_v21 = vadd.f32 %v1362_v51, %v1274_v7  ;;  %1542 = vmatmul.bf16.gmra.mxu0 %v10866_v14 }
 0x172   :  { %1631 = vmatmul.bf16.gmra.mxu1 %v10870_v13 }
 0x173   :  { %1913 = vmatmul.bf16.gmra.mxu2 %v10770_v20 }
 0x174   :  { %2002 = vmatmul.bf16.gmra.mxu3 %v10772_v22 }
 0x176   :  { %v1276_v53 = vpop.f32.mrf.mxu2  ;;  %v1004_v15 = vpop.f32.mrf.mxu0 }
 0x177   :  { %v1365_v57 = vpop.f32.mrf.mxu3  ;;  %v1277_v62 = vadd.f32 %v1276_v53, %v1092_v52  ;;  %v1093_v18 = vpop.f32.mrf.mxu1 }
 0x178   :  { %v1094_v58 = vadd.f32 %v1093_v18, %v1004_v15 }
 0x179   :  { %v11342_v59 = vadd.f32 %v1365_v57, %v1277_v62 }
 0x17e   :  { %v1278_v29 = vpop.f32.mrf.mxu2  ;;  %v1007_v7 = vpop.f32.mrf.mxu0 }
 0x17f   :  { %v1367_v50 = vpop.f32.mrf.mxu3  ;;  %v1279_v51 = vadd.f32 %v1278_v29, %v1094_v58  ;;  %v1096_v36 = vpop.f32.mrf.mxu1 }
 0x180   :  { %v1097_v14 = vadd.f32 %v1096_v36, %v1007_v7 }
 0x181   :  { %v11344_v19 = vadd.f32 %v1367_v50, %v1279_v51  ;;  %1547 = vmatmul.bf16.gmra.mxu0 %v10900_v8 }
 0x182   :  { %1636 = vmatmul.bf16.gmra.mxu1 %v10904_v34 }
 0x183   :  { %1918 = vmatmul.bf16.gmra.mxu2 %v10804_v63 }
 0x184   :  { %2007 = vmatmul.bf16.gmra.mxu3 %v10806_v3 }
 0x186   :  { %v1281_v13 = vpop.f32.mrf.mxu2  ;;  %v1009_v57 = vpop.f32.mrf.mxu0 }
 0x187   :  { %v1370_v52 = vpop.f32.mrf.mxu3  ;;  %v1282_v53 = vadd.f32 %v1281_v13, %v1097_v14  ;;  %v1098_v62 = vpop.f32.mrf.mxu1 }
 0x188   :  { %v1099_v15 = vadd.f32 %v1098_v62, %v1009_v57 }
 0x189   :  { %v11350_v18 = vadd.f32 %v1370_v52, %v1282_v53 }
 0x18e   :  { %v1283_v58 = vpop.f32.mrf.mxu2  ;;  %v1012_v51 = vpop.f32.mrf.mxu0 }
 0x18f   :  { %v1372_v29 = vpop.f32.mrf.mxu3  ;;  %v1284_v50 = vadd.f32 %v1283_v58, %v1099_v15  ;;  %v1101_v7 = vpop.f32.mrf.mxu1 }
 0x190   :  { %v1102_v8 = vadd.f32 %v1101_v7, %v1012_v51 }
 0x191   :  { %v11352_v36 = vadd.f32 %v1372_v29, %v1284_v50  ;;  %1552 = vmatmul.bf16.gmra.mxu0 %v10934_v25 }
 0x192   :  { %1641 = vmatmul.bf16.gmra.mxu1 %v10938_v38 }
 0x193   :  { %1923 = vmatmul.bf16.gmra.mxu2 %v10838_v55 }
 0x194   :  { %2012 = vmatmul.bf16.gmra.mxu3 %v10840_v5 }
 0x196   :  { %v1286_v34 = vpop.f32.mrf.mxu2  ;;  %v1014_v52 = vpop.f32.mrf.mxu0 }
 0x197   :  { %v1375_v14 = vpop.f32.mrf.mxu3  ;;  %v1287_v13 = vadd.f32 %v1286_v34, %v1102_v8  ;;  %v1103_v53 = vpop.f32.mrf.mxu1 }
 0x198   :  { %v1104_v57 = vadd.f32 %v1103_v53, %v1014_v52 }
 0x199   :  { %v11358_v62 = vadd.f32 %v1375_v14, %v1287_v13 }
 0x19e   :  { %v1288_v15 = vpop.f32.mrf.mxu2  ;;  %v1518_v50 = vpop.f32.mrf.mxu0 }
 0x19f   :  { %v1377_v58 = vpop.f32.mrf.mxu3  ;;  %v1289_v29 = vadd.f32 %v1288_v15, %v1104_v57  ;;  %v1607_v51 = vpop.f32.mrf.mxu1  ;;  %v14906_v15 = vld [vmem:[#allocation13_spill] sm:$0xff] }
 0x1a0   :  { %v1608_v25 = vadd.f32 %v1607_v51, %v1518_v50 }
 0x1a1   :  { %v11360_v7 = vadd.f32 %v1377_v58, %v1289_v29  ;;  %1557 = vmatmul.bf16.gmra.mxu0 %v10972_v6 }
 0x1a2   :  { %v1687_v38 = vadd.f32 %v1608_v25, %v10962_v16  ;;  %1646 = vmatmul.bf16.gmra.mxu1 %v10976_v45 }
 0x1a3   :  { %1928 = vmatmul.bf16.gmra.mxu2 %v10872_v24 }
 0x1a4   :  { %2017 = vmatmul.bf16.gmra.mxu3 %v10874_v26 }
 0x1a6   :  { %v1889_v8 = vpop.f32.mrf.mxu2  ;;  %v1520_v13 = vpop.f32.mrf.mxu0 }
 0x1a7   :  { %v1978_v34 = vpop.f32.mrf.mxu3  ;;  %v1609_v52 = vpop.f32.mrf.mxu1 }
 0x1a8   :  { %v1979_v14 = vadd.f32 %v1978_v34, %v1889_v8  ;;  %v1610_v53 = vadd.f32 %v1609_v52, %v1520_v13  ;;  %v14909_v8 = vld [vmem:[#allocation7_spill] sm:$0xff] }
 0x1aa   :  { %v11367_v57 = vadd.f32 %v1979_v14, %v1687_v38  ;;  %v1688_v58 = vadd.f32 %v1610_v53, %v14906_v15  ;;  %v14910_v38 = vld [vmem:[#allocation8_spill] sm:$0xff] }
 0x1ae   :  { %v1891_v29 = vpop.f32.mrf.mxu2  ;;  %v1523_v6 = vpop.f32.mrf.mxu0 }
 0x1af   :  { %v1980_v16 = vpop.f32.mrf.mxu3  ;;  %v1612_v51 = vpop.f32.mrf.mxu1 }
 0x1b0   :  { %v1981_v50 = vadd.f32 %v1980_v16, %v1891_v29  ;;  %v1613_v45 = vadd.f32 %v1612_v51, %v1523_v6 }
 0x1b1   :  { %1562 = vmatmul.bf16.gmra.mxu0 %v11008_v39 }
 0x1b2   :  { %v11370_v25 = vadd.f32 %v1981_v50, %v1688_v58  ;;  %v1689_v27 = vadd.f32 %v1613_v45, %v14908_v30  ;;  %1651 = vmatmul.bf16.gmra.mxu1 %v11012_v1  ;;  %v14912_v58 = vld [vmem:[#allocation17_spill] sm:$0xff] }
 0x1b3   :  { %1933 = vmatmul.bf16.gmra.mxu2 %v14909_v8 }
 0x1b4   :  { %14907 = vst [vmem:[#allocation13_spill] sm:$0xff] %v11370_v25  ;;  %2022 = vmatmul.bf16.gmra.mxu3 %v14910_v38 }
 0x1b6   :  { %v1894_v34 = vpop.f32.mrf.mxu2  ;;  %v1525_v52 = vpop.f32.mrf.mxu0 }
 0x1b7   :  { %v1983_v14 = vpop.f32.mrf.mxu3  ;;  %v1614_v53 = vpop.f32.mrf.mxu1 }
 0x1b8   :  { %v1984_v13 = vadd.f32 %v1983_v14, %v1894_v34  ;;  %v1615_v15 = vadd.f32 %v1614_v53, %v1525_v52  ;;  %v14915_v34 = vld [vmem:[#allocation20_spill] sm:$0xff]  ;;  %v14916_v14 = vld [vmem:[#allocation9_spill] sm:$0xff] }
 0x1b9   :  { %v9982_v52 = vld [vmem:[%s14700_s1 + $0x278] sm:$0xff] }
 0x1ba   :  { %v11377_v29 = vadd.f32 %v1984_v13, %v1689_v27  ;;  %v1690_v16 = vadd.f32 %v1615_v15, %v14912_v58  ;;  %v14917_v27 = vld [vmem:[#allocation10_spill] sm:$0xff]  ;;  %v9974_v13 = vld [vmem:[%s14700_s1 + $0x238] sm:$0xff]  ;;  %2310 = vmatpush.bf16.msra.mxu1 %v9982_v52 }
 0x1bb   :  { %2221 = vmatpush.bf16.msra.mxu0 %v9974_v13  ;;  %v14921_v13 = vld [vmem:[#allocation23_spill] sm:$0xff] }
 0x1bc   :  { %14911 = vst [vmem:[#allocation14_spill] sm:$0xff] %v11377_v29 }
 0x1be   :  { %v1896_v50 = vpop.f32.mrf.mxu2  ;;  %v1528_v39 = vpop.f32.mrf.mxu0 }
 0x1bf   :  { %v1985_v30 = vpop.f32.mrf.mxu3  ;;  %v1617_v51 = vpop.f32.mrf.mxu1 }
 0x1c0   :  { %v1986_v6 = vadd.f32 %v1985_v30, %v1896_v50  ;;  %v1618_v1 = vadd.f32 %v1617_v51, %v1528_v39  ;;  %v14919_v30 = vld [vmem:[#allocation22_spill] sm:$0xff] }
 0x1c1   :  { %1567 = vmatmul.bf16.gmra.mxu0 %v11054_v17 }
 0x1c2   :  { %v11380_v45 = vadd.f32 %v1986_v6, %v1690_v16  ;;  %v1691_v25 = vadd.f32 %v1618_v1, %v14914_v35  ;;  %1656 = vmatmul.bf16.gmra.mxu1 %v14915_v34 }
 0x1c3   :  { %1938 = vmatmul.bf16.gmra.mxu2 %v14916_v14  ;;  %v14922_v14 = vld [vmem:[#allocation24_spill] sm:$0xff] }
 0x1c4   :  { %14913 = vst [vmem:[#allocation17_spill] sm:$0xff] %v11380_v45  ;;  %2027 = vmatmul.bf16.gmra.mxu3 %v14917_v27 }
 0x1c6   :  { %v1899_v53 = vpop.f32.mrf.mxu2  ;;  %v1530_v17 = vpop.f32.mrf.mxu0 }
 0x1c7   :  { %v1988_v35 = vpop.f32.mrf.mxu3  ;;  %v1619_v58 = vpop.f32.mrf.mxu1 }
 0x1c8   :  { %v1989_v15 = vadd.f32 %v1988_v35, %v1899_v53  ;;  %v1620_v16 = vadd.f32 %v1619_v58, %v1530_v17  ;;  %v14923_v53 = vld [vmem:[#allocation25_spill] sm:$0xff]  ;;  %v14924_v35 = vld [vmem:[#allocation11_spill] sm:$0xff] }
 0x1ca   :  { %v11393_v50 = vadd.f32 %v1989_v15, %v1691_v25  ;;  %v1692_v6 = vadd.f32 %v1620_v16, %v14919_v30  ;;  %v14925_v25 = vld [vmem:[#allocation12_spill] sm:$0xff] }
 0x1cc   :  { %14918 = vst [vmem:[#allocation18_spill] sm:$0xff] %v11393_v50  ;;  %v14928_v50 = vld [vmem:[#allocation29_spill] sm:$0xff] }
 0x1ce   :  { %v1901_v39 = vpop.f32.mrf.mxu2  ;;  %v1533_v34 = vpop.f32.mrf.mxu0 }
 0x1cf   :  { %v1990_v51 = vpop.f32.mrf.mxu3  ;;  %v1622_v45 = vpop.f32.mrf.mxu1 }
 0x1d0   :  { %v1991_v1 = vadd.f32 %v1990_v51, %v1901_v39  ;;  %v1623_v29 = vadd.f32 %v1622_v45, %v1533_v34  ;;  %v14926_v45 = vld [vmem:[#allocation28_spill] sm:$0xff] }
 0x1d1   :  { %1572 = vmatmul.bf16.gmra.mxu0 %v14922_v14 }
 0x1d2   :  { %v11396_v27 = vadd.f32 %v1991_v1, %v1692_v6  ;;  %v1693_v52 = vadd.f32 %v1623_v29, %v14921_v13  ;;  %1661 = vmatmul.bf16.gmra.mxu1 %v14923_v53 }
 0x1d3   :  { %1943 = vmatmul.bf16.gmra.mxu2 %v14924_v35  ;;  %v14929_v35 = vld [vmem:[#allocation31_spill] sm:$0xff] }
 0x1d4   :  { %14920 = vst [vmem:[#allocation20_spill] sm:$0xff] %v11396_v27  ;;  %2032 = vmatmul.bf16.gmra.mxu3 %v14925_v25 }
 0x1d6   :  { %v1904_v15 = vpop.f32.mrf.mxu2  ;;  %v1535_v16 = vpop.f32.mrf.mxu0 }
 0x1d7   :  { %v1993_v17 = vpop.f32.mrf.mxu3  ;;  %v1624_v30 = vpop.f32.mrf.mxu1 }
 0x1d8   :  { %v1994_v58 = vadd.f32 %v1993_v17, %v1904_v15  ;;  %v1625_v39 = vadd.f32 %v1624_v30, %v1535_v16  ;;  %v14930_v15 = vld [vmem:[#allocation32_spill] sm:$0xff] }
 0x1d9   :  { %v9998_v17 = vld [vmem:[%s14700_s1 + $0x3f8] sm:$0xff] }
 0x1da   :  { %v11403_v51 = vadd.f32 %v1994_v58, %v1693_v52  ;;  %v1694_v6 = vadd.f32 %v1625_v39, %v14926_v45  ;;  %v9990_v52 = vld [vmem:[%s14700_s1 + $0x3b8] sm:$0xff]  ;;  %v14931_v58 = vld [vmem:[#allocation15_spill] sm:$0xff]  ;;  %2651 = vmatpush.bf16.msra.mxu3 %v9998_v17  ;;  %v9980_v17 = vld [vmem:[%s14700_s1 + $0x268] sm:$0xff] }
 0x1db   :  { %v14932_v16 = vld [vmem:[#allocation16_spill] sm:$0xff]  ;;  %2562 = vmatpush.bf16.msra.mxu2 %v9990_v52  ;;  %v9989_v45 = vld [vmem:[%s14700_s1 + $0x3b0] sm:$0xff]  ;;  %v9972_v52 = vld [vmem:[%s14700_s1 + $0x228] sm:$0xff] }
 0x1de   :  { %v1906_v1 = vpop.f32.mrf.mxu2  ;;  %v1538_v14 = vpop.f32.mrf.mxu0 }
 0x1df   :  { %v1995_v29 = vpop.f32.mrf.mxu3  ;;  %v1627_v13 = vpop.f32.mrf.mxu1  ;;  %2563 = vmatpush.bf16.msra.mxu2 %v9989_v45  ;;  %v9979_v45 = vld [vmem:[%s14700_s1 + $0x260] sm:$0xff] }
 0x1e0   :  { %v1996_v34 = vadd.f32 %v1995_v29, %v1906_v1  ;;  %v1628_v53 = vadd.f32 %v1627_v13, %v1538_v14 }
 0x1e1   :  { %1577 = vmatmul.bf16.gmra.mxu0 %v14929_v35  ;;  %v9981_v35 = vld [vmem:[%s14700_s1 + $0x270] sm:$0xff] }
 0x1e2   :  { %v11406_v27 = vadd.f32 %v1996_v34, %v1694_v6  ;;  %v1695_v25 = vadd.f32 %v1628_v53, %v14928_v50  ;;  %1666 = vmatmul.bf16.gmra.mxu1 %v14930_v15  ;;  %v9973_v50 = vld [vmem:[%s14700_s1 + $0x230] sm:$0xff]  ;;  %v14934_v53 = vld [vmem:[#allocation34_spill] sm:$0xff] }
 0x1e3   :  { %1948 = vmatmul.bf16.gmra.mxu2 %v14931_v58  ;;  %2222 = vmatpush.bf16.msra.mxu0 %v9973_v50  ;;  %v9997_v6 = vld [vmem:[%s14700_s1 + $0x3f0] sm:$0xff]  ;;  %v9988_v50 = vld [vmem:[%s14700_s1 + $0x3a8] sm:$0xff] }
 0x1e4   :  { %14927 = vst [vmem:[#allocation22_spill] sm:$0xff] %v11406_v27  ;;  %2037 = vmatmul.bf16.gmra.mxu3 %v14932_v16  ;;  %2311 = vmatpush.bf16.msra.mxu1 %v9981_v35  ;;  %v9996_v35 = vld [vmem:[%s14700_s1 + $0x3e8] sm:$0xff] }
 0x1e5   :  { %2652 = vmatpush.bf16.msra.mxu3 %v9997_v6  ;;  %2564 = vmatpush.bf16.msra.mxu2 %v9988_v50  ;;  %v9987_v6 = vld [vmem:[%s14700_s1 + $0x3a0] sm:$0xff] }
 0x1e6   :  { %v1909_v30 = vpop.f32.mrf.mxu2  ;;  %v1540_v29 = vpop.f32.mrf.mxu0 }
 0x1e7   :  { %v1998_v39 = vpop.f32.mrf.mxu3  ;;  %v1629_v34 = vpop.f32.mrf.mxu1  ;;  %2223 = vmatpush.bf16.msra.mxu0 %v9972_v52 }
 0x1e8   :  { %v1999_v1 = vadd.f32 %v1998_v39, %v1909_v30  ;;  %v1630_v14 = vadd.f32 %v1629_v34, %v1540_v29  ;;  %2312 = vmatpush.bf16.msra.mxu1 %v9980_v17  ;;  %v9971_v39 = vld [vmem:[%s14700_s1 + $0x220] sm:$0xff]  ;;  %v14936_v17 = vld [vmem:[#allocation35_spill] sm:$0xff] }
 0x1e9   :  { %2653 = vmatpush.bf16.msra.mxu3 %v9996_v35  ;;  %2565 = vmatpush.bf16.msra.mxu2 %v9987_v6  ;;  %v9970_v35 = vld [vmem:[%s14700_s1 + $0x218] sm:$0xff]  ;;  %v9969_v6 = vld [vmem:[%s14700_s1 + $0x210] sm:$0xff] }
 0x1ea   :  { %v11431_v13 = vadd.f32 %v1999_v1, %v1695_v25  ;;  %v1696_v15 = vadd.f32 %v1630_v14, %v14934_v53  ;;  %v9995_v14 = vld [vmem:[%s14700_s1 + $0x3e0] sm:$0xff] }
 0x1eb   :  { %2224 = vmatpush.bf16.msra.mxu0 %v9971_v39  ;;  %v14938_v39 = vld [vmem:[#allocation21_spill] sm:$0xff] }
 0x1ec   :  { %14933 = vst [vmem:[#allocation23_spill] sm:$0xff] %v11431_v13  ;;  %2313 = vmatpush.bf16.msra.mxu1 %v9979_v45 }
 0x1ed   :  { %2654 = vmatpush.bf16.msra.mxu3 %v9995_v14 }
 0x1ee   :  { %v1911_v25 = vpop.f32.mrf.mxu2  ;;  %v1543_v29 = vpop.f32.mrf.mxu0 }
 0x1ef   :  { %v2000_v30 = vpop.f32.mrf.mxu3  ;;  %v1632_v34 = vpop.f32.mrf.mxu1  ;;  %2225 = vmatpush.bf16.msra.mxu0 %v9970_v35 }
 0x1f0   :  { %v2001_v1 = vadd.f32 %v2000_v30, %v1911_v25  ;;  %v1633_v53 = vadd.f32 %v1632_v34, %v1543_v29  ;;  %v9978_v25 = vld [vmem:[%s14700_s1 + $0x258] sm:$0xff]  ;;  %v14937_v30 = vld [vmem:[#allocation19_spill] sm:$0xff] }
 0x1f1   :  { %1582 = vmatmul.bf16.gmra.mxu0 %v11238_v9  ;;  %2314 = vmatpush.bf16.msra.mxu1 %v9978_v25  ;;  %v9985_v29 = vld [vmem:[%s14700_s1 + $0x390] sm:$0xff] }
 0x1f2   :  { %v11458_v52 = vadd.f32 %v2001_v1, %v1696_v15  ;;  %v1697_v50 = vadd.f32 %v1633_v53, %v14936_v17  ;;  %1671 = vmatmul.bf16.gmra.mxu1 %v11251_v49  ;;  %v9986_v15 = vld [vmem:[%s14700_s1 + $0x398] sm:$0xff]  ;;  %v9977_v1 = vld [vmem:[%s14700_s1 + $0x250] sm:$0xff] }
 0x1f3   :  { %1953 = vmatmul.bf16.gmra.mxu2 %v14937_v30  ;;  %v9994_v49 = vld [vmem:[%s14700_s1 + $0x3d8] sm:$0xff]  ;;  %v9993_v17 = vld [vmem:[%s14700_s1 + $0x3d0] sm:$0xff]  ;;  %2226 = vmatpush.bf16.msra.mxu0 %v9969_v6 }
 0x1f4   :  { %14935 = vst [vmem:[#allocation24_spill] sm:$0xff] %v11458_v52  ;;  %2042 = vmatmul.bf16.gmra.mxu3 %v14938_v39  ;;  %2566 = vmatpush.bf16.msra.mxu2 %v9986_v15  ;;  %v14940_v15 = vld [vmem:[#allocation38_spill] sm:$0xff]  ;;  %v8051_v6 = vld [vmem:[#allocation2 + $0x110] sm:$0xf] }
 0x1f5   :  { %2655 = vmatpush.bf16.msra.mxu3 %v9994_v49  ;;  %2315 = vmatpush.bf16.msra.mxu1 %v9977_v1  ;;  %v9968_v52 = vld [vmem:[%s14700_s1 + $0x208] sm:$0xff]  ;;  %v9902_v1 = vld [vmem:[#allocation2 + $0x114] sm:$0xf0] }
 0x1f6   :  { %v1914_v9 = vpop.f32.mrf.mxu2  ;;  %v1545_v14 = vpop.f32.mrf.mxu0 }
 0x1f7   :  { %v2003_v45 = vpop.f32.mrf.mxu3  ;;  %v1634_v53 = vpop.f32.mrf.mxu1  ;;  %2227 = vmatpush.bf16.msra.mxu0 %v9968_v52 }
 0x1f8   :  { %v2004_v34 = vadd.f32 %v2003_v45, %v1914_v9  ;;  %v1635_v35 = vadd.f32 %v1634_v53, %v1545_v14  ;;  %2567 = vmatpush.bf16.msra.mxu2 %v9985_v29  ;;  %v9976_v9 = vld [vmem:[%s14700_s1 + $0x248] sm:$0xff]  ;;  %v9901_v29 = vld [vmem:[#allocation2 + $0x114] sm:$0xf] }
 0x1f9   :  { %2656 = vmatpush.bf16.msra.mxu3 %v9993_v17  ;;  %v9984_v45 = vld [vmem:[%s14700_s1 + $0x388] sm:$0xff]  ;;  %2316 = vmatpush.bf16.msra.mxu1 %v9976_v9  ;;  %v11504_v17 = vor.u32 %v9902_v1, %v8051_v6  ;;  %v9991_v6 = vld [vmem:[%s14700_s1 + $0x3c0] sm:$0xff] }
 0x1fa   :  { %v11489_v25 = vadd.f32 %v2004_v34, %v1697_v50  ;;  %v1698_v49 = vadd.f32 %v1635_v35, %v14940_v15  ;;  %v9992_v50 = vld [vmem:[%s14700_s1 + $0x3c8] sm:$0xff]  ;;  %v8053_v34 = vld [vmem:[#allocation2 + $0x118] sm:$0xf0] }
 0x1fb   :  { %14941 = vst [vmem:[#allocation28_spill] sm:$0xff] %v11504_v17  ;;  %v9967_v35 = vld [vmem:[%s14700_s1 + $0x200] sm:$0xff] }
 0x1fc   :  { %14939 = vst [vmem:[#allocation25_spill] sm:$0xff] %v11489_v25  ;;  %2568 = vmatpush.bf16.msra.mxu2 %v9984_v45  ;;  %v9975_v15 = vld [vmem:[%s14700_s1 + $0x240] sm:$0xff]  ;;  %2228 = vmatpush.bf16.msra.mxu0 %v9967_v35 }
 0x1fd   :  { %2657 = vmatpush.bf16.msra.mxu3 %v9992_v50  ;;  %v9983_v25 = vld [vmem:[%s14700_s1 + $0x380] sm:$0xff]  ;;  %v11515_v50 = vor.u32 %v9901_v29, %v8053_v34  ;;  %2317 = vmatpush.bf16.msra.mxu1 %v9975_v15  ;;  %v14817_v29 = vshrl.u32 %v11504_v17, 16  ;;  %v14944_v34 = vld [vmem:[#allocation26_spill] sm:$0xff] }
 0x1fe   :  { %v1916_v14 = vpop.f32.mrf.mxu2  ;;  %v1548_v9 = vpop.f32.mrf.mxu0 }
 0x1ff   :  { %v2005_v53 = vpop.f32.mrf.mxu3  ;;  %v1637_v45 = vpop.f32.mrf.mxu1  ;;  %14942 = vst [vmem:[#allocation29_spill] sm:$0xff] %v11515_v50 }
 0x200   :  { %v2006_v52 = vadd.f32 %v2005_v53, %v1916_v14  ;;  %v1638_v1 = vadd.f32 %v1637_v45, %v1548_v9  ;;  %2569 = vmatpush.bf16.msra.mxu2 %v9983_v25  ;;  %v14945_v14 = vld [vmem:[#allocation27_spill] sm:$0xff]  ;;  %v14818_v53 = vshrl.u32 %v11515_v50, 16  ;;  %v534_v25 = vrot.slane %v14817_v29, 7 }
 0x201   :  { %2658 = vmatpush.bf16.msra.mxu3 %v9991_v6  ;;  %1587 = vmatmul.bf16.gmra.mxu0 %v11282_v46  ;;  %v14820_v46 = vshll.u32 %v11504_v17, 16  ;;  %v14819_v9 = vshll.u32 %v11515_v50, 16 }
 0x202   :  { %v11520_v13 = vadd.f32 %v2006_v52, %v1698_v49  ;;  %v1699_v27 = vadd.f32 %v1638_v1, %v11274_v48  ;;  %1676 = vmatmul.bf16.gmra.mxu1 %v11286_v42  ;;  %v541_v42 = vrot.slane %v14818_v53, 7 }
 0x203   :  { %1958 = vmatmul.bf16.gmra.mxu2 %v14944_v34 }
 0x204   :  { %14943 = vst [vmem:[#allocation31_spill] sm:$0xff] %v11520_v13  ;;  %2047 = vmatmul.bf16.gmra.mxu3 %v14945_v14  ;;  %v537_v13 = vor.u32 %v14820_v46, %v534_v25  ;;  %v14946_v25 = vld [vmem:[#allocation30_spill] sm:$0xff] }
 0x206   :  { %v1919_v35 = vpop.f32.mrf.mxu2  ;;  %v1550_v52 = vpop.f32.mrf.mxu0  ;;  %v618_v53 = vsel %vm10656_vm2, 0, %v537_v13 }
 0x207   :  { %v2008_v15 = vpop.f32.mrf.mxu3  ;;  %v1639_v48 = vpop.f32.mrf.mxu1 }
 0x208   :  { %v2009_v49 = vadd.f32 %v2008_v15, %v1919_v35  ;;  %v1640_v45 = vadd.f32 %v1639_v48, %v1550_v52  ;;  %v544_v35 = vor.u32 %v14819_v9, %v541_v42  ;;  %v14947_v48 = vld [vmem:[#allocation33_spill] sm:$0xff] }
 0x20a   :  { %v11535_v6 = vadd.f32 %v2009_v49, %v1699_v27  ;;  %v1700_v1 = vadd.f32 %v1640_v45, %v11288_v28  ;;  %v619_v27 = vsel %vm10656_vm2, 0, %v544_v35 }
 0x20e   :  { %v1921_v15 = vpop.f32.mrf.mxu2  ;;  %v1553_v34 = vpop.f32.mrf.mxu0 }
 0x20f   :  { %v2010_v29 = vpop.f32.mrf.mxu3  ;;  %v1642_v39 = vpop.f32.mrf.mxu1 }
 0x210   :  { %v2011_v14 = vadd.f32 %v2010_v29, %v1921_v15  ;;  %v1643_v49 = vadd.f32 %v1642_v39, %v1553_v34 }
 0x211   :  { %1592 = vmatmul.bf16.gmra.mxu0 %v618_v53 }
 0x212   :  { %v11546_v52 = vadd.f32 %v2011_v14, %v1700_v1  ;;  %v1701_v28 = vadd.f32 %v1643_v49, %v11294_v23  ;;  %1681 = vmatmul.bf16.gmra.mxu1 %v619_v27 }
 0x213   :  { %1963 = vmatmul.bf16.gmra.mxu2 %v14946_v25 }
 0x214   :  { %2052 = vmatmul.bf16.gmra.mxu3 %v14947_v48 }
 0x216   :  { %v1924_v29 = vpop.f32.mrf.mxu2  ;;  %v1555_v15 = vpop.f32.mrf.mxu0 }
 0x217   :  { %v2013_v42 = vpop.f32.mrf.mxu3  ;;  %v1644_v9 = vpop.f32.mrf.mxu1 }
 0x218   :  { %v2014_v45 = vadd.f32 %v2013_v42, %v1924_v29  ;;  %v1645_v13 = vadd.f32 %v1644_v9, %v1555_v15 }
 0x21a   :  { %v11551_v46 = vadd.f32 %v2014_v45, %v1701_v28  ;;  %v1702_v39 = vadd.f32 %v1645_v13, %v11296_v4 }
 0x21e   :  { %v1926_v34 = vpop.f32.mrf.mxu2  ;;  %v1558_v23 = vpop.f32.mrf.mxu0 }
 0x21f   :  { %v2015_v14 = vpop.f32.mrf.mxu3  ;;  %v1647_v53 = vpop.f32.mrf.mxu1 }
 0x220   :  { %v2016_v1 = vadd.f32 %v2015_v14, %v1926_v34  ;;  %v1648_v35 = vadd.f32 %v1647_v53, %v1558_v23 }
 0x221   :  { %2229 = vmatmul.bf16.vlgmr.msra.gmra.mxu0 %v10610_v43 }
 0x222   :  { %v11554_v27 = vadd.f32 %v2016_v1, %v1702_v39  ;;  %v1703_v49 = vadd.f32 %v1648_v35, %v11302_v40  ;;  %2318 = vmatmul.bf16.vlgmr.msra.gmra.mxu1 %v10612_v44 }
 0x223   :  { %2570 = vmatmul.bf16.vlgmr.msra.gmra.mxu2 %v10670_v10 }
 0x224   :  { %2659 = vmatmul.bf16.vlgmr.msra.gmra.mxu3 %v10672_v11 }
 0x226   :  { %v1929_v9 = vpop.f32.mrf.mxu2  ;;  %v1560_v29 = vpop.f32.mrf.mxu0 }
 0x227   :  { %v2018_v4 = vpop.f32.mrf.mxu3  ;;  %v1649_v42 = vpop.f32.mrf.mxu1 }
 0x228   :  { %v2019_v28 = vadd.f32 %v2018_v4, %v1929_v9  ;;  %v1650_v45 = vadd.f32 %v1649_v42, %v1560_v29 }
 0x22a   :  { %v11561_v15 = vadd.f32 %v2019_v28, %v1703_v49  ;;  %v1704_v13 = vadd.f32 %v1650_v45, %v11304_v56 }
 0x22e   :  { %v1931_v39 = vpop.f32.mrf.mxu2  ;;  %v1563_v14 = vpop.f32.mrf.mxu0 }
 0x22f   :  { %v2020_v40 = vpop.f32.mrf.mxu3  ;;  %v1652_v1 = vpop.f32.mrf.mxu1 }
 0x230   :  { %v2021_v34 = vadd.f32 %v2020_v40, %v1931_v39  ;;  %v1653_v23 = vadd.f32 %v1652_v1, %v1563_v14 }
 0x231   :  { %2234 = vmatmul.bf16.gmra.mxu0 %v10670_v10 }
 0x232   :  { %v11564_v53 = vadd.f32 %v2021_v34, %v1704_v13  ;;  %v1705_v35 = vadd.f32 %v1653_v23, %v11310_v2  ;;  %2323 = vmatmul.bf16.gmra.mxu1 %v10672_v11 }
 0x233   :  { %2575 = vmatmul.bf16.gmra.mxu2 %v10704_v32 }
 0x234   :  { %2664 = vmatmul.bf16.gmra.mxu3 %v10706_v33 }
 0x236   :  { %v1934_v49 = vpop.f32.mrf.mxu2  ;;  %v1565_v4 = vpop.f32.mrf.mxu0 }
 0x237   :  { %v2023_v56 = vpop.f32.mrf.mxu3  ;;  %v1654_v28 = vpop.f32.mrf.mxu1 }
 0x238   :  { %v2024_v9 = vadd.f32 %v2023_v56, %v1934_v49  ;;  %v1655_v29 = vadd.f32 %v1654_v28, %v1565_v4 }
 0x23a   :  { %v11571_v42 = vadd.f32 %v2024_v9, %v1705_v35  ;;  %v1706_v45 = vadd.f32 %v1655_v29, %v11312_v37 }
 0x23e   :  { %v1936_v13 = vpop.f32.mrf.mxu2  ;;  %v1568_v40 = vpop.f32.mrf.mxu0 }
 0x23f   :  { %v2025_v2 = vpop.f32.mrf.mxu3  ;;  %v1657_v34 = vpop.f32.mrf.mxu1 }
 0x240   :  { %v2026_v39 = vadd.f32 %v2025_v2, %v1936_v13  ;;  %v1658_v14 = vadd.f32 %v1657_v34, %v1568_v40 }
 0x241   :  { %2239 = vmatmul.bf16.gmra.mxu0 %v10704_v32 }
 0x242   :  { %v11574_v1 = vadd.f32 %v2026_v39, %v1706_v45  ;;  %v1707_v23 = vadd.f32 %v1658_v14, %v11318_v12  ;;  %2328 = vmatmul.bf16.gmra.mxu1 %v10706_v33 }
 0x243   :  { %2580 = vmatmul.bf16.gmra.mxu2 %v10736_v60 }
 0x244   :  { %2669 = vmatmul.bf16.gmra.mxu3 %v10738_v61 }
 0x246   :  { %v1939_v35 = vpop.f32.mrf.mxu2  ;;  %v1570_v56 = vpop.f32.mrf.mxu0 }
 0x247   :  { %v2028_v37 = vpop.f32.mrf.mxu3  ;;  %v1659_v9 = vpop.f32.mrf.mxu1 }
 0x248   :  { %v2029_v49 = vadd.f32 %v2028_v37, %v1939_v35  ;;  %v1660_v4 = vadd.f32 %v1659_v9, %v1570_v56 }
 0x24a   :  { %v11581_v28 = vadd.f32 %v2029_v49, %v1707_v23  ;;  %v1708_v29 = vadd.f32 %v1660_v4, %v11320_v47 }
 0x24e   :  { %v1941_v45 = vpop.f32.mrf.mxu2  ;;  %v1573_v2 = vpop.f32.mrf.mxu0 }
 0x24f   :  { %v2030_v12 = vpop.f32.mrf.mxu3  ;;  %v1662_v39 = vpop.f32.mrf.mxu1 }
 0x250   :  { %v2031_v13 = vadd.f32 %v2030_v12, %v1941_v45  ;;  %v1663_v40 = vadd.f32 %v1662_v39, %v1573_v2 }
 0x251   :  { %2244 = vmatmul.bf16.gmra.mxu0 %v10736_v60 }
 0x252   :  { %v11584_v34 = vadd.f32 %v2031_v13, %v1708_v29  ;;  %v1709_v14 = vadd.f32 %v1663_v40, %v11326_v54  ;;  %2333 = vmatmul.bf16.gmra.mxu1 %v10738_v61 }
 0x253   :  { %2585 = vmatmul.bf16.gmra.mxu2 %v10770_v20 }
 0x254   :  { %2674 = vmatmul.bf16.gmra.mxu3 %v10772_v22 }
 0x256   :  { %v1944_v23 = vpop.f32.mrf.mxu2  ;;  %v1575_v37 = vpop.f32.mrf.mxu0 }
 0x257   :  { %v2033_v47 = vpop.f32.mrf.mxu3  ;;  %v1664_v49 = vpop.f32.mrf.mxu1 }
 0x258   :  { %v2034_v35 = vadd.f32 %v2033_v47, %v1944_v23  ;;  %v1665_v56 = vadd.f32 %v1664_v49, %v1575_v37 }
 0x25a   :  { %v11591_v9 = vadd.f32 %v2034_v35, %v1709_v14  ;;  %v1710_v4 = vadd.f32 %v1665_v56, %v11328_v41 }
 0x25e   :  { %v1946_v29 = vpop.f32.mrf.mxu2  ;;  %v1578_v12 = vpop.f32.mrf.mxu0 }
 0x25f   :  { %v2035_v54 = vpop.f32.mrf.mxu3  ;;  %v1667_v13 = vpop.f32.mrf.mxu1 }
 0x260   :  { %v2036_v45 = vadd.f32 %v2035_v54, %v1946_v29  ;;  %v1668_v2 = vadd.f32 %v1667_v13, %v1578_v12 }
 0x261   :  { %2249 = vmatmul.bf16.gmra.mxu0 %v10770_v20 }
 0x262   :  { %v11594_v39 = vadd.f32 %v2036_v45, %v1710_v4  ;;  %v1711_v40 = vadd.f32 %v1668_v2, %v11334_v31  ;;  %2338 = vmatmul.bf16.gmra.mxu1 %v10772_v22 }
 0x263   :  { %2590 = vmatmul.bf16.gmra.mxu2 %v10804_v63 }
 0x264   :  { %2679 = vmatmul.bf16.gmra.mxu3 %v10806_v3 }
 0x266   :  { %v1949_v14 = vpop.f32.mrf.mxu2  ;;  %v1580_v47 = vpop.f32.mrf.mxu0 }
 0x267   :  { %v2038_v41 = vpop.f32.mrf.mxu3  ;;  %v1669_v35 = vpop.f32.mrf.mxu1 }
 0x268   :  { %v2039_v23 = vadd.f32 %v2038_v41, %v1949_v14  ;;  %v1670_v37 = vadd.f32 %v1669_v35, %v1580_v47 }
 0x26a   :  { %v11601_v49 = vadd.f32 %v2039_v23, %v1711_v40  ;;  %v1712_v56 = vadd.f32 %v1670_v37, %v11336_v21 }
 0x26e   :  { %v1951_v4 = vpop.f32.mrf.mxu2  ;;  %v1583_v54 = vpop.f32.mrf.mxu0 }
 0x26f   :  { %v2040_v31 = vpop.f32.mrf.mxu3  ;;  %v1672_v45 = vpop.f32.mrf.mxu1 }
 0x270   :  { %v2041_v29 = vadd.f32 %v2040_v31, %v1951_v4  ;;  %v1673_v12 = vadd.f32 %v1672_v45, %v1583_v54 }
 0x271   :  { %2254 = vmatmul.bf16.gmra.mxu0 %v10804_v63 }
 0x272   :  { %v11604_v13 = vadd.f32 %v2041_v29, %v1712_v56  ;;  %v1713_v2 = vadd.f32 %v1673_v12, %v11342_v59  ;;  %2343 = vmatmul.bf16.gmra.mxu1 %v10806_v3 }
 0x273   :  { %2595 = vmatmul.bf16.gmra.mxu2 %v10838_v55 }
 0x274   :  { %2684 = vmatmul.bf16.gmra.mxu3 %v10840_v5 }
 0x276   :  { %v1954_v40 = vpop.f32.mrf.mxu2  ;;  %v1585_v41 = vpop.f32.mrf.mxu0 }
 0x277   :  { %v2043_v21 = vpop.f32.mrf.mxu3  ;;  %v1674_v23 = vpop.f32.mrf.mxu1 }
 0x278   :  { %v2044_v14 = vadd.f32 %v2043_v21, %v1954_v40  ;;  %v1675_v47 = vadd.f32 %v1674_v23, %v1585_v41 }
 0x27a   :  { %v11611_v35 = vadd.f32 %v2044_v14, %v1713_v2  ;;  %v1714_v37 = vadd.f32 %v1675_v47, %v11344_v19 }
 0x27e   :  { %v1956_v56 = vpop.f32.mrf.mxu2  ;;  %v1588_v31 = vpop.f32.mrf.mxu0 }
 0x27f   :  { %v2045_v59 = vpop.f32.mrf.mxu3  ;;  %v1677_v29 = vpop.f32.mrf.mxu1 }
 0x280   :  { %v2046_v4 = vadd.f32 %v2045_v59, %v1956_v56  ;;  %v1678_v54 = vadd.f32 %v1677_v29, %v1588_v31 }
 0x281   :  { %2259 = vmatmul.bf16.gmra.mxu0 %v10838_v55 }
 0x282   :  { %v11614_v45 = vadd.f32 %v2046_v4, %v1714_v37  ;;  %v1715_v12 = vadd.f32 %v1678_v54, %v11350_v18  ;;  %2348 = vmatmul.bf16.gmra.mxu1 %v10840_v5 }
 0x283   :  { %2600 = vmatmul.bf16.gmra.mxu2 %v10872_v24 }
 0x284   :  { %2689 = vmatmul.bf16.gmra.mxu3 %v10874_v26 }
 0x286   :  { %v1959_v2 = vpop.f32.mrf.mxu2  ;;  %v1590_v21 = vpop.f32.mrf.mxu0 }
 0x287   :  { %v2048_v19 = vpop.f32.mrf.mxu3  ;;  %v1679_v14 = vpop.f32.mrf.mxu1 }
 0x288   :  { %v2049_v40 = vadd.f32 %v2048_v19, %v1959_v2  ;;  %v1680_v41 = vadd.f32 %v1679_v14, %v1590_v21 }
 0x28a   :  { %v11621_v23 = vadd.f32 %v2049_v40, %v1715_v12  ;;  %v1716_v47 = vadd.f32 %v1680_v41, %v11352_v36 }
 0x28e   :  { %v1961_v37 = vpop.f32.mrf.mxu2  ;;  %v1593_v59 = vpop.f32.mrf.mxu0 }
 0x28f   :  { %v2050_v18 = vpop.f32.mrf.mxu3  ;;  %v1682_v4 = vpop.f32.mrf.mxu1 }
 0x290   :  { %v2051_v56 = vadd.f32 %v2050_v18, %v1961_v37  ;;  %v1683_v31 = vadd.f32 %v1682_v4, %v1593_v59 }
 0x291   :  { %2264 = vmatmul.bf16.gmra.mxu0 %v10872_v24 }
 0x292   :  { %v11624_v29 = vadd.f32 %v2051_v56, %v1716_v47  ;;  %v1717_v54 = vadd.f32 %v1683_v31, %v11358_v62  ;;  %2353 = vmatmul.bf16.gmra.mxu1 %v10874_v26 }
 0x293   :  { %2605 = vmatmul.bf16.gmra.mxu2 %v14909_v8 }
 0x294   :  { %2694 = vmatmul.bf16.gmra.mxu3 %v14910_v38 }
 0x296   :  { %v1964_v12 = vpop.f32.mrf.mxu2  ;;  %v1595_v19 = vpop.f32.mrf.mxu0 }
 0x297   :  { %v2053_v36 = vpop.f32.mrf.mxu3  ;;  %v1684_v40 = vpop.f32.mrf.mxu1 }
 0x298   :  { %v2054_v2 = vadd.f32 %v2053_v36, %v1964_v12  ;;  %v1685_v21 = vadd.f32 %v1684_v40, %v1595_v19  ;;  %v14949_v12 = vld [vmem:[#allocation9_spill] sm:$0xff] }
 0x29a   :  { %v11631_v14 = vadd.f32 %v2054_v2, %v1717_v54  ;;  %v1718_v41 = vadd.f32 %v1685_v21, %v11360_v7  ;;  %v14950_v54 = vld [vmem:[#allocation10_spill] sm:$0xff] }
 0x29e   :  { %v1966_v47 = vpop.f32.mrf.mxu2  ;;  %v2230_v18 = vpop.f32.mrf.mxu0 }
 0x29f   :  { %v2055_v62 = vpop.f32.mrf.mxu3  ;;  %v2319_v56 = vpop.f32.mrf.mxu1 }
 0x2a0   :  { %v2056_v37 = vadd.f32 %v2055_v62, %v1966_v47  ;;  %v2320_v59 = vadd.f32 %v2319_v56, %v2230_v18 }
 0x2a1   :  { %2269 = vmatmul.bf16.gmra.mxu0 %v14909_v8 }
 0x2a2   :  { %v11634_v4 = vadd.f32 %v2056_v37, %v1718_v41  ;;  %v2399_v31 = vadd.f32 %v2320_v59, %v11367_v57  ;;  %2358 = vmatmul.bf16.gmra.mxu1 %v14910_v38  ;;  %v14952_v41 = vld [vmem:[#allocation13_spill] sm:$0xff]  ;;  %v14954_v38 = vld [vmem:[#allocation14_spill] sm:$0xff] }
 0x2a3   :  { %2610 = vmatmul.bf16.gmra.mxu2 %v14949_v12 }
 0x2a4   :  { %14948 = vst [vmem:[#allocation32_spill] sm:$0xff] %v11634_v4  ;;  %2699 = vmatmul.bf16.gmra.mxu3 %v14950_v54 }
 0x2a6   :  { %v2571_v36 = vpop.f32.mrf.mxu2  ;;  %v2232_v19 = vpop.f32.mrf.mxu0 }
 0x2a7   :  { %v2660_v7 = vpop.f32.mrf.mxu3  ;;  %v2321_v40 = vpop.f32.mrf.mxu1 }
 0x2a8   :  { %v2661_v2 = vadd.f32 %v2660_v7, %v2571_v36  ;;  %v2322_v21 = vadd.f32 %v2321_v40, %v2232_v19  ;;  %v14955_v36 = vld [vmem:[#allocation11_spill] sm:$0xff] }
 0x2aa   :  { %v11641_v47 = vadd.f32 %v2661_v2, %v2399_v31  ;;  %v2400_v62 = vadd.f32 %v2322_v21, %v14952_v41  ;;  %v14956_v31 = vld [vmem:[#allocation12_spill] sm:$0xff] }
 0x2ac   :  { %14951 = vst [vmem:[#allocation15_spill] sm:$0xff] %v11641_v47 }
 0x2ae   :  { %v2573_v37 = vpop.f32.mrf.mxu2  ;;  %v2235_v56 = vpop.f32.mrf.mxu0 }
 0x2af   :  { %v2662_v57 = vpop.f32.mrf.mxu3  ;;  %v2324_v59 = vpop.f32.mrf.mxu1 }
 0x2b0   :  { %v2663_v18 = vadd.f32 %v2662_v57, %v2573_v37  ;;  %v2325_v0 = vadd.f32 %v2324_v59, %v2235_v56 }
 0x2b1   :  { %2274 = vmatmul.bf16.gmra.mxu0 %v14949_v12  ;;  %v14959_v12 = vld [vmem:[#allocation18_spill] sm:$0xff] }
 0x2b2   :  { %v11644_v4 = vadd.f32 %v2663_v18, %v2400_v62  ;;  %v2401_v8 = vadd.f32 %v2325_v0, %v14954_v38  ;;  %2363 = vmatmul.bf16.gmra.mxu1 %v14950_v54  ;;  %v14957_v62 = vld [vmem:[#allocation17_spill] sm:$0xff] }
 0x2b3   :  { %2615 = vmatmul.bf16.gmra.mxu2 %v14955_v36 }
 0x2b4   :  { %14953 = vst [vmem:[#allocation34_spill] sm:$0xff] %v11644_v4  ;;  %2704 = vmatmul.bf16.gmra.mxu3 %v14956_v31 }
 0x2b6   :  { %v2576_v7 = vpop.f32.mrf.mxu2  ;;  %v2237_v40 = vpop.f32.mrf.mxu0 }
 0x2b7   :  { %v2665_v2 = vpop.f32.mrf.mxu3  ;;  %v2326_v21 = vpop.f32.mrf.mxu1 }
 0x2b8   :  { %v2666_v19 = vadd.f32 %v2665_v2, %v2576_v7  ;;  %v2327_v41 = vadd.f32 %v2326_v21, %v2237_v40  ;;  %v10014_v7 = vld [vmem:[%s14700_s1 + $0x178] sm:$0xff] }
 0x2b9   :  { %2990 = vmatpush.bf16.msrb.mxu1 %v10014_v7 }
 0x2ba   :  { %v11651_v37 = vadd.f32 %v2666_v19, %v2401_v8  ;;  %v2402_v57 = vadd.f32 %v2327_v41, %v14957_v62  ;;  %v10006_v8 = vld [vmem:[%s14700_s1 + $0x138] sm:$0xff] }
 0x2bb   :  { %2901 = vmatpush.bf16.msrb.mxu0 %v10006_v8  ;;  %v14960_v62 = vld [vmem:[#allocation20_spill] sm:$0xff] }
 0x2be   :  { %v2578_v18 = vpop.f32.mrf.mxu2  ;;  %v2240_v56 = vpop.f32.mrf.mxu0 }
 0x2bf   :  { %v2667_v0 = vpop.f32.mrf.mxu3  ;;  %v2329_v59 = vpop.f32.mrf.mxu1 }
 0x2c0   :  { %v2668_v38 = vadd.f32 %v2667_v0, %v2578_v18  ;;  %v2330_v4 = vadd.f32 %v2329_v59, %v2240_v56 }
 0x2c1   :  { %2279 = vmatmul.bf16.gmra.mxu0 %v14955_v36 }
 0x2c2   :  { %v11654_v54 = vadd.f32 %v2668_v38, %v2402_v57  ;;  %v2403_v47 = vadd.f32 %v2330_v4, %v14959_v12  ;;  %2368 = vmatmul.bf16.gmra.mxu1 %v14956_v31 }
 0x2c3   :  { %2620 = vmatmul.bf16.gmra.mxu2 %v14931_v58 }
 0x2c4   :  { %14958 = vst [vmem:[#allocation35_spill] sm:$0xff] %v11654_v54  ;;  %2709 = vmatmul.bf16.gmra.mxu3 %v14932_v16 }
 0x2c6   :  { %v2581_v2 = vpop.f32.mrf.mxu2  ;;  %v2242_v19 = vpop.f32.mrf.mxu0 }
 0x2c7   :  { %v2670_v4 = vpop.f32.mrf.mxu3  ;;  %v2331_v40 = vpop.f32.mrf.mxu1 }
 0x2c8   :  { %v2671_v12 = vadd.f32 %v2670_v4, %v2581_v2  ;;  %v2332_v21 = vadd.f32 %v2331_v40, %v2242_v19 }
 0x2ca   :  { %v11667_v41 = vadd.f32 %v2671_v12, %v2403_v47  ;;  %v2404_v57 = vadd.f32 %v2332_v21, %v14960_v62  ;;  %v14962_v47 = vld [vmem:[#allocation21_spill] sm:$0xff]  ;;  %v14963_v62 = vld [vmem:[#allocation22_spill] sm:$0xff] }
 0x2ce   :  { %v2583_v18 = vpop.f32.mrf.mxu2  ;;  %v2245_v56 = vpop.f32.mrf.mxu0 }
 0x2cf   :  { %v2672_v0 = vpop.f32.mrf.mxu3  ;;  %v2334_v59 = vpop.f32.mrf.mxu1 }
 0x2d0   :  { %v2673_v38 = vadd.f32 %v2672_v0, %v2583_v18  ;;  %v2335_v54 = vadd.f32 %v2334_v59, %v2245_v56 }
 0x2d1   :  { %2284 = vmatmul.bf16.gmra.mxu0 %v14931_v58 }
 0x2d2   :  { %v11670_v31 = vadd.f32 %v2673_v38, %v2404_v57  ;;  %v2405_v8 = vadd.f32 %v2335_v54, %v11403_v51  ;;  %2373 = vmatmul.bf16.gmra.mxu1 %v14932_v16 }
 0x2d3   :  { %2625 = vmatmul.bf16.gmra.mxu2 %v14937_v30 }
 0x2d4   :  { %14961 = vst [vmem:[#allocation19_spill] sm:$0xff] %v11670_v31  ;;  %2714 = vmatmul.bf16.gmra.mxu3 %v14962_v47  ;;  %v14964_v31 = vld [vmem:[#allocation23_spill] sm:$0xff] }
 0x2d6   :  { %v2586_v7 = vpop.f32.mrf.mxu2  ;;  %v2247_v12 = vpop.f32.mrf.mxu0 }
 0x2d7   :  { %v2675_v2 = vpop.f32.mrf.mxu3  ;;  %v2336_v19 = vpop.f32.mrf.mxu1 }
 0x2d8   :  { %v2676_v4 = vadd.f32 %v2675_v2, %v2586_v7  ;;  %v2337_v40 = vadd.f32 %v2336_v19, %v2247_v12  ;;  %v10030_v7 = vld [vmem:[%s14700_s1 + $0x2f8] sm:$0xff]  ;;  %v14965_v2 = vld [vmem:[#allocation26_spill] sm:$0xff]  ;;  %v10013_v12 = vld [vmem:[%s14700_s1 + $0x170] sm:$0xff] }
 0x2d9   :  { %3329 = vmatpush.bf16.msrb.mxu3 %v10030_v7  ;;  %2991 = vmatpush.bf16.msrb.mxu1 %v10013_v12  ;;  %v10004_v7 = vld [vmem:[%s14700_s1 + $0x128] sm:$0xff] }
 0x2da   :  { %v11677_v21 = vadd.f32 %v2676_v4, %v2405_v8  ;;  %v2406_v57 = vadd.f32 %v2337_v40, %v14963_v62  ;;  %v10022_v8 = vld [vmem:[%s14700_s1 + $0x2b8] sm:$0xff]  ;;  %v14966_v4 = vld [vmem:[#allocation27_spill] sm:$0xff]  ;;  %v10020_v12 = vld [vmem:[%s14700_s1 + $0x2a8] sm:$0xff] }
 0x2db   :  { %3240 = vmatpush.bf16.msrb.mxu2 %v10022_v8  ;;  %v10021_v62 = vld [vmem:[%s14700_s1 + $0x2b0] sm:$0xff] }
 0x2de   :  { %v2588_v18 = vpop.f32.mrf.mxu2  ;;  %v2250_v0 = vpop.f32.mrf.mxu0 }
 0x2df   :  { %v2677_v51 = vpop.f32.mrf.mxu3  ;;  %v2339_v38 = vpop.f32.mrf.mxu1  ;;  %3241 = vmatpush.bf16.msrb.mxu2 %v10021_v62  ;;  %v10003_v62 = vld [vmem:[%s14700_s1 + $0x120] sm:$0xff] }
 0x2e0   :  { %v2678_v54 = vadd.f32 %v2677_v51, %v2588_v18  ;;  %v2340_v56 = vadd.f32 %v2339_v38, %v2250_v0 }
 0x2e1   :  { %2289 = vmatmul.bf16.gmra.mxu0 %v14937_v30 }
 0x2e2   :  { %v11680_v59 = vadd.f32 %v2678_v54, %v2406_v57  ;;  %v2407_v16 = vadd.f32 %v2340_v56, %v14964_v31  ;;  %2378 = vmatmul.bf16.gmra.mxu1 %v14962_v47  ;;  %v10005_v31 = vld [vmem:[%s14700_s1 + $0x130] sm:$0xff]  ;;  %v14967_v56 = vld [vmem:[#allocation24_spill] sm:$0xff] }
 0x2e3   :  { %2630 = vmatmul.bf16.gmra.mxu2 %v14965_v2  ;;  %2902 = vmatpush.bf16.msrb.mxu0 %v10005_v31  ;;  %v10029_v57 = vld [vmem:[%s14700_s1 + $0x2f0] sm:$0xff]  ;;  %v10012_v31 = vld [vmem:[%s14700_s1 + $0x168] sm:$0xff] }
 0x2e4   :  { %2719 = vmatmul.bf16.gmra.mxu3 %v14966_v4  ;;  %2992 = vmatpush.bf16.msrb.mxu1 %v10012_v31 }
 0x2e5   :  { %3330 = vmatpush.bf16.msrb.mxu3 %v10029_v57  ;;  %3242 = vmatpush.bf16.msrb.mxu2 %v10020_v12  ;;  %v10011_v57 = vld [vmem:[%s14700_s1 + $0x160] sm:$0xff] }
 0x2e6   :  { %v2591_v19 = vpop.f32.mrf.mxu2  ;;  %v2252_v51 = vpop.f32.mrf.mxu0  ;;  %v14969_v12 = vld [vmem:[#allocation25_spill] sm:$0xff] }
 0x2e7   :  { %v2680_v40 = vpop.f32.mrf.mxu3  ;;  %v2341_v54 = vpop.f32.mrf.mxu1  ;;  %2903 = vmatpush.bf16.msrb.mxu0 %v10004_v7 }
 0x2e8   :  { %v2681_v18 = vadd.f32 %v2680_v40, %v2591_v19  ;;  %v2342_v0 = vadd.f32 %v2341_v54, %v2252_v51  ;;  %v10028_v19 = vld [vmem:[%s14700_s1 + $0x2e8] sm:$0xff]  ;;  %2993 = vmatpush.bf16.msrb.mxu1 %v10011_v57 }
 0x2e9   :  { %3331 = vmatpush.bf16.msrb.mxu3 %v10028_v19 }
 0x2ea   :  { %v11705_v38 = vadd.f32 %v2681_v18, %v2407_v16  ;;  %v2408_v8 = vadd.f32 %v2342_v0, %v14967_v56  ;;  %v10019_v18 = vld [vmem:[%s14700_s1 + $0x2a0] sm:$0xff] }
 0x2eb   :  { %v10027_v56 = vld [vmem:[%s14700_s1 + $0x2e0] sm:$0xff]  ;;  %2904 = vmatpush.bf16.msrb.mxu0 %v10003_v62  ;;  %3243 = vmatpush.bf16.msrb.mxu2 %v10019_v18  ;;  %v10026_v62 = vld [vmem:[%s14700_s1 + $0x2d8] sm:$0xff] }
 0x2ed   :  { %3332 = vmatpush.bf16.msrb.mxu3 %v10027_v56 }
 0x2ee   :  { %v2593_v16 = vpop.f32.mrf.mxu2  ;;  %v2255_v54 = vpop.f32.mrf.mxu0 }
 0x2ef   :  { %v2682_v40 = vpop.f32.mrf.mxu3  ;;  %v2344_v0 = vpop.f32.mrf.mxu1 }
 0x2f0   :  { %v2683_v51 = vadd.f32 %v2682_v40, %v2593_v16  ;;  %v2345_v7 = vadd.f32 %v2344_v0, %v2255_v54  ;;  %v10002_v16 = vld [vmem:[%s14700_s1 + $0x118] sm:$0xff]  ;;  %v10009_v54 = vld [vmem:[%s14700_s1 + $0x150] sm:$0xff] }
 0x2f1   :  { %2294 = vmatmul.bf16.gmra.mxu0 %v14965_v2  ;;  %v10010_v40 = vld [vmem:[%s14700_s1 + $0x158] sm:$0xff]  ;;  %3333 = vmatpush.bf16.msrb.mxu3 %v10026_v62  ;;  %v10017_v0 = vld [vmem:[%s14700_s1 + $0x290] sm:$0xff] }
 0x2f2   :  { %v11732_v31 = vadd.f32 %v2683_v51, %v2408_v8  ;;  %v2409_v19 = vadd.f32 %v2345_v7, %v14969_v12  ;;  %2383 = vmatmul.bf16.gmra.mxu1 %v14966_v4  ;;  %v10018_v8 = vld [vmem:[%s14700_s1 + $0x298] sm:$0xff]  ;;  %2905 = vmatpush.bf16.msrb.mxu0 %v10002_v16  ;;  %v10001_v51 = vld [vmem:[%s14700_s1 + $0x110] sm:$0xff]  ;;  %v10000_v4 = vld [vmem:[%s14700_s1 + $0x108] sm:$0xff] }
 0x2f3   :  { %2635 = vmatmul.bf16.gmra.mxu2 %v14946_v25  ;;  %2994 = vmatpush.bf16.msrb.mxu1 %v10010_v40  ;;  %v10025_v16 = vld [vmem:[%s14700_s1 + $0x2d0] sm:$0xff] }
 0x2f4   :  { %14968 = vst [vmem:[#allocation38_spill] sm:$0xff] %v11732_v31  ;;  %2724 = vmatmul.bf16.gmra.mxu3 %v14947_v48  ;;  %3244 = vmatpush.bf16.msrb.mxu2 %v10018_v8  ;;  %v14971_v62 = vld [vmem:[#allocation31_spill] sm:$0xff] }
 0x2f5   :  { %3334 = vmatpush.bf16.msrb.mxu3 %v10025_v16 }
 0x2f6   :  { %v2596_v57 = vpop.f32.mrf.mxu2  ;;  %v2257_v7 = vpop.f32.mrf.mxu0  ;;  %2906 = vmatpush.bf16.msrb.mxu0 %v10001_v51 }
 0x2f7   :  { %v2685_v18 = vpop.f32.mrf.mxu3  ;;  %v2346_v12 = vpop.f32.mrf.mxu1  ;;  %2995 = vmatpush.bf16.msrb.mxu1 %v10009_v54 }
 0x2f8   :  { %v2686_v56 = vadd.f32 %v2685_v18, %v2596_v57  ;;  %v2347_v40 = vadd.f32 %v2346_v12, %v2257_v7  ;;  %3245 = vmatpush.bf16.msrb.mxu2 %v10017_v0  ;;  %v10008_v57 = vld [vmem:[%s14700_s1 + $0x148] sm:$0xff]  ;;  %v9999_v0 = vld [vmem:[%s14700_s1 + $0x100] sm:$0xff] }
 0x2f9   :  { %v10016_v18 = vld [vmem:[%s14700_s1 + $0x288] sm:$0xff]  ;;  %v10015_v7 = vld [vmem:[%s14700_s1 + $0x280] sm:$0xff] }
 0x2fa   :  { %v11763_v8 = vadd.f32 %v2686_v56, %v2409_v19  ;;  %v2410_v31 = vadd.f32 %v2347_v40, %v14971_v62  ;;  %v10024_v19 = vld [vmem:[%s14700_s1 + $0x2c8] sm:$0xff]  ;;  %2907 = vmatpush.bf16.msrb.mxu0 %v10000_v4  ;;  %v10007_v56 = vld [vmem:[%s14700_s1 + $0x140] sm:$0xff] }
 0x2fb   :  { %2996 = vmatpush.bf16.msrb.mxu1 %v10008_v57  ;;  %3335 = vmatpush.bf16.msrb.mxu3 %v10024_v19  ;;  %v10023_v40 = vld [vmem:[%s14700_s1 + $0x2c0] sm:$0xff]  ;;  %v14973_v19 = vld [vmem:[#allocation36_spill] sm:$0xff] }
 0x2fc   :  { %14970 = vst [vmem:[#allocation13_spill] sm:$0xff] %v11763_v8  ;;  %3246 = vmatpush.bf16.msrb.mxu2 %v10016_v18 }
 0x2fe   :  { %v2598_v51 = vpop.f32.mrf.mxu2  ;;  %v2260_v16 = vpop.f32.mrf.mxu0  ;;  %2908 = vmatpush.bf16.msrb.mxu0 %v9999_v0 }
 0x2ff   :  { %v2687_v54 = vpop.f32.mrf.mxu3  ;;  %v2349_v4 = vpop.f32.mrf.mxu1  ;;  %2997 = vmatpush.bf16.msrb.mxu1 %v10007_v56  ;;  %3336 = vmatpush.bf16.msrb.mxu3 %v10023_v40 }
 0x300   :  { %v2688_v12 = vadd.f32 %v2687_v54, %v2598_v51  ;;  %v2350_v62 = vadd.f32 %v2349_v4, %v2260_v16  ;;  %3247 = vmatpush.bf16.msrb.mxu2 %v10015_v7  ;;  %v14974_v51 = vld [vmem:[#allocation37_spill] sm:$0xff] }
 0x301   :  { %2299 = vmatmul.bf16.gmra.mxu0 %v14946_v25 }
 0x302   :  { %v11790_v57 = vadd.f32 %v2688_v12, %v2410_v31  ;;  %v2411_v18 = vadd.f32 %v2350_v62, %v11535_v6  ;;  %2388 = vmatmul.bf16.gmra.mxu1 %v14947_v48 }
 0x303   :  { %2640 = vmatmul.bf16.gmra.mxu2 %v14973_v19 }
 0x304   :  { %14972 = vst [vmem:[#allocation14_spill] sm:$0xff] %v11790_v57  ;;  %2729 = vmatmul.bf16.gmra.mxu3 %v14974_v51 }
 0x306   :  { %v2601_v54 = vpop.f32.mrf.mxu2  ;;  %v2262_v16 = vpop.f32.mrf.mxu0 }
 0x307   :  { %v2690_v8 = vpop.f32.mrf.mxu3  ;;  %v2351_v0 = vpop.f32.mrf.mxu1 }
 0x308   :  { %v2691_v2 = vadd.f32 %v2690_v8, %v2601_v54  ;;  %v2352_v56 = vadd.f32 %v2351_v0, %v2262_v16  ;;  %v14976_v8 = vld [vmem:[#allocation4_spill] sm:$0xff]  ;;  %v14978_v16 = vld [vmem:[#allocation5_spill] sm:$0xff] }
 0x309   :  { %v14979_v0 = vshll.u32 %v14978_v16, 16 }
 0x30a   :  { %v11797_v31 = vadd.f32 %v2691_v2, %v2411_v18  ;;  %v2412_v7 = vadd.f32 %v2352_v56, %v11546_v52  ;;  %v14977_v18 = vshll.u32 %v14976_v8, 16 }
 0x30b   :  { %v622_v56 = vrot.slane %v14979_v0, 1  ;;  %v14985_v0 = vmov 0 }
 0x30c   :  { %v620_v54 = vrot.slane %v14977_v18, 1  ;;  %v14983_v18 = vshrl.u32 %v14976_v8, 16  ;;  %v14986_v0 = vsel %vm11822_vm5, 4294967295, %v14985_v0 }
 0x30d   :  { %14987 = vst [vmem:[#allocation18_spill] sm:$0xff] %v14986_v0 }
 0x30e   :  { %v2603_v12 = vpop.f32.mrf.mxu2  ;;  %v2265_v40 = vpop.f32.mrf.mxu0 }
 0x30f   :  { %v2692_v6 = vpop.f32.mrf.mxu3  ;;  %v2354_v62 = vpop.f32.mrf.mxu1 }
 0x310   :  { %v2693_v4 = vadd.f32 %v2692_v6, %v2603_v12  ;;  %v2355_v57 = vadd.f32 %v2354_v62, %v2265_v40 }
 0x311   :  { %2304 = vmatmul.bf16.gmra.mxu0 %v14973_v19 }
 0x312   :  { %v11800_v48 = vadd.f32 %v2693_v4, %v2412_v7  ;;  %v2413_v25 = vadd.f32 %v2355_v57, %v11551_v46  ;;  %2393 = vmatmul.bf16.gmra.mxu1 %v14974_v51  ;;  %v14980_v46 = vshll.u32 %v10610_v43, 16  ;;  %v14981_v4 = vshll.u32 %v10612_v44, 16 }
 0x313   :  { %2645 = vmatmul.bf16.gmra.mxu2 %v11504_v17 }
 0x314   :  { %14975 = vst [vmem:[#allocation11_spill] sm:$0xff] %v11800_v48  ;;  %2734 = vmatmul.bf16.gmra.mxu3 %v11515_v50  ;;  %v624_v57 = vrot.slane %v14980_v46, 1  ;;  %v626_v40 = vrot.slane %v14981_v4, 1  ;;  %v621_v48 = vor.u32 %v620_v54, %v14983_v18  ;;  %v14988_v46 = vshrl.u32 %v10610_v43, 16 }
 0x316   :  { %v2606_v2 = vpop.f32.mrf.mxu2  ;;  %v2267_v12 = vpop.f32.mrf.mxu0  ;;  %v625_v4 = vor.u32 %v624_v57, %v14988_v46  ;;  %v731_v8 = vsel %vm11822_vm5, %v621_v48, 0 }
 0x317   :  { %v2695_v52 = vpop.f32.mrf.mxu3  ;;  %v2356_v6 = vpop.f32.mrf.mxu1 }
 0x318   :  { %v2696_v7 = vadd.f32 %v2695_v52, %v2606_v2  ;;  %v2357_v62 = vadd.f32 %v2356_v6, %v2267_v12  ;;  %v14984_v2 = vshrl.u32 %v14978_v16, 16 }
 0x31a   :  { %v11815_v17 = vadd.f32 %v2696_v7, %v2413_v25  ;;  %v2414_v50 = vadd.f32 %v2357_v62, %v11554_v27  ;;  %v623_v52 = vor.u32 %v622_v56, %v14984_v2  ;;  %v14989_v25 = vshrl.u32 %v10612_v44, 16 }
 0x31b   :  { %v733_v56 = vsel %vm11822_vm5, %v625_v4, 0 }
 0x31c   :  { %14982 = vst [vmem:[#allocation17_spill] sm:$0xff] %v11815_v17  ;;  %v627_v7 = vor.u32 %v626_v40, %v14989_v25  ;;  %v732_v54 = vsel %vm11822_vm5, %v623_v52, 0  ;;  %v14990_v25 = vshll.u32 %v10670_v10, 16 }
 0x31e   :  { %v2608_v12 = vpop.f32.mrf.mxu2  ;;  %v2270_v27 = vpop.f32.mrf.mxu0  ;;  %v734_v43 = vsel %vm11822_vm5, %v627_v7, 0  ;;  %v628_v4 = vrot.slane %v14990_v25, 1 }
 0x31f   :  { %v2697_v6 = vpop.f32.mrf.mxu3  ;;  %v2359_v62 = vpop.f32.mrf.mxu1 }
 0x320   :  { %v2698_v17 = vadd.f32 %v2697_v6, %v2608_v12  ;;  %v2360_v16 = vadd.f32 %v2359_v62, %v2270_v27  ;;  %v14991_v12 = vshll.u32 %v10672_v11, 16  ;;  %v14993_v27 = vshrl.u32 %v10672_v11, 16 }
 0x321   :  { %2909 = vmatmul.bf16.vlgmr.msrb.gmra.mxu0 %v731_v8 }
 0x322   :  { %v11838_v44 = vadd.f32 %v2698_v17, %v2414_v50  ;;  %v2415_v57 = vadd.f32 %v2360_v16, %v11561_v15  ;;  %2998 = vmatmul.bf16.vlgmr.msrb.gmra.mxu1 %v732_v54  ;;  %v630_v7 = vrot.slane %v14991_v12, 1  ;;  %v14992_v15 = vshrl.u32 %v10670_v10, 16 }
 0x323   :  { %3248 = vmatmul.bf16.vlgmr.msrb.gmra.mxu2 %v733_v56 }
 0x324   :  { %3337 = vmatmul.bf16.vlgmr.msrb.gmra.mxu3 %v734_v43  ;;  %v629_v6 = vor.u32 %v628_v4, %v14992_v15  ;;  %v631_v62 = vor.u32 %v630_v7, %v14993_v27  ;;  %v14994_v7 = vshll.u32 %v10704_v32, 16 }
 0x326   :  { %v2611_v40 = vpop.f32.mrf.mxu2  ;;  %v2272_v2 = vpop.f32.mrf.mxu0  ;;  %v632_v15 = vrot.slane %v14994_v7, 1 }
 0x327   :  { %v2700_v48 = vpop.f32.mrf.mxu3  ;;  %v2361_v52 = vpop.f32.mrf.mxu1 }
 0x328   :  { %v2701_v18 = vadd.f32 %v2700_v48, %v2611_v40  ;;  %v2362_v46 = vadd.f32 %v2361_v52, %v2272_v2  ;;  %v11854_v52 = vsel %vm11822_vm5, %v629_v6, 0 }
 0x32a   :  { %v11845_v17 = vadd.f32 %v2701_v18, %v2415_v57  ;;  %v2416_v50 = vadd.f32 %v2362_v46, %v11564_v53  ;;  %v11858_v57 = vsel %vm11822_vm5, %v631_v62, 0  ;;  %v14997_v62 = vshrl.u32 %v10706_v33, 16 }
 0x32e   :  { %v2613_v8 = vpop.f32.mrf.mxu2  ;;  %v2275_v40 = vpop.f32.mrf.mxu0 }
 0x32f   :  { %v2702_v54 = vpop.f32.mrf.mxu3  ;;  %v2364_v48 = vpop.f32.mrf.mxu1 }
 0x330   :  { %v2703_v16 = vadd.f32 %v2702_v54, %v2613_v8  ;;  %v2365_v2 = vadd.f32 %v2364_v48, %v2275_v40 }
 0x331   :  { %2914 = vmatmul.bf16.gmra.mxu0 %v733_v56  ;;  %v14996_v56 = vshrl.u32 %v10704_v32, 16 }
 0x332   :  { %v11860_v53 = vadd.f32 %v2703_v16, %v2416_v50  ;;  %v2417_v10 = vadd.f32 %v2365_v2, %v11571_v42  ;;  %3003 = vmatmul.bf16.gmra.mxu1 %v734_v43  ;;  %v14995_v50 = vshll.u32 %v10706_v33, 16 }
 0x333   :  { %3253 = vmatmul.bf16.gmra.mxu2 %v11854_v52  ;;  %v633_v43 = vor.u32 %v632_v15, %v14996_v56  ;;  %v14998_v15 = vshll.u32 %v10736_v60, 16 }
 0x334   :  { %3342 = vmatmul.bf16.gmra.mxu3 %v11858_v57  ;;  %v634_v6 = vrot.slane %v14995_v50, 1 }
 0x335   :  { %v636_v50 = vrot.slane %v14998_v15, 1 }
 0x336   :  { %v2616_v11 = vpop.f32.mrf.mxu2  ;;  %v2277_v25 = vpop.f32.mrf.mxu0  ;;  %v635_v8 = vor.u32 %v634_v6, %v14997_v62  ;;  %v14999_v6 = vshll.u32 %v10738_v61, 16 }
 0x337   :  { %v2705_v18 = vpop.f32.mrf.mxu3  ;;  %v2366_v4 = vpop.f32.mrf.mxu1 }
 0x338   :  { %v2706_v46 = vadd.f32 %v2705_v18, %v2616_v11  ;;  %v2367_v12 = vadd.f32 %v2366_v4, %v2277_v25  ;;  %v11878_v18 = vsel %vm11822_vm5, %v633_v43, 0  ;;  %v15000_v43 = vshrl.u32 %v10736_v60, 16 }
 0x33a   :  { %v11869_v27 = vadd.f32 %v2706_v46, %v2417_v10  ;;  %v2418_v42 = vadd.f32 %v2367_v12, %v11574_v1  ;;  %v11882_v10 = vsel %vm11822_vm5, %v635_v8, 0  ;;  %v637_v62 = vor.u32 %v636_v50, %v15000_v43 }
 0x33b   :  { %v15001_v8 = vshrl.u32 %v10738_v61, 16  ;;  %v15002_v50 = vshll.u32 %v10770_v20, 16 }
 0x33e   :  { %v2618_v54 = vpop.f32.mrf.mxu2  ;;  %v2280_v48 = vpop.f32.mrf.mxu0 }
 0x33f   :  { %v2707_v16 = vpop.f32.mrf.mxu3  ;;  %v2369_v2 = vpop.f32.mrf.mxu1 }
 0x340   :  { %v2708_v40 = vadd.f32 %v2707_v16, %v2618_v54  ;;  %v2370_v11 = vadd.f32 %v2369_v2, %v2280_v48 }
 0x341   :  { %2919 = vmatmul.bf16.gmra.mxu0 %v11854_v52 }
 0x342   :  { %v11884_v1 = vadd.f32 %v2708_v40, %v2418_v42  ;;  %v2419_v32 = vadd.f32 %v2370_v11, %v11581_v28  ;;  %3008 = vmatmul.bf16.gmra.mxu1 %v11858_v57  ;;  %v638_v28 = vrot.slane %v14999_v6, 1  ;;  %v640_v6 = vrot.slane %v15002_v50, 1 }
 0x343   :  { %3258 = vmatmul.bf16.gmra.mxu2 %v11878_v18 }
 0x344   :  { %3347 = vmatmul.bf16.gmra.mxu3 %v11882_v10  ;;  %v639_v54 = vor.u32 %v638_v28, %v15001_v8  ;;  %v15003_v28 = vshll.u32 %v10772_v22, 16 }
 0x346   :  { %v2621_v33 = vpop.f32.mrf.mxu2  ;;  %v2282_v4 = vpop.f32.mrf.mxu0 }
 0x347   :  { %v2710_v46 = vpop.f32.mrf.mxu3  ;;  %v2371_v12 = vpop.f32.mrf.mxu1 }
 0x348   :  { %v2711_v25 = vadd.f32 %v2710_v46, %v2621_v33  ;;  %v2372_v7 = vadd.f32 %v2371_v12, %v2282_v4  ;;  %v11904_v46 = vsel %vm11822_vm5, %v637_v62, 0  ;;  %v15004_v62 = vshrl.u32 %v10770_v20, 16 }
 0x34a   :  { %v11895_v42 = vadd.f32 %v2711_v25, %v2419_v32  ;;  %v2420_v56 = vadd.f32 %v2372_v7, %v11584_v34  ;;  %v11908_v32 = vsel %vm11822_vm5, %v639_v54, 0  ;;  %v641_v8 = vor.u32 %v640_v6, %v15004_v62 }
 0x34b   :  { %v15005_v54 = vshrl.u32 %v10772_v22, 16  ;;  %v15006_v6 = vshll.u32 %v10804_v63, 16 }
 0x34e   :  { %v2623_v16 = vpop.f32.mrf.mxu2  ;;  %v2285_v2 = vpop.f32.mrf.mxu0 }
 0x34f   :  { %v2712_v40 = vpop.f32.mrf.mxu3  ;;  %v2374_v11 = vpop.f32.mrf.mxu1 }
 0x350   :  { %v2713_v48 = vadd.f32 %v2712_v40, %v2623_v16  ;;  %v2375_v33 = vadd.f32 %v2374_v11, %v2285_v2 }
 0x351   :  { %2924 = vmatmul.bf16.gmra.mxu0 %v11878_v18 }
 0x352   :  { %v11910_v34 = vadd.f32 %v2713_v48, %v2420_v56  ;;  %v2421_v60 = vadd.f32 %v2375_v33, %v11591_v9  ;;  %3013 = vmatmul.bf16.gmra.mxu1 %v11882_v10  ;;  %v642_v9 = vrot.slane %v15003_v28, 1  ;;  %v644_v28 = vrot.slane %v15006_v6, 1 }
 0x353   :  { %3263 = vmatmul.bf16.gmra.mxu2 %v11904_v46 }
 0x354   :  { %3352 = vmatmul.bf16.gmra.mxu3 %v11908_v32  ;;  %v643_v16 = vor.u32 %v642_v9, %v15005_v54  ;;  %v15007_v9 = vshll.u32 %v10806_v3, 16 }
 0x356   :  { %v2626_v61 = vpop.f32.mrf.mxu2  ;;  %v2287_v12 = vpop.f32.mrf.mxu0 }
 0x357   :  { %v2715_v25 = vpop.f32.mrf.mxu3  ;;  %v2376_v7 = vpop.f32.mrf.mxu1 }
 0x358   :  { %v2716_v4 = vadd.f32 %v2715_v25, %v2626_v61  ;;  %v2377_v15 = vadd.f32 %v2376_v7, %v2287_v12  ;;  %v11930_v25 = vsel %vm11822_vm5, %v641_v8, 0  ;;  %v15008_v8 = vshrl.u32 %v10804_v63, 16 }
 0x35a   :  { %v11921_v56 = vadd.f32 %v2716_v4, %v2421_v60  ;;  %v2422_v43 = vadd.f32 %v2377_v15, %v11594_v39  ;;  %v11934_v60 = vsel %vm11822_vm5, %v643_v16, 0  ;;  %v645_v54 = vor.u32 %v644_v28, %v15008_v8 }
 0x35b   :  { %v15009_v16 = vshrl.u32 %v10806_v3, 16  ;;  %v15010_v28 = vshll.u32 %v10838_v55, 16 }
 0x35e   :  { %v2628_v40 = vpop.f32.mrf.mxu2  ;;  %v2290_v11 = vpop.f32.mrf.mxu0 }
 0x35f   :  { %v2717_v48 = vpop.f32.mrf.mxu3  ;;  %v2379_v33 = vpop.f32.mrf.mxu1 }
 0x360   :  { %v2718_v2 = vadd.f32 %v2717_v48, %v2628_v40  ;;  %v2380_v61 = vadd.f32 %v2379_v33, %v2290_v11 }
 0x361   :  { %2929 = vmatmul.bf16.gmra.mxu0 %v11904_v46 }
 0x362   :  { %v11936_v39 = vadd.f32 %v2718_v2, %v2422_v43  ;;  %v2423_v20 = vadd.f32 %v2380_v61, %v11601_v49  ;;  %3018 = vmatmul.bf16.gmra.mxu1 %v11908_v32  ;;  %v646_v49 = vrot.slane %v15007_v9, 1  ;;  %v648_v9 = vrot.slane %v15010_v28, 1 }
 0x363   :  { %3268 = vmatmul.bf16.gmra.mxu2 %v11930_v25 }
 0x364   :  { %3357 = vmatmul.bf16.gmra.mxu3 %v11934_v60  ;;  %v647_v40 = vor.u32 %v646_v49, %v15009_v16  ;;  %v15011_v49 = vshll.u32 %v10840_v5, 16 }
 0x366   :  { %v2631_v22 = vpop.f32.mrf.mxu2  ;;  %v2292_v7 = vpop.f32.mrf.mxu0 }
 0x367   :  { %v2720_v4 = vpop.f32.mrf.mxu3  ;;  %v2381_v15 = vpop.f32.mrf.mxu1 }
 0x368   :  { %v2721_v12 = vadd.f32 %v2720_v4, %v2631_v22  ;;  %v2382_v50 = vadd.f32 %v2381_v15, %v2292_v7  ;;  %v11956_v4 = vsel %vm11822_vm5, %v645_v54, 0  ;;  %v15012_v54 = vshrl.u32 %v10838_v55, 16 }
 0x36a   :  { %v11947_v43 = vadd.f32 %v2721_v12, %v2423_v20  ;;  %v2424_v62 = vadd.f32 %v2382_v50, %v11604_v13  ;;  %v11960_v20 = vsel %vm11822_vm5, %v647_v40, 0  ;;  %v649_v16 = vor.u32 %v648_v9, %v15012_v54 }
 0x36b   :  { %v15013_v40 = vshrl.u32 %v10840_v5, 16  ;;  %v15014_v9 = vshll.u32 %v10872_v24, 16 }
 0x36e   :  { %v2633_v48 = vpop.f32.mrf.mxu2  ;;  %v2295_v33 = vpop.f32.mrf.mxu0 }
 0x36f   :  { %v2722_v2 = vpop.f32.mrf.mxu3  ;;  %v2384_v61 = vpop.f32.mrf.mxu1 }
 0x370   :  { %v2723_v11 = vadd.f32 %v2722_v2, %v2633_v48  ;;  %v2385_v22 = vadd.f32 %v2384_v61, %v2295_v33 }
 0x371   :  { %2934 = vmatmul.bf16.gmra.mxu0 %v11930_v25 }
 0x372   :  { %v11962_v13 = vadd.f32 %v2723_v11, %v2424_v62  ;;  %v2425_v63 = vadd.f32 %v2385_v22, %v11611_v35  ;;  %3023 = vmatmul.bf16.gmra.mxu1 %v11934_v60  ;;  %v650_v35 = vrot.slane %v15011_v49, 1  ;;  %v652_v49 = vrot.slane %v15014_v9, 1 }
 0x373   :  { %3273 = vmatmul.bf16.gmra.mxu2 %v11956_v4 }
 0x374   :  { %3362 = vmatmul.bf16.gmra.mxu3 %v11960_v20  ;;  %v651_v48 = vor.u32 %v650_v35, %v15013_v40  ;;  %v15015_v35 = vshll.u32 %v10874_v26, 16 }
 0x376   :  { %v2636_v3 = vpop.f32.mrf.mxu2  ;;  %v2297_v15 = vpop.f32.mrf.mxu0 }
 0x377   :  { %v2725_v12 = vpop.f32.mrf.mxu3  ;;  %v2386_v50 = vpop.f32.mrf.mxu1 }
 0x378   :  { %v2726_v7 = vadd.f32 %v2725_v12, %v2636_v3  ;;  %v2387_v6 = vadd.f32 %v2386_v50, %v2297_v15  ;;  %v11982_v12 = vsel %vm11822_vm5, %v649_v16, 0  ;;  %v15016_v16 = vshrl.u32 %v10872_v24, 16 }
 0x37a   :  { %v11973_v62 = vadd.f32 %v2726_v7, %v2425_v63  ;;  %v2426_v8 = vadd.f32 %v2387_v6, %v11614_v45  ;;  %v11986_v63 = vsel %vm11822_vm5, %v651_v48, 0  ;;  %v653_v40 = vor.u32 %v652_v49, %v15016_v16  ;;  %v15020_v49 = vld [vmem:[#allocation7_spill] sm:$0xff] }
 0x37b   :  { %v15017_v48 = vshrl.u32 %v10874_v26, 16 }
 0x37e   :  { %v2638_v2 = vpop.f32.mrf.mxu2  ;;  %v2300_v61 = vpop.f32.mrf.mxu0 }
 0x37f   :  { %v2727_v11 = vpop.f32.mrf.mxu3  ;;  %v2389_v22 = vpop.f32.mrf.mxu1 }
 0x380   :  { %v2728_v33 = vadd.f32 %v2727_v11, %v2638_v2  ;;  %v2390_v3 = vadd.f32 %v2389_v22, %v2300_v61 }
 0x381   :  { %2939 = vmatmul.bf16.gmra.mxu0 %v11956_v4 }
 0x382   :  { %v11988_v45 = vadd.f32 %v2728_v33, %v2426_v8  ;;  %v2427_v55 = vadd.f32 %v2390_v3, %v11621_v23  ;;  %3028 = vmatmul.bf16.gmra.mxu1 %v11960_v20  ;;  %v654_v23 = vrot.slane %v15015_v35, 1  ;;  %v15021_v35 = vshll.u32 %v15020_v49, 16 }
 0x383   :  { %3278 = vmatmul.bf16.gmra.mxu2 %v11982_v12 }
 0x384   :  { %3367 = vmatmul.bf16.gmra.mxu3 %v11986_v63  ;;  %v655_v2 = vor.u32 %v654_v23, %v15017_v48  ;;  %v656_v23 = vrot.slane %v15021_v35, 1  ;;  %v15025_v48 = vld [vmem:[#allocation32_spill] sm:$0xff] }
 0x386   :  { %v2641_v5 = vpop.f32.mrf.mxu2  ;;  %v2302_v50 = vpop.f32.mrf.mxu0 }
 0x387   :  { %v2730_v7 = vpop.f32.mrf.mxu3  ;;  %v2391_v6 = vpop.f32.mrf.mxu1 }
 0x388   :  { %v2731_v15 = vadd.f32 %v2730_v7, %v2641_v5  ;;  %v2392_v28 = vadd.f32 %v2391_v6, %v2302_v50  ;;  %v12008_v7 = vsel %vm11822_vm5, %v653_v40, 0 }
 0x38a   :  { %v11999_v8 = vadd.f32 %v2731_v15, %v2427_v55  ;;  %v2428_v54 = vadd.f32 %v2392_v28, %v11624_v29  ;;  %v12012_v55 = vsel %vm11822_vm5, %v655_v2, 0 }
 0x38b   :  { %15018 = vst [vmem:[#allocation20_spill] sm:$0xff] %v12012_v55 }
 0x38e   :  { %v2643_v11 = vpop.f32.mrf.mxu2  ;;  %v2305_v22 = vpop.f32.mrf.mxu0 }
 0x38f   :  { %v2732_v33 = vpop.f32.mrf.mxu3  ;;  %v2394_v3 = vpop.f32.mrf.mxu1 }
 0x390   :  { %v2733_v61 = vadd.f32 %v2732_v33, %v2643_v11  ;;  %v2395_v5 = vadd.f32 %v2394_v3, %v2305_v22  ;;  %v15026_v11 = vshrl.u32 %v15020_v49, 16 }
 0x391   :  { %2944 = vmatmul.bf16.gmra.mxu0 %v11982_v12 }
 0x392   :  { %v12014_v29 = vadd.f32 %v2733_v61, %v2428_v54  ;;  %v2429_v24 = vadd.f32 %v2395_v5, %v11631_v14  ;;  %3033 = vmatmul.bf16.gmra.mxu1 %v11986_v63  ;;  %v15022_v54 = vld [vmem:[#allocation8_spill] sm:$0xff]  ;;  %v657_v33 = vor.u32 %v656_v23, %v15026_v11 }
 0x393   :  { %3283 = vmatmul.bf16.gmra.mxu2 %v12008_v7  ;;  %v15023_v16 = vshll.u32 %v15022_v54, 16  ;;  %v15027_v61 = vshrl.u32 %v15022_v54, 16 }
 0x394   :  { %15019 = vst [vmem:[#allocation21_spill] sm:$0xff] %v12014_v29  ;;  %3372 = vmatmul.bf16.gmra.mxu3 %v12012_v55  ;;  %v12034_v35 = vsel %vm11822_vm5, %v657_v33, 0  ;;  %v15030_v33 = vld [vmem:[#allocation9_spill] sm:$0xff] }
 0x395   :  { %v658_v14 = vrot.slane %v15023_v16, 1 }
 0x396   :  { %v2646_v26 = vpop.f32.mrf.mxu2  ;;  %v2307_v6 = vpop.f32.mrf.mxu0 }
 0x397   :  { %v2735_v15 = vpop.f32.mrf.mxu3  ;;  %v2396_v28 = vpop.f32.mrf.mxu1  ;;  %v659_v22 = vor.u32 %v658_v14, %v15027_v61  ;;  %v15031_v61 = vshll.u32 %v15030_v33, 16 }
 0x398   :  { %v2736_v50 = vadd.f32 %v2735_v15, %v2646_v26  ;;  %v2397_v9 = vadd.f32 %v2396_v28, %v2307_v6 }
 0x39a   :  { %v12025_v40 = vadd.f32 %v2736_v50, %v2429_v24  ;;  %v2430_v2 = vadd.f32 %v2397_v9, %v15025_v48  ;;  %v12038_v24 = vsel %vm11822_vm5, %v659_v22, 0  ;;  %v15029_v9 = vld [vmem:[#allocation15_spill] sm:$0xff]  ;;  %v15032_v22 = vld [vmem:[#allocation10_spill] sm:$0xff] }
 0x39c   :  { %15024 = vst [vmem:[#allocation22_spill] sm:$0xff] %v12025_v40 }
 0x39e   :  { %v2648_v3 = vpop.f32.mrf.mxu2  ;;  %v2910_v15 = vpop.f32.mrf.mxu0 }
 0x39f   :  { %v2737_v5 = vpop.f32.mrf.mxu3  ;;  %v2999_v6 = vpop.f32.mrf.mxu1 }
 0x3a0   :  { %v2738_v26 = vadd.f32 %v2737_v5, %v2648_v3  ;;  %v3000_v28 = vadd.f32 %v2999_v6, %v2910_v15  ;;  %v15033_v3 = vshll.u32 %v15032_v22, 16  ;;  %v15035_v15 = vld [vmem:[#allocation34_spill] sm:$0xff] }
 0x3a1   :  { %2949 = vmatmul.bf16.gmra.mxu0 %v12008_v7 }
 0x3a2   :  { %v12040_v50 = vadd.f32 %v2738_v26, %v2430_v2  ;;  %v3079_v49 = vadd.f32 %v3000_v28, %v15029_v9  ;;  %3038 = vmatmul.bf16.gmra.mxu1 %v12012_v55  ;;  %v660_v2 = vrot.slane %v15031_v61, 1  ;;  %v662_v5 = vrot.slane %v15033_v3, 1 }
 0x3a3   :  { %3288 = vmatmul.bf16.gmra.mxu2 %v12034_v35  ;;  %v15036_v28 = vshrl.u32 %v15030_v33, 16 }
 0x3a4   :  { %15028 = vst [vmem:[#allocation23_spill] sm:$0xff] %v12040_v50  ;;  %3377 = vmatmul.bf16.gmra.mxu3 %v12038_v24  ;;  %v15037_v50 = vshrl.u32 %v15032_v22, 16 }
 0x3a5   :  { %v661_v9 = vor.u32 %v660_v2, %v15036_v28  ;;  %v15043_v28 = vld [vmem:[#allocation35_spill] sm:$0xff] }
 0x3a6   :  { %v3249_v23 = vpop.f32.mrf.mxu2  ;;  %v2912_v14 = vpop.f32.mrf.mxu0  ;;  %v663_v40 = vor.u32 %v662_v5, %v15037_v50 }
 0x3a7   :  { %v3338_v54 = vpop.f32.mrf.mxu3  ;;  %v3001_v48 = vpop.f32.mrf.mxu1  ;;  %v12060_v61 = vsel %vm11822_vm5, %v661_v9, 0 }
 0x3a8   :  { %v3339_v16 = vadd.f32 %v3338_v54, %v3249_v23  ;;  %v3002_v11 = vadd.f32 %v3001_v48, %v2912_v14 }
 0x3aa   :  { %v12051_v26 = vadd.f32 %v3339_v16, %v3079_v49  ;;  %v3080_v6 = vadd.f32 %v3002_v11, %v15035_v15  ;;  %v12064_v49 = vsel %vm11822_vm5, %v663_v40, 0  ;;  %v15039_v40 = vshll.u32 %v14955_v36, 16  ;;  %v15040_v15 = vld [vmem:[#allocation12_spill] sm:$0xff] }
 0x3ac   :  { %15034 = vst [vmem:[#allocation24_spill] sm:$0xff] %v12051_v26 }
 0x3ae   :  { %v3251_v23 = vpop.f32.mrf.mxu2  ;;  %v2915_v14 = vpop.f32.mrf.mxu0 }
 0x3af   :  { %v3340_v54 = vpop.f32.mrf.mxu3  ;;  %v3004_v48 = vpop.f32.mrf.mxu1 }
 0x3b0   :  { %v3341_v29 = vadd.f32 %v3340_v54, %v3251_v23  ;;  %v3005_v55 = vadd.f32 %v3004_v48, %v2915_v14  ;;  %v15044_v23 = vshrl.u32 %v14955_v36, 16  ;;  %v15045_v14 = vshrl.u32 %v15040_v15, 16 }
 0x3b1   :  { %2954 = vmatmul.bf16.gmra.mxu0 %v12034_v35 }
 0x3b2   :  { %v12066_v16 = vadd.f32 %v3341_v29, %v3080_v6  ;;  %v3081_v11 = vadd.f32 %v3005_v55, %v11651_v37  ;;  %3043 = vmatmul.bf16.gmra.mxu1 %v12038_v24  ;;  %v664_v29 = vrot.slane %v15039_v40, 1  ;;  %v15041_v6 = vshll.u32 %v15040_v15, 16 }
 0x3b3   :  { %3293 = vmatmul.bf16.gmra.mxu2 %v12060_v61 }
 0x3b4   :  { %15038 = vst [vmem:[#allocation25_spill] sm:$0xff] %v12066_v16  ;;  %3382 = vmatmul.bf16.gmra.mxu3 %v12064_v49  ;;  %v666_v37 = vrot.slane %v15041_v6, 1  ;;  %v665_v54 = vor.u32 %v664_v29, %v15044_v23  ;;  %v10046_v29 = vld [vmem:[%s14700_s1 + $0x478] sm:$0xff] }
 0x3b5   :  { %3668 = vmatpush.bf16.msra.mxu1 %v10046_v29  ;;  %v15048_v23 = vld [vmem:[#allocation16_spill] sm:$0xff] }
 0x3b6   :  { %v3254_v50 = vpop.f32.mrf.mxu2  ;;  %v2917_v22 = vpop.f32.mrf.mxu0  ;;  %v667_v48 = vor.u32 %v666_v37, %v15045_v14  ;;  %v12086_v40 = vsel %vm11822_vm5, %v665_v54, 0  ;;  %v15049_v54 = vshll.u32 %v15048_v23, 16 }
 0x3b7   :  { %v3343_v33 = vpop.f32.mrf.mxu3  ;;  %v3006_v3 = vpop.f32.mrf.mxu1 }
 0x3b8   :  { %v3344_v2 = vadd.f32 %v3343_v33, %v3254_v50  ;;  %v3007_v5 = vadd.f32 %v3006_v3, %v2917_v22  ;;  %v670_v14 = vrot.slane %v15049_v54, 1 }
 0x3ba   :  { %v12077_v55 = vadd.f32 %v3344_v2, %v3081_v11  ;;  %v3082_v9 = vadd.f32 %v3007_v5, %v15043_v28  ;;  %v12090_v11 = vsel %vm11822_vm5, %v667_v48, 0  ;;  %v10038_v5 = vld [vmem:[%s14700_s1 + $0x438] sm:$0xff]  ;;  %v15047_v28 = vshll.u32 %v14931_v58, 16 }
 0x3bb   :  { %3579 = vmatpush.bf16.msra.mxu0 %v10038_v5  ;;  %v15052_v5 = vshrl.u32 %v15048_v23, 16 }
 0x3bc   :  { %15042 = vst [vmem:[#allocation31_spill] sm:$0xff] %v12077_v55 }
 0x3bd   :  { %v671_v29 = vor.u32 %v670_v14, %v15052_v5  ;;  %v15055_v5 = vshrl.u32 %v14937_v30, 16 }
 0x3be   :  { %v3256_v50 = vpop.f32.mrf.mxu2  ;;  %v2920_v22 = vpop.f32.mrf.mxu0 }
 0x3bf   :  { %v3345_v33 = vpop.f32.mrf.mxu3  ;;  %v3009_v3 = vpop.f32.mrf.mxu1 }
 0x3c0   :  { %v3346_v16 = vadd.f32 %v3345_v33, %v3256_v50  ;;  %v3010_v26 = vadd.f32 %v3009_v3, %v2920_v22  ;;  %v15050_v50 = vld [vmem:[#allocation19_spill] sm:$0xff]  ;;  %v15051_v22 = vshrl.u32 %v14931_v58, 16 }
 0x3c1   :  { %2959 = vmatmul.bf16.gmra.mxu0 %v12060_v61 }
 0x3c2   :  { %v12092_v2 = vadd.f32 %v3346_v16, %v3082_v9  ;;  %v3083_v36 = vadd.f32 %v3010_v26, %v11667_v41  ;;  %3048 = vmatmul.bf16.gmra.mxu1 %v12064_v49  ;;  %v668_v9 = vrot.slane %v15047_v28, 1 }
 0x3c3   :  { %3298 = vmatmul.bf16.gmra.mxu2 %v12086_v40 }
 0x3c4   :  { %15046 = vst [vmem:[#allocation36_spill] sm:$0xff] %v12092_v2  ;;  %3387 = vmatmul.bf16.gmra.mxu3 %v12090_v11  ;;  %v669_v3 = vor.u32 %v668_v9, %v15051_v22  ;;  %v15053_v22 = vshll.u32 %v14937_v30, 16 }
 0x3c6   :  { %v3259_v16 = vpop.f32.mrf.mxu2  ;;  %v2922_v15 = vpop.f32.mrf.mxu0  ;;  %v12118_v28 = vsel %vm11822_vm5, %v669_v3, 0 }
 0x3c7   :  { %v3348_v41 = vpop.f32.mrf.mxu3  ;;  %v3011_v6 = vpop.f32.mrf.mxu1 }
 0x3c8   :  { %v3349_v26 = vadd.f32 %v3348_v41, %v3259_v16  ;;  %v3012_v37 = vadd.f32 %v3011_v6, %v2922_v15 }
 0x3ca   :  { %v12109_v48 = vadd.f32 %v3349_v26, %v3083_v36  ;;  %v3084_v33 = vadd.f32 %v3012_v37, %v15050_v50  ;;  %v12122_v36 = vsel %vm11822_vm5, %v671_v29, 0 }
 0x3ce   :  { %v3261_v16 = vpop.f32.mrf.mxu2  ;;  %v2925_v15 = vpop.f32.mrf.mxu0 }
 0x3cf   :  { %v3350_v41 = vpop.f32.mrf.mxu3  ;;  %v3014_v6 = vpop.f32.mrf.mxu1 }
 0x3d0   :  { %v3351_v2 = vadd.f32 %v3350_v41, %v3261_v16  ;;  %v3015_v55 = vadd.f32 %v3014_v6, %v2925_v15  ;;  %v15056_v16 = vshrl.u32 %v14962_v47, 16 }
 0x3d1   :  { %2964 = vmatmul.bf16.gmra.mxu0 %v12086_v40 }
 0x3d2   :  { %v12124_v26 = vadd.f32 %v3351_v2, %v3084_v33  ;;  %v3085_v58 = vadd.f32 %v3015_v55, %v11677_v21  ;;  %3053 = vmatmul.bf16.gmra.mxu1 %v12090_v11  ;;  %v672_v2 = vrot.slane %v15053_v22, 1  ;;  %v15054_v33 = vshll.u32 %v14962_v47, 16  ;;  %v10037_v47 = vld [vmem:[%s14700_s1 + $0x430] sm:$0xff] }
 0x3d3   :  { %3303 = vmatmul.bf16.gmra.mxu2 %v12118_v28  ;;  %3580 = vmatpush.bf16.msra.mxu0 %v10037_v47  ;;  %v10044_v47 = vld [vmem:[%s14700_s1 + $0x468] sm:$0xff] }
 0x3d4   :  { %3392 = vmatmul.bf16.gmra.mxu3 %v12122_v36  ;;  %v674_v21 = vrot.slane %v15054_v33, 1  ;;  %v673_v29 = vor.u32 %v672_v2, %v15055_v5  ;;  %v15058_v5 = vld [vmem:[#allocation26_spill] sm:$0xff] }
 0x3d6   :  { %v3264_v37 = vpop.f32.mrf.mxu2  ;;  %v2927_v54 = vpop.f32.mrf.mxu0  ;;  %v675_v41 = vor.u32 %v674_v21, %v15056_v16  ;;  %v12144_v22 = vsel %vm11822_vm5, %v673_v29, 0  ;;  %v15059_v29 = vshll.u32 %v15058_v5, 16 }
 0x3d7   :  { %v3353_v9 = vpop.f32.mrf.mxu3  ;;  %v3016_v14 = vpop.f32.mrf.mxu1 }
 0x3d8   :  { %v3354_v23 = vadd.f32 %v3353_v9, %v3264_v37  ;;  %v3017_v50 = vadd.f32 %v3016_v14, %v2927_v54  ;;  %v676_v16 = vrot.slane %v15059_v29, 1 }
 0x3da   :  { %v12135_v55 = vadd.f32 %v3354_v23, %v3085_v58  ;;  %v3086_v3 = vadd.f32 %v3017_v50, %v11680_v59  ;;  %v12148_v58 = vsel %vm11822_vm5, %v675_v41, 0  ;;  %v10045_v23 = vld [vmem:[%s14700_s1 + $0x470] sm:$0xff] }
 0x3db   :  { %3669 = vmatpush.bf16.msra.mxu1 %v10045_v23  ;;  %v15060_v41 = vld [vmem:[#allocation27_spill] sm:$0xff]  ;;  %v15065_v23 = vshrl.u32 %v15058_v5, 16 }
 0x3de   :  { %v3266_v15 = vpop.f32.mrf.mxu2  ;;  %v2930_v9 = vpop.f32.mrf.mxu0 }
 0x3df   :  { %v3355_v6 = vpop.f32.mrf.mxu3  ;;  %v3019_v54 = vpop.f32.mrf.mxu1  ;;  %3670 = vmatpush.bf16.msra.mxu1 %v10044_v47  ;;  %v10042_v47 = vld [vmem:[%s14700_s1 + $0x458] sm:$0xff] }
 0x3e0   :  { %v3356_v37 = vadd.f32 %v3355_v6, %v3266_v15  ;;  %v3020_v14 = vadd.f32 %v3019_v54, %v2930_v9  ;;  %v15061_v15 = vshll.u32 %v15060_v41, 16  ;;  %v15063_v9 = vld [vmem:[#allocation38_spill] sm:$0xff] }
 0x3e1   :  { %2969 = vmatmul.bf16.gmra.mxu0 %v12118_v28 }
 0x3e2   :  { %v12150_v59 = vadd.f32 %v3356_v37, %v3086_v3  ;;  %v3087_v30 = vadd.f32 %v3020_v14, %v11705_v38  ;;  %3058 = vmatmul.bf16.gmra.mxu1 %v12122_v36  ;;  %v678_v6 = vrot.slane %v15061_v15, 1  ;;  %v10036_v14 = vld [vmem:[%s14700_s1 + $0x428] sm:$0xff] }
 0x3e3   :  { %3308 = vmatmul.bf16.gmra.mxu2 %v12144_v22  ;;  %3581 = vmatpush.bf16.msra.mxu0 %v10036_v14  ;;  %v10034_v14 = vld [vmem:[%s14700_s1 + $0x418] sm:$0xff] }
 0x3e4   :  { %15057 = vst [vmem:[#allocation37_spill] sm:$0xff] %v12150_v59  ;;  %3397 = vmatmul.bf16.gmra.mxu3 %v12148_v58 }
 0x3e6   :  { %v3269_v50 = vpop.f32.mrf.mxu2  ;;  %v2932_v33 = vpop.f32.mrf.mxu0 }
 0x3e7   :  { %v3358_v38 = vpop.f32.mrf.mxu3  ;;  %v3021_v21 = vpop.f32.mrf.mxu1 }
 0x3e8   :  { %v3359_v2 = vadd.f32 %v3358_v38, %v3269_v50  ;;  %v3022_v3 = vadd.f32 %v3021_v21, %v2932_v33  ;;  %v677_v50 = vor.u32 %v676_v16, %v15065_v23  ;;  %v15066_v38 = vshrl.u32 %v15060_v41, 16  ;;  %v10035_v21 = vld [vmem:[%s14700_s1 + $0x420] sm:$0xff] }
 0x3e9   :  { %3582 = vmatpush.bf16.msra.mxu0 %v10035_v21 }
 0x3ea   :  { %v12167_v37 = vadd.f32 %v3359_v2, %v3087_v30  ;;  %v12170_v54 = vadd.f32 %v3022_v3, %v15063_v9  ;;  %v679_v33 = vor.u32 %v678_v6, %v15066_v38  ;;  %v10043_v3 = vld [vmem:[%s14700_s1 + $0x460] sm:$0xff]  ;;  %v12194_v41 = vsel %vm11822_vm5, %v677_v50, 0  ;;  %v10033_v38 = vld [vmem:[%s14700_s1 + $0x410] sm:$0xff] }
 0x3eb   :  { %3671 = vmatpush.bf16.msra.mxu1 %v10043_v3  ;;  %v15070_v6 = vld [vmem:[#allocation13_spill] sm:$0xff] }
 0x3ec   :  { %15062 = vst [vmem:[#allocation4_spill] sm:$0xff] %v12167_v37  ;;  %v12198_v15 = vsel %vm11822_vm5, %v679_v33, 0  ;;  %v10041_v33 = vld [vmem:[%s14700_s1 + $0x450] sm:$0xff]  ;;  %v15073_v37 = vld [vmem:[#allocation33_spill] sm:$0xff] }
 0x3ed   :  { %15064 = vst [vmem:[#allocation5_spill] sm:$0xff] %v12170_v54  ;;  %3583 = vmatpush.bf16.msra.mxu0 %v10034_v14  ;;  %v15074_v14 = vshll.u32 %v15073_v37, 16 }
 0x3ee   :  { %v12182_v30 = vpop.f32.mrf.mxu2  ;;  %v2935_v29 = vpop.f32.mrf.mxu0  ;;  %15069 = vst [vmem:[#allocation32_spill] sm:$0xff] %v12198_v15 }
 0x3ef   :  { %15067 = vst [vmem:[#allocation7_spill] sm:$0xff] %v12182_v30  ;;  %v12184_v2 = vpop.f32.mrf.mxu3  ;;  %v3024_v5 = vpop.f32.mrf.mxu1  ;;  %3672 = vmatpush.bf16.msra.mxu1 %v10042_v47  ;;  %v682_v47 = vrot.slane %v15074_v14, 1  ;;  %v15076_v30 = vld [vmem:[#allocation14_spill] sm:$0xff] }
 0x3f0   :  { %15068 = vst [vmem:[#allocation8_spill] sm:$0xff] %v12184_v2  ;;  %v3025_v16 = vadd.f32 %v3024_v5, %v2935_v29 }
 0x3f1   :  { %2974 = vmatmul.bf16.gmra.mxu0 %v12144_v22 }
 0x3f2   :  { %v3089_v9 = vadd.f32 %v3025_v16, %v15070_v6  ;;  %3063 = vmatmul.bf16.gmra.mxu1 %v12148_v58  ;;  %v15071_v16 = vld [vmem:[#allocation30_spill] sm:$0xff]  ;;  %3584 = vmatpush.bf16.msra.mxu0 %v10033_v38 }
 0x3f3   :  { %3313 = vmatmul.bf16.gmra.mxu2 %v12194_v41  ;;  %v15072_v6 = vshll.u32 %v15071_v16, 16  ;;  %3673 = vmatpush.bf16.msra.mxu1 %v10041_v33  ;;  %v10031_v33 = vld [vmem:[%s14700_s1 + $0x400] sm:$0xff] }
 0x3f4   :  { %3402 = vmatmul.bf16.gmra.mxu3 %v12198_v15 }
 0x3f5   :  { %v680_v54 = vrot.slane %v15072_v6, 1  ;;  %v15079_v6 = vshrl.u32 %v15073_v37, 16 }
 0x3f6   :  { %v3274_v23 = vpop.f32.mrf.mxu2  ;;  %v2937_v3 = vpop.f32.mrf.mxu0 }
 0x3f7   :  { %v3363_v50 = vpop.f32.mrf.mxu3  ;;  %v3026_v29 = vpop.f32.mrf.mxu1  ;;  %v683_v38 = vor.u32 %v682_v47, %v15079_v6 }
 0x3f8   :  { %v3364_v21 = vadd.f32 %v3363_v50, %v3274_v23  ;;  %v3027_v5 = vadd.f32 %v3026_v29, %v2937_v3  ;;  %v10032_v23 = vld [vmem:[%s14700_s1 + $0x408] sm:$0xff]  ;;  %v15078_v3 = vshrl.u32 %v15071_v16, 16 }
 0x3f9   :  { %v10040_v50 = vld [vmem:[%s14700_s1 + $0x448] sm:$0xff]  ;;  %3585 = vmatpush.bf16.msra.mxu0 %v10032_v23  ;;  %v12252_v14 = vsel %vm11822_vm5, %v683_v38, 0  ;;  %v15082_v38 = vshll.u32 %v14973_v19, 16 }
 0x3fa   :  { %v12221_v2 = vadd.f32 %v3364_v21, %v3089_v9  ;;  %v12224_v59 = vadd.f32 %v3027_v5, %v15076_v30  ;;  %v681_v29 = vor.u32 %v680_v54, %v15078_v3  ;;  %3674 = vmatpush.bf16.msra.mxu1 %v10040_v50  ;;  %v10039_v21 = vld [vmem:[%s14700_s1 + $0x440] sm:$0xff] }
 0x3fc   :  { %15075 = vst [vmem:[#allocation15_spill] sm:$0xff] %v12221_v2  ;;  %v12248_v37 = vsel %vm11822_vm5, %v681_v29, 0  ;;  %v15085_v2 = vshrl.u32 %v14973_v19, 16  ;;  %v15087_v19 = vld [vmem:[#allocation17_spill] sm:$0xff] }
 0x3fd   :  { %15077 = vst [vmem:[#allocation9_spill] sm:$0xff] %v12224_v59  ;;  %3586 = vmatpush.bf16.msra.mxu0 %v10031_v33  ;;  %v684_v33 = vrot.slane %v15082_v38, 1 }
 0x3fe   :  { %v12236_v9 = vpop.f32.mrf.mxu2  ;;  %v2940_v5 = vpop.f32.mrf.mxu0  ;;  %3675 = vmatpush.bf16.msra.mxu1 %v10039_v21  ;;  %v15083_v21 = vshll.u32 %v14974_v51, 16 }
 0x3ff   :  { %15080 = vst [vmem:[#allocation10_spill] sm:$0xff] %v12236_v9  ;;  %v12238_v30 = vpop.f32.mrf.mxu3  ;;  %v3029_v16 = vpop.f32.mrf.mxu1  ;;  %v15086_v9 = vshrl.u32 %v14974_v51, 16 }
 0x400   :  { %15081 = vst [vmem:[#allocation34_spill] sm:$0xff] %v12238_v30  ;;  %v3030_v54 = vadd.f32 %v3029_v16, %v2940_v5  ;;  %v685_v30 = vor.u32 %v684_v33, %v15085_v2 }
 0x401   :  { %2979 = vmatmul.bf16.gmra.mxu0 %v12194_v41 }
 0x402   :  { %v3091_v47 = vadd.f32 %v3030_v54, %v11797_v31  ;;  %3068 = vmatmul.bf16.gmra.mxu1 %v12198_v15  ;;  %v686_v31 = vrot.slane %v15083_v21, 1  ;;  %v15084_v54 = vld [vmem:[#allocation11_spill] sm:$0xff] }
 0x403   :  { %3318 = vmatmul.bf16.gmra.mxu2 %v12248_v37 }
 0x404   :  { %3407 = vmatmul.bf16.gmra.mxu3 %v12252_v14 }
 0x406   :  { %v3279_v23 = vpop.f32.mrf.mxu2  ;;  %v2942_v29 = vpop.f32.mrf.mxu0 }
 0x407   :  { %v3368_v50 = vpop.f32.mrf.mxu3  ;;  %v3031_v6 = vpop.f32.mrf.mxu1 }
 0x408   :  { %v3369_v3 = vadd.f32 %v3368_v50, %v3279_v23  ;;  %v3032_v5 = vadd.f32 %v3031_v6, %v2942_v29  ;;  %v687_v23 = vor.u32 %v686_v31, %v15086_v9 }
 0x40a   :  { %v12263_v16 = vadd.f32 %v3369_v3, %v3091_v47  ;;  %v12266_v59 = vadd.f32 %v3032_v5, %v15084_v54  ;;  %v12278_v47 = vsel %vm11822_vm5, %v685_v30, 0  ;;  %v12282_v3 = vsel %vm11822_vm5, %v687_v23, 0 }
 0x40e   :  { %v12272_v50 = vpop.f32.mrf.mxu2  ;;  %v2945_v6 = vpop.f32.mrf.mxu0 }
 0x40f   :  { %v12274_v29 = vpop.f32.mrf.mxu3  ;;  %v3034_v38 = vpop.f32.mrf.mxu1 }
 0x410   :  { %v3035_v15 = vadd.f32 %v3034_v38, %v2945_v6 }
 0x411   :  { %2984 = vmatmul.bf16.gmra.mxu0 %v12248_v37 }
 0x412   :  { %v3093_v2 = vadd.f32 %v3035_v15, %v15087_v19  ;;  %3073 = vmatmul.bf16.gmra.mxu1 %v12252_v14 }
 0x413   :  { %3323 = vmatmul.bf16.gmra.mxu2 %v12278_v47 }
 0x414   :  { %3412 = vmatmul.bf16.gmra.mxu3 %v12282_v3 }
 0x416   :  { %v3284_v51 = vpop.f32.mrf.mxu2  ;;  %v2947_v33 = vpop.f32.mrf.mxu0 }
 0x417   :  { %v3373_v9 = vpop.f32.mrf.mxu3  ;;  %v3036_v30 = vpop.f32.mrf.mxu1 }
 0x418   :  { %v3374_v5 = vadd.f32 %v3373_v9, %v3284_v51  ;;  %v3037_v21 = vadd.f32 %v3036_v30, %v2947_v33 }
 0x41a   :  { %v12289_v31 = vadd.f32 %v3374_v5, %v3093_v2  ;;  %v12292_v54 = vadd.f32 %v3037_v21, %v11838_v44 }
 0x41c   :  { %15088 = vst [vmem:[#allocation12_spill] sm:$0xff] %v12292_v54 }
 0x41e   :  { %v12294_v15 = vpop.f32.mrf.mxu2  ;;  %v2950_v6 = vpop.f32.mrf.mxu0 }
 0x41f   :  { %v12296_v23 = vpop.f32.mrf.mxu3  ;;  %v3039_v38 = vpop.f32.mrf.mxu1 }
 0x420   :  { %v3040_v19 = vadd.f32 %v3039_v38, %v2950_v6 }
 0x421   :  { %3587 = vmatmul.bf16.vlgmr.msra.gmra.mxu0 %v11854_v52 }
 0x422   :  { %v3095_v0 = vadd.f32 %v3040_v19, %v11845_v17  ;;  %3676 = vmatmul.bf16.vlgmr.msra.gmra.mxu1 %v11858_v57 }
 0x426   :  { %v3289_v51 = vpop.f32.mrf.mxu2  ;;  %v2952_v5 = vpop.f32.mrf.mxu0 }
 0x427   :  { %v3378_v9 = vpop.f32.mrf.mxu3  ;;  %v3041_v33 = vpop.f32.mrf.mxu1 }
 0x428   :  { %v3379_v2 = vadd.f32 %v3378_v9, %v3289_v51  ;;  %v3042_v44 = vadd.f32 %v3041_v33, %v2952_v5 }
 0x42a   :  { %v12301_v30 = vadd.f32 %v3379_v2, %v3095_v0  ;;  %v12304_v21 = vadd.f32 %v3042_v44, %v11860_v53 }
 0x42e   :  { %v12306_v54 = vpop.f32.mrf.mxu2  ;;  %v2955_v17 = vpop.f32.mrf.mxu0 }
 0x42f   :  { %v12308_v6 = vpop.f32.mrf.mxu3  ;;  %v3044_v38 = vpop.f32.mrf.mxu1 }
 0x430   :  { %v3045_v52 = vadd.f32 %v3044_v38, %v2955_v17 }
 0x431   :  { %3592 = vmatmul.bf16.gmra.mxu0 %v11878_v18 }
 0x432   :  { %v3097_v57 = vadd.f32 %v3045_v52, %v11869_v27  ;;  %3681 = vmatmul.bf16.gmra.mxu1 %v11882_v10 }
 0x436   :  { %v3294_v19 = vpop.f32.mrf.mxu2  ;;  %v2957_v9 = vpop.f32.mrf.mxu0 }
 0x437   :  { %v3383_v51 = vpop.f32.mrf.mxu3  ;;  %v3046_v2 = vpop.f32.mrf.mxu1 }
 0x438   :  { %v3384_v0 = vadd.f32 %v3383_v51, %v3294_v19  ;;  %v3047_v53 = vadd.f32 %v3046_v2, %v2957_v9 }
 0x43a   :  { %v12313_v5 = vadd.f32 %v3384_v0, %v3097_v57  ;;  %v12316_v33 = vadd.f32 %v3047_v53, %v11884_v1 }
 0x43e   :  { %v12318_v44 = vpop.f32.mrf.mxu2  ;;  %v2960_v27 = vpop.f32.mrf.mxu0 }
 0x43f   :  { %v12320_v17 = vpop.f32.mrf.mxu3  ;;  %v3049_v38 = vpop.f32.mrf.mxu1 }
 0x440   :  { %v3050_v18 = vadd.f32 %v3049_v38, %v2960_v27 }
 0x441   :  { %3597 = vmatmul.bf16.gmra.mxu0 %v11904_v46 }
 0x442   :  { %v3099_v10 = vadd.f32 %v3050_v18, %v11895_v42  ;;  %3686 = vmatmul.bf16.gmra.mxu1 %v11908_v32 }
 0x446   :  { %v3299_v52 = vpop.f32.mrf.mxu2  ;;  %v2962_v51 = vpop.f32.mrf.mxu0 }
 0x447   :  { %v3388_v19 = vpop.f32.mrf.mxu3  ;;  %v3051_v0 = vpop.f32.mrf.mxu1 }
 0x448   :  { %v3389_v57 = vadd.f32 %v3388_v19, %v3299_v52  ;;  %v3052_v1 = vadd.f32 %v3051_v0, %v2962_v51 }
 0x44a   :  { %v12325_v9 = vadd.f32 %v3389_v57, %v3099_v10  ;;  %v12328_v2 = vadd.f32 %v3052_v1, %v11910_v34 }
 0x44e   :  { %v12330_v53 = vpop.f32.mrf.mxu2  ;;  %v2965_v42 = vpop.f32.mrf.mxu0 }
 0x44f   :  { %v12332_v27 = vpop.f32.mrf.mxu3  ;;  %v3054_v38 = vpop.f32.mrf.mxu1 }
 0x450   :  { %v3055_v46 = vadd.f32 %v3054_v38, %v2965_v42 }
 0x451   :  { %3602 = vmatmul.bf16.gmra.mxu0 %v11930_v25 }
 0x452   :  { %v3101_v32 = vadd.f32 %v3055_v46, %v11921_v56  ;;  %3691 = vmatmul.bf16.gmra.mxu1 %v11934_v60 }
 0x456   :  { %v3304_v18 = vpop.f32.mrf.mxu2  ;;  %v2967_v19 = vpop.f32.mrf.mxu0 }
 0x457   :  { %v3393_v52 = vpop.f32.mrf.mxu3  ;;  %v3056_v57 = vpop.f32.mrf.mxu1 }
 0x458   :  { %v3394_v10 = vadd.f32 %v3393_v52, %v3304_v18  ;;  %v3057_v34 = vadd.f32 %v3056_v57, %v2967_v19  ;;  %v10080_v57 = vld [vmem:[%s14704_s4 + $0xf8] sm:$0xff] }
 0x459   :  { %4399 = vmatpush.bf16.msra.mxu2 %v10080_v57 }
 0x45a   :  { %v12337_v51 = vadd.f32 %v3394_v10, %v3101_v32  ;;  %v12340_v0 = vadd.f32 %v3057_v34, %v11936_v39 }
 0x45e   :  { %v12342_v1 = vpop.f32.mrf.mxu2  ;;  %v2970_v56 = vpop.f32.mrf.mxu0 }
 0x45f   :  { %v12344_v42 = vpop.f32.mrf.mxu3  ;;  %v3059_v38 = vpop.f32.mrf.mxu1 }
 0x460   :  { %v3060_v25 = vadd.f32 %v3059_v38, %v2970_v56 }
 0x461   :  { %3607 = vmatmul.bf16.gmra.mxu0 %v11956_v4 }
 0x462   :  { %v3103_v60 = vadd.f32 %v3060_v25, %v11947_v43  ;;  %3696 = vmatmul.bf16.gmra.mxu1 %v11960_v20 }
 0x466   :  { %v3309_v46 = vpop.f32.mrf.mxu2  ;;  %v2972_v52 = vpop.f32.mrf.mxu0 }
 0x467   :  { %v3398_v18 = vpop.f32.mrf.mxu3  ;;  %v3061_v10 = vpop.f32.mrf.mxu1 }
 0x468   :  { %v3399_v32 = vadd.f32 %v3398_v18, %v3309_v46  ;;  %v3062_v39 = vadd.f32 %v3061_v10, %v2972_v52 }
 0x46a   :  { %v12349_v19 = vadd.f32 %v3399_v32, %v3103_v60  ;;  %v12355_v34 = vadd.f32 %v3062_v39, %v11962_v13  ;;  %v10072_v60 = vld [vmem:[%s14704_s4 + $0x38] sm:$0xff]  ;;  %v10071_v39 = vld [vmem:[%s14704_s4 + $0x30] sm:$0xff] }
 0x46b   :  { %4536 = vmatpush.bf16.msra.mxu3 %v10072_v60 }
 0x46e   :  { %v12357_v43 = vpop.f32.mrf.mxu2  ;;  %v2975_v20 = vpop.f32.mrf.mxu0 }
 0x46f   :  { %v12359_v4 = vpop.f32.mrf.mxu3  ;;  %v3064_v56 = vpop.f32.mrf.mxu1  ;;  %4537 = vmatpush.bf16.msra.mxu3 %v10071_v39 }
 0x470   :  { %v3065_v38 = vadd.f32 %v3064_v56, %v2975_v20 }
 0x471   :  { %3612 = vmatmul.bf16.gmra.mxu0 %v11982_v12 }
 0x472   :  { %v3105_v25 = vadd.f32 %v3065_v38, %v11973_v62  ;;  %3701 = vmatmul.bf16.gmra.mxu1 %v11986_v63  ;;  %v10070_v63 = vld [vmem:[%s14704_s4 + $0x28] sm:$0xff] }
 0x473   :  { %4538 = vmatpush.bf16.msra.mxu3 %v10070_v63 }
 0x476   :  { %v3314_v13 = vpop.f32.mrf.mxu2  ;;  %v2977_v32 = vpop.f32.mrf.mxu0 }
 0x477   :  { %v3403_v46 = vpop.f32.mrf.mxu3  ;;  %v3066_v52 = vpop.f32.mrf.mxu1 }
 0x478   :  { %v3404_v18 = vadd.f32 %v3403_v46, %v3314_v13  ;;  %v3067_v10 = vadd.f32 %v3066_v52, %v2977_v32  ;;  %v15091_v13 = vld [vmem:[#allocation20_spill] sm:$0xff] }
 0x479   :  { %v10068_v46 = vld [vmem:[%s14704_s4 + $0x18] sm:$0xff] }
 0x47a   :  { %v12370_v62 = vadd.f32 %v3404_v18, %v3105_v25  ;;  %v12373_v12 = vadd.f32 %v3067_v10, %v11988_v45  ;;  %v10069_v25 = vld [vmem:[%s14704_s4 + $0x20] sm:$0xff] }
 0x47b   :  { %4539 = vmatpush.bf16.msra.mxu3 %v10069_v25  ;;  %v10078_v25 = vld [vmem:[%s14704_s4 + $0xe8] sm:$0xff] }
 0x47c   :  { %15089 = vst [vmem:[#allocation35_spill] sm:$0xff] %v12370_v62 }
 0x47d   :  { %15090 = vst [vmem:[#allocation16_spill] sm:$0xff] %v12373_v12  ;;  %v15105_v12 = vld [vmem:[#allocation36_spill] sm:$0xff] }
 0x47e   :  { %v12378_v57 = vpop.f32.mrf.mxu2  ;;  %v2980_v56 = vpop.f32.mrf.mxu0 }
 0x47f   :  { %v12380_v20 = vpop.f32.mrf.mxu3  ;;  %v3069_v38 = vpop.f32.mrf.mxu1  ;;  %4540 = vmatpush.bf16.msra.mxu3 %v10068_v46  ;;  %v12408_v46 = vld [vmem:[#allocation3] sm:$0xff] }
 0x480   :  { %v3070_v60 = vadd.f32 %v3069_v38, %v2980_v56  ;;  %v15093_v38 = vld [vmem:[#allocation21_spill] sm:$0xff] }
 0x481   :  { %3617 = vmatmul.bf16.gmra.mxu0 %v12008_v7  ;;  %v10067_v7 = vld [vmem:[%s14704_s4 + $0x10] sm:$0xff] }
 0x482   :  { %v3107_v45 = vadd.f32 %v3070_v60, %v11999_v8  ;;  %3706 = vmatmul.bf16.gmra.mxu1 %v15091_v13  ;;  %v10079_v8 = vld [vmem:[%s14704_s4 + $0xf0] sm:$0xff]  ;;  %v10066_v13 = vld [vmem:[%s14704_s4 + $0x8] sm:$0xff] }
 0x483   :  { %4400 = vmatpush.bf16.msra.mxu2 %v10079_v8  ;;  %4541 = vmatpush.bf16.msra.mxu3 %v10067_v7  ;;  %v10065_v8 = vld [vmem:[%s14704_s4] sm:$0xff] }
 0x486   :  { %v3319_v18 = vpop.f32.mrf.mxu2  ;;  %v2982_v10 = vpop.f32.mrf.mxu0 }
 0x487   :  { %v3408_v32 = vpop.f32.mrf.mxu3  ;;  %v3071_v39 = vpop.f32.mrf.mxu1  ;;  %4401 = vmatpush.bf16.msra.mxu2 %v10078_v25  ;;  %4542 = vmatpush.bf16.msra.mxu3 %v10066_v13  ;;  %v15097_v25 = vld [vmem:[#allocation22_spill] sm:$0xff] }
 0x488   :  { %v3409_v52 = vadd.f32 %v3408_v32, %v3319_v18  ;;  %v3072_v63 = vadd.f32 %v3071_v39, %v2982_v10 }
 0x48a   :  { %v12397_v56 = vadd.f32 %v3409_v52, %v3107_v45  ;;  %v12400_v60 = vadd.f32 %v3072_v63, %v15093_v38  ;;  %v14841_v45 = vshrl.u32 %v12408_v46, 16  ;;  %v10077_v63 = vld [vmem:[%s14704_s4 + $0xe0] sm:$0xff]  ;;  %v14842_v38 = vshll.u32 %v12408_v46, 16 }
 0x48b   :  { %4402 = vmatpush.bf16.msra.mxu2 %v10077_v63  ;;  %4543 = vmatpush.bf16.msra.mxu3 %v10065_v8  ;;  %v10075_v63 = vld [vmem:[%s14704_s4 + $0xd0] sm:$0xff] }
 0x48c   :  { %15092 = vst [vmem:[#allocation19_spill] sm:$0xff] %v12397_v56  ;;  %v4087_v7 = vrot.slane %v14841_v45, 7  ;;  %v10076_v45 = vld [vmem:[%s14704_s4 + $0xd8] sm:$0xff] }
 0x48d   :  { %15094 = vst [vmem:[#allocation26_spill] sm:$0xff] %v12400_v60 }
 0x48e   :  { %v12410_v18 = vpop.f32.mrf.mxu2  ;;  %v2985_v52 = vpop.f32.mrf.mxu0  ;;  %v4090_v13 = vor.u32 %v14842_v38, %v4087_v7  ;;  %v15100_v7 = vld [vmem:[#allocation23_spill] sm:$0xff]  ;;  %v10074_v38 = vld [vmem:[%s14704_s4 + $0xc8] sm:$0xff] }
 0x48f   :  { %15095 = vst [vmem:[#allocation27_spill] sm:$0xff] %v12410_v18  ;;  %v12412_v32 = vpop.f32.mrf.mxu3  ;;  %v3074_v10 = vpop.f32.mrf.mxu1  ;;  %4403 = vmatpush.bf16.msra.mxu2 %v10076_v45  ;;  %v10073_v45 = vld [vmem:[%s14704_s4 + $0xc0] sm:$0xff] }
 0x490   :  { %15096 = vst [vmem:[#allocation38_spill] sm:$0xff] %v12412_v32  ;;  %v3075_v39 = vadd.f32 %v3074_v10, %v2985_v52  ;;  %v4228_v10 = vsel %vm10656_vm2, 0, %v4090_v13 }
 0x491   :  { %3622 = vmatmul.bf16.gmra.mxu0 %v12034_v35  ;;  %4544 = vmatmul.bf16.vlgmr.msra.gmra.mxu3 %v4228_v10 }
 0x492   :  { %v3109_v60 = vadd.f32 %v3075_v39, %v15097_v25  ;;  %3711 = vmatmul.bf16.gmra.mxu1 %v12038_v24 }
 0x493   :  { %4404 = vmatpush.bf16.msra.mxu2 %v10075_v63  ;;  %v12460_v63 = vld [vmem:[%s14703_s3] ss:$0 sm:$0xff] }
 0x496   :  { %v3324_v56 = vpop.f32.mrf.mxu2  ;;  %v2987_v25 = vpop.f32.mrf.mxu0 }
 0x497   :  { %v3413_v32 = vpop.f32.mrf.mxu3  ;;  %v3076_v35 = vpop.f32.mrf.mxu1  ;;  %4405 = vmatpush.bf16.msra.mxu2 %v10074_v38 }
 0x498   :  { %v3414_v39 = vadd.f32 %v3413_v32, %v3324_v56  ;;  %v3077_v24 = vadd.f32 %v3076_v35, %v2987_v25  ;;  %v12454_v25 = vld [vmem:[%s14702_s2] ss:$0 sm:$0xff] }
 0x49a   :  { %v12437_v8 = vadd.f32 %v3414_v39, %v3109_v60  ;;  %v12440_v13 = vadd.f32 %v3077_v24, %v15100_v7  ;;  %v15102_v60 = vld [vmem:[#allocation24_spill] sm:$0xff]  ;;  %v15103_v7 = vld [vmem:[#allocation25_spill] sm:$0xff] }
 0x49b   :  { %4406 = vmatpush.bf16.msra.mxu2 %v10073_v45 }
 0x49c   :  { %15099 = vst [vmem:[#allocation13_spill] sm:$0xff] %v12437_v8 }
 0x49d   :  { %15101 = vst [vmem:[#allocation30_spill] sm:$0xff] %v12440_v13 }
 0x49e   :  { %v3588_v10 = vpop.f32.mrf.mxu0 }
 0x49f   :  { %v3677_v56 = vpop.f32.mrf.mxu1 }
 0x4a0   :  { %v3678_v32 = vadd.f32 %v3677_v56, %v3588_v10 }
 0x4a1   :  { %3627 = vmatmul.bf16.gmra.mxu0 %v12060_v61 }
 0x4a2   :  { %3716 = vmatmul.bf16.gmra.mxu1 %v12064_v49  ;;  %v3757_v39 = vadd.f32 %v3678_v32, %v15102_v60 }
 0x4a4   :  { %v3793_v38 = vmul.f32 %v12454_v25, %v3757_v39 }
 0x4a6   :  { %v3590_v35 = vpop.f32.mrf.mxu0  ;;  %v3829_v10 = vadd.f32 %v12460_v63, %v3793_v38 }
 0x4a7   :  { %v3679_v24 = vpop.f32.mrf.mxu1 }
 0x4a8   :  { %v3680_v61 = vadd.f32 %v3679_v24, %v3590_v35  ;;  %v3861_v13 = vmax.f32 %v3829_v10, 0.0  ;;  %v15104_v35 = vld [vmem:[#allocation31_spill] sm:$0xff] }
 0x4aa   :  { %v3758_v49 = vadd.f32 %v3680_v61, %v15103_v7 }
 0x4ac   :  { %v3794_v56 = vmul.f32 %v12454_v25, %v3758_v49 }
 0x4ae   :  { %v3830_v32 = vadd.f32 %v12460_v63, %v3794_v56  ;;  %v3593_v45 = vpop.f32.mrf.mxu0 }
 0x4af   :  { %v3682_v60 = vpop.f32.mrf.mxu1 }
 0x4b0   :  { %v3862_v8 = vmax.f32 %v3830_v32, 0.0  ;;  %v3683_v18 = vadd.f32 %v3682_v60, %v3593_v45 }
 0x4b1   :  { %3632 = vmatmul.bf16.gmra.mxu0 %v12086_v40 }
 0x4b2   :  { %v10230_v39 = vpack.c.bf16 %v3862_v8, %v3861_v13  ;;  %3721 = vmatmul.bf16.gmra.mxu1 %v12090_v11  ;;  %v3759_v24 = vadd.f32 %v3683_v18, %v15104_v35 }
 0x4b4   :  { %10231 = vst [vmem:[#allocation3 + $0x8] sm:$0xff] %v10230_v39   ;;  %v3795_v38 = vmul.f32 %v12454_v25, %v3759_v24 }
 0x4b6   :  { %v3595_v61 = vpop.f32.mrf.mxu0  ;;  %v3831_v10 = vadd.f32 %v12460_v63, %v3795_v38 }
 0x4b7   :  { %v3684_v7 = vpop.f32.mrf.mxu1 }
 0x4b8   :  { %v3685_v49 = vadd.f32 %v3684_v7, %v3595_v61  ;;  %v3863_v39 = vmax.f32 %v3831_v10, 0.0 }
 0x4ba   :  { %v3760_v56 = vadd.f32 %v3685_v49, %v15105_v12 }
 0x4bb   :  { %v12471_v62 = vld [vmem:[#allocation3 + $0x8] sm:$0xff] }
 0x4bc   :  { %v3796_v8 = vmul.f32 %v12454_v25, %v3760_v56  ;;  %v4092_v40 = vshrl.u32 %v12471_v62, 16  ;;  %v4095_v11 = vshll.u32 %v12471_v62, 16 }
 0x4be   :  { %v3832_v13 = vadd.f32 %v12460_v63, %v3796_v8  ;;  %v3598_v18 = vpop.f32.mrf.mxu0  ;;  %v4094_v45 = vrot.slane %v4092_v40, 7  ;;  %v4248_v60 = vrot.slane %v4095_v11, 1 }
 0x4bf   :  { %v3687_v32 = vpop.f32.mrf.mxu1 }
 0x4c0   :  { %v3864_v35 = vmax.f32 %v3832_v13, 0.0  ;;  %v3688_v24 = vadd.f32 %v3687_v32, %v3598_v18  ;;  %v4097_v12 = vor.u32 %v4095_v11, %v4094_v45  ;;  %v12478_v61 = vor.u32 %v4248_v60, %v4092_v40 }
 0x4c1   :  { %3637 = vmatmul.bf16.gmra.mxu0 %v12118_v28 }
 0x4c2   :  { %v10235_v7 = vpack.c.bf16 %v3864_v35, %v3863_v39  ;;  %3726 = vmatmul.bf16.gmra.mxu1 %v12122_v36  ;;  %v4229_v38 = vsel %vm10656_vm2, 0, %v4097_v12  ;;  %v3761_v49 = vadd.f32 %v3688_v24, %v12109_v48 }
 0x4c3   :  { %4407 = vmatmul.bf16.vlgmr.msra.gmra.mxu2 %v4229_v38  ;;  %4549 = vmatmul.bf16.gmra.mxu3 %v4229_v38 }
 0x4c4   :  { %10387 = vst [vmem:[#allocation3 + $0x10] sm:$0xff] %v10235_v7   ;;  %v3797_v8 = vmul.f32 %v12454_v25, %v3761_v49 }
 0x4c6   :  { %v3600_v56 = vpop.f32.mrf.mxu0  ;;  %v3833_v28 = vadd.f32 %v12460_v63, %v3797_v8 }
 0x4c7   :  { %v3689_v10 = vpop.f32.mrf.mxu1 }
 0x4c8   :  { %v3690_v11 = vadd.f32 %v3689_v10, %v3600_v56  ;;  %v3865_v24 = vmax.f32 %v3833_v28, 0.0 }
 0x4ca   :  { %v3762_v40 = vadd.f32 %v3690_v11, %v12124_v26 }
 0x4cb   :  { %v12487_v13 = vld [vmem:[#allocation3 + $0x10] sm:$0xff] }
 0x4cc   :  { %v3798_v36 = vmul.f32 %v12454_v25, %v3762_v40  ;;  %v4099_v18 = vshrl.u32 %v12487_v13, 16  ;;  %v4102_v32 = vshll.u32 %v12487_v13, 16 }
 0x4ce   :  { %v3834_v48 = vadd.f32 %v12460_v63, %v3798_v36  ;;  %v3603_v45 = vpop.f32.mrf.mxu0  ;;  %v4101_v39 = vrot.slane %v4099_v18, 7  ;;  %v4250_v35 = vrot.slane %v4102_v32, 1  ;;  %v15106_v36 = vld [vmem:[#allocation37_spill] sm:$0xff] }
 0x4cf   :  { %v3692_v60 = vpop.f32.mrf.mxu1 }
 0x4d0   :  { %v3866_v12 = vmax.f32 %v3834_v48, 0.0  ;;  %v3693_v7 = vadd.f32 %v3692_v60, %v3603_v45  ;;  %v4104_v26 = vor.u32 %v4102_v32, %v4101_v39  ;;  %v12494_v38 = vor.u32 %v4250_v35, %v4099_v18 }
 0x4d1   :  { %3642 = vmatmul.bf16.gmra.mxu0 %v12144_v22 }
 0x4d2   :  { %v10240_v49 = vpack.c.bf16 %v3866_v12, %v3865_v24  ;;  %3731 = vmatmul.bf16.gmra.mxu1 %v12148_v58  ;;  %v12500_v56 = vsel %vm10656_vm2, 0, %v4104_v26  ;;  %v3763_v10 = vadd.f32 %v3693_v7, %v12135_v55 }
 0x4d3   :  { %4412 = vmatmul.bf16.gmra.mxu2 %v12500_v56  ;;  %4554 = vmatmul.bf16.gmra.mxu3 %v12500_v56 }
 0x4d4   :  { %10388 = vst [vmem:[#allocation3 + $0x18] sm:$0xff] %v10240_v49   ;;  %v3799_v40 = vmul.f32 %v12454_v25, %v3763_v10 }
 0x4d6   :  { %v3605_v8 = vpop.f32.mrf.mxu0  ;;  %v3835_v58 = vadd.f32 %v12460_v63, %v3799_v40  ;;  %v10088_v40 = vld [vmem:[%s14704_s4 + $0x1b8] sm:$0xff] }
 0x4d7   :  { %v3694_v11 = vpop.f32.mrf.mxu1  ;;  %4690 = vmatpush.bf16.msrb.mxu0 %v10088_v40 }
 0x4d8   :  { %v3695_v28 = vadd.f32 %v3694_v11, %v3605_v8  ;;  %v3867_v12 = vmax.f32 %v3835_v58, 0.0  ;;  %v15107_v11 = vld [vmem:[#allocation32_spill] sm:$0xff] }
 0x4d9   :  { %v15109_v58 = vld [vmem:[#allocation8_spill] sm:$0xff] }
 0x4da   :  { %v3764_v22 = vadd.f32 %v3695_v28, %v15106_v36  ;;  %v10096_v28 = vld [vmem:[%s14704_s4 + $0x78] sm:$0xff] }
 0x4db   :  { %v12507_v18 = vld [vmem:[#allocation3 + $0x18] sm:$0xff]  ;;  %4892 = vmatpush.bf16.msrb.mxu1 %v10096_v28 }
 0x4dc   :  { %v3800_v32 = vmul.f32 %v12454_v25, %v3764_v22  ;;  %v4106_v48 = vshrl.u32 %v12507_v18, 16  ;;  %v4109_v55 = vshll.u32 %v12507_v18, 16  ;;  %v15108_v22 = vld [vmem:[#allocation7_spill] sm:$0xff] }
 0x4de   :  { %v3836_v45 = vadd.f32 %v12460_v63, %v3800_v32  ;;  %v3608_v60 = vpop.f32.mrf.mxu0  ;;  %v4108_v35 = vrot.slane %v4106_v48, 7  ;;  %v4252_v24 = vrot.slane %v4109_v55, 1  ;;  %v3361_v32 = vadd.f32 %v15109_v58, %v15108_v22 }
 0x4df   :  { %v3697_v39 = vpop.f32.mrf.mxu1 }
 0x4e0   :  { %v3868_v7 = vmax.f32 %v3836_v45, 0.0  ;;  %v3698_v26 = vadd.f32 %v3697_v39, %v3608_v60  ;;  %v4111_v49 = vor.u32 %v4109_v55, %v4108_v35  ;;  %v12514_v10 = vor.u32 %v4252_v24, %v4106_v48  ;;  %v15110_v48 = vld [vmem:[#allocation4_spill] sm:$0xff]  ;;  %v10087_v55 = vld [vmem:[%s14704_s4 + $0x1b0] sm:$0xff]  ;;  %v15111_v35 = vld [vmem:[#allocation5_spill] sm:$0xff] }
 0x4e1   :  { %3647 = vmatmul.bf16.gmra.mxu0 %v12194_v41  ;;  %v10095_v45 = vld [vmem:[%s14704_s4 + $0x70] sm:$0xff]  ;;  %v3427_v24 = vadd.f32 %v3361_v32, %v15111_v35 }
 0x4e2   :  { %v10245_v8 = vpack.c.bf16 %v3868_v7, %v3867_v12  ;;  %3736 = vmatmul.bf16.gmra.mxu1 %v15107_v11  ;;  %v12526_v36 = vsel %vm10656_vm2, 0, %v4111_v49  ;;  %v3765_v41 = vadd.f32 %v3698_v26, %v15110_v48  ;;  %4691 = vmatpush.bf16.msrb.mxu0 %v10087_v55  ;;  %v10086_v49 = vld [vmem:[%s14704_s4 + $0x1a8] sm:$0xff]  ;;  %v10085_v48 = vld [vmem:[%s14704_s4 + $0x1a0] sm:$0xff] }
 0x4e3   :  { %4417 = vmatmul.bf16.gmra.mxu2 %v12526_v36  ;;  %4559 = vmatmul.bf16.gmra.mxu3 %v12526_v36 }
 0x4e4   :  { %10389 = vst [vmem:[#allocation3 + $0x20] sm:$0xff] %v10245_v8   ;;  %v3801_v12 = vmul.f32 %v12454_v25, %v3765_v41  ;;  %4893 = vmatpush.bf16.msrb.mxu1 %v10095_v45  ;;  %v10094_v8 = vld [vmem:[%s14704_s4 + $0x68] sm:$0xff]  ;;  %v10093_v41 = vld [vmem:[%s14704_s4 + $0x60] sm:$0xff] }
 0x4e6   :  { %v3610_v60 = vpop.f32.mrf.mxu0  ;;  %v3837_v40 = vadd.f32 %v12460_v63, %v3801_v12  ;;  %4692 = vmatpush.bf16.msrb.mxu0 %v10086_v49 }
 0x4e7   :  { %v3699_v39 = vpop.f32.mrf.mxu1 }
 0x4e8   :  { %v3700_v7 = vadd.f32 %v3699_v39, %v3610_v60  ;;  %4894 = vmatpush.bf16.msrb.mxu1 %v10094_v8  ;;  %v3869_v35 = vmax.f32 %v3837_v40, 0.0  ;;  %v10084_v8 = vld [vmem:[%s14704_s4 + $0x198] sm:$0xff] }
 0x4e9   :  { %v10092_v40 = vld [vmem:[%s14704_s4 + $0x58] sm:$0xff] }
 0x4ea   :  { %v3766_v26 = vadd.f32 %v3700_v7, %v3427_v24  ;;  %4693 = vmatpush.bf16.msrb.mxu0 %v10085_v48  ;;  %v15115_v48 = vld [vmem:[#allocation15_spill] sm:$0xff] }
 0x4eb   :  { %v12547_v11 = vld [vmem:[#allocation3 + $0x20] sm:$0xff] }
 0x4ec   :  { %v3802_v28 = vmul.f32 %v12454_v25, %v3766_v26  ;;  %v4113_v22 = vshrl.u32 %v12547_v11, 16  ;;  %v4116_v58 = vshll.u32 %v12547_v11, 16  ;;  %4895 = vmatpush.bf16.msrb.mxu1 %v10093_v41  ;;  %v10091_v41 = vld [vmem:[%s14704_s4 + $0x50] sm:$0xff] }
 0x4ee   :  { %v3838_v32 = vadd.f32 %v12460_v63, %v3802_v28  ;;  %v3613_v55 = vpop.f32.mrf.mxu0  ;;  %v4115_v60 = vrot.slane %v4113_v22, 7  ;;  %v4254_v39 = vrot.slane %v4116_v58, 1  ;;  %4694 = vmatpush.bf16.msrb.mxu0 %v10084_v8 }
 0x4ef   :  { %v3702_v45 = vpop.f32.mrf.mxu1 }
 0x4f0   :  { %v3870_v24 = vmax.f32 %v3838_v32, 0.0  ;;  %v3703_v12 = vadd.f32 %v3702_v45, %v3613_v55  ;;  %v4118_v7 = vor.u32 %v4116_v58, %v4115_v60  ;;  %v12560_v26 = vor.u32 %v4254_v39, %v4113_v22  ;;  %v15113_v58 = vld [vmem:[#allocation10_spill] sm:$0xff]  ;;  %4896 = vmatpush.bf16.msrb.mxu1 %v10092_v40  ;;  %v15116_v60 = vld [vmem:[#allocation9_spill] sm:$0xff] }
 0x4f1   :  { %3652 = vmatmul.bf16.gmra.mxu0 %v12248_v37  ;;  %v15114_v22 = vld [vmem:[#allocation34_spill] sm:$0xff] }
 0x4f2   :  { %15112 = vst [vmem:[#allocation33_spill] sm:$0xff] %v12560_v26  ;;  %v10250_v49 = vpack.c.bf16 %v3870_v24, %v3869_v35  ;;  %3741 = vmatmul.bf16.gmra.mxu1 %v12252_v14  ;;  %v12572_v28 = vsel %vm10656_vm2, 0, %v4118_v7  ;;  %v3366_v32 = vadd.f32 %v15114_v22, %v15113_v58  ;;  %v3767_v37 = vadd.f32 %v3703_v12, %v15115_v48  ;;  %v10083_v14 = vld [vmem:[%s14704_s4 + $0x190] sm:$0xff]  ;;  %v10082_v7 = vld [vmem:[%s14704_s4 + $0x188] sm:$0xff] }
 0x4f3   :  { %4422 = vmatmul.bf16.gmra.mxu2 %v12572_v28  ;;  %4564 = vmatmul.bf16.gmra.mxu3 %v12572_v28  ;;  %v3371_v26 = vadd.f32 %v12274_v29, %v12272_v50 }
 0x4f4   :  { %10390 = vst [vmem:[#allocation3 + $0x28] sm:$0xff] %v10250_v49   ;;  %v3429_v39 = vadd.f32 %v3366_v32, %v15116_v60  ;;  %v3803_v35 = vmul.f32 %v12454_v25, %v3767_v37  ;;  %4695 = vmatpush.bf16.msrb.mxu0 %v10083_v14  ;;  %4897 = vmatpush.bf16.msrb.mxu1 %v10091_v41  ;;  %v10090_v49 = vld [vmem:[%s14704_s4 + $0x48] sm:$0xff]  ;;  %v10081_v37 = vld [vmem:[%s14704_s4 + $0x180] sm:$0xff] }
 0x4f5   :  { %v10089_v14 = vld [vmem:[%s14704_s4 + $0x40] sm:$0xff] }
 0x4f6   :  { %v3615_v55 = vpop.f32.mrf.mxu0  ;;  %v3839_v40 = vadd.f32 %v12460_v63, %v3803_v35 }
 0x4f7   :  { %v3704_v45 = vpop.f32.mrf.mxu1 }
 0x4f8   :  { %v3705_v24 = vadd.f32 %v3704_v45, %v3615_v55  ;;  %4696 = vmatpush.bf16.msrb.mxu0 %v10082_v7  ;;  %4898 = vmatpush.bf16.msrb.mxu1 %v10090_v49 }
 0x4fa   :  { %v3768_v12 = vadd.f32 %v3705_v24, %v3429_v39  ;;  %v3871_v39 = vmax.f32 %v3839_v40, 0.0 }
 0x4fb   :  { %v12593_v8 = vld [vmem:[#allocation3 + $0x28] sm:$0xff] }
 0x4fc   :  { %v3804_v58 = vmul.f32 %v12454_v25, %v3768_v12  ;;  %v4120_v22 = vshrl.u32 %v12593_v8, 16  ;;  %v4123_v32 = vshll.u32 %v12593_v8, 16  ;;  %4697 = vmatpush.bf16.msrb.mxu0 %v10081_v37  ;;  %4899 = vmatpush.bf16.msrb.mxu1 %v10089_v14 }
 0x4fe   :  { %v3840_v48 = vadd.f32 %v12460_v63, %v3804_v58  ;;  %v3618_v41 = vpop.f32.mrf.mxu0  ;;  %v4122_v45 = vrot.slane %v4120_v22, 7  ;;  %v4256_v60 = vrot.slane %v4123_v32, 1 }
 0x4ff   :  { %v3707_v55 = vpop.f32.mrf.mxu1 }
 0x500   :  { %v3872_v35 = vmax.f32 %v3840_v48, 0.0  ;;  %v3708_v24 = vadd.f32 %v3707_v55, %v3618_v41  ;;  %v4125_v12 = vor.u32 %v4123_v32, %v4122_v45  ;;  %v12606_v7 = vor.u32 %v4256_v60, %v4120_v22  ;;  %v15117_v48 = vld [vmem:[#allocation28_spill] sm:$0xff] }
 0x501   :  { %3657 = vmatmul.bf16.gmra.mxu0 %v12278_v47  ;;  %v15118_v47 = vshll.u32 %v15117_v48, 16  ;;  %v3431_v55 = vadd.f32 %v3371_v26, %v12266_v59 }
 0x502   :  { %v10255_v49 = vpack.c.bf16 %v3872_v35, %v3871_v39  ;;  %3746 = vmatmul.bf16.gmra.mxu1 %v12282_v3  ;;  %v12612_v58 = vsel %vm10656_vm2, 0, %v4125_v12  ;;  %v3769_v40 = vadd.f32 %v3708_v24, %v12263_v16  ;;  %v15119_v3 = vld [vmem:[#allocation29_spill] sm:$0xff]  ;;  %v15121_v16 = vshrl.u32 %v15117_v48, 16 }
 0x503   :  { %4427 = vmatmul.bf16.gmra.mxu2 %v12612_v58  ;;  %4569 = vmatmul.bf16.gmra.mxu3 %v12612_v58  ;;  %v688_v37 = vrot.slane %v15118_v47, 1  ;;  %v15120_v14 = vshll.u32 %v15119_v3, 16  ;;  %v15122_v39 = vshrl.u32 %v15119_v3, 16 }
 0x504   :  { %10391 = vst [vmem:[#allocation3 + $0x30] sm:$0xff] %v10255_v49   ;;  %v3805_v45 = vmul.f32 %v12454_v25, %v3769_v40 }
 0x505   :  { %v690_v41 = vrot.slane %v15120_v14, 1  ;;  %v689_v60 = vor.u32 %v688_v37, %v15121_v16 }
 0x506   :  { %v3620_v22 = vpop.f32.mrf.mxu0  ;;  %v3841_v12 = vadd.f32 %v12460_v63, %v3805_v45 }
 0x507   :  { %v3709_v32 = vpop.f32.mrf.mxu1  ;;  %v691_v35 = vor.u32 %v690_v41, %v15122_v39  ;;  %v765_v48 = vsel %vm11822_vm5, %v689_v60, 0  ;;  %v3376_v60 = vadd.f32 %v12296_v23, %v12294_v15 }
 0x508   :  { %v3710_v50 = vadd.f32 %v3709_v32, %v3620_v22  ;;  %v3873_v41 = vmax.f32 %v3841_v12, 0.0 }
 0x509   :  { %v766_v37 = vsel %vm11822_vm5, %v691_v35, 0 }
 0x50a   :  { %v3770_v29 = vadd.f32 %v3710_v50, %v3431_v55 }
 0x50b   :  { %v12629_v24 = vld [vmem:[#allocation3 + $0x30] sm:$0xff] }
 0x50c   :  { %v3806_v49 = vmul.f32 %v12454_v25, %v3770_v29  ;;  %v4127_v47 = vshrl.u32 %v12629_v24, 16  ;;  %v4130_v59 = vshll.u32 %v12629_v24, 16 }
 0x50e   :  { %v3842_v26 = vadd.f32 %v12460_v63, %v3806_v49  ;;  %v3623_v40 = vpop.f32.mrf.mxu0  ;;  %v4129_v3 = vrot.slane %v4127_v47, 7  ;;  %v4258_v14 = vrot.slane %v4130_v59, 1 }
 0x50f   :  { %v3712_v22 = vpop.f32.mrf.mxu1 }
 0x510   :  { %v3874_v55 = vmax.f32 %v3842_v26, 0.0  ;;  %v3713_v45 = vadd.f32 %v3712_v22, %v3623_v40  ;;  %v4132_v50 = vor.u32 %v4130_v59, %v4129_v3  ;;  %v12640_v29 = vor.u32 %v4258_v14, %v4127_v47  ;;  %v15124_v47 = vld [vmem:[#allocation12_spill] sm:$0xff] }
 0x511   :  { %3662 = vmatmul.bf16.gmra.mxu0 %v765_v48  ;;  %v3433_v59 = vadd.f32 %v3376_v60, %v15124_v47 }
 0x512   :  { %v10260_v16 = vpack.c.bf16 %v3874_v55, %v3873_v41  ;;  %3751 = vmatmul.bf16.gmra.mxu1 %v766_v37  ;;  %v12644_v39 = vsel %vm10656_vm2, 0, %v4132_v50  ;;  %v3771_v35 = vadd.f32 %v3713_v45, %v12289_v31 }
 0x513   :  { %4432 = vmatmul.bf16.gmra.mxu2 %v12644_v39  ;;  %4574 = vmatmul.bf16.gmra.mxu3 %v12644_v39 }
 0x514   :  { %10392 = vst [vmem:[#allocation3 + $0x38] sm:$0xff] %v10260_v16   ;;  %v3807_v26 = vmul.f32 %v12454_v25, %v3771_v35 }
 0x516   :  { %v3625_v12 = vpop.f32.mrf.mxu0  ;;  %v3843_v37 = vadd.f32 %v12460_v63, %v3807_v26 }
 0x517   :  { %v3714_v49 = vpop.f32.mrf.mxu1 }
 0x518   :  { %v3715_v40 = vadd.f32 %v3714_v49, %v3625_v12  ;;  %v3875_v50 = vmax.f32 %v3843_v37, 0.0 }
 0x51a   :  { %v3772_v22 = vadd.f32 %v3715_v40, %v3433_v59  ;;  %v3381_v59 = vadd.f32 %v12308_v6, %v12306_v54 }
 0x51b   :  { %v12653_v48 = vld [vmem:[#allocation3 + $0x38] sm:$0xff] }
 0x51c   :  { %v3808_v15 = vmul.f32 %v12454_v25, %v3772_v22  ;;  %v4134_v31 = vshrl.u32 %v12653_v48, 16  ;;  %v4137_v23 = vshll.u32 %v12653_v48, 16 }
 0x51e   :  { %v3844_v3 = vadd.f32 %v12460_v63, %v3808_v15  ;;  %v3628_v14 = vpop.f32.mrf.mxu0  ;;  %v4136_v55 = vrot.slane %v4134_v31, 7  ;;  %v4260_v45 = vrot.slane %v4137_v23, 1 }
 0x51f   :  { %v3717_v41 = vpop.f32.mrf.mxu1 }
 0x520   :  { %v3876_v16 = vmax.f32 %v3844_v3, 0.0  ;;  %v3718_v60 = vadd.f32 %v3717_v41, %v3628_v14  ;;  %v4139_v35 = vor.u32 %v4137_v23, %v4136_v55  ;;  %v12660_v12 = vor.u32 %v4260_v45, %v4134_v31  ;;  %v12677_v3 = vpop.f32.mrf.mxu3 }
 0x521   :  { %4698 = vmatmul.bf16.vlgmr.msrb.gmra.mxu0 %v12500_v56  ;;  %v3435_v56 = vadd.f32 %v3381_v59, %v12304_v21 }
 0x522   :  { %v10265_v49 = vpack.c.bf16 %v3876_v16, %v3875_v50  ;;  %4900 = vmatmul.bf16.vlgmr.msrb.gmra.mxu1 %v12408_v46  ;;  %v12666_v47 = vsel %vm10656_vm2, 0, %v4139_v35  ;;  %v3773_v26 = vadd.f32 %v3718_v60, %v12301_v30 }
 0x523   :  { %4437 = vmatmul.bf16.gmra.mxu2 %v12666_v47  ;;  %4579 = vmatmul.bf16.gmra.mxu3 %v12666_v47 }
 0x524   :  { %10393 = vst [vmem:[#allocation3 + $0x40] sm:$0xff] %v10265_v49   ;;  %v3809_v37 = vmul.f32 %v12454_v25, %v3773_v26 }
 0x526   :  { %v3630_v40 = vpop.f32.mrf.mxu0  ;;  %v3845_v54 = vadd.f32 %v12460_v63, %v3809_v37 }
 0x527   :  { %v3719_v22 = vpop.f32.mrf.mxu1 }
 0x528   :  { %v3720_v15 = vadd.f32 %v3719_v22, %v3630_v40  ;;  %v3877_v16 = vmax.f32 %v3845_v54, 0.0  ;;  %v3386_v22 = vadd.f32 %v12320_v17, %v12318_v44  ;;  %v4545_v37 = vpop.f32.mrf.mxu3 }
 0x52a   :  { %v3774_v31 = vadd.f32 %v3720_v15, %v3435_v56 }
 0x52b   :  { %v12675_v23 = vld [vmem:[#allocation3 + $0x40] sm:$0xff] }
 0x52c   :  { %v3810_v30 = vmul.f32 %v12454_v25, %v3774_v31  ;;  %v4141_v6 = vshrl.u32 %v12675_v23, 16  ;;  %v4144_v14 = vshll.u32 %v12675_v23, 16 }
 0x52e   :  { %v3846_v41 = vadd.f32 %v12460_v63, %v3810_v30  ;;  %v3633_v55 = vpop.f32.mrf.mxu0  ;;  %v4143_v45 = vrot.slane %v4141_v6, 7  ;;  %v4262_v50 = vrot.slane %v4144_v14, 1 }
 0x52f   :  { %v3722_v21 = vpop.f32.mrf.mxu1 }
 0x530   :  { %v3878_v60 = vmax.f32 %v3846_v41, 0.0  ;;  %v3723_v35 = vadd.f32 %v3722_v21, %v3633_v55  ;;  %v4146_v49 = vor.u32 %v4144_v14, %v4143_v45  ;;  %v12684_v59 = vor.u32 %v4262_v50, %v4141_v6  ;;  %v4547_v55 = vpop.f32.mrf.mxu3 }
 0x531   :  { %4703 = vmatmul.bf16.gmra.mxu0 %v12526_v36  ;;  %v3437_v36 = vadd.f32 %v3386_v22, %v12316_v33 }
 0x532   :  { %v10270_v26 = vpack.c.bf16 %v3878_v60, %v3877_v16  ;;  %4905 = vmatmul.bf16.gmra.mxu1 %v12471_v62  ;;  %v12690_v40 = vsel %vm10656_vm2, 0, %v4146_v49  ;;  %v3775_v56 = vadd.f32 %v3723_v35, %v12313_v5  ;;  %v12706_v16 = vpop.f32.mrf.mxu2 }
 0x533   :  { %4442 = vmatmul.bf16.gmra.mxu2 %v12690_v40  ;;  %4584 = vmatmul.bf16.gmra.mxu3 %v12690_v40 }
 0x534   :  { %10394 = vst [vmem:[#allocation3 + $0x48] sm:$0xff] %v10270_v26   ;;  %v3811_v62 = vmul.f32 %v12454_v25, %v3775_v56 }
 0x536   :  { %v3635_v15 = vpop.f32.mrf.mxu0  ;;  %v3847_v44 = vadd.f32 %v12460_v63, %v3811_v62 }
 0x537   :  { %v3724_v31 = vpop.f32.mrf.mxu1 }
 0x538   :  { %v3725_v54 = vadd.f32 %v3724_v31, %v3635_v15  ;;  %v3879_v60 = vmax.f32 %v3847_v44, 0.0  ;;  %v3391_v31 = vadd.f32 %v12332_v27, %v12330_v53 }
 0x53a   :  { %v3776_v30 = vadd.f32 %v3725_v54, %v3437_v36 }
 0x53b   :  { %v12699_v6 = vld [vmem:[#allocation3 + $0x48] sm:$0xff] }
 0x53c   :  { %v3812_v17 = vmul.f32 %v12454_v25, %v3776_v30  ;;  %v4148_v5 = vshrl.u32 %v12699_v6, 16  ;;  %v4151_v14 = vshll.u32 %v12699_v6, 16 }
 0x53e   :  { %v3848_v41 = vadd.f32 %v12460_v63, %v3812_v17  ;;  %v3638_v21 = vpop.f32.mrf.mxu0  ;;  %v4150_v33 = vrot.slane %v4148_v5, 7  ;;  %v4264_v50 = vrot.slane %v4151_v14, 1 }
 0x53f   :  { %v3727_v45 = vpop.f32.mrf.mxu1 }
 0x540   :  { %v3880_v35 = vmax.f32 %v3848_v41, 0.0  ;;  %v3728_v49 = vadd.f32 %v3727_v45, %v3638_v21  ;;  %v4153_v26 = vor.u32 %v4151_v14, %v4150_v33  ;;  %v12708_v22 = vor.u32 %v4264_v50, %v4148_v5 }
 0x541   :  { %4708 = vmatmul.bf16.gmra.mxu0 %v12572_v28  ;;  %v3439_v28 = vadd.f32 %v3391_v31, %v12328_v2 }
 0x542   :  { %v10275_v56 = vpack.c.bf16 %v3880_v35, %v3879_v60  ;;  %4910 = vmatmul.bf16.gmra.mxu1 %v12487_v13  ;;  %v12714_v15 = vsel %vm10656_vm2, 0, %v4153_v26  ;;  %v3777_v36 = vadd.f32 %v3728_v49, %v12325_v9 }
 0x543   :  { %4447 = vmatmul.bf16.gmra.mxu2 %v12714_v15  ;;  %4589 = vmatmul.bf16.gmra.mxu3 %v12714_v15 }
 0x544   :  { %10395 = vst [vmem:[#allocation3 + $0x50] sm:$0xff] %v10275_v56   ;;  %v3813_v13 = vmul.f32 %v12454_v25, %v3777_v36 }
 0x546   :  { %v3640_v62 = vpop.f32.mrf.mxu0  ;;  %v4408_v44 = vpop.f32.mrf.mxu2  ;;  %v3849_v9 = vadd.f32 %v12460_v63, %v3813_v13  ;;  %v3396_v13 = vadd.f32 %v12344_v42, %v12342_v1 }
 0x547   :  { %v3729_v54 = vpop.f32.mrf.mxu1  ;;  %v4550_v17 = vpop.f32.mrf.mxu3  ;;  %v12723_v5 = vadd.f32 %v4545_v37, %v4408_v44 }
 0x548   :  { %v3730_v30 = vadd.f32 %v3729_v54, %v3640_v62  ;;  %v3881_v35 = vmax.f32 %v3849_v9, 0.0 }
 0x54a   :  { %v3778_v14 = vadd.f32 %v3730_v30, %v3439_v28 }
 0x54b   :  { %v12725_v53 = vld [vmem:[#allocation3 + $0x50] sm:$0xff] }
 0x54c   :  { %v3814_v27 = vmul.f32 %v12454_v25, %v3778_v14  ;;  %v4155_v41 = vshrl.u32 %v12725_v53, 16  ;;  %v4158_v21 = vshll.u32 %v12725_v53, 16 }
 0x54e   :  { %v3850_v2 = vadd.f32 %v12460_v63, %v3814_v27  ;;  %v3643_v45 = vpop.f32.mrf.mxu0  ;;  %v4157_v50 = vrot.slane %v4155_v41, 7  ;;  %v4266_v60 = vrot.slane %v4158_v21, 1  ;;  %v4410_v26 = vpop.f32.mrf.mxu2 }
 0x54f   :  { %v3732_v33 = vpop.f32.mrf.mxu1  ;;  %v4552_v56 = vpop.f32.mrf.mxu3  ;;  %v12732_v31 = vadd.f32 %v4547_v55, %v4410_v26 }
 0x550   :  { %v3882_v37 = vmax.f32 %v3850_v2, 0.0  ;;  %v3733_v49 = vadd.f32 %v3732_v33, %v3643_v45  ;;  %v4160_v36 = vor.u32 %v4158_v21, %v4157_v50  ;;  %v12734_v62 = vor.u32 %v4266_v60, %v4155_v41 }
 0x551   :  { %4713 = vmatmul.bf16.gmra.mxu0 %v12612_v58  ;;  %v3441_v58 = vadd.f32 %v3396_v13, %v12340_v0 }
 0x552   :  { %15125 = vst [vmem:[#allocation14_spill] sm:$0xff] %v12734_v62  ;;  %v10280_v54 = vpack.c.bf16 %v3882_v37, %v3881_v35  ;;  %4915 = vmatmul.bf16.gmra.mxu1 %v12507_v18  ;;  %v12740_v28 = vsel %vm10656_vm2, 0, %v4160_v36  ;;  %v3779_v30 = vadd.f32 %v3733_v49, %v12337_v51 }
 0x553   :  { %4452 = vmatmul.bf16.gmra.mxu2 %v12740_v28  ;;  %4594 = vmatmul.bf16.gmra.mxu3 %v12740_v28 }
 0x554   :  { %10396 = vst [vmem:[#allocation3 + $0x58] sm:$0xff] %v10280_v54   ;;  %v3815_v18 = vmul.f32 %v12454_v25, %v3779_v30 }
 0x556   :  { %v3645_v55 = vpop.f32.mrf.mxu0  ;;  %v4413_v9 = vpop.f32.mrf.mxu2  ;;  %v3851_v51 = vadd.f32 %v12460_v63, %v3815_v18 }
 0x557   :  { %v3734_v44 = vpop.f32.mrf.mxu1  ;;  %v4555_v27 = vpop.f32.mrf.mxu3  ;;  %v12749_v41 = vadd.f32 %v4550_v17, %v4413_v9 }
 0x558   :  { %v3735_v14 = vadd.f32 %v3734_v44, %v3645_v55  ;;  %v3883_v37 = vmax.f32 %v3851_v51, 0.0 }
 0x55a   :  { %v3780_v21 = vadd.f32 %v3735_v14, %v3441_v58  ;;  %v3401_v58 = vadd.f32 %v12359_v4, %v12357_v43  ;;  %v10104_v43 = vld [vmem:[%s14704_s4 + $0x138] sm:$0xff] }
 0x55b   :  { %v12751_v1 = vld [vmem:[#allocation3 + $0x58] sm:$0xff]  ;;  %5079 = vmatpush.bf16.msrb.mxu2 %v10104_v43  ;;  %v15129_v43 = vld [vmem:[#allocation16_spill] sm:$0xff] }
 0x55c   :  { %v3816_v42 = vmul.f32 %v12454_v25, %v3780_v21  ;;  %v4162_v2 = vshrl.u32 %v12751_v1, 16  ;;  %v4165_v45 = vshll.u32 %v12751_v1, 16 }
 0x55e   :  { %v3852_v0 = vadd.f32 %v12460_v63, %v3816_v42  ;;  %v3648_v33 = vpop.f32.mrf.mxu0  ;;  %v4164_v60 = vrot.slane %v4162_v2, 7  ;;  %v4268_v35 = vrot.slane %v4165_v45, 1  ;;  %v4415_v26 = vpop.f32.mrf.mxu2 }
 0x55f   :  { %v3737_v50 = vpop.f32.mrf.mxu1  ;;  %v4557_v36 = vpop.f32.mrf.mxu3  ;;  %v12758_v54 = vadd.f32 %v4552_v56, %v4415_v26 }
 0x560   :  { %v3884_v17 = vmax.f32 %v3852_v0, 0.0  ;;  %v3738_v49 = vadd.f32 %v3737_v50, %v3648_v33  ;;  %v4167_v13 = vor.u32 %v4165_v45, %v4164_v60  ;;  %v12760_v30 = vor.u32 %v4268_v35, %v4162_v2 }
 0x561   :  { %4718 = vmatmul.bf16.gmra.mxu0 %v12644_v39  ;;  %v3443_v39 = vadd.f32 %v3401_v58, %v12355_v34 }
 0x562   :  { %15126 = vst [vmem:[#allocation11_spill] sm:$0xff] %v12760_v30  ;;  %v10285_v55 = vpack.c.bf16 %v3884_v17, %v3883_v37  ;;  %4920 = vmatmul.bf16.gmra.mxu1 %v12547_v11  ;;  %v12766_v44 = vsel %vm10656_vm2, 0, %v4167_v13  ;;  %v3781_v18 = vadd.f32 %v3738_v49, %v12349_v19 }
 0x563   :  { %4457 = vmatmul.bf16.gmra.mxu2 %v12766_v44  ;;  %4599 = vmatmul.bf16.gmra.mxu3 %v12766_v44 }
 0x564   :  { %10397 = vst [vmem:[#allocation3 + $0x60] sm:$0xff] %v10285_v55   ;;  %v3817_v11 = vmul.f32 %v12454_v25, %v3781_v18 }
 0x566   :  { %v3650_v56 = vpop.f32.mrf.mxu0  ;;  %v4418_v21 = vpop.f32.mrf.mxu2  ;;  %v3853_v2 = vadd.f32 %v12460_v63, %v3817_v11  ;;  %v15128_v11 = vld [vmem:[#allocation35_spill] sm:$0xff] }
 0x567   :  { %v3739_v14 = vpop.f32.mrf.mxu1  ;;  %v4560_v51 = vpop.f32.mrf.mxu3  ;;  %v12778_v4 = vadd.f32 %v4555_v27, %v4418_v21 }
 0x568   :  { %v3740_v9 = vadd.f32 %v3739_v14, %v3650_v56  ;;  %v3885_v27 = vmax.f32 %v3853_v2, 0.0 }
 0x56a   :  { %v3782_v19 = vadd.f32 %v3740_v9, %v3443_v39  ;;  %v3406_v39 = vadd.f32 %v12380_v20, %v12378_v57 }
 0x56b   :  { %v12780_v42 = vld [vmem:[#allocation3 + $0x60] sm:$0xff] }
 0x56c   :  { %v3818_v45 = vmul.f32 %v12454_v25, %v3782_v19  ;;  %v4169_v34 = vshrl.u32 %v12780_v42, 16  ;;  %v4172_v0 = vshll.u32 %v12780_v42, 16  ;;  %v3445_v19 = vadd.f32 %v3406_v39, %v15129_v43 }
 0x56e   :  { %v3854_v33 = vadd.f32 %v12460_v63, %v3818_v45  ;;  %v3653_v50 = vpop.f32.mrf.mxu0  ;;  %v4171_v35 = vrot.slane %v4169_v34, 7  ;;  %v4270_v37 = vrot.slane %v4172_v0, 1  ;;  %v4420_v26 = vpop.f32.mrf.mxu2 }
 0x56f   :  { %v3742_v60 = vpop.f32.mrf.mxu1  ;;  %v4562_v13 = vpop.f32.mrf.mxu3  ;;  %v12787_v55 = vadd.f32 %v4557_v36, %v4420_v26 }
 0x570   :  { %v3886_v17 = vmax.f32 %v3854_v33, 0.0  ;;  %v3743_v49 = vadd.f32 %v3742_v60, %v3653_v50  ;;  %v4174_v58 = vor.u32 %v4172_v0, %v4171_v35  ;;  %v12789_v18 = vor.u32 %v4270_v37, %v4169_v34  ;;  %v10111_v34 = vld [vmem:[%s14704_s4 + $0x1f0] sm:$0xff]  ;;  %v10110_v37 = vld [vmem:[%s14704_s4 + $0x1e8] sm:$0xff] }
 0x571   :  { %4723 = vmatmul.bf16.gmra.mxu0 %v12666_v47  ;;  %v10112_v47 = vld [vmem:[%s14704_s4 + $0x1f8] sm:$0xff] }
 0x572   :  { %15127 = vst [vmem:[#allocation17_spill] sm:$0xff] %v12789_v18  ;;  %v10290_v56 = vpack.c.bf16 %v3886_v17, %v3885_v27  ;;  %4925 = vmatmul.bf16.gmra.mxu1 %v12593_v8  ;;  %v12795_v14 = vsel %vm10656_vm2, 0, %v4174_v58  ;;  %v3783_v9 = vadd.f32 %v3743_v49, %v15128_v11  ;;  %5266 = vmatpush.bf16.msrb.mxu3 %v10112_v47 }
 0x573   :  { %4462 = vmatmul.bf16.gmra.mxu2 %v12795_v14  ;;  %4604 = vmatmul.bf16.gmra.mxu3 %v12795_v14 }
 0x574   :  { %10398 = vst [vmem:[#allocation3 + $0x68] sm:$0xff] %v10290_v56   ;;  %v3819_v2 = vmul.f32 %v12454_v25, %v3783_v9 }
 0x576   :  { %v3655_v36 = vpop.f32.mrf.mxu0  ;;  %v4423_v57 = vpop.f32.mrf.mxu2  ;;  %5267 = vmatpush.bf16.msrb.mxu3 %v10111_v34  ;;  %v3855_v60 = vadd.f32 %v12460_v63, %v3819_v2  ;;  %v15131_v34 = vld [vmem:[#allocation27_spill] sm:$0xff] }
 0x577   :  { %v3744_v21 = vpop.f32.mrf.mxu1  ;;  %v4565_v20 = vpop.f32.mrf.mxu3  ;;  %v12810_v0 = vadd.f32 %v4560_v51, %v4423_v57 }
 0x578   :  { %v3745_v45 = vadd.f32 %v3744_v21, %v3655_v36  ;;  %v3887_v39 = vmax.f32 %v3855_v60, 0.0  ;;  %v10109_v21 = vld [vmem:[%s14704_s4 + $0x1e0] sm:$0xff] }
 0x57a   :  { %v3784_v33 = vadd.f32 %v3745_v45, %v3445_v19  ;;  %5268 = vmatpush.bf16.msrb.mxu3 %v10110_v37  ;;  %v10108_v37 = vld [vmem:[%s14704_s4 + $0x1d8] sm:$0xff] }
 0x57b   :  { %v12812_v50 = vld [vmem:[#allocation3 + $0x68] sm:$0xff] }
 0x57c   :  { %v3820_v35 = vmul.f32 %v12454_v25, %v3784_v33  ;;  %v4176_v27 = vshrl.u32 %v12812_v50, 16  ;;  %v4179_v17 = vshll.u32 %v12812_v50, 16  ;;  %v15132_v33 = vld [vmem:[#allocation38_spill] sm:$0xff] }
 0x57d   :  { %v3411_v60 = vadd.f32 %v15132_v33, %v15131_v34 }
 0x57e   :  { %v3856_v49 = vadd.f32 %v12460_v63, %v3820_v35  ;;  %v3658_v51 = vpop.f32.mrf.mxu0  ;;  %v4178_v58 = vrot.slane %v4176_v27, 7  ;;  %v4272_v56 = vrot.slane %v4179_v17, 1  ;;  %v4425_v47 = vpop.f32.mrf.mxu2  ;;  %5269 = vmatpush.bf16.msrb.mxu3 %v10109_v21  ;;  %v15133_v35 = vld [vmem:[#allocation19_spill] sm:$0xff]  ;;  %v10102_v21 = vld [vmem:[%s14704_s4 + $0x128] sm:$0xff] }
 0x57f   :  { %v3747_v26 = vpop.f32.mrf.mxu1  ;;  %v4567_v36 = vpop.f32.mrf.mxu3  ;;  %v12825_v43 = vadd.f32 %v4562_v13, %v4425_v47 }
 0x580   :  { %v3888_v11 = vmax.f32 %v3856_v49, 0.0  ;;  %v3748_v9 = vadd.f32 %v3747_v26, %v3658_v51  ;;  %v4181_v19 = vor.u32 %v4179_v17, %v4178_v58  ;;  %v12827_v2 = vor.u32 %v4272_v56, %v4176_v27  ;;  %v15134_v49 = vld [vmem:[#allocation26_spill] sm:$0xff] }
 0x581   :  { %4728 = vmatmul.bf16.gmra.mxu0 %v12690_v40  ;;  %v10103_v40 = vld [vmem:[%s14704_s4 + $0x130] sm:$0xff]  ;;  %v3447_v51 = vadd.f32 %v3411_v60, %v15134_v49 }
 0x582   :  { %15130 = vst [vmem:[#allocation20_spill] sm:$0xff] %v12827_v2  ;;  %v10295_v45 = vpack.c.bf16 %v3888_v11, %v3887_v39  ;;  %4930 = vmatmul.bf16.gmra.mxu1 %v12629_v24  ;;  %v12833_v57 = vsel %vm10656_vm2, 0, %v4181_v19  ;;  %v3785_v13 = vadd.f32 %v3748_v9, %v15133_v35  ;;  %5080 = vmatpush.bf16.msrb.mxu2 %v10103_v40  ;;  %v10107_v11 = vld [vmem:[%s14704_s4 + $0x1d0] sm:$0xff] }
 0x583   :  { %4467 = vmatmul.bf16.gmra.mxu2 %v12833_v57  ;;  %4609 = vmatmul.bf16.gmra.mxu3 %v12833_v57 }
 0x584   :  { %10399 = vst [vmem:[#allocation3 + $0x70] sm:$0xff] %v10295_v45   ;;  %5270 = vmatpush.bf16.msrb.mxu3 %v10108_v37  ;;  %v3821_v26 = vmul.f32 %v12454_v25, %v3785_v13  ;;  %v10106_v45 = vld [vmem:[%s14704_s4 + $0x1c8] sm:$0xff] }
 0x586   :  { %v3660_v27 = vpop.f32.mrf.mxu0  ;;  %v4428_v56 = vpop.f32.mrf.mxu2  ;;  %v3857_v34 = vadd.f32 %v12460_v63, %v3821_v26  ;;  %5081 = vmatpush.bf16.msrb.mxu2 %v10102_v21  ;;  %v10105_v26 = vld [vmem:[%s14704_s4 + $0x1c0] sm:$0xff] }
 0x587   :  { %v3749_v17 = vpop.f32.mrf.mxu1  ;;  %v4570_v39 = vpop.f32.mrf.mxu3  ;;  %v12851_v9 = vadd.f32 %v4565_v20, %v4428_v56 }
 0x588   :  { %v3750_v58 = vadd.f32 %v3749_v17, %v3660_v27  ;;  %5271 = vmatpush.bf16.msrb.mxu3 %v10107_v11  ;;  %v3889_v17 = vmax.f32 %v3857_v34, 0.0  ;;  %v3416_v34 = vadd.f32 %v12677_v3, %v12706_v16  ;;  %v10440_v3 = vld [vmem:[%s14702_s2] ss:$0 sm:$0xff] }
 0x58a   :  { %v3786_v47 = vadd.f32 %v3750_v58, %v3447_v51 }
 0x58b   :  { %v12856_v19 = vld [vmem:[#allocation3 + $0x70] sm:$0xff] }
 0x58c   :  { %v3822_v33 = vmul.f32 %v12454_v25, %v3786_v47  ;;  %v4183_v20 = vshrl.u32 %v12856_v19, 16  ;;  %v4186_v60 = vshll.u32 %v12856_v19, 16  ;;  %5272 = vmatpush.bf16.msrb.mxu3 %v10106_v45  ;;  %v10101_v25 = vld [vmem:[%s14704_s4 + $0x120] sm:$0xff] }
 0x58d   :  { %5082 = vmatpush.bf16.msrb.mxu2 %v10101_v25  ;;  %v10098_v25 = vld [vmem:[%s14704_s4 + $0x108] sm:$0xff] }
 0x58e   :  { %v3858_v35 = vadd.f32 %v12460_v63, %v3822_v33  ;;  %v3663_v13 = vpop.f32.mrf.mxu0  ;;  %v4185_v37 = vrot.slane %v4183_v20, 7  ;;  %v4274_v27 = vrot.slane %v4186_v60, 1  ;;  %v4430_v58 = vpop.f32.mrf.mxu2 }
 0x58f   :  { %v3752_v40 = vpop.f32.mrf.mxu1  ;;  %v4572_v56 = vpop.f32.mrf.mxu3  ;;  %v12872_v11 = vadd.f32 %v4567_v36, %v4430_v58  ;;  %v15136_v36 = vld [vmem:[#allocation13_spill] sm:$0xff] }
 0x590   :  { %v3890_v49 = vmax.f32 %v3858_v35, 0.0  ;;  %v3753_v51 = vadd.f32 %v3752_v40, %v3663_v13  ;;  %v4188_v63 = vor.u32 %v4186_v60, %v4185_v37  ;;  %v12874_v47 = vor.u32 %v4274_v27, %v4183_v20  ;;  %5273 = vmatpush.bf16.msrb.mxu3 %v10105_v26  ;;  %v15137_v35 = vld [vmem:[#allocation30_spill] sm:$0xff]  ;;  %v10441_v26 = vld [vmem:[%s14703_s3] ss:$0 sm:$0xff] }
 0x591   :  { %4733 = vmatmul.bf16.gmra.mxu0 %v12714_v15  ;;  %v10100_v15 = vld [vmem:[%s14704_s4 + $0x118] sm:$0xff]  ;;  %v3449_v13 = vadd.f32 %v3416_v34, %v15137_v35 }
 0x592   :  { %15135 = vst [vmem:[#allocation21_spill] sm:$0xff] %v12874_v47  ;;  %v10300_v21 = vpack.c.bf16 %v3890_v49, %v3889_v17  ;;  %4935 = vmatmul.bf16.gmra.mxu1 %v12653_v48  ;;  %v12880_v45 = vsel %vm10656_vm2, 0, %v4188_v63  ;;  %v3787_v33 = vadd.f32 %v3753_v51, %v15136_v36  ;;  %5083 = vmatpush.bf16.msrb.mxu2 %v10100_v15  ;;  %v10099_v17 = vld [vmem:[%s14704_s4 + $0x110] sm:$0xff] }
 0x593   :  { %4472 = vmatmul.bf16.gmra.mxu2 %v12880_v45  ;;  %4614 = vmatmul.bf16.gmra.mxu3 %v12880_v45 }
 0x594   :  { %10400 = vst [vmem:[#allocation3 + $0x78] sm:$0xff] %v10300_v21   ;;  %v3823_v16 = vmul.f32 %v10440_v3, %v3787_v33 }
 0x596   :  { %v3665_v20 = vpop.f32.mrf.mxu0  ;;  %v4433_v37 = vpop.f32.mrf.mxu2  ;;  %5084 = vmatpush.bf16.msrb.mxu2 %v10099_v17  ;;  %v3859_v63 = vadd.f32 %v10441_v26, %v3823_v16 }
 0x597   :  { %v3754_v60 = vpop.f32.mrf.mxu1  ;;  %v4575_v27 = vpop.f32.mrf.mxu3  ;;  %v12897_v49 = vadd.f32 %v4570_v39, %v4433_v37 }
 0x598   :  { %v3755_v40 = vadd.f32 %v3754_v60, %v3665_v20  ;;  %v3891_v35 = vmax.f32 %v3859_v63, 0.0 }
 0x59a   :  { %v3788_v51 = vadd.f32 %v3755_v40, %v3449_v13  ;;  %5085 = vmatpush.bf16.msrb.mxu2 %v10098_v25 }
 0x59b   :  { %v12899_v58 = vld [vmem:[#allocation3 + $0x78] sm:$0xff] }
 0x59c   :  { %v3824_v21 = vmul.f32 %v10440_v3, %v3788_v51  ;;  %v4190_v34 = vshrl.u32 %v12899_v58, 16  ;;  %v4193_v36 = vshll.u32 %v12899_v58, 16  ;;  %v10097_v3 = vld [vmem:[%s14704_s4 + $0x100] sm:$0xff] }
 0x59e   :  { %v3860_v39 = vadd.f32 %v10441_v26, %v3824_v21  ;;  %v4699_v33 = vpop.f32.mrf.mxu0  ;;  %v4192_v20 = vrot.slane %v4190_v34, 7  ;;  %v4276_v60 = vrot.slane %v4193_v36, 1  ;;  %v4435_v37 = vpop.f32.mrf.mxu2  ;;  %5086 = vmatpush.bf16.msrb.mxu2 %v10097_v3 }
 0x59f   :  { %v4901_v15 = vpop.f32.mrf.mxu1  ;;  %v4779_v40 = vadd.f32 %v4699_v33, %v12723_v5  ;;  %v4577_v17 = vpop.f32.mrf.mxu3  ;;  %v12913_v16 = vadd.f32 %v4572_v56, %v4435_v37 }
 0x5a0   :  { %v3892_v13 = vmax.f32 %v3860_v39, 0.0  ;;  %v4195_v51 = vor.u32 %v4193_v36, %v4192_v20  ;;  %v12915_v47 = vor.u32 %v4276_v60, %v4190_v34 }
 0x5a1   :  { %v12917_v21 = vadd.f32 %v4901_v15, %v4779_v40  ;;  %4738 = vmatmul.bf16.gmra.mxu0 %v12740_v28 }
 0x5a2   :  { %15138 = vst [vmem:[#allocation22_spill] sm:$0xff] %v12915_v47  ;;  %v10305_v26 = vpack.c.bf16 %v3892_v13, %v3891_v35  ;;  %4940 = vmatmul.bf16.gmra.mxu1 %v12675_v23  ;;  %v12923_v5 = vsel %vm10656_vm2, 0, %v4195_v51 }
 0x5a3   :  { %4477 = vmatmul.bf16.gmra.mxu2 %v12923_v5  ;;  %4619 = vmatmul.bf16.gmra.mxu3 %v12923_v5 }
 0x5a4   :  { %10401 = vst [vmem:[#allocation3 + $0x80] sm:$0xff] %v10305_v26  }
 0x5a6   :  { %v4701_v56 = vpop.f32.mrf.mxu0  ;;  %v4438_v34 = vpop.f32.mrf.mxu2 }
 0x5a7   :  { %v4903_v25 = vpop.f32.mrf.mxu1  ;;  %v4780_v63 = vadd.f32 %v4701_v56, %v12732_v31  ;;  %v4580_v36 = vpop.f32.mrf.mxu3  ;;  %v12928_v39 = vadd.f32 %v4575_v27, %v4438_v34 }
 0x5a9   :  { %v12930_v28 = vadd.f32 %v4903_v25, %v4780_v63 }
 0x5ab   :  { %v12932_v33 = vld [vmem:[#allocation3 + $0x80] sm:$0xff] }
 0x5ac   :  { %v4197_v15 = vshrl.u32 %v12932_v33, 16  ;;  %v4200_v20 = vshll.u32 %v12932_v33, 16 }
 0x5ae   :  { %v4704_v60 = vpop.f32.mrf.mxu0  ;;  %v4199_v13 = vrot.slane %v4197_v15, 7  ;;  %v4278_v40 = vrot.slane %v4200_v20, 1  ;;  %v4440_v3 = vpop.f32.mrf.mxu2 }
 0x5af   :  { %v4906_v35 = vpop.f32.mrf.mxu1  ;;  %v4781_v37 = vadd.f32 %v4704_v60, %v12749_v41  ;;  %v4582_v31 = vpop.f32.mrf.mxu3  ;;  %v12937_v51 = vadd.f32 %v4577_v17, %v4440_v3  ;;  %v10442_v41 = vld [vmem:[#allocation3 + $0x10] sm:$0xff] }
 0x5b0   :  { %v4202_v27 = vor.u32 %v4200_v20, %v4199_v13  ;;  %v12939_v26 = vor.u32 %v4278_v40, %v4197_v15 }
 0x5b1   :  { %v12941_v56 = vadd.f32 %v4906_v35, %v4781_v37  ;;  %4743 = vmatmul.bf16.gmra.mxu0 %v12766_v44 }
 0x5b2   :  { %15139 = vst [vmem:[#allocation23_spill] sm:$0xff] %v12939_v26  ;;  %4945 = vmatmul.bf16.gmra.mxu1 %v12699_v6  ;;  %v12947_v25 = vsel %vm10656_vm2, 0, %v4202_v27 }
 0x5b3   :  { %4482 = vmatmul.bf16.gmra.mxu2 %v12947_v25  ;;  %5274 = vmatmul.bf16.vlgmr.msrb.gmra.mxu3 %v10442_v41 }
 0x5b6   :  { %v4706_v63 = vpop.f32.mrf.mxu0  ;;  %v4443_v15 = vpop.f32.mrf.mxu2 }
 0x5b7   :  { %v4908_v17 = vpop.f32.mrf.mxu1  ;;  %v4782_v34 = vadd.f32 %v4706_v63, %v12758_v54  ;;  %v4585_v20 = vpop.f32.mrf.mxu3  ;;  %v12951_v60 = vadd.f32 %v4580_v36, %v4443_v15  ;;  %v10443_v54 = vld [vmem:[#allocation3 + $0x8] sm:$0xff]  ;;  %v10444_v36 = vld [vmem:[#allocation3 + $0x18] sm:$0xff] }
 0x5b9   :  { %v12953_v35 = vadd.f32 %v4908_v17, %v4782_v34 }
 0x5be   :  { %v4709_v44 = vpop.f32.mrf.mxu0  ;;  %v4445_v37 = vpop.f32.mrf.mxu2 }
 0x5bf   :  { %v4911_v13 = vpop.f32.mrf.mxu1  ;;  %v4783_v40 = vadd.f32 %v4709_v44, %v12778_v4  ;;  %v4587_v3 = vpop.f32.mrf.mxu3  ;;  %v12956_v27 = vadd.f32 %v4582_v31, %v4445_v37 }
 0x5c1   :  { %v12958_v26 = vadd.f32 %v4911_v13, %v4783_v40  ;;  %4748 = vmatmul.bf16.gmra.mxu0 %v12795_v14 }
 0x5c2   :  { %4950 = vmatmul.bf16.gmra.mxu1 %v12725_v53 }
 0x5c3   :  { %5087 = vmatmul.bf16.vlgmr.msrb.gmra.mxu2 %v10443_v54  ;;  %5279 = vmatmul.bf16.gmra.mxu3 %v10444_v36 }
 0x5c6   :  { %v4711_v63 = vpop.f32.mrf.mxu0  ;;  %v4448_v15 = vpop.f32.mrf.mxu2 }
 0x5c7   :  { %v4913_v17 = vpop.f32.mrf.mxu1  ;;  %v4784_v34 = vadd.f32 %v4711_v63, %v12787_v55  ;;  %v4590_v4 = vpop.f32.mrf.mxu3  ;;  %v12963_v44 = vadd.f32 %v4585_v20, %v4448_v15  ;;  %v10445_v55 = vld [vmem:[#allocation3 + $0x20] sm:$0xff] }
 0x5c9   :  { %v12965_v31 = vadd.f32 %v4913_v17, %v4784_v34 }
 0x5ce   :  { %v4714_v13 = vpop.f32.mrf.mxu0  ;;  %v4450_v37 = vpop.f32.mrf.mxu2 }
 0x5cf   :  { %v4916_v40 = vpop.f32.mrf.mxu1  ;;  %v4785_v14 = vadd.f32 %v4714_v13, %v12810_v0  ;;  %v4592_v47 = vpop.f32.mrf.mxu3  ;;  %v12968_v2 = vadd.f32 %v4587_v3, %v4450_v37 }
 0x5d1   :  { %v12970_v54 = vadd.f32 %v4916_v40, %v4785_v14  ;;  %4753 = vmatmul.bf16.gmra.mxu0 %v12833_v57 }
 0x5d2   :  { %4955 = vmatmul.bf16.gmra.mxu1 %v12751_v1 }
 0x5d3   :  { %5092 = vmatmul.bf16.gmra.mxu2 %v10442_v41  ;;  %5284 = vmatmul.bf16.gmra.mxu3 %v10445_v55 }
 0x5d6   :  { %v4716_v20 = vpop.f32.mrf.mxu0  ;;  %v4453_v34 = vpop.f32.mrf.mxu2 }
 0x5d7   :  { %v4918_v63 = vpop.f32.mrf.mxu1  ;;  %v4786_v17 = vadd.f32 %v4716_v20, %v12825_v43  ;;  %v4595_v15 = vpop.f32.mrf.mxu3  ;;  %v12975_v0 = vadd.f32 %v4590_v4, %v4453_v34  ;;  %v10120_v43 = vld [vmem:[%s14704_s4 + $0xb8] sm:$0xff] }
 0x5d8   :  { %v10128_v4 = vld [vmem:[%s14704_s4 + $0x178] sm:$0xff]  ;;  %5452 = vmatpush.bf16.msra.mxu0 %v10120_v43 }
 0x5d9   :  { %v12977_v13 = vadd.f32 %v4918_v63, %v4786_v17  ;;  %5638 = vmatpush.bf16.msra.mxu1 %v10128_v4 }
 0x5de   :  { %v4719_v3 = vpop.f32.mrf.mxu0  ;;  %v4455_v57 = vpop.f32.mrf.mxu2 }
 0x5df   :  { %v4921_v40 = vpop.f32.mrf.mxu1  ;;  %v4787_v14 = vadd.f32 %v4719_v3, %v12851_v9  ;;  %v4597_v37 = vpop.f32.mrf.mxu3  ;;  %v12980_v18 = vadd.f32 %v4592_v47, %v4455_v57  ;;  %v10119_v9 = vld [vmem:[%s14704_s4 + $0xb0] sm:$0xff] }
 0x5e0   :  { %v10127_v47 = vld [vmem:[%s14704_s4 + $0x170] sm:$0xff]  ;;  %5453 = vmatpush.bf16.msra.mxu0 %v10119_v9 }
 0x5e1   :  { %v12982_v41 = vadd.f32 %v4921_v40, %v4787_v14  ;;  %4758 = vmatmul.bf16.gmra.mxu0 %v12880_v45  ;;  %5639 = vmatpush.bf16.msra.mxu1 %v10127_v47  ;;  %v10126_v40 = vld [vmem:[%s14704_s4 + $0x168] sm:$0xff] }
 0x5e2   :  { %4960 = vmatmul.bf16.gmra.mxu1 %v12780_v42 }
 0x5e3   :  { %5097 = vmatmul.bf16.gmra.mxu2 %v10444_v36  ;;  %5289 = vmatmul.bf16.gmra.mxu3 %v12593_v8  ;;  %v10118_v36 = vld [vmem:[%s14704_s4 + $0xa8] sm:$0xff] }
 0x5e4   :  { %5454 = vmatpush.bf16.msra.mxu0 %v10118_v36 }
 0x5e5   :  { %5640 = vmatpush.bf16.msra.mxu1 %v10126_v40 }
 0x5e6   :  { %v4721_v45 = vpop.f32.mrf.mxu0  ;;  %v4458_v17 = vpop.f32.mrf.mxu2 }
 0x5e7   :  { %v4923_v20 = vpop.f32.mrf.mxu1  ;;  %v4788_v63 = vadd.f32 %v4721_v45, %v12872_v11  ;;  %v4600_v34 = vpop.f32.mrf.mxu3  ;;  %v13000_v3 = vadd.f32 %v4595_v15, %v4458_v17  ;;  %v10117_v11 = vld [vmem:[%s14704_s4 + $0xa0] sm:$0xff] }
 0x5e8   :  { %v10125_v15 = vld [vmem:[%s14704_s4 + $0x160] sm:$0xff]  ;;  %5455 = vmatpush.bf16.msra.mxu0 %v10117_v11 }
 0x5e9   :  { %v13002_v8 = vadd.f32 %v4923_v20, %v4788_v63  ;;  %5641 = vmatpush.bf16.msra.mxu1 %v10125_v15  ;;  %v10116_v20 = vld [vmem:[%s14704_s4 + $0x98] sm:$0xff] }
 0x5ec   :  { %5456 = vmatpush.bf16.msra.mxu0 %v10116_v20 }
 0x5ee   :  { %v4724_v14 = vpop.f32.mrf.mxu0  ;;  %v4460_v4 = vpop.f32.mrf.mxu2 }
 0x5ef   :  { %v4926_v57 = vpop.f32.mrf.mxu1  ;;  %v4789_v43 = vadd.f32 %v4724_v14, %v12897_v49  ;;  %v4602_v9 = vpop.f32.mrf.mxu3  ;;  %v13017_v47 = vadd.f32 %v4597_v37, %v4460_v4  ;;  %v10124_v49 = vld [vmem:[%s14704_s4 + $0x158] sm:$0xff]  ;;  %v10115_v37 = vld [vmem:[%s14704_s4 + $0x90] sm:$0xff]  ;;  %v10122_v14 = vld [vmem:[%s14704_s4 + $0x148] sm:$0xff] }
 0x5f0   :  { %5642 = vmatpush.bf16.msra.mxu1 %v10124_v49  ;;  %5457 = vmatpush.bf16.msra.mxu0 %v10115_v37  ;;  %v13053_v4 = vld [vmem:[#allocation3 + $0x88] sm:$0xff] }
 0x5f1   :  { %v13019_v45 = vadd.f32 %v4926_v57, %v4789_v43  ;;  %4763 = vmatmul.bf16.gmra.mxu0 %v12923_v5  ;;  %v10123_v5 = vld [vmem:[%s14704_s4 + $0x150] sm:$0xff] }
 0x5f2   :  { %4965 = vmatmul.bf16.gmra.mxu1 %v12812_v50 }
 0x5f3   :  { %5102 = vmatmul.bf16.gmra.mxu2 %v10445_v55  ;;  %5294 = vmatmul.bf16.gmra.mxu3 %v12629_v24  ;;  %v10114_v55 = vld [vmem:[%s14704_s4 + $0x88] sm:$0xff] }
 0x5f4   :  { %5643 = vmatpush.bf16.msra.mxu1 %v10123_v5  ;;  %5458 = vmatpush.bf16.msra.mxu0 %v10114_v55  ;;  %v14844_v55 = vshll.u32 %v13053_v4, 16 }
 0x5f6   :  { %v4726_v63 = vpop.f32.mrf.mxu0  ;;  %v4463_v40 = vpop.f32.mrf.mxu2 }
 0x5f7   :  { %v4928_v17 = vpop.f32.mrf.mxu1  ;;  %v4790_v36 = vadd.f32 %v4726_v63, %v12913_v16  ;;  %v4605_v11 = vpop.f32.mrf.mxu3  ;;  %v13037_v15 = vadd.f32 %v4600_v34, %v4463_v40  ;;  %v10113_v16 = vld [vmem:[%s14704_s4 + $0x80] sm:$0xff] }
 0x5f8   :  { %5644 = vmatpush.bf16.msra.mxu1 %v10122_v14  ;;  %v10121_v34 = vld [vmem:[%s14704_s4 + $0x140] sm:$0xff]  ;;  %5459 = vmatpush.bf16.msra.mxu0 %v10113_v16 }
 0x5f9   :  { %v13039_v24 = vadd.f32 %v4928_v17, %v4790_v36  ;;  %v14843_v17 = vshrl.u32 %v13053_v4, 16  ;;  %v10446_v36 = vld [vmem:[#allocation3 + $0x28] sm:$0xff] }
 0x5fc   :  { %5645 = vmatpush.bf16.msra.mxu1 %v10121_v34 }
 0x5fe   :  { %v4729_v57 = vpop.f32.mrf.mxu0  ;;  %v4465_v49 = vpop.f32.mrf.mxu2 }
 0x5ff   :  { %v4931_v43 = vpop.f32.mrf.mxu1  ;;  %v4791_v20 = vadd.f32 %v4729_v57, %v12928_v39  ;;  %v4607_v37 = vpop.f32.mrf.mxu3  ;;  %v13056_v5 = vadd.f32 %v4602_v9, %v4465_v49  ;;  %v4206_v9 = vrot.slane %v14843_v17, 7 }
 0x601   :  { %v13058_v63 = vadd.f32 %v4931_v43, %v4791_v20  ;;  %4768 = vmatmul.bf16.gmra.mxu0 %v12947_v25  ;;  %v4209_v43 = vor.u32 %v14844_v55, %v4206_v9  ;;  %v15140_v9 = vshll.u32 %v12408_v46, 16 }
 0x602   :  { %4970 = vmatmul.bf16.gmra.mxu1 %v12856_v19 }
 0x603   :  { %5107 = vmatmul.bf16.gmra.mxu2 %v10446_v36  ;;  %5299 = vmatmul.bf16.gmra.mxu3 %v12653_v48  ;;  %v4245_v49 = vsel %vm10656_vm2, 0, %v4209_v43 }
 0x606   :  { %v4731_v40 = vpop.f32.mrf.mxu0  ;;  %v4468_v16 = vpop.f32.mrf.mxu2 }
 0x607   :  { %v4933_v39 = vpop.f32.mrf.mxu1  ;;  %v4792_v14 = vadd.f32 %v4731_v40, %v12937_v51  ;;  %v4610_v34 = vpop.f32.mrf.mxu3  ;;  %v13068_v25 = vadd.f32 %v4605_v11, %v4468_v16  ;;  %v10447_v11 = vld [vmem:[#allocation3 + $0x30] sm:$0xff] }
 0x609   :  { %v13070_v57 = vadd.f32 %v4933_v39, %v4792_v14  ;;  %v4246_v14 = vrot.slane %v15140_v9, 1 }
 0x60e   :  { %v4734_v20 = vpop.f32.mrf.mxu0  ;;  %v4470_v17 = vpop.f32.mrf.mxu2 }
 0x60f   :  { %v4936_v48 = vpop.f32.mrf.mxu1  ;;  %v4793_v36 = vadd.f32 %v4734_v20, %v12951_v60  ;;  %v4612_v30 = vpop.f32.mrf.mxu3  ;;  %v13077_v62 = vadd.f32 %v4607_v37, %v4470_v17  ;;  %v15141_v20 = vshrl.u32 %v12408_v46, 16  ;;  %v10448_v46 = vld [vmem:[#allocation3 + $0x38] sm:$0xff] }
 0x611   :  { %v13079_v51 = vadd.f32 %v4936_v48, %v4793_v36  ;;  %4773 = vmatmul.bf16.gmra.mxu0 %v4245_v49  ;;  %v4247_v48 = vor.u32 %v4246_v14, %v15141_v20 }
 0x612   :  { %4975 = vmatmul.bf16.gmra.mxu1 %v12899_v58 }
 0x613   :  { %5112 = vmatmul.bf16.gmra.mxu2 %v10447_v11  ;;  %5304 = vmatmul.bf16.gmra.mxu3 %v12675_v23  ;;  %v4300_v23 = vsel %vm11822_vm5, %v4247_v48, 0 }
 0x616   :  { %v4736_v40 = vpop.f32.mrf.mxu0  ;;  %v4473_v16 = vpop.f32.mrf.mxu2 }
 0x617   :  { %v4938_v39 = vpop.f32.mrf.mxu1  ;;  %v4794_v60 = vadd.f32 %v4736_v40, %v12956_v27  ;;  %v4615_v43 = vpop.f32.mrf.mxu3  ;;  %v13086_v37 = vadd.f32 %v4610_v34, %v4473_v16  ;;  %v4301_v27 = vsel %vm11822_vm5, %v12478_v61, 0 }
 0x619   :  { %v13088_v17 = vadd.f32 %v4938_v39, %v4794_v60 }
 0x61e   :  { %v4739_v49 = vpop.f32.mrf.mxu0  ;;  %v4475_v55 = vpop.f32.mrf.mxu2 }
 0x61f   :  { %v4941_v36 = vpop.f32.mrf.mxu1  ;;  %v4795_v11 = vadd.f32 %v4739_v49, %v12963_v44  ;;  %v4617_v9 = vpop.f32.mrf.mxu3  ;;  %v13095_v52 = vadd.f32 %v4612_v30, %v4475_v55 }
 0x621   :  { %v13100_v34 = vadd.f32 %v4941_v36, %v4795_v11  ;;  %5460 = vmatmul.bf16.vlgmr.msra.gmra.mxu0 %v4300_v23  ;;  %v13114_v36 = vsel %vm11822_vm5, %v12494_v38, 0 }
 0x622   :  { %5646 = vmatmul.bf16.vlgmr.msra.gmra.mxu1 %v4301_v27 }
 0x623   :  { %5117 = vmatmul.bf16.gmra.mxu2 %v10448_v46  ;;  %5309 = vmatmul.bf16.gmra.mxu3 %v12699_v6 }
 0x626   :  { %v4741_v40 = vpop.f32.mrf.mxu0  ;;  %v4478_v14 = vpop.f32.mrf.mxu2 }
 0x627   :  { %v4943_v39 = vpop.f32.mrf.mxu1  ;;  %v4796_v44 = vadd.f32 %v4741_v40, %v12968_v2  ;;  %v4620_v60 = vpop.f32.mrf.mxu3  ;;  %v13104_v30 = vadd.f32 %v4615_v43, %v4478_v14  ;;  %v10449_v43 = vld [vmem:[#allocation3 + $0x40] sm:$0xff] }
 0x629   :  { %v13106_v55 = vadd.f32 %v4943_v39, %v4796_v44 }
 0x62e   :  { %v4744_v16 = vpop.f32.mrf.mxu0  ;;  %v4480_v48 = vpop.f32.mrf.mxu2 }
 0x62f   :  { %v4946_v61 = vpop.f32.mrf.mxu1  ;;  %v4797_v20 = vadd.f32 %v4744_v16, %v12975_v0  ;;  %v13109_v49 = vadd.f32 %v4617_v9, %v4480_v48  ;;  %v4622_v2 = vpop.f32.mrf.mxu3 }
 0x631   :  { %v13116_v23 = vadd.f32 %v4946_v61, %v4797_v20  ;;  %5465 = vmatmul.bf16.gmra.mxu0 %v4301_v27  ;;  %v13131_v20 = vsel %vm11822_vm5, %v12514_v10, 0 }
 0x632   :  { %5651 = vmatmul.bf16.gmra.mxu1 %v13114_v36 }
 0x633   :  { %5122 = vmatmul.bf16.gmra.mxu2 %v10449_v43  ;;  %5314 = vmatmul.bf16.gmra.mxu3 %v12725_v53 }
 0x636   :  { %v4746_v11 = vpop.f32.mrf.mxu0  ;;  %v4483_v46 = vpop.f32.mrf.mxu2 }
 0x637   :  { %v4948_v0 = vpop.f32.mrf.mxu1  ;;  %v4798_v9 = vadd.f32 %v4746_v11, %v12980_v18  ;;  %v13121_v40 = vadd.f32 %v4620_v60, %v4483_v46  ;;  %v5275_v38 = vpop.f32.mrf.mxu3 }
 0x639   :  { %v13123_v39 = vadd.f32 %v4948_v0, %v4798_v9 }
 0x63e   :  { %v4749_v44 = vpop.f32.mrf.mxu0  ;;  %v4485_v16 = vpop.f32.mrf.mxu2 }
 0x63f   :  { %v4951_v14 = vpop.f32.mrf.mxu1  ;;  %v4799_v27 = vadd.f32 %v4749_v44, %v13000_v3  ;;  %v13126_v61 = vadd.f32 %v4622_v2, %v4485_v16  ;;  %v5277_v18 = vpop.f32.mrf.mxu3  ;;  %v15143_v16 = vld [vmem:[#allocation33_spill] sm:$0xff] }
 0x641   :  { %v13133_v48 = vadd.f32 %v4951_v14, %v4799_v27  ;;  %5470 = vmatmul.bf16.gmra.mxu0 %v13114_v36 }
 0x642   :  { %5656 = vmatmul.bf16.gmra.mxu1 %v13131_v20 }
 0x643   :  { %15142 = vst [vmem:[#allocation24_spill] sm:$0xff] %v13133_v48  ;;  %5127 = vmatmul.bf16.gmra.mxu2 %v12699_v6  ;;  %5319 = vmatmul.bf16.gmra.mxu3 %v12751_v1  ;;  %v13150_v48 = vsel %vm11822_vm5, %v15143_v16, 0 }
 0x646   :  { %v4751_v3 = vpop.f32.mrf.mxu0  ;;  %v5088_v43 = vpop.f32.mrf.mxu2 }
 0x647   :  { %v4953_v60 = vpop.f32.mrf.mxu1  ;;  %v4800_v2 = vadd.f32 %v4751_v3, %v13017_v47  ;;  %v5168_v11 = vadd.f32 %v5088_v43, %v12917_v21  ;;  %v5280_v44 = vpop.f32.mrf.mxu3 }
 0x649   :  { %v13141_v10 = vadd.f32 %v4953_v60, %v4800_v2  ;;  %v13143_v0 = vadd.f32 %v5275_v38, %v5168_v11 }
 0x64e   :  { %v4754_v9 = vpop.f32.mrf.mxu0  ;;  %v5090_v6 = vpop.f32.mrf.mxu2 }
 0x64f   :  { %v4956_v46 = vpop.f32.mrf.mxu1  ;;  %v4801_v14 = vadd.f32 %v4754_v9, %v13037_v15  ;;  %v5169_v27 = vadd.f32 %v5090_v6, %v12930_v28  ;;  %v5282_v2 = vpop.f32.mrf.mxu3  ;;  %v13171_v6 = vsel %vm11822_vm5, %v12606_v7, 0 }
 0x651   :  { %v13152_v47 = vadd.f32 %v4956_v46, %v4801_v14  ;;  %5475 = vmatmul.bf16.gmra.mxu0 %v13131_v20  ;;  %v13156_v21 = vadd.f32 %v5277_v18, %v5169_v27 }
 0x652   :  { %5661 = vmatmul.bf16.gmra.mxu1 %v13150_v48 }
 0x653   :  { %5132 = vmatmul.bf16.gmra.mxu2 %v12725_v53  ;;  %5324 = vmatmul.bf16.gmra.mxu3 %v12780_v42 }
 0x656   :  { %v4756_v15 = vpop.f32.mrf.mxu0  ;;  %v5093_v3 = vpop.f32.mrf.mxu2 }
 0x657   :  { %v4958_v38 = vpop.f32.mrf.mxu1  ;;  %v4802_v28 = vadd.f32 %v4756_v15, %v13056_v5  ;;  %v5170_v60 = vadd.f32 %v5093_v3, %v12941_v56 }
 0x659   :  { %v13162_v43 = vadd.f32 %v4958_v38, %v4802_v28  ;;  %v13164_v11 = vadd.f32 %v5280_v44, %v5170_v60  ;;  %v5285_v44 = vpop.f32.mrf.mxu3 }
 0x65e   :  { %v4759_v9 = vpop.f32.mrf.mxu0  ;;  %v5095_v14 = vpop.f32.mrf.mxu2 }
 0x65f   :  { %v4961_v46 = vpop.f32.mrf.mxu1  ;;  %v4803_v18 = vadd.f32 %v4759_v9, %v13068_v25  ;;  %v5171_v53 = vadd.f32 %v5095_v14, %v12953_v35  ;;  %v10136_v35 = vld [vmem:[%s14704_s4 + $0x238] sm:$0xff] }
 0x660   :  { %5824 = vmatpush.bf16.msra.mxu2 %v10136_v35 }
 0x661   :  { %v13173_v5 = vadd.f32 %v4961_v46, %v4803_v18  ;;  %5480 = vmatmul.bf16.gmra.mxu0 %v13150_v48  ;;  %v13177_v56 = vadd.f32 %v5282_v2, %v5171_v53  ;;  %v5287_v3 = vpop.f32.mrf.mxu3  ;;  %v13195_v18 = vsel %vm11822_vm5, %v12640_v29, 0 }
 0x662   :  { %5666 = vmatmul.bf16.gmra.mxu1 %v13171_v6 }
 0x663   :  { %5137 = vmatmul.bf16.gmra.mxu2 %v12751_v1  ;;  %5329 = vmatmul.bf16.gmra.mxu3 %v12812_v50 }
 0x666   :  { %v4761_v7 = vpop.f32.mrf.mxu0  ;;  %v5098_v16 = vpop.f32.mrf.mxu2 }
 0x667   :  { %v4963_v25 = vpop.f32.mrf.mxu1  ;;  %v4804_v27 = vadd.f32 %v4761_v7, %v13077_v62  ;;  %v5172_v15 = vadd.f32 %v5098_v16, %v12958_v26 }
 0x669   :  { %v13186_v38 = vadd.f32 %v4963_v25, %v4804_v27  ;;  %v13188_v28 = vadd.f32 %v5285_v44, %v5172_v15 }
 0x66e   :  { %v4764_v1 = vpop.f32.mrf.mxu0  ;;  %v5100_v9 = vpop.f32.mrf.mxu2 }
 0x66f   :  { %v4966_v60 = vpop.f32.mrf.mxu1  ;;  %v4805_v2 = vadd.f32 %v4764_v1, %v13086_v37  ;;  %v5173_v46 = vadd.f32 %v5100_v9, %v12965_v31  ;;  %v5290_v31 = vpop.f32.mrf.mxu3 }
 0x671   :  { %v13197_v62 = vadd.f32 %v4966_v60, %v4805_v2  ;;  %5485 = vmatmul.bf16.gmra.mxu0 %v13171_v6  ;;  %v13201_v26 = vadd.f32 %v5287_v3, %v5173_v46  ;;  %v13216_v3 = vsel %vm11822_vm5, %v12660_v12, 0 }
 0x672   :  { %5671 = vmatmul.bf16.gmra.mxu1 %v13195_v18 }
 0x673   :  { %5142 = vmatmul.bf16.gmra.mxu2 %v12780_v42  ;;  %5334 = vmatmul.bf16.gmra.mxu3 %v12856_v19 }
 0x676   :  { %v4766_v37 = vpop.f32.mrf.mxu0  ;;  %v5103_v44 = vpop.f32.mrf.mxu2 }
 0x677   :  { %v4968_v14 = vpop.f32.mrf.mxu1  ;;  %v4806_v53 = vadd.f32 %v4766_v37, %v13095_v52  ;;  %v5174_v29 = vadd.f32 %v5103_v44, %v12970_v54  ;;  %v5292_v52 = vpop.f32.mrf.mxu3 }
 0x679   :  { %v13207_v35 = vadd.f32 %v4968_v14, %v4806_v53  ;;  %v13209_v7 = vadd.f32 %v5290_v31, %v5174_v29 }
 0x67e   :  { %v4769_v25 = vpop.f32.mrf.mxu0  ;;  %v5105_v15 = vpop.f32.mrf.mxu2 }
 0x67f   :  { %v4971_v27 = vpop.f32.mrf.mxu1  ;;  %v4807_v16 = vadd.f32 %v4769_v25, %v13104_v30  ;;  %v5175_v42 = vadd.f32 %v5105_v15, %v12977_v13  ;;  %v10135_v13 = vld [vmem:[%s14704_s4 + $0x230] sm:$0xff] }
 0x680   :  { %5825 = vmatpush.bf16.msra.mxu2 %v10135_v13 }
 0x681   :  { %v13218_v1 = vadd.f32 %v4971_v27, %v4807_v16  ;;  %5490 = vmatmul.bf16.gmra.mxu0 %v13195_v18  ;;  %v13222_v54 = vadd.f32 %v5292_v52, %v5175_v42  ;;  %v10131_v16 = vld [vmem:[%s14704_s4 + $0x210] sm:$0xff]  ;;  %v10130_v42 = vld [vmem:[%s14704_s4 + $0x208] sm:$0xff] }
 0x682   :  { %5676 = vmatmul.bf16.gmra.mxu1 %v13216_v3 }
 0x683   :  { %5147 = vmatmul.bf16.gmra.mxu2 %v12812_v50  ;;  %5339 = vmatmul.bf16.gmra.mxu3 %v12899_v58  ;;  %v10134_v50 = vld [vmem:[%s14704_s4 + $0x228] sm:$0xff] }
 0x684   :  { %5826 = vmatpush.bf16.msra.mxu2 %v10134_v50 }
 0x686   :  { %v4771_v12 = vpop.f32.mrf.mxu0  ;;  %v5108_v2 = vpop.f32.mrf.mxu2 }
 0x687   :  { %v4973_v30 = vpop.f32.mrf.mxu1  ;;  %v4808_v60 = vadd.f32 %v4771_v12, %v13109_v49  ;;  %v13231_v9 = vadd.f32 %v5108_v2, %v12982_v41  ;;  %v10133_v49 = vld [vmem:[%s14704_s4 + $0x220] sm:$0xff]  ;;  %v13248_v41 = vsel %vm11822_vm5, %v12684_v59, 0 }
 0x688   :  { %5827 = vmatpush.bf16.msra.mxu2 %v10133_v49 }
 0x689   :  { %v13233_v46 = vadd.f32 %v4973_v30, %v4808_v60  ;;  %v10129_v30 = vld [vmem:[%s14704_s4 + $0x200] sm:$0xff]  ;;  %v13281_v60 = vsel %vm11822_vm5, %v12708_v22, 0 }
 0x68e   :  { %v4774_v37 = vpop.f32.mrf.mxu0  ;;  %v5110_v53 = vpop.f32.mrf.mxu2 }
 0x68f   :  { %v4976_v14 = vpop.f32.mrf.mxu1  ;;  %v4809_v31 = vadd.f32 %v4774_v37, %v13121_v40  ;;  %v13243_v44 = vadd.f32 %v5110_v53, %v13002_v8  ;;  %v10132_v8 = vld [vmem:[%s14704_s4 + $0x218] sm:$0xff] }
 0x690   :  { %5828 = vmatpush.bf16.msra.mxu2 %v10132_v8 }
 0x691   :  { %v13250_v29 = vadd.f32 %v4976_v14, %v4809_v31  ;;  %5495 = vmatmul.bf16.gmra.mxu0 %v13216_v3 }
 0x692   :  { %5681 = vmatmul.bf16.gmra.mxu1 %v13248_v41 }
 0x693   :  { %5152 = vmatmul.bf16.gmra.mxu2 %v12856_v19  ;;  %5344 = vmatmul.bf16.gmra.mxu3 %v12932_v33 }
 0x694   :  { %5829 = vmatpush.bf16.msra.mxu2 %v10131_v16 }
 0x696   :  { %v4776_v40 = vpop.f32.mrf.mxu0  ;;  %v5113_v27 = vpop.f32.mrf.mxu2 }
 0x697   :  { %v4978_v25 = vpop.f32.mrf.mxu1  ;;  %v4810_v59 = vadd.f32 %v4776_v40, %v13126_v61  ;;  %v13264_v15 = vadd.f32 %v5113_v27, %v13019_v45 }
 0x698   :  { %5830 = vmatpush.bf16.msra.mxu2 %v10130_v42 }
 0x699   :  { %v13266_v19 = vadd.f32 %v4978_v25, %v4810_v59 }
 0x69c   :  { %5831 = vmatpush.bf16.msra.mxu2 %v10129_v30  ;;  %v15145_v30 = vld [vmem:[#allocation11_spill] sm:$0xff] }
 0x69e   :  { %v5461_v52 = vpop.f32.mrf.mxu0  ;;  %v5115_v12 = vpop.f32.mrf.mxu2 }
 0x69f   :  { %v5647_v13 = vpop.f32.mrf.mxu1  ;;  %v5541_v61 = vadd.f32 %v5461_v52, %v13143_v0  ;;  %v13276_v45 = vadd.f32 %v5115_v12, %v13039_v24 }
 0x6a1   :  { %v13283_v2 = vadd.f32 %v5647_v13, %v5541_v61  ;;  %5500 = vmatmul.bf16.gmra.mxu0 %v13248_v41 }
 0x6a2   :  { %5686 = vmatmul.bf16.gmra.mxu1 %v13281_v60 }
 0x6a3   :  { %5157 = vmatmul.bf16.gmra.mxu2 %v12899_v58  ;;  %5349 = vmatmul.bf16.gmra.mxu3 %v13053_v4  ;;  %v15144_v58 = vld [vmem:[#allocation14_spill] sm:$0xff] }
 0x6a4   :  { %v13302_v25 = vsel %vm11822_vm5, %v15144_v58, 0  ;;  %v15146_v58 = vld [vmem:[#allocation17_spill] sm:$0xff] }
 0x6a6   :  { %v5463_v0 = vpop.f32.mrf.mxu0  ;;  %v5118_v37 = vpop.f32.mrf.mxu2 }
 0x6a7   :  { %v5649_v50 = vpop.f32.mrf.mxu1  ;;  %v5542_v24 = vadd.f32 %v5463_v0, %v13156_v21  ;;  %v13291_v14 = vadd.f32 %v5118_v37, %v13058_v63 }
 0x6a9   :  { %v13293_v22 = vadd.f32 %v5649_v50, %v5542_v24 }
 0x6ae   :  { %v5466_v31 = vpop.f32.mrf.mxu0  ;;  %v5120_v8 = vpop.f32.mrf.mxu2 }
 0x6af   :  { %v5652_v53 = vpop.f32.mrf.mxu1  ;;  %v5543_v49 = vadd.f32 %v5466_v31, %v13164_v11  ;;  %v13297_v40 = vadd.f32 %v5120_v8, %v13070_v57 }
 0x6b1   :  { %v13304_v21 = vadd.f32 %v5652_v53, %v5543_v49  ;;  %5505 = vmatmul.bf16.gmra.mxu0 %v13281_v60 }
 0x6b2   :  { %5691 = vmatmul.bf16.gmra.mxu1 %v13302_v25 }
 0x6b3   :  { %5162 = vmatmul.bf16.gmra.mxu2 %v12932_v33  ;;  %v13322_v33 = vsel %vm11822_vm5, %v15145_v30, 0 }
 0x6b6   :  { %v5468_v63 = vpop.f32.mrf.mxu0  ;;  %v5123_v27 = vpop.f32.mrf.mxu2 }
 0x6b7   :  { %v5654_v59 = vpop.f32.mrf.mxu1  ;;  %v5544_v11 = vadd.f32 %v5468_v63, %v13177_v56  ;;  %v13311_v57 = vadd.f32 %v5123_v27, %v13079_v51 }
 0x6b9   :  { %v13313_v16 = vadd.f32 %v5654_v59, %v5544_v11 }
 0x6be   :  { %v5471_v42 = vpop.f32.mrf.mxu0  ;;  %v5125_v61 = vpop.f32.mrf.mxu2 }
 0x6bf   :  { %v5657_v52 = vpop.f32.mrf.mxu1  ;;  %v5545_v13 = vadd.f32 %v5471_v42, %v13188_v28  ;;  %v13317_v12 = vadd.f32 %v5125_v61, %v13088_v17 }
 0x6c1   :  { %v13324_v56 = vadd.f32 %v5657_v52, %v5545_v13  ;;  %5510 = vmatmul.bf16.gmra.mxu0 %v13302_v25  ;;  %v15147_v52 = vld [vmem:[#allocation20_spill] sm:$0xff] }
 0x6c2   :  { %5696 = vmatmul.bf16.gmra.mxu1 %v13322_v33  ;;  %v13361_v13 = vsel %vm11822_vm5, %v15147_v52, 0 }
 0x6c3   :  { %5832 = vmatmul.bf16.vlgmr.msra.gmra.mxu2 %v13114_v36  ;;  %v13342_v36 = vsel %vm11822_vm5, %v15146_v58, 0 }
 0x6c6   :  { %v5473_v51 = vpop.f32.mrf.mxu0  ;;  %v5128_v50 = vpop.f32.mrf.mxu2 }
 0x6c7   :  { %v5659_v0 = vpop.f32.mrf.mxu1  ;;  %v5546_v28 = vadd.f32 %v5473_v51, %v13201_v26  ;;  %v13331_v17 = vadd.f32 %v5128_v50, %v13100_v34 }
 0x6c9   :  { %v13333_v24 = vadd.f32 %v5659_v0, %v5546_v28 }
 0x6ce   :  { %v5476_v37 = vpop.f32.mrf.mxu0  ;;  %v5130_v49 = vpop.f32.mrf.mxu2 }
 0x6cf   :  { %v5662_v31 = vpop.f32.mrf.mxu1  ;;  %v5547_v53 = vadd.f32 %v5476_v37, %v13209_v7  ;;  %v13337_v8 = vadd.f32 %v5130_v49, %v13106_v55 }
 0x6d1   :  { %v13344_v26 = vadd.f32 %v5662_v31, %v5547_v53  ;;  %5515 = vmatmul.bf16.gmra.mxu0 %v13322_v33 }
 0x6d2   :  { %5701 = vmatmul.bf16.gmra.mxu1 %v13342_v36 }
 0x6d3   :  { %5837 = vmatmul.bf16.gmra.mxu2 %v13131_v20 }
 0x6d6   :  { %v5478_v34 = vpop.f32.mrf.mxu0  ;;  %v5133_v63 = vpop.f32.mrf.mxu2 }
 0x6d7   :  { %v5548_v7 = vadd.f32 %v5478_v34, %v13222_v54  ;;  %v5664_v59 = vpop.f32.mrf.mxu1  ;;  %v13351_v55 = vadd.f32 %v5133_v63, %v13116_v23  ;;  %v15148_v23 = vld [vmem:[#allocation24_spill] sm:$0xff] }
 0x6d9   :  { %v13353_v11 = vadd.f32 %v5664_v59, %v5548_v7 }
 0x6de   :  { %v5135_v27 = vpop.f32.mrf.mxu2 }
 0x6df   :  { %v13356_v42 = vadd.f32 %v5135_v27, %v13123_v39  ;;  %v15149_v39 = vld [vmem:[#allocation21_spill] sm:$0xff] }
 0x6e0   :  { %v13375_v51 = vsel %vm11822_vm5, %v15149_v39, 0 }
 0x6e1   :  { %5520 = vmatmul.bf16.gmra.mxu0 %v13342_v36 }
 0x6e2   :  { %5706 = vmatmul.bf16.gmra.mxu1 %v13361_v13 }
 0x6e3   :  { %5842 = vmatmul.bf16.gmra.mxu2 %v13150_v48 }
 0x6e6   :  { %v5138_v20 = vpop.f32.mrf.mxu2 }
 0x6e7   :  { %v13367_v54 = vadd.f32 %v5138_v20, %v15148_v23  ;;  %v13444_v20 = vpop.f32.mrf.mxu0 }
 0x6ee   :  { %v5140_v61 = vpop.f32.mrf.mxu2 }
 0x6ef   :  { %v13370_v30 = vadd.f32 %v5140_v61, %v13141_v10  ;;  %v15150_v10 = vld [vmem:[#allocation22_spill] sm:$0xff] }
 0x6f0   :  { %v13389_v37 = vsel %vm11822_vm5, %v15150_v10, 0 }
 0x6f1   :  { %5525 = vmatmul.bf16.gmra.mxu0 %v13361_v13 }
 0x6f2   :  { %5711 = vmatmul.bf16.gmra.mxu1 %v13375_v51 }
 0x6f3   :  { %5847 = vmatmul.bf16.gmra.mxu2 %v13171_v6 }
 0x6f6   :  { %v5143_v48 = vpop.f32.mrf.mxu2 }
 0x6f7   :  { %v13381_v0 = vadd.f32 %v5143_v48, %v13152_v47 }
 0x6fe   :  { %v5145_v28 = vpop.f32.mrf.mxu2 }
 0x6ff   :  { %v13384_v50 = vadd.f32 %v5145_v28, %v13162_v43  ;;  %v15151_v43 = vld [vmem:[#allocation23_spill] sm:$0xff]  ;;  %v13450_v28 = vpop.f32.mrf.mxu1 }
 0x700   :  { %v13403_v49 = vsel %vm11822_vm5, %v15151_v43, 0  ;;  %v13455_v43 = vpop.f32.mrf.mxu0 }
 0x701   :  { %5530 = vmatmul.bf16.gmra.mxu0 %v13375_v51 }
 0x702   :  { %5716 = vmatmul.bf16.gmra.mxu1 %v13389_v37 }
 0x703   :  { %5852 = vmatmul.bf16.gmra.mxu2 %v13195_v18 }
 0x706   :  { %v5148_v6 = vpop.f32.mrf.mxu2 }
 0x707   :  { %v13395_v31 = vadd.f32 %v5148_v6, %v13173_v5 }
 0x70e   :  { %v5150_v47 = vpop.f32.mrf.mxu2 }
 0x70f   :  { %v13398_v53 = vadd.f32 %v5150_v47, %v13186_v38 }
 0x711   :  { %5535 = vmatmul.bf16.gmra.mxu0 %v13389_v37 }
 0x712   :  { %5721 = vmatmul.bf16.gmra.mxu1 %v13403_v49 }
 0x713   :  { %5857 = vmatmul.bf16.gmra.mxu2 %v13216_v3 }
 0x716   :  { %v5153_v18 = vpop.f32.mrf.mxu2 }
 0x717   :  { %v13409_v58 = vadd.f32 %v5153_v18, %v13197_v62 }
 0x71e   :  { %v5155_v5 = vpop.f32.mrf.mxu2 }
 0x71f   :  { %v13412_v34 = vadd.f32 %v5155_v5, %v13207_v35 }
 0x723   :  { %5862 = vmatmul.bf16.gmra.mxu2 %v13248_v41 }
 0x726   :  { %v5158_v38 = vpop.f32.mrf.mxu2 }
 0x727   :  { %v13416_v7 = vadd.f32 %v5158_v38, %v13218_v1  ;;  %v13459_v38 = vpop.f32.mrf.mxu1 }
 0x72e   :  { %v5160_v63 = vpop.f32.mrf.mxu2 }
 0x72f   :  { %v13419_v59 = vadd.f32 %v5160_v63, %v13233_v46  ;;  %v13433_v46 = vld [vmem:[%s14705_s5] ss:$0 sm:$0xff] }
 0x733   :  { %5867 = vmatmul.bf16.gmra.mxu2 %v13281_v60 }
 0x736   :  { %v5163_v3 = vpop.f32.mrf.mxu2 }
 0x737   :  { %v13423_v62 = vadd.f32 %v5163_v3, %v13250_v29  ;;  %v13439_v29 = vld [vmem:[%s14706_s6] ss:$0 sm:$0xff] }
 0x73e   :  { %v5165_v27 = vpop.f32.mrf.mxu2 }
 0x73f   :  { %v13426_v35 = vadd.f32 %v5165_v27, %v13266_v19  ;;  %v13441_v19 = vpop.f32.mrf.mxu3 }
 0x743   :  { %5872 = vmatmul.bf16.gmra.mxu2 %v13302_v25 }
 0x746   :  { %v5833_v41 = vpop.f32.mrf.mxu2 }
 0x747   :  { %v5913_v1 = vadd.f32 %v5833_v41, %v13283_v2  ;;  %v13452_v47 = vpop.f32.mrf.mxu3 }
 0x749   :  { %v5949_v60 = vmul.f32 %v13433_v46, %v5913_v1 }
 0x74b   :  { %v5985_v2 = vadd.f32 %v13439_v29, %v5949_v60  ;;  %v13470_v60 = vpop.f32.mrf.mxu0 }
 0x74d   :  { %v6017_v39 = vmax.f32 %v5985_v2, 0.0 }
 0x74e   :  { %v5835_v52 = vpop.f32.mrf.mxu2 }
 0x74f   :  { %v5914_v25 = vadd.f32 %v5835_v52, %v13293_v22 }
 0x751   :  { %v5950_v23 = vmul.f32 %v13433_v46, %v5914_v25 }
 0x753   :  { %5877 = vmatmul.bf16.gmra.mxu2 %v13322_v33  ;;  %v5986_v61 = vadd.f32 %v13439_v29, %v5950_v23 }
 0x755   :  { %v6018_v48 = vmax.f32 %v5986_v61, 0.0 }
 0x756   :  { %v5838_v10 = vpop.f32.mrf.mxu2 }
 0x757   :  { %v10310_v6 = vpack.c.bf16 %v6018_v48, %v6017_v39  ;;  %v5915_v22 = vadd.f32 %v5838_v10, %v13304_v21  ;;  %v13467_v21 = vpop.f32.mrf.mxu3  ;;  %v13480_v48 = vpop.f32.mrf.mxu1 }
 0x759   :  { %10311 = vst [vmem:[#allocation3 + $0x8] sm:$0xff] %v10310_v6   ;;  %v5951_v18 = vmul.f32 %v13433_v46, %v5915_v22  ;;  %v13485_v22 = vpop.f32.mrf.mxu0 }
 0x75b   :  { %v5987_v3 = vadd.f32 %v13439_v29, %v5951_v18 }
 0x75d   :  { %v6019_v25 = vmax.f32 %v5987_v3, 0.0 }
 0x75e   :  { %v5840_v5 = vpop.f32.mrf.mxu2 }
 0x75f   :  { %v5916_v33 = vadd.f32 %v5840_v5, %v13313_v16  ;;  %v13482_v10 = vpop.f32.mrf.mxu3 }
 0x760   :  { %v13461_v63 = vld [vmem:[#allocation3 + $0x8] sm:$0xff] }
 0x761   :  { %v5952_v27 = vmul.f32 %v13433_v46, %v5916_v33  ;;  %v14846_v41 = vshll.u32 %v13461_v63, 16  ;;  %v14847_v16 = vshrl.u32 %v13461_v63, 16 }
 0x763   :  { %5882 = vmatmul.bf16.gmra.mxu2 %v13342_v36  ;;  %v5988_v1 = vadd.f32 %v13439_v29, %v5952_v27  ;;  %v6403_v52 = vrot.slane %v14846_v41, 1 }
 0x765   :  { %v6020_v2 = vmax.f32 %v5988_v1, 0.0  ;;  %v13477_v61 = vor.u32 %v6403_v52, %v14847_v16  ;;  %v13495_v52 = vpop.f32.mrf.mxu1 }
 0x766   :  { %v5843_v23 = vpop.f32.mrf.mxu2 }
 0x767   :  { %15152 = vst [vmem:[#allocation25_spill] sm:$0xff] %v13477_v61  ;;  %v10315_v36 = vpack.c.bf16 %v6020_v2, %v6019_v25  ;;  %v5917_v39 = vadd.f32 %v5843_v23, %v13324_v56 }
 0x769   :  { %10402 = vst [vmem:[#allocation3 + $0x10] sm:$0xff] %v10315_v36   ;;  %v5953_v6 = vmul.f32 %v13433_v46, %v5917_v39 }
 0x76b   :  { %v5989_v3 = vadd.f32 %v13439_v29, %v5953_v6  ;;  %v13504_v6 = vpop.f32.mrf.mxu3 }
 0x76d   :  { %v13510_v41 = vpop.f32.mrf.mxu1 }
 0x76e   :  { %v5845_v18 = vpop.f32.mrf.mxu2 }
 0x76f   :  { %v5918_v5 = vadd.f32 %v5845_v18, %v13333_v24  ;;  %v6021_v24 = vmax.f32 %v5989_v3, 0.0  ;;  %v13506_v18 = vpop.f32.mrf.mxu0 }
 0x770   :  { %v13488_v33 = vld [vmem:[#allocation3 + $0x10] sm:$0xff] }
 0x771   :  { %v5954_v27 = vmul.f32 %v13433_v46, %v5918_v5  ;;  %v14848_v56 = vshll.u32 %v13488_v33, 16  ;;  %v14849_v25 = vshrl.u32 %v13488_v33, 16 }
 0x773   :  { %5887 = vmatmul.bf16.gmra.mxu2 %v13361_v13  ;;  %v5990_v1 = vadd.f32 %v13439_v29, %v5954_v27  ;;  %v6405_v2 = vrot.slane %v14848_v56, 1  ;;  %v13515_v56 = vpop.f32.mrf.mxu3 }
 0x775   :  { %v6022_v23 = vmax.f32 %v5990_v1, 0.0  ;;  %v13502_v39 = vor.u32 %v6405_v2, %v14849_v25  ;;  %v5363_v2 = vadd.f32 %v13441_v19, %v13231_v9  ;;  %v5364_v25 = vadd.f32 %v13452_v47, %v13243_v44 }
 0x776   :  { %v5848_v36 = vpop.f32.mrf.mxu2  ;;  %v5365_v44 = vadd.f32 %v13467_v21, %v13264_v15 }
 0x777   :  { %v10320_v13 = vpack.c.bf16 %v6022_v23, %v6021_v24  ;;  %v5919_v5 = vadd.f32 %v5848_v36, %v13344_v26  ;;  %v5549_v36 = vadd.f32 %v13444_v20, %v5363_v2  ;;  %v13537_v2 = vpop.f32.mrf.mxu1 }
 0x779   :  { %10403 = vst [vmem:[#allocation3 + $0x18] sm:$0xff] %v10320_v13   ;;  %v5955_v27 = vmul.f32 %v13433_v46, %v5919_v5  ;;  %v13521_v13 = vpop.f32.mrf.mxu0 }
 0x77b   :  { %v5991_v24 = vadd.f32 %v13439_v29, %v5955_v27 }
 0x77d   :  { %v6023_v9 = vmax.f32 %v5991_v24, 0.0 }
 0x77e   :  { %v5850_v16 = vpop.f32.mrf.mxu2 }
 0x77f   :  { %v5920_v3 = vadd.f32 %v5850_v16, %v13353_v11 }
 0x780   :  { %v13513_v1 = vld [vmem:[#allocation3 + $0x18] sm:$0xff] }
 0x781   :  { %v5956_v23 = vmul.f32 %v13433_v46, %v5920_v3  ;;  %v14850_v26 = vshll.u32 %v13513_v1, 16  ;;  %v14851_v16 = vshrl.u32 %v13513_v1, 16  ;;  %v13542_v24 = vpop.f32.mrf.mxu0 }
 0x783   :  { %5892 = vmatmul.bf16.gmra.mxu2 %v13375_v51  ;;  %v5992_v11 = vadd.f32 %v13439_v29, %v5956_v23  ;;  %v6407_v5 = vrot.slane %v14850_v26, 1  ;;  %v5735_v51 = vadd.f32 %v13450_v28, %v5549_v36  ;;  %v5550_v23 = vadd.f32 %v13455_v43, %v5364_v25  ;;  %v13540_v26 = vpop.f32.mrf.mxu3  ;;  %v13552_v25 = vpop.f32.mrf.mxu1 }
 0x785   :  { %v6024_v19 = vmax.f32 %v5992_v11, 0.0  ;;  %v13532_v3 = vor.u32 %v6407_v5, %v14851_v16  ;;  %v5736_v11 = vadd.f32 %v13459_v38, %v5550_v23  ;;  %v5551_v38 = vadd.f32 %v13470_v60, %v5365_v44 }
 0x786   :  { %v5853_v27 = vpop.f32.mrf.mxu2  ;;  %v5366_v23 = vadd.f32 %v13482_v10, %v13276_v45  ;;  %v5367_v45 = vadd.f32 %v13504_v6, %v13291_v14 }
 0x787   :  { %v10325_v20 = vpack.c.bf16 %v6024_v19, %v6023_v9  ;;  %v5921_v61 = vadd.f32 %v5853_v27, %v5735_v51  ;;  %v5737_v60 = vadd.f32 %v13480_v48, %v5551_v38 }
 0x788   :  { %v5553_v38 = vadd.f32 %v13506_v18, %v5367_v45  ;;  %v5368_v18 = vadd.f32 %v13515_v56, %v13297_v40 }
 0x789   :  { %10404 = vst [vmem:[#allocation3 + $0x20] sm:$0xff] %v10325_v20   ;;  %v5957_v5 = vmul.f32 %v13433_v46, %v5921_v61  ;;  %v13563_v51 = vpop.f32.mrf.mxu0 }
 0x78b   :  { %v5993_v47 = vadd.f32 %v13439_v29, %v5957_v5  ;;  %v13561_v15 = vpop.f32.mrf.mxu3  ;;  %v5552_v5 = vadd.f32 %v13485_v22, %v5366_v23  ;;  %v5684_v44 = vpop.f32.mrf.mxu1 }
 0x78d   :  { %v6025_v21 = vmax.f32 %v5993_v47, 0.0  ;;  %v5738_v47 = vadd.f32 %v13495_v52, %v5552_v5 }
 0x78e   :  { %v5855_v16 = vpop.f32.mrf.mxu2 }
 0x78f   :  { %v5922_v28 = vadd.f32 %v5855_v16, %v5736_v11 }
 0x790   :  { %v13546_v36 = vld [vmem:[#allocation3 + $0x20] sm:$0xff] }
 0x791   :  { %v5958_v43 = vmul.f32 %v13433_v46, %v5922_v28  ;;  %v14852_v9 = vshll.u32 %v13546_v36, 16  ;;  %v14853_v16 = vshrl.u32 %v13546_v36, 16 }
 0x793   :  { %5897 = vmatmul.bf16.gmra.mxu2 %v13389_v37  ;;  %v5994_v61 = vadd.f32 %v13439_v29, %v5958_v43  ;;  %v6409_v19 = vrot.slane %v14852_v9, 1  ;;  %v13575_v9 = vpop.f32.mrf.mxu3  ;;  %v13592_v14 = vpop.f32.mrf.mxu1 }
 0x795   :  { %v6026_v27 = vmax.f32 %v5994_v61, 0.0  ;;  %v13567_v37 = vor.u32 %v6409_v19, %v14853_v16  ;;  %v13577_v16 = vpop.f32.mrf.mxu0 }
 0x796   :  { %v5858_v20 = vpop.f32.mrf.mxu2 }
 0x797   :  { %v10330_v11 = vpack.c.bf16 %v6026_v27, %v6025_v21  ;;  %v5923_v28 = vadd.f32 %v5858_v20, %v5737_v60 }
 0x799   :  { %10405 = vst [vmem:[#allocation3 + $0x28] sm:$0xff] %v10330_v11   ;;  %v5959_v43 = vmul.f32 %v13433_v46, %v5923_v28  ;;  %v15153_v28 = vshll.u32 %v13053_v4, 16 }
 0x79b   :  { %v5995_v10 = vadd.f32 %v13439_v29, %v5959_v43  ;;  %v5317_v43 = vpop.f32.mrf.mxu3  ;;  %v5689_v56 = vpop.f32.mrf.mxu1 }
 0x79d   :  { %v6027_v60 = vmax.f32 %v5995_v10, 0.0  ;;  %v5503_v45 = vpop.f32.mrf.mxu0  ;;  %v15154_v10 = vshrl.u32 %v13053_v4, 16 }
 0x79e   :  { %v5860_v61 = vpop.f32.mrf.mxu2 }
 0x79f   :  { %v5924_v19 = vadd.f32 %v5860_v61, %v5738_v47  ;;  %v4280_v47 = vrot.slane %v15153_v28, 1  ;;  %v5554_v61 = vadd.f32 %v13521_v13, %v5368_v18  ;;  %v5369_v13 = vadd.f32 %v13540_v26, %v13311_v57 }
 0x7a0   :  { %v13579_v48 = vld [vmem:[#allocation3 + $0x28] sm:$0xff] }
 0x7a1   :  { %v5960_v22 = vmul.f32 %v13433_v46, %v5924_v19  ;;  %v14854_v52 = vshll.u32 %v13579_v48, 16  ;;  %v6275_v27 = vshrl.u32 %v13579_v48, 16 }
 0x7a3   :  { %5902 = vmatmul.bf16.gmra.mxu2 %v13403_v49  ;;  %v5996_v21 = vadd.f32 %v13439_v29, %v5960_v22  ;;  %v6411_v20 = vrot.slane %v14854_v52, 1  ;;  %v5739_v49 = vadd.f32 %v13510_v41, %v5553_v38  ;;  %v4281_v22 = vor.u32 %v4280_v47, %v15154_v10 }
 0x7a5   :  { %v6028_v23 = vmax.f32 %v5996_v21, 0.0  ;;  %v13596_v11 = vor.u32 %v6411_v20, %v6275_v27  ;;  %v5740_v21 = vadd.f32 %v13537_v2, %v5554_v61  ;;  %v4317_v40 = vsel %vm11822_vm5, %v4281_v22, 0 }
 0x7a6   :  { %v5863_v6 = vpop.f32.mrf.mxu2  ;;  %v5370_v22 = vadd.f32 %v13561_v15, %v13317_v12 }
 0x7a7   :  { %v10335_v5 = vpack.c.bf16 %v6028_v23, %v6027_v60  ;;  %v5925_v19 = vadd.f32 %v5863_v6, %v5739_v49  ;;  %v5320_v6 = vpop.f32.mrf.mxu3  ;;  %v5555_v49 = vadd.f32 %v13542_v24, %v5369_v13 }
 0x7a8   :  { %v5556_v24 = vadd.f32 %v13563_v51, %v5370_v22 }
 0x7a9   :  { %10406 = vst [vmem:[#allocation3 + $0x30] sm:$0xff] %v10335_v5   ;;  %v5961_v41 = vmul.f32 %v13433_v46, %v5925_v19  ;;  %v13619_v5 = vpop.f32.mrf.mxu0  ;;  %v5741_v10 = vadd.f32 %v13552_v25, %v5555_v49  ;;  %v5371_v25 = vadd.f32 %v13575_v9, %v13331_v17 }
 0x7ab   :  { %v5997_v23 = vadd.f32 %v13439_v29, %v5961_v41 }
 0x7ad   :  { %v6029_v61 = vmax.f32 %v5997_v23, 0.0 }
 0x7ae   :  { %v5865_v38 = vpop.f32.mrf.mxu2 }
 0x7af   :  { %v5926_v20 = vadd.f32 %v5865_v38, %v5740_v21  ;;  %v5692_v38 = vpop.f32.mrf.mxu1 }
 0x7b0   :  { %v13610_v60 = vld [vmem:[#allocation3 + $0x30] sm:$0xff] }
 0x7b1   :  { %v5962_v4 = vmul.f32 %v13433_v46, %v5926_v20  ;;  %v6285_v2 = vshll.u32 %v13610_v60, 16  ;;  %v6282_v28 = vshrl.u32 %v13610_v60, 16  ;;  %v5322_v20 = vpop.f32.mrf.mxu3  ;;  %v13629_v23 = vpop.f32.mrf.mxu0 }
 0x7b3   :  { %5907 = vmatmul.bf16.gmra.mxu2 %v4317_v40  ;;  %v5998_v18 = vadd.f32 %v13439_v29, %v5962_v4  ;;  %v6413_v47 = vrot.slane %v6285_v2, 1  ;;  %v5742_v40 = vadd.f32 %v5684_v44, %v5556_v24  ;;  %v5557_v44 = vadd.f32 %v13577_v16, %v5371_v25  ;;  %v14157_v16 = vld [vmem:[%s14707_s7 + $0x1b8] sm:$0xff] }
 0x7b5   :  { %v6030_v19 = vmax.f32 %v5998_v18, 0.0  ;;  %v13622_v26 = vor.u32 %v6413_v47, %v6282_v28 }
 0x7b6   :  { %v5868_v57 = vpop.f32.mrf.mxu2 }
 0x7b7   :  { %v10340_v21 = vpack.c.bf16 %v6030_v19, %v6029_v61  ;;  %v5927_v41 = vadd.f32 %v5868_v57, %v5741_v10  ;;  %v5694_v19 = vpop.f32.mrf.mxu1 }
 0x7b9   :  { %10407 = vst [vmem:[#allocation3 + $0x38] sm:$0xff] %v10340_v21   ;;  %v5963_v13 = vmul.f32 %v13433_v46, %v5927_v41  ;;  %v5325_v9 = vpop.f32.mrf.mxu3 }
 0x7bb   :  { %v5999_v12 = vadd.f32 %v13439_v29, %v5963_v13  ;;  %v5372_v13 = vadd.f32 %v5317_v43, %v13337_v8 }
 0x7bd   :  { %v6031_v22 = vmax.f32 %v5999_v12, 0.0  ;;  %v5558_v52 = vadd.f32 %v5503_v45, %v5372_v13  ;;  %v6277_v45 = vrot.slane %v6275_v27, 7  ;;  %v15156_v27 = vshll.u32 %v13579_v48, 16 }
 0x7be   :  { %v5870_v4 = vpop.f32.mrf.mxu2 }
 0x7bf   :  { %v5928_v18 = vadd.f32 %v5870_v4, %v5742_v40  ;;  %v5743_v40 = vadd.f32 %v13592_v14, %v5557_v44  ;;  %v13653_v14 = vpop.f32.mrf.mxu1  ;;  %v6280_v13 = vor.u32 %v15156_v27, %v6277_v45  ;;  %v15158_v45 = vshrl.u32 %v13546_v36, 16 }
 0x7c0   :  { %v13631_v47 = vld [vmem:[#allocation3 + $0x38] sm:$0xff] }
 0x7c1   :  { %v5964_v15 = vmul.f32 %v13433_v46, %v5928_v18  ;;  %v6289_v51 = vshrl.u32 %v13631_v47, 16  ;;  %v6292_v49 = vshll.u32 %v13631_v47, 16  ;;  %v13645_v18 = vpop.f32.mrf.mxu0 }
 0x7c3   :  { %v6000_v61 = vadd.f32 %v13439_v29, %v5964_v15  ;;  %v6291_v57 = vrot.slane %v6289_v51, 7  ;;  %v6415_v10 = vrot.slane %v6292_v49, 1  ;;  %v6284_v15 = vrot.slane %v6282_v28, 7  ;;  %v5327_v28 = vpop.f32.mrf.mxu3 }
 0x7c5   :  { %v6032_v21 = vmax.f32 %v6000_v61, 0.0  ;;  %v6294_v41 = vor.u32 %v6292_v49, %v6291_v57  ;;  %v13641_v17 = vor.u32 %v6415_v10, %v6289_v51  ;;  %v6287_v51 = vor.u32 %v6285_v2, %v6284_v15 }
 0x7c6   :  { %v5873_v24 = vpop.f32.mrf.mxu2  ;;  %v5744_v49 = vadd.f32 %v5689_v56, %v5558_v52  ;;  %v5373_v10 = vadd.f32 %v5320_v6, %v13351_v55 }
 0x7c7   :  { %v10345_v4 = vpack.c.bf16 %v6032_v21, %v6031_v22  ;;  %v13649_v25 = vsel %vm10656_vm2, 0, %v6294_v41  ;;  %v5929_v12 = vadd.f32 %v5873_v24, %v5743_v40  ;;  %v13657_v44 = vsel %vm10656_vm2, 0, %v6287_v51 }
 0x7c8   :  { %6674 = vmatpush.bf16.xpose.msrb.mxu0 %v13649_v25  ;;  %v5559_v24 = vadd.f32 %v13619_v5, %v5373_v10  ;;  %v13682_v10 = vsel %vm10656_vm2, 0, %v6280_v13 }
 0x7c9   :  { %10408 = vst [vmem:[#allocation3 + $0x40] sm:$0xff] %v10345_v4   ;;  %v5965_v61 = vmul.f32 %v13433_v46, %v5929_v12  ;;  %v5513_v2 = vpop.f32.mrf.mxu0 }
 0x7cb   :  { %v6001_v52 = vadd.f32 %v13439_v29, %v5965_v61  ;;  %v5374_v61 = vadd.f32 %v5322_v20, %v13356_v42  ;;  %v5330_v42 = vpop.f32.mrf.mxu3  ;;  %v15159_v20 = vshll.u32 %v13546_v36, 16 }
 0x7cd   :  { %v6033_v6 = vmax.f32 %v6001_v52, 0.0  ;;  %v6270_v52 = vrot.slane %v15158_v45, 7 }
 0x7ce   :  { %v5875_v8 = vpop.f32.mrf.mxu2 }
 0x7cf   :  { %v5930_v43 = vadd.f32 %v5875_v8, %v5744_v49  ;;  %v5745_v49 = vadd.f32 %v5692_v38, %v5559_v24 }
 0x7d0   :  { %v13659_v57 = vld [vmem:[#allocation3 + $0x40] sm:$0xff]  ;;  %6675 = vmatpush.bf16.xpose.msrb.mxu0 %v13657_v44 }
 0x7d1   :  { %v5966_v56 = vmul.f32 %v13433_v46, %v5930_v43  ;;  %v6296_v22 = vshrl.u32 %v13659_v57, 16  ;;  %v6299_v21 = vshll.u32 %v13659_v57, 16  ;;  %v5699_v43 = vpop.f32.mrf.mxu1  ;;  %v5516_v38 = vpop.f32.mrf.mxu0 }
 0x7d3   :  { %v6002_v41 = vadd.f32 %v13439_v29, %v5966_v56  ;;  %v6298_v40 = vrot.slane %v6296_v22, 7  ;;  %v6417_v55 = vrot.slane %v6299_v21, 1  ;;  %v5560_v56 = vadd.f32 %v13629_v23, %v5374_v61 }
 0x7d4   :  { %v15160_v23 = vshrl.u32 %v13513_v1, 16 }
 0x7d5   :  { %v6034_v4 = vmax.f32 %v6002_v41, 0.0  ;;  %v6301_v12 = vor.u32 %v6299_v21, %v6298_v40  ;;  %v13673_v51 = vor.u32 %v6417_v55, %v6296_v22  ;;  %v6273_v21 = vor.u32 %v15159_v20, %v6270_v52 }
 0x7d6   :  { %v5878_v15 = vpop.f32.mrf.mxu2  ;;  %v5746_v24 = vadd.f32 %v5694_v19, %v5560_v56  ;;  %v6263_v55 = vrot.slane %v15160_v23, 7  ;;  %v15161_v52 = vshll.u32 %v13513_v1, 16 }
 0x7d7   :  { %15157 = vst [vmem:[#allocation31_spill] sm:$0xff] %v13673_v51  ;;  %v10350_v8 = vpack.c.bf16 %v6034_v4, %v6033_v6  ;;  %v13678_v5 = vsel %vm10656_vm2, 0, %v6301_v12  ;;  %v5931_v22 = vadd.f32 %v5878_v15, %v5745_v49  ;;  %v13694_v13 = vsel %vm10656_vm2, 0, %v6273_v21 }
 0x7d8   :  { %6554 = vmatpush.bf16.xpose.msra.mxu3 %v13678_v5  ;;  %6676 = vmatpush.bf16.xpose.msrb.mxu0 %v13682_v10  ;;  %v5375_v4 = vadd.f32 %v5325_v9, %v13367_v54  ;;  %v6266_v54 = vor.u32 %v15161_v52, %v6263_v55  ;;  %v5376_v51 = vadd.f32 %v5327_v28, %v13370_v30 }
 0x7d9   :  { %10409 = vst [vmem:[#allocation3 + $0x48] sm:$0xff] %v10350_v8   ;;  %v5967_v41 = vmul.f32 %v13433_v46, %v5931_v22  ;;  %v5702_v19 = vpop.f32.mrf.mxu1  ;;  %v5332_v22 = vpop.f32.mrf.mxu3 }
 0x7da   :  { %v5561_v8 = vadd.f32 %v13645_v18, %v5375_v4  ;;  %v13717_v4 = vsel %vm10656_vm2, 0, %v6266_v54  ;;  %v13731_v54 = vld [vmem:[#allocation3] sm:$0xff] }
 0x7db   :  { %v6003_v15 = vadd.f32 %v13439_v29, %v5967_v41 }
 0x7dc   :  { %v5747_v23 = vadd.f32 %v13653_v14, %v5561_v8  ;;  %v15163_v14 = vshll.u32 %v13488_v33, 16 }
 0x7dd   :  { %v6035_v20 = vmax.f32 %v6003_v15, 0.0  ;;  %v15162_v15 = vshrl.u32 %v13488_v33, 16 }
 0x7de   :  { %v5880_v40 = vpop.f32.mrf.mxu2 }
 0x7df   :  { %v5932_v27 = vadd.f32 %v5880_v40, %v5746_v24  ;;  %v5518_v24 = vpop.f32.mrf.mxu0 }
 0x7e0   :  { %v13698_v6 = vld [vmem:[#allocation3 + $0x48] sm:$0xff]  ;;  %6555 = vmatpush.bf16.xpose.msra.mxu3 %v13649_v25  ;;  %6677 = vmatpush.bf16.xpose.msrb.mxu0 %v13694_v13 }
 0x7e1   :  { %v5968_v12 = vmul.f32 %v13433_v46, %v5932_v27  ;;  %v6303_v49 = vshrl.u32 %v13698_v6, 16  ;;  %v6306_v61 = vshll.u32 %v13698_v6, 16  ;;  %v5704_v30 = vpop.f32.mrf.mxu1 }
 0x7e3   :  { %v6004_v45 = vadd.f32 %v13439_v29, %v5968_v12  ;;  %v6305_v9 = vrot.slane %v6303_v49, 7  ;;  %v6419_v56 = vrot.slane %v6306_v61, 1  ;;  %v6256_v12 = vrot.slane %v15162_v15, 7 }
 0x7e5   :  { %v6036_v21 = vmax.f32 %v6004_v45, 0.0  ;;  %v6308_v40 = vor.u32 %v6306_v61, %v6305_v9  ;;  %v13711_v27 = vor.u32 %v6419_v56, %v6303_v49  ;;  %v5562_v45 = vadd.f32 %v5513_v2, %v5376_v51  ;;  %v5335_v9 = vpop.f32.mrf.mxu3 }
 0x7e6   :  { %v5883_v41 = vpop.f32.mrf.mxu2  ;;  %v6259_v28 = vor.u32 %v15163_v14, %v6256_v12 }
 0x7e7   :  { %v10355_v18 = vpack.c.bf16 %v6036_v21, %v6035_v20  ;;  %v13721_v55 = vsel %vm10656_vm2, 0, %v6308_v40  ;;  %v5933_v49 = vadd.f32 %v5883_v41, %v5747_v23  ;;  %v5748_v61 = vadd.f32 %v5699_v43, %v5562_v45  ;;  %v5521_v51 = vpop.f32.mrf.mxu0 }
 0x7e8   :  { %6556 = vmatpush.bf16.xpose.msra.mxu3 %v13657_v44  ;;  %6678 = vmatpush.bf16.xpose.msrb.mxu0 %v13717_v4  ;;  %v13735_v56 = vsel %vm10656_vm2, 0, %v6259_v28  ;;  %v15164_v20 = vshrl.u32 %v13461_v63, 16  ;;  %v5377_v40 = vadd.f32 %v5330_v42, %v13381_v0 }
 0x7e9   :  { %10410 = vst [vmem:[#allocation3 + $0x50] sm:$0xff] %v10355_v18   ;;  %6811 = vmatpush.bf16.xpose.msrb.mxu2 %v13721_v55  ;;  %v5969_v8 = vmul.f32 %v13433_v46, %v5933_v49  ;;  %v14856_v18 = vshrl.u32 %v13731_v54, 16  ;;  %v15165_v49 = vshll.u32 %v13461_v63, 16 }
 0x7ea   :  { %v6249_v21 = vrot.slane %v15164_v20, 7  ;;  %v5563_v12 = vadd.f32 %v5516_v38, %v5377_v40  ;;  %v14857_v20 = vshll.u32 %v13731_v54, 16 }
 0x7eb   :  { %v6005_v43 = vadd.f32 %v13439_v29, %v5969_v8  ;;  %v5707_v8 = vpop.f32.mrf.mxu1 }
 0x7ec   :  { %v6252_v0 = vor.u32 %v15165_v49, %v6249_v21  ;;  %v5749_v40 = vadd.f32 %v5702_v19, %v5563_v12  ;;  %v5378_v21 = vadd.f32 %v5332_v22, %v13384_v50 }
 0x7ed   :  { %v6037_v28 = vmax.f32 %v6005_v43, 0.0  ;;  %v5337_v43 = vpop.f32.mrf.mxu3 }
 0x7ee   :  { %v5885_v52 = vpop.f32.mrf.mxu2  ;;  %v6384_v49 = vsel %vm10656_vm2, 0, %v6252_v0 }
 0x7ef   :  { %v5934_v2 = vadd.f32 %v5885_v52, %v5748_v61 }
 0x7f0   :  { %v13739_v41 = vld [vmem:[#allocation3 + $0x50] sm:$0xff]  ;;  %6557 = vmatpush.bf16.xpose.msra.mxu3 %v13682_v10  ;;  %6679 = vmatpush.bf16.xpose.msrb.mxu0 %v13735_v56 }
 0x7f1   :  { %v5970_v23 = vmul.f32 %v13433_v46, %v5934_v2  ;;  %6812 = vmatpush.bf16.xpose.msrb.mxu2 %v13678_v5  ;;  %v14855_v15 = vshll.u32 %v13739_v41, 16  ;;  %v14858_v42 = vshrl.u32 %v13739_v41, 16  ;;  %v6242_v2 = vrot.slane %v14856_v18, 7  ;;  %v5523_v18 = vpop.f32.mrf.mxu0 }
 0x7f3   :  { %v6006_v45 = vadd.f32 %v13439_v29, %v5970_v23  ;;  %v6421_v14 = vrot.slane %v14855_v15, 1 }
 0x7f5   :  { %v6038_v61 = vmax.f32 %v6006_v45, 0.0  ;;  %v13760_v38 = vor.u32 %v6421_v14, %v14858_v42  ;;  %v5564_v45 = vadd.f32 %v5518_v24, %v5378_v21  ;;  %v6245_v14 = vor.u32 %v14857_v20, %v6242_v2  ;;  %v5709_v24 = vpop.f32.mrf.mxu1 }
 0x7f6   :  { %v5888_v52 = vpop.f32.mrf.mxu2 }
 0x7f7   :  { %15166 = vst [vmem:[#allocation36_spill] sm:$0xff] %v13760_v38  ;;  %v10360_v23 = vpack.c.bf16 %v6038_v61, %v6037_v28  ;;  %v5935_v15 = vadd.f32 %v5888_v52, %v5749_v40  ;;  %v5750_v19 = vadd.f32 %v5704_v30, %v5564_v45  ;;  %v6383_v12 = vsel %vm10656_vm2, 0, %v6245_v14 }
 0x7f8   :  { %6558 = vmatpush.bf16.xpose.msra.mxu3 %v13694_v13  ;;  %6680 = vmatpush.bf16.xpose.msrb.mxu0 %v6384_v49  ;;  %v5379_v61 = vadd.f32 %v5335_v9, %v13395_v31  ;;  %v13785_v31 = vld [vmem:[%s14707_s7] sm:$0xff]  ;;  %v15178_v38 = vshrl.u32 %v13731_v54, 16 }
 0x7f9   :  { %10411 = vst [vmem:[#allocation3 + $0x58] sm:$0xff] %v10360_v23   ;;  %6813 = vmatpush.bf16.xpose.msrb.mxu2 %v13649_v25  ;;  %v5971_v50 = vmul.f32 %v13433_v46, %v5935_v15  ;;  %v5340_v15 = vpop.f32.mrf.mxu3  ;;  %v5526_v21 = vpop.f32.mrf.mxu0 }
 0x7fa   :  { %v5565_v2 = vadd.f32 %v5521_v51, %v5379_v61 }
 0x7fb   :  { %v6007_v52 = vadd.f32 %v13439_v29, %v5971_v50  ;;  %v5380_v50 = vadd.f32 %v5337_v43, %v13398_v53 }
 0x7fc   :  { %v5751_v51 = vadd.f32 %v5707_v8, %v5565_v2 }
 0x7fd   :  { %v5712_v61 = vpop.f32.mrf.mxu1 }
 0x7fe   :  { %v5890_v22 = vpop.f32.mrf.mxu2 }
 0x7ff   :  { %v5936_v0 = vadd.f32 %v5890_v22, %v5750_v19 }
 0x800   :  { %v13772_v28 = vld [vmem:[#allocation3 + $0x58] sm:$0xff]  ;;  %6559 = vmatpush.bf16.xpose.msra.mxu3 %v13717_v4  ;;  %6681 = vmatpush.bf16.xpose.msrb.mxu0 %v6383_v12  ;;  %v5566_v12 = vadd.f32 %v5523_v18, %v5380_v50  ;;  %v5381_v18 = vadd.f32 %v5340_v15, %v13409_v58  ;;  %v13817_v58 = vld [vmem:[%s14707_s7 + $0x8] sm:$0xff] }
 0x801   :  { %v5972_v25 = vmul.f32 %v13433_v46, %v5936_v0  ;;  %6814 = vmatpush.bf16.xpose.msrb.mxu2 %v13657_v44  ;;  %v6320_v30 = vshll.u32 %v13772_v28, 16  ;;  %v6317_v9 = vshrl.u32 %v13772_v28, 16  ;;  %v6039_v44 = vmax.f32 %v6007_v52, 0.0  ;;  %v5342_v52 = vpop.f32.mrf.mxu3  ;;  %v5528_v8 = vpop.f32.mrf.mxu0 }
 0x803   :  { %v6008_v40 = vadd.f32 %v13439_v29, %v5972_v25  ;;  %v6423_v23 = vrot.slane %v6320_v30, 1  ;;  %v5752_v25 = vadd.f32 %v5709_v24, %v5566_v12  ;;  %v5567_v24 = vadd.f32 %v5526_v21, %v5381_v18 }
 0x805   :  { %v6040_v45 = vmax.f32 %v6008_v40, 0.0  ;;  %v13792_v19 = vor.u32 %v6423_v23, %v6317_v9  ;;  %v5753_v12 = vadd.f32 %v5712_v61, %v5567_v24 }
 0x806   :  { %v5893_v14 = vpop.f32.mrf.mxu2 }
 0x807   :  { %15167 = vst [vmem:[#allocation37_spill] sm:$0xff] %v13792_v19  ;;  %v10365_v22 = vpack.c.bf16 %v6040_v45, %v6039_v44  ;;  %6682 = vmatmul.bf16.vlgmr.msrb.gmra.mxu0 %v13785_v31  ;;  %v5937_v0 = vadd.f32 %v5893_v14, %v5751_v51  ;;  %v5714_v14 = vpop.f32.mrf.mxu1  ;;  %v13812_v51 = vld [vmem:[%s14707_s7 + $0xc0] sm:$0xff] }
 0x808   :  { %6970 = vmatpush.bf16.xpose.msra.mxu0 %v13631_v47  ;;  %6560 = vmatpush.bf16.xpose.msra.mxu3 %v13735_v56 }
 0x809   :  { %10412 = vst [vmem:[#allocation3 + $0x60] sm:$0xff] %v10365_v22   ;;  %6815 = vmatpush.bf16.xpose.msrb.mxu2 %v13682_v10  ;;  %v5973_v40 = vmul.f32 %v13433_v46, %v5937_v0  ;;  %v5382_v0 = vadd.f32 %v5342_v52, %v13412_v34 }
 0x80b   :  { %v6009_v23 = vadd.f32 %v13439_v29, %v5973_v40  ;;  %v5345_v40 = vpop.f32.mrf.mxu3 }
 0x80d   :  { %v6041_v15 = vmax.f32 %v6009_v23, 0.0 }
 0x80e   :  { %v5895_v2 = vpop.f32.mrf.mxu2 }
 0x80f   :  { %v5938_v53 = vadd.f32 %v5895_v2, %v5752_v25  ;;  %v5531_v2 = vpop.f32.mrf.mxu0  ;;  %v5717_v61 = vpop.f32.mrf.mxu1 }
 0x810   :  { %6971 = vmatpush.bf16.xpose.msra.mxu0 %v13610_v60  ;;  %v13800_v43 = vld [vmem:[#allocation3 + $0x60] sm:$0xff]  ;;  %6561 = vmatpush.bf16.xpose.msra.mxu3 %v6384_v49 }
 0x811   :  { %v5974_v44 = vmul.f32 %v13433_v46, %v5938_v53  ;;  %6816 = vmatpush.bf16.xpose.msrb.mxu2 %v13694_v13  ;;  %v6327_v10 = vshll.u32 %v13800_v43, 16  ;;  %v6324_v13 = vshrl.u32 %v13800_v43, 16  ;;  %v5568_v53 = vadd.f32 %v5528_v8, %v5382_v0 }
 0x813   :  { %v6010_v45 = vadd.f32 %v13439_v29, %v5974_v44  ;;  %v6425_v49 = vrot.slane %v6327_v10, 1  ;;  %v5754_v23 = vadd.f32 %v5714_v14, %v5568_v53 }
 0x815   :  { %v6042_v21 = vmax.f32 %v6010_v45, 0.0  ;;  %v13824_v22 = vor.u32 %v6425_v49, %v6324_v13  ;;  %v5383_v45 = vadd.f32 %v5345_v40, %v13416_v7  ;;  %v13845_v7 = vld [vmem:[%s14707_s7 + $0xc8] sm:$0xff] }
 0x816   :  { %v5898_v50 = vpop.f32.mrf.mxu2 }
 0x817   :  { %v10370_v25 = vpack.c.bf16 %v6042_v21, %v6041_v15  ;;  %6562 = vmatmul.bf16.vlgmr.msra.gmra.mxu3 %v13812_v51  ;;  %6687 = vmatmul.bf16.gmra.mxu0 %v13817_v58  ;;  %v5939_v18 = vadd.f32 %v5898_v50, %v5753_v12  ;;  %v5347_v15 = vpop.f32.mrf.mxu3  ;;  %v5533_v21 = vpop.f32.mrf.mxu0  ;;  %v5569_v14 = vadd.f32 %v5531_v2, %v5383_v45  ;;  %v13850_v12 = vld [vmem:[%s14707_s7 + $0x10] sm:$0xff]  ;;  %v13858_v2 = vld [vmem:[%s14707_s7 + $0x180] sm:$0xff] }
 0x818   :  { %6972 = vmatpush.bf16.xpose.msra.mxu0 %v13579_v48 }
 0x819   :  { %10413 = vst [vmem:[#allocation3 + $0x68] sm:$0xff] %v10370_v25   ;;  %6817 = vmatpush.bf16.xpose.msrb.mxu2 %v13717_v4  ;;  %v5975_v44 = vmul.f32 %v13433_v46, %v5939_v18 }
 0x81b   :  { %v6011_v49 = vadd.f32 %v13439_v29, %v5975_v44  ;;  %v5384_v44 = vadd.f32 %v5347_v15, %v13419_v59 }
 0x81d   :  { %v6043_v25 = vmax.f32 %v6011_v49, 0.0  ;;  %v5570_v45 = vadd.f32 %v5533_v21, %v5384_v44 }
 0x81e   :  { %v5900_v24 = vpop.f32.mrf.mxu2 }
 0x81f   :  { %v5940_v34 = vadd.f32 %v5900_v24, %v5754_v23  ;;  %v5755_v23 = vadd.f32 %v5717_v61, %v5569_v14 }
 0x820   :  { %6973 = vmatpush.bf16.xpose.msra.mxu0 %v13546_v36  ;;  %v13832_v52 = vld [vmem:[#allocation3 + $0x68] sm:$0xff] }
 0x821   :  { %v5976_v8 = vmul.f32 %v13433_v46, %v5940_v34  ;;  %6818 = vmatpush.bf16.xpose.msrb.mxu2 %v13735_v56  ;;  %v6334_v4 = vshll.u32 %v13832_v52, 16  ;;  %v6331_v56 = vshrl.u32 %v13832_v52, 16  ;;  %v5719_v34 = vpop.f32.mrf.mxu1 }
 0x822   :  { %v5756_v61 = vadd.f32 %v5719_v34, %v5570_v45  ;;  %v13883_v45 = vld [vmem:[%s14707_s7 + $0xd0] sm:$0xff] }
 0x823   :  { %v6012_v50 = vadd.f32 %v13439_v29, %v5976_v8  ;;  %v6427_v0 = vrot.slane %v6334_v4, 1  ;;  %v5350_v8 = vpop.f32.mrf.mxu3 }
 0x825   :  { %v6044_v40 = vmax.f32 %v6012_v50, 0.0  ;;  %v13862_v18 = vor.u32 %v6427_v0, %v6331_v56  ;;  %v5536_v50 = vpop.f32.mrf.mxu0 }
 0x826   :  { %v5903_v53 = vpop.f32.mrf.mxu2 }
 0x827   :  { %v10375_v24 = vpack.c.bf16 %v6044_v40, %v6043_v25  ;;  %6567 = vmatmul.bf16.gmra.mxu3 %v13845_v7  ;;  %6691 = vmatmul.bf16.gmra.mxu0 %v13850_v12  ;;  %v5941_v49 = vadd.f32 %v5903_v53, %v5755_v23  ;;  %v5385_v25 = vadd.f32 %v5350_v8, %v13423_v62  ;;  %v13888_v62 = vld [vmem:[%s14707_s7 + $0x18] sm:$0xff] }
 0x828   :  { %6974 = vmatpush.bf16.xpose.msra.mxu0 %v13513_v1  ;;  %6819 = vmatmul.bf16.vlgmr.msrb.gmra.mxu2 %v13858_v2 }
 0x829   :  { %7114 = vmatpush.bf16.xpose.msra.mxu2 %v13659_v57  ;;  %10414 = vst [vmem:[#allocation3 + $0x70] sm:$0xff] %v10375_v24   ;;  %v5977_v59 = vmul.f32 %v13433_v46, %v5941_v49  ;;  %v5722_v53 = vpop.f32.mrf.mxu1  ;;  %v5571_v44 = vadd.f32 %v5536_v50, %v5385_v25 }
 0x82b   :  { %v6013_v21 = vadd.f32 %v13439_v29, %v5977_v59  ;;  %v5352_v34 = vpop.f32.mrf.mxu3 }
 0x82c   :  { %v5386_v25 = vadd.f32 %v5352_v34, %v13426_v35 }
 0x82d   :  { %v6045_v8 = vmax.f32 %v6013_v21, 0.0  ;;  %v5538_v59 = vpop.f32.mrf.mxu0 }
 0x82e   :  { %v5905_v15 = vpop.f32.mrf.mxu2  ;;  %v5572_v42 = vadd.f32 %v5538_v59, %v5386_v25  ;;  %v13923_v25 = vld [vmem:[%s14707_s7 + $0x20] sm:$0xff] }
 0x82f   :  { %v5942_v14 = vadd.f32 %v5905_v15, %v5756_v61  ;;  %v13894_v61 = vld [vmem:[%s14707_s7 + $0x188] sm:$0xff] }
 0x830   :  { %6975 = vmatpush.bf16.xpose.msra.mxu0 %v13488_v33  ;;  %v13871_v0 = vld [vmem:[#allocation3 + $0x70] sm:$0xff] }
 0x831   :  { %7115 = vmatpush.bf16.xpose.msra.mxu2 %v13631_v47  ;;  %v5978_v40 = vmul.f32 %v13433_v46, %v5942_v14  ;;  %v6341_v23 = vshll.u32 %v13871_v0, 16 }
 0x833   :  { %v6014_v24 = vadd.f32 %v13439_v29, %v5978_v40  ;;  %v6429_v49 = vrot.slane %v6341_v23, 1  ;;  %v5757_v40 = vadd.f32 %v5722_v53, %v5571_v44 }
 0x835   :  { %v6046_v50 = vmax.f32 %v6014_v24, 0.0  ;;  %v5724_v24 = vpop.f32.mrf.mxu1 }
 0x836   :  { %v5908_v15 = vpop.f32.mrf.mxu2 }
 0x837   :  { %v10380_v20 = vpack.c.bf16 %v6046_v50, %v6045_v8  ;;  %6571 = vmatmul.bf16.gmra.mxu3 %v13883_v45  ;;  %6694 = vmatmul.bf16.gmra.mxu0 %v13888_v62  ;;  %v5943_v21 = vadd.f32 %v5908_v15, %v5757_v40 }
 0x838   :  { %6976 = vmatpush.bf16.xpose.msra.mxu0 %v13461_v63  ;;  %v6338_v63 = vshrl.u32 %v13871_v0, 16  ;;  %6824 = vmatmul.bf16.gmra.mxu2 %v13894_v61 }
 0x839   :  { %7116 = vmatpush.bf16.xpose.msra.mxu2 %v13610_v60  ;;  %10415 = vst [vmem:[#allocation3 + $0x78] sm:$0xff] %v10380_v20   ;;  %v5979_v35 = vmul.f32 %v13433_v46, %v5943_v21 }
 0x83a   :  { %v13896_v14 = vor.u32 %v6429_v49, %v6338_v63  ;;  %v5758_v49 = vadd.f32 %v5724_v24, %v5572_v42  ;;  %v13918_v42 = vld [vmem:[%s14707_s7 + $0xd8] sm:$0xff] }
 0x83b   :  { %v6015_v8 = vadd.f32 %v13439_v29, %v5979_v35 }
 0x83d   :  { %v6047_v21 = vmax.f32 %v6015_v8, 0.0 }
 0x83e   :  { %v5910_v53 = vpop.f32.mrf.mxu2 }
 0x83f   :  { %v5944_v44 = vadd.f32 %v5910_v53, %v5758_v49 }
 0x840   :  { %6977 = vmatpush.bf16.xpose.msra.mxu0 %v13731_v54  ;;  %v13906_v34 = vld [vmem:[#allocation3 + $0x78] sm:$0xff] }
 0x841   :  { %7117 = vmatpush.bf16.xpose.msra.mxu2 %v13579_v48  ;;  %v5980_v20 = vmul.f32 %v13433_v46, %v5944_v44  ;;  %v6345_v50 = vshrl.u32 %v13906_v34, 16  ;;  %v6348_v59 = vshll.u32 %v13906_v34, 16 }
 0x843   :  { %v6016_v15 = vadd.f32 %v13439_v29, %v5980_v20  ;;  %v6347_v46 = vrot.slane %v6345_v50, 7  ;;  %v6431_v40 = vrot.slane %v6348_v59, 1  ;;  %v13928_v29 = vld [vmem:[%s14707_s7 + $0x190] sm:$0xff]  ;;  %v6340_v20 = vrot.slane %v6338_v63, 7 }
 0x844   :  { %15168 = vst [vmem:[#allocation32_spill] sm:$0xff] %v13928_v29  ;;  %v6333_v63 = vrot.slane %v6331_v56, 7 }
 0x845   :  { %v6048_v24 = vmax.f32 %v6016_v15, 0.0  ;;  %v6350_v49 = vor.u32 %v6348_v59, %v6347_v46  ;;  %v13930_v35 = vor.u32 %v6431_v40, %v6345_v50  ;;  %v6343_v8 = vor.u32 %v6341_v23, %v6340_v20  ;;  %v13963_v23 = vld [vmem:[%s14707_s7 + $0x28] sm:$0xff]  ;;  %v10450_v20 = vld [vmem:[#allocation3 + $0x8] sm:$0xff] }
 0x847   :  { %v10385_v53 = vpack.c.bf16 %v6048_v24, %v6047_v21  ;;  %6574 = vmatmul.bf16.gmra.mxu3 %v13918_v42  ;;  %6697 = vmatmul.bf16.gmra.mxu0 %v13923_v25  ;;  %v13936_v44 = vsel %vm10656_vm2, 0, %v6350_v49  ;;  %v13944_v50 = vsel %vm10656_vm2, 0, %v6343_v8  ;;  %v13968_v21 = vld [vmem:[%s14707_s7 + $0x198] sm:$0xff]  ;;  %v13993_v8 = vsel %vm11822_vm5, %v13641_v17, 0  ;;  %v14016_v17 = vld [vmem:[%s14707_s7 + $0xe8] sm:$0xff] }
 0x848   :  { %7258 = vmatpush.bf16.xpose.msrb.mxu0 %v13698_v6  ;;  %6828 = vmatmul.bf16.gmra.mxu2 %v13928_v29  ;;  %15169 = vst [vmem:[#allocation7_spill] sm:$0xff] %v13968_v21 }
 0x849   :  { %7118 = vmatpush.bf16.xpose.msra.mxu2 %v13546_v36  ;;  %10416 = vst [vmem:[#allocation3 + $0x80] sm:$0xff] %v10385_v53   ;;  %6710 = vmatpush.bf16.xpose.msrb.mxu1 %v13936_v44 }
 0x850   :  { %7259 = vmatpush.bf16.xpose.msrb.mxu0 %v13659_v57  ;;  %v13946_v59 = vld [vmem:[#allocation3 + $0x80] sm:$0xff] }
 0x851   :  { %7119 = vmatpush.bf16.xpose.msra.mxu2 %v13513_v1  ;;  %6711 = vmatpush.bf16.xpose.msrb.mxu1 %v13944_v50  ;;  %v6352_v15 = vshrl.u32 %v13946_v59, 16  ;;  %v6355_v46 = vshll.u32 %v13946_v59, 16 }
 0x853   :  { %v6354_v40 = vrot.slane %v6352_v15, 7  ;;  %v6433_v56 = vrot.slane %v6355_v46, 1 }
 0x855   :  { %v13972_v24 = vor.u32 %v6433_v56, %v6352_v15  ;;  %v6319_v15 = vrot.slane %v6317_v9, 7  ;;  %v14021_v9 = vld [vmem:[%s14707_s7 + $0x30] sm:$0xff]  ;;  %v15172_v56 = vshll.u32 %v13739_v41, 16 }
 0x857   :  { %6700 = vmatmul.bf16.gmra.mxu0 %v13963_v23 }
 0x858   :  { %7260 = vmatpush.bf16.xpose.msrb.mxu0 %v13631_v47  ;;  %v13958_v47 = vld [vmem:[%s14707_s7 + $0xe0] sm:$0xff]  ;;  %6831 = vmatmul.bf16.gmra.mxu2 %v13968_v21 }
 0x859   :  { %7120 = vmatpush.bf16.xpose.msra.mxu2 %v13488_v33  ;;  %v6336_v33 = vor.u32 %v6334_v4, %v6333_v63  ;;  %6577 = vmatmul.bf16.gmra.mxu3 %v13958_v47  ;;  %v6326_v4 = vrot.slane %v6324_v13, 7 }
 0x85b   :  { %v13984_v53 = vsel %vm10656_vm2, 0, %v6336_v33  ;;  %v6329_v63 = vor.u32 %v6327_v10, %v6326_v4  ;;  %v10451_v4 = vld [vmem:[#allocation3 + $0x10] sm:$0xff] }
 0x85c   :  { %6712 = vmatpush.bf16.xpose.msrb.mxu1 %v13984_v53 }
 0x85d   :  { %v14001_v13 = vsel %vm10656_vm2, 0, %v6329_v63  ;;  %v14075_v63 = vld [vmem:[%s14707_s7 + $0x1a8] sm:$0xff] }
 0x85e   :  { %15173 = vst [vmem:[#allocation4_spill] sm:$0xff] %v14075_v63 }
 0x860   :  { %7261 = vmatpush.bf16.xpose.msrb.mxu0 %v13610_v60  ;;  %v6357_v60 = vor.u32 %v6355_v46, %v6354_v40  ;;  %v15171_v46 = vshrl.u32 %v13739_v41, 16 }
 0x861   :  { %7121 = vmatpush.bf16.xpose.msra.mxu2 %v10450_v20  ;;  %v14070_v20 = vld [vmem:[%s14707_s7 + $0x38] sm:$0xff] }
 0x862   :  { %v13978_v49 = vsel %vm10656_vm2, 0, %v6357_v60  ;;  %v6312_v40 = vrot.slane %v15171_v46, 7  ;;  %v14107_v46 = vld [vmem:[%s14707_s7 + $0x40] sm:$0xff] }
 0x863   :  { %6590 = vmatpush.bf16.xpose.msrb.mxu3 %v13978_v49 }
 0x864   :  { %6713 = vmatpush.bf16.xpose.msrb.mxu1 %v14001_v13  ;;  %v6315_v33 = vor.u32 %v15172_v56, %v6312_v40 }
 0x866   :  { %v14053_v60 = vsel %vm10656_vm2, 0, %v6315_v33 }
 0x867   :  { %6703 = vmatmul.bf16.gmra.mxu0 %v14021_v9 }
 0x868   :  { %7262 = vmatpush.bf16.xpose.msrb.mxu0 %v13579_v48  ;;  %v14010_v48 = vsel %vm11822_vm5, %v13622_v26, 0  ;;  %v6322_v26 = vor.u32 %v6320_v30, %v6319_v15  ;;  %v14045_v30 = vsel %vm11822_vm5, %v13596_v11, 0  ;;  %v14065_v11 = vld [vmem:[%s14707_s7 + $0xf0] sm:$0xff] }
 0x869   :  { %7401 = vmatpush.bf16.xpose.msrb.mxu2 %v13993_v8  ;;  %6580 = vmatmul.bf16.gmra.mxu3 %v14016_v17  ;;  %v14088_v15 = vld [vmem:[#allocation3 + $0x88] sm:$0xff] }
 0x86a   :  { %v14036_v10 = vsel %vm10656_vm2, 0, %v6322_v26  ;;  %v14096_v26 = vsel %vm11822_vm5, %v13502_v39, 0  ;;  %v14113_v39 = vld [vmem:[%s14707_s7 + $0x1b0] sm:$0xff]  ;;  %v6362_v33 = vshll.u32 %v14088_v15, 16 }
 0x86b   :  { %6591 = vmatpush.bf16.xpose.msrb.mxu3 %v13936_v44  ;;  %15174 = vst [vmem:[#allocation5_spill] sm:$0xff] %v14113_v39 }
 0x86c   :  { %6714 = vmatpush.bf16.xpose.msrb.mxu1 %v14036_v10 }
 0x870   :  { %7263 = vmatpush.bf16.xpose.msrb.mxu0 %v13546_v36  ;;  %v14026_v36 = vld [vmem:[%s14707_s7 + $0x1a0] sm:$0xff] }
 0x871   :  { %7402 = vmatpush.bf16.xpose.msrb.mxu2 %v14010_v48  ;;  %15170 = vst [vmem:[#allocation8_spill] sm:$0xff] %v14026_v36 }
 0x872   :  { %6834 = vmatmul.bf16.gmra.mxu2 %v14026_v36  ;;  %v15176_v36 = vshll.u32 %v13731_v54, 16 }
 0x873   :  { %6592 = vmatpush.bf16.xpose.msrb.mxu3 %v13944_v50 }
 0x874   :  { %6715 = vmatpush.bf16.xpose.msrb.mxu1 %v14053_v60  ;;  %v6401_v21 = vrot.slane %v15176_v36, 1 }
 0x876   :  { %v6402_v36 = vor.u32 %v6401_v21, %v15178_v38 }
 0x877   :  { %6706 = vmatmul.bf16.gmra.mxu0 %v14070_v20 }
 0x878   :  { %7264 = vmatpush.bf16.xpose.msrb.mxu0 %v13513_v1  ;;  %v14059_v1 = vsel %vm11822_vm5, %v13567_v37, 0  ;;  %v14085_v37 = vsel %vm11822_vm5, %v13532_v3, 0  ;;  %v14102_v3 = vld [vmem:[%s14707_s7 + $0xf8] sm:$0xff]  ;;  %v6455_v19 = vsel %vm11822_vm5, %v6402_v36, 0 }
 0x879   :  { %7403 = vmatpush.bf16.xpose.msrb.mxu2 %v14045_v30  ;;  %6583 = vmatmul.bf16.gmra.mxu3 %v14065_v11 }
 0x87b   :  { %6593 = vmatpush.bf16.xpose.msrb.mxu3 %v13984_v53 }
 0x87c   :  { %6716 = vmatpush.bf16.xpose.msrb.mxu1 %v13721_v55 }
 0x880   :  { %7265 = vmatpush.bf16.xpose.msrb.mxu0 %v10451_v4  ;;  %v15175_v4 = vld [vmem:[#allocation31_spill] sm:$0xff] }
 0x881   :  { %7404 = vmatpush.bf16.xpose.msrb.mxu2 %v14059_v1 }
 0x882   :  { %6837 = vmatmul.bf16.gmra.mxu2 %v14075_v63  ;;  %v14125_v63 = vsel %vm11822_vm5, %v15175_v4, 0 }
 0x883   :  { %6594 = vmatpush.bf16.xpose.msrb.mxu3 %v14001_v13 }
 0x884   :  { %6717 = vmatpush.bf16.xpose.msrb.mxu1 %v13678_v5  ;;  %v14862_v5 = vshrl.u32 %v14088_v15, 16  ;;  %v6683_v40 = vpop.f32.mrf.mxu0 }
 0x886   :  { %v6361_v56 = vrot.slane %v14862_v5, 7  ;;  %v15177_v5 = vld [vmem:[#allocation25_spill] sm:$0xff] }
 0x887   :  { %6978 = vmatmul.bf16.vlgmr.msra.gmra.mxu0 %v14107_v46 }
 0x888   :  { %7544 = vmatpush.bf16.xpose.msra.mxu0 %v14125_v63  ;;  %v6364_v4 = vor.u32 %v6362_v33, %v6361_v56 }
 0x889   :  { %7405 = vmatpush.bf16.xpose.msrb.mxu2 %v14085_v37  ;;  %6586 = vmatmul.bf16.gmra.mxu3 %v14102_v3 }
 0x88a   :  { %v6400_v29 = vsel %vm10656_vm2, 0, %v6364_v4 }
 0x88b   :  { %6595 = vmatpush.bf16.xpose.msrb.mxu3 %v14036_v10  ;;  %6718 = vmatmul.bf16.vlgmr.msrb.gmra.mxu1 %v13785_v31  ;;  %v14135_v31 = vsel %vm11822_vm5, %v15177_v5, 0  ;;  %v14152_v5 = vld [vmem:[%s14707_s7 + $0x48] sm:$0xff] }
 0x88c   :  { %7006 = vmatpush.bf16.xpose.msra.mxu1 %v13906_v34 }
 0x890   :  { %7545 = vmatpush.bf16.xpose.msra.mxu0 %v13993_v8 }
 0x891   :  { %7406 = vmatpush.bf16.xpose.msrb.mxu2 %v14096_v26 }
 0x892   :  { %6840 = vmatmul.bf16.gmra.mxu2 %v14113_v39  ;;  %v6685_v39 = vpop.f32.mrf.mxu0 }
 0x893   :  { %6596 = vmatpush.bf16.xpose.msrb.mxu3 %v14053_v60 }
 0x894   :  { %7007 = vmatpush.bf16.xpose.msra.mxu1 %v13871_v0 }
 0x897   :  { %6983 = vmatmul.bf16.gmra.mxu0 %v14152_v5 }
 0x898   :  { %7546 = vmatpush.bf16.xpose.msra.mxu0 %v14010_v48 }
 0x899   :  { %7407 = vmatpush.bf16.xpose.msrb.mxu2 %v14135_v31 }
 0x89a   :  { %v6688_v54 = vpop.f32.mrf.mxu0 }
 0x89b   :  { %6597 = vmatpush.bf16.xpose.msrb.mxu3 %v13721_v55  ;;  %6723 = vmatmul.bf16.gmra.mxu1 %v13817_v58  ;;  %v6563_v55 = vpop.f32.mrf.mxu3  ;;  %v14172_v58 = vld [vmem:[%s14707_s7 + $0x50] sm:$0xff] }
 0x89c   :  { %7008 = vmatpush.bf16.xpose.msra.mxu1 %v13832_v52  ;;  %v6684_v38 = vadd.f32 %v6683_v40, %v6563_v55  ;;  %v14208_v55 = vld [vmem:[%s14707_s7 + $0x108] sm:$0xff] }
 0x8a0   :  { %7547 = vmatpush.bf16.xpose.msra.mxu0 %v14045_v30 }
 0x8a1   :  { %7408 = vmatpush.bf16.xpose.msrb.mxu2 %v6455_v19 }
 0x8a2   :  { %6598 = vmatmul.bf16.vlgmr.msrb.gmra.mxu3 %v13812_v51  ;;  %6843 = vmatmul.bf16.gmra.mxu2 %v14157_v16  ;;  %v6690_v19 = vpop.f32.mrf.mxu0 }
 0x8a3   :  { %6847 = vmatpush.bf16.xpose.msra.mxu3 %v6400_v29  ;;  %v6565_v51 = vpop.f32.mrf.mxu3 }
 0x8a4   :  { %7009 = vmatpush.bf16.xpose.msra.mxu1 %v13800_v43  ;;  %v6686_v29 = vadd.f32 %v6685_v39, %v6565_v51 }
 0x8a7   :  { %6987 = vmatmul.bf16.gmra.mxu0 %v14172_v58 }
 0x8a8   :  { %7548 = vmatpush.bf16.xpose.msra.mxu0 %v14059_v1 }
 0x8aa   :  { %v6692_v21 = vpop.f32.mrf.mxu0 }
 0x8ab   :  { %6848 = vmatpush.bf16.xpose.msra.mxu3 %v13978_v49  ;;  %v14177_v49 = vld [vmem:[%s14707_s7 + $0x100] sm:$0xff]  ;;  %6727 = vmatmul.bf16.gmra.mxu1 %v13850_v12  ;;  %v6568_v40 = vpop.f32.mrf.mxu3 }
 0x8ac   :  { %7010 = vmatpush.bf16.xpose.msra.mxu1 %v13772_v28  ;;  %v6689_v39 = vadd.f32 %v6688_v54, %v6568_v40 }
 0x8b0   :  { %7549 = vmatpush.bf16.xpose.msra.mxu0 %v14085_v37 }
 0x8b2   :  { %6603 = vmatmul.bf16.gmra.mxu3 %v13845_v7  ;;  %7122 = vmatmul.bf16.vlgmr.msra.gmra.mxu2 %v14177_v49  ;;  %v6820_v7 = vpop.f32.mrf.mxu2  ;;  %v6693_v12 = vpop.f32.mrf.mxu0 }
 0x8b3   :  { %6849 = vmatpush.bf16.xpose.msra.mxu3 %v13936_v44  ;;  %v14187_v44 = vsel %vm11822_vm5, %v13711_v27, 0  ;;  %v14192_v56 = vadd.f32 %v6820_v7, %v6684_v38  ;;  %v6570_v27 = vpop.f32.mrf.mxu3  ;;  %v14286_v12 = vld [vmem:[%s14707_s7 + $0x78] sm:$0xff] }
 0x8b4   :  { %7687 = vmatpush.bf16.xpose.msra.mxu2 %v14187_v44  ;;  %7011 = vmatpush.bf16.xpose.msra.mxu1 %v13739_v41 }
 0x8b8   :  { %7550 = vmatpush.bf16.xpose.msra.mxu0 %v14096_v26 }
 0x8ba   :  { %v6822_v4 = vpop.f32.mrf.mxu2  ;;  %v6695_v54 = vpop.f32.mrf.mxu0 }
 0x8bb   :  { %6850 = vmatpush.bf16.xpose.msra.mxu3 %v13944_v50  ;;  %v14201_v50 = vld [vmem:[%s14707_s7 + $0x58] sm:$0xff]  ;;  %v14203_v36 = vadd.f32 %v6822_v4, %v6686_v29  ;;  %6730 = vmatmul.bf16.gmra.mxu1 %v13888_v62 }
 0x8bc   :  { %7688 = vmatpush.bf16.xpose.msra.mxu2 %v14125_v63  ;;  %7012 = vmatpush.bf16.xpose.msra.mxu1 %v13698_v6 }
 0x8bd   :  { %6990 = vmatmul.bf16.gmra.mxu0 %v14201_v50 }
 0x8c0   :  { %7551 = vmatpush.bf16.xpose.msra.mxu0 %v14135_v31 }
 0x8c2   :  { %6607 = vmatmul.bf16.gmra.mxu3 %v13883_v45  ;;  %7127 = vmatmul.bf16.gmra.mxu2 %v14208_v55  ;;  %v6825_v38 = vpop.f32.mrf.mxu2  ;;  %v6696_v51 = vpop.f32.mrf.mxu0 }
 0x8c3   :  { %6851 = vmatpush.bf16.xpose.msra.mxu3 %v13984_v53  ;;  %v6572_v53 = vpop.f32.mrf.mxu3  ;;  %v14218_v19 = vadd.f32 %v6825_v38, %v6689_v39 }
 0x8c4   :  { %7689 = vmatpush.bf16.xpose.msra.mxu2 %v13993_v8  ;;  %7013 = vmatpush.bf16.xpose.msra.mxu1 %v13659_v57  ;;  %v14227_v8 = vld [vmem:[%s14707_s7 + $0x60] sm:$0xff] }
 0x8c5   :  { %v14303_v53 = vld [vmem:[%s14707_s7 + $0x1c0] sm:$0xff] }
 0x8ca   :  { %v6827_v62 = vpop.f32.mrf.mxu2  ;;  %v6698_v57 = vpop.f32.mrf.mxu0 }
 0x8cb   :  { %6852 = vmatpush.bf16.xpose.msra.mxu3 %v14001_v13  ;;  %v6573_v45 = vpop.f32.mrf.mxu3  ;;  %v14233_v13 = vld [vmem:[%s14707_s7 + $0x110] sm:$0xff]  ;;  %6733 = vmatmul.bf16.gmra.mxu1 %v13923_v25 }
 0x8cc   :  { %7294 = vmatpush.bf16.xpose.msrb.mxu1 %v14088_v15  ;;  %7690 = vmatpush.bf16.xpose.msra.mxu2 %v14010_v48 }
 0x8cd   :  { %6993 = vmatmul.bf16.gmra.mxu0 %v14227_v8 }
 0x8d2   :  { %6610 = vmatmul.bf16.gmra.mxu3 %v13918_v42  ;;  %7131 = vmatmul.bf16.gmra.mxu2 %v14233_v13  ;;  %v6699_v31 = vpop.f32.mrf.mxu0  ;;  %v14248_v42 = vld [vmem:[%s14707_s7 + $0x68] sm:$0xff] }
 0x8d3   :  { %6853 = vmatpush.bf16.xpose.msra.mxu3 %v14036_v10  ;;  %v6575_v48 = vpop.f32.mrf.mxu3  ;;  %v6829_v10 = vpop.f32.mrf.mxu2 }
 0x8d4   :  { %7295 = vmatpush.bf16.xpose.msrb.mxu1 %v13946_v59  ;;  %7691 = vmatpush.bf16.xpose.msra.mxu2 %v14045_v30  ;;  %v14331_v48 = vld [vmem:[%s14707_s7 + $0x1c8] sm:$0xff] }
 0x8da   :  { %v6701_v25 = vpop.f32.mrf.mxu0 }
 0x8db   :  { %6854 = vmatpush.bf16.xpose.msra.mxu3 %v14053_v60  ;;  %v6576_v29 = vpop.f32.mrf.mxu3  ;;  %v6830_v21 = vpop.f32.mrf.mxu2  ;;  %6736 = vmatmul.bf16.gmra.mxu1 %v13963_v23 }
 0x8dc   :  { %7296 = vmatpush.bf16.xpose.msrb.mxu1 %v13906_v34  ;;  %7692 = vmatpush.bf16.xpose.msra.mxu2 %v14059_v1 }
 0x8dd   :  { %6996 = vmatmul.bf16.gmra.mxu0 %v14248_v42 }
 0x8e2   :  { %6613 = vmatmul.bf16.gmra.mxu3 %v13958_v47  ;;  %v6702_v60 = vpop.f32.mrf.mxu0  ;;  %v14268_v47 = vld [vmem:[%s14707_s7 + $0x70] sm:$0xff] }
 0x8e3   :  { %7150 = vmatpush.bf16.xpose.msrb.mxu3 %v13946_v59  ;;  %v14254_v59 = vld [vmem:[%s14707_s7 + $0x118] sm:$0xff]  ;;  %v6832_v30 = vpop.f32.mrf.mxu2 }
 0x8e4   :  { %7297 = vmatpush.bf16.xpose.msrb.mxu1 %v13871_v0  ;;  %7134 = vmatmul.bf16.gmra.mxu2 %v14254_v59 }
 0x8e5   :  { %7693 = vmatpush.bf16.xpose.msra.mxu2 %v14085_v37 }
 0x8ea   :  { %v6704_v23 = vpop.f32.mrf.mxu0 }
 0x8eb   :  { %7151 = vmatpush.bf16.xpose.msrb.mxu3 %v13906_v34  ;;  %v6578_v34 = vpop.f32.mrf.mxu3  ;;  %v6833_v40 = vpop.f32.mrf.mxu2  ;;  %6739 = vmatmul.bf16.gmra.mxu1 %v14021_v9  ;;  %v14292_v9 = vld [vmem:[%s14707_s7 + $0x128] sm:$0xff]  ;;  %v14369_v23 = vld [vmem:[%s14707_s7 + $0x80] sm:$0xff] }
 0x8ec   :  { %7298 = vmatpush.bf16.xpose.msrb.mxu1 %v13832_v52 }
 0x8ed   :  { %7694 = vmatpush.bf16.xpose.msra.mxu2 %v14096_v26  ;;  %6999 = vmatmul.bf16.gmra.mxu0 %v14268_v47 }
 0x8f2   :  { %6616 = vmatmul.bf16.gmra.mxu3 %v14016_v17  ;;  %v6705_v26 = vpop.f32.mrf.mxu0 }
 0x8f3   :  { %7152 = vmatpush.bf16.xpose.msrb.mxu3 %v13871_v0  ;;  %v6579_v1 = vpop.f32.mrf.mxu3  ;;  %v14274_v0 = vld [vmem:[%s14707_s7 + $0x120] sm:$0xff] }
 0x8f4   :  { %7299 = vmatpush.bf16.xpose.msrb.mxu1 %v13800_v43  ;;  %7137 = vmatmul.bf16.gmra.mxu2 %v14274_v0 }
 0x8f5   :  { %v6835_v37 = vpop.f32.mrf.mxu2 }
 0x8fa   :  { %v6707_v17 = vpop.f32.mrf.mxu0 }
 0x8fb   :  { %7153 = vmatpush.bf16.xpose.msrb.mxu3 %v13832_v52  ;;  %v6581_v52 = vpop.f32.mrf.mxu3  ;;  %6742 = vmatmul.bf16.gmra.mxu1 %v14070_v20  ;;  %v14309_v20 = vld [vmem:[%s14707_s7 + $0x130] sm:$0xff] }
 0x8fc   :  { %7300 = vmatpush.bf16.xpose.msrb.mxu1 %v13772_v28 }
 0x8fd   :  { %v6836_v7 = vpop.f32.mrf.mxu2  ;;  %7002 = vmatmul.bf16.gmra.mxu0 %v14286_v12 }
 0x902   :  { %6619 = vmatmul.bf16.gmra.mxu3 %v14065_v11  ;;  %v6708_v27 = vpop.f32.mrf.mxu0 }
 0x903   :  { %7154 = vmatpush.bf16.xpose.msrb.mxu3 %v13800_v43  ;;  %v6582_v39 = vpop.f32.mrf.mxu3 }
 0x904   :  { %7301 = vmatpush.bf16.xpose.msrb.mxu1 %v13739_v41  ;;  %7140 = vmatmul.bf16.gmra.mxu2 %v14292_v9 }
 0x905   :  { %v6838_v43 = vpop.f32.mrf.mxu2 }
 0x906   :  { %v14396_v43 = vld [vmem:[%s14707_s7 + $0x1d8] sm:$0xff] }
 0x908   :  { %v6719_v51 = vpop.f32.mrf.mxu1 }
 0x90a   :  { %v6979_v38 = vpop.f32.mrf.mxu0 }
 0x90b   :  { %7155 = vmatpush.bf16.xpose.msrb.mxu3 %v13772_v28  ;;  %v6584_v28 = vpop.f32.mrf.mxu3  ;;  %v7042_v11 = vadd.f32 %v6979_v38, %v14192_v56  ;;  %7014 = vmatmul.bf16.vlgmr.msra.gmra.mxu1 %v14107_v46  ;;  %v14403_v38 = vld [vmem:[%s14707_s7 + $0x88] sm:$0xff] }
 0x90d   :  { %v6839_v54 = vpop.f32.mrf.mxu2  ;;  %7266 = vmatmul.bf16.vlgmr.msrb.gmra.mxu0 %v14303_v53 }
 0x910   :  { %v6721_v57 = vpop.f32.mrf.mxu1 }
 0x912   :  { %6622 = vmatmul.bf16.gmra.mxu3 %v14102_v3  ;;  %v6981_v45 = vpop.f32.mrf.mxu0  ;;  %v14325_v3 = vsel %vm11822_vm5, %v13930_v35, 0  ;;  %v14347_v35 = vsel %vm11822_vm5, %v13896_v14, 0  ;;  %v14362_v14 = vld [vmem:[%s14707_s7 + $0x1d0] sm:$0xff] }
 0x913   :  { %7156 = vmatpush.bf16.xpose.msrb.mxu3 %v13739_v41  ;;  %v6585_v4 = vpop.f32.mrf.mxu3  ;;  %v7044_v62 = vadd.f32 %v6981_v45, %v14203_v36  ;;  %v14337_v36 = vld [vmem:[%s14707_s7 + $0x138] sm:$0xff] }
 0x914   :  { %7143 = vmatmul.bf16.gmra.mxu2 %v14309_v20 }
 0x915   :  { %v6841_v56 = vpop.f32.mrf.mxu2 }
 0x918   :  { %v6724_v29 = vpop.f32.mrf.mxu1 }
 0x91a   :  { %v6984_v10 = vpop.f32.mrf.mxu0 }
 0x91b   :  { %7157 = vmatpush.bf16.xpose.msrb.mxu3 %v13698_v6  ;;  %v14317_v6 = vsel %vm11822_vm5, %v13972_v24, 0  ;;  %v6587_v41 = vpop.f32.mrf.mxu3  ;;  %v7046_v31 = vadd.f32 %v6984_v10, %v14218_v19  ;;  %7019 = vmatmul.bf16.gmra.mxu1 %v14152_v5  ;;  %v14423_v10 = vld [vmem:[%s14707_s7 + $0x1e0] sm:$0xff] }
 0x91c   :  { %7580 = vmatpush.bf16.xpose.msra.mxu1 %v14317_v6  ;;  %v15181_v41 = vld [vmem:[#allocation36_spill] sm:$0xff] }
 0x91d   :  { %v6842_v24 = vpop.f32.mrf.mxu2  ;;  %7271 = vmatmul.bf16.gmra.mxu0 %v14331_v48  ;;  %v14413_v56 = vsel %vm11822_vm5, %v15181_v41, 0 }
 0x920   :  { %v6726_v30 = vpop.f32.mrf.mxu1 }
 0x922   :  { %6855 = vmatmul.bf16.vlgmr.msra.gmra.mxu3 %v13858_v2  ;;  %v6986_v34 = vpop.f32.mrf.mxu0  ;;  %v14356_v2 = vsel %vm11822_vm5, %v13862_v18, 0  ;;  %v14379_v18 = vsel %vm11822_vm5, %v13824_v22, 0 }
 0x923   :  { %v6588_v46 = vpop.f32.mrf.mxu3  ;;  %7437 = vmatpush.bf16.xpose.msra.mxu3 %v14325_v3  ;;  %v15182_v34 = vld [vmem:[#allocation7_spill] sm:$0xff] }
 0x924   :  { %7581 = vmatpush.bf16.xpose.msra.mxu1 %v14325_v3  ;;  %7146 = vmatmul.bf16.gmra.mxu2 %v14337_v36 }
 0x925   :  { %v6844_v21 = vpop.f32.mrf.mxu2 }
 0x926   :  { %v14428_v21 = vld [vmem:[%s14707_s7 + $0x90] sm:$0xff] }
 0x928   :  { %v6728_v52 = vpop.f32.mrf.mxu1 }
 0x92a   :  { %v6988_v40 = vpop.f32.mrf.mxu0 }
 0x92b   :  { %v6599_v19 = vpop.f32.mrf.mxu3  ;;  %7438 = vmatpush.bf16.xpose.msra.mxu3 %v14347_v35  ;;  %7023 = vmatmul.bf16.gmra.mxu1 %v14172_v58  ;;  %v15179_v58 = vld [vmem:[#allocation37_spill] sm:$0xff] }
 0x92c   :  { %7582 = vmatpush.bf16.xpose.msra.mxu1 %v14347_v35  ;;  %v14350_v25 = vadd.f32 %v6719_v51, %v6599_v19  ;;  %v14390_v28 = vsel %vm11822_vm5, %v15179_v58, 0  ;;  %v15180_v51 = vld [vmem:[#allocation32_spill] sm:$0xff] }
 0x92d   :  { %v6845_v60 = vpop.f32.mrf.mxu2  ;;  %7275 = vmatmul.bf16.gmra.mxu0 %v14362_v14 }
 0x932   :  { %6860 = vmatmul.bf16.gmra.mxu3 %v13894_v61  ;;  %v6989_v7 = vpop.f32.mrf.mxu0  ;;  %v6729_v61 = vpop.f32.mrf.mxu1 }
 0x933   :  { %v6601_v5 = vpop.f32.mrf.mxu3  ;;  %7439 = vmatpush.bf16.xpose.msra.mxu3 %v14356_v2  ;;  %v15183_v61 = vld [vmem:[#allocation8_spill] sm:$0xff] }
 0x934   :  { %7583 = vmatpush.bf16.xpose.msra.mxu1 %v14356_v2  ;;  %v14364_v1 = vadd.f32 %v6721_v57, %v6601_v5  ;;  %7409 = vmatmul.bf16.vlgmr.msrb.gmra.mxu2 %v14369_v23 }
 0x935   :  { %v7123_v26 = vpop.f32.mrf.mxu2 }
 0x936   :  { %v14384_v17 = vadd.f32 %v7123_v26, %v7042_v11 }
 0x93a   :  { %v6991_v4 = vpop.f32.mrf.mxu0  ;;  %v6731_v11 = vpop.f32.mrf.mxu1 }
 0x93b   :  { %v6604_v37 = vpop.f32.mrf.mxu3  ;;  %7440 = vmatpush.bf16.xpose.msra.mxu3 %v14379_v18  ;;  %7026 = vmatmul.bf16.gmra.mxu1 %v14201_v50  ;;  %v14453_v11 = vld [vmem:[%s14707_s7 + $0x1f0] sm:$0xff] }
 0x93c   :  { %7584 = vmatpush.bf16.xpose.msra.mxu1 %v14379_v18  ;;  %v14382_v39 = vadd.f32 %v6724_v29, %v6604_v37  ;;  %v14439_v37 = vld [vmem:[%s14707_s7 + $0x1e8] sm:$0xff] }
 0x93d   :  { %v7125_v27 = vpop.f32.mrf.mxu2  ;;  %7278 = vmatmul.bf16.gmra.mxu0 %v14396_v43 }
 0x93e   :  { %v14398_v54 = vadd.f32 %v7125_v27, %v7044_v62 }
 0x942   :  { %6864 = vmatmul.bf16.gmra.mxu3 %v15180_v51  ;;  %v6992_v57 = vpop.f32.mrf.mxu0  ;;  %v6732_v24 = vpop.f32.mrf.mxu1 }
 0x943   :  { %v6606_v22 = vpop.f32.mrf.mxu3  ;;  %7441 = vmatpush.bf16.xpose.msra.mxu3 %v14390_v28 }
 0x944   :  { %7585 = vmatpush.bf16.xpose.msra.mxu1 %v14390_v28  ;;  %7414 = vmatmul.bf16.gmra.mxu2 %v14403_v38 }
 0x945   :  { %v7128_v62 = vpop.f32.mrf.mxu2 }
 0x946   :  { %v14416_v46 = vadd.f32 %v7128_v62, %v7046_v31  ;;  %v15184_v62 = vld [vmem:[#allocation4_spill] sm:$0xff] }
 0x94a   :  { %v6994_v19 = vpop.f32.mrf.mxu0  ;;  %v6734_v31 = vpop.f32.mrf.mxu1 }
 0x94b   :  { %v6608_v45 = vpop.f32.mrf.mxu3  ;;  %7442 = vmatpush.bf16.xpose.msra.mxu3 %v14413_v56  ;;  %7029 = vmatmul.bf16.gmra.mxu1 %v14227_v8  ;;  %v14444_v8 = vld [vmem:[%s14707_s7 + $0x98] sm:$0xff] }
 0x94c   :  { %7586 = vmatpush.bf16.xpose.msra.mxu1 %v14413_v56  ;;  %v14458_v45 = vld [vmem:[%s14707_s7 + $0xa0] sm:$0xff]  ;;  %v14467_v31 = vld [vmem:[%s14707_s7 + $0x1f8] sm:$0xff] }
 0x94d   :  { %v7130_v29 = vpop.f32.mrf.mxu2  ;;  %7281 = vmatmul.bf16.gmra.mxu0 %v14423_v10 }
 0x952   :  { %6867 = vmatmul.bf16.gmra.mxu3 %v15182_v34  ;;  %v6995_v60 = vpop.f32.mrf.mxu0  ;;  %v6735_v40 = vpop.f32.mrf.mxu1 }
 0x953   :  { %v6609_v50 = vpop.f32.mrf.mxu3  ;;  %7443 = vmatpush.bf16.xpose.msra.mxu3 %v14187_v44  ;;  %v15185_v60 = vld [vmem:[#allocation5_spill] sm:$0xff] }
 0x954   :  { %7587 = vmatpush.bf16.xpose.msra.mxu1 %v14187_v44  ;;  %7418 = vmatmul.bf16.gmra.mxu2 %v14428_v21 }
 0x955   :  { %v7132_v5 = vpop.f32.mrf.mxu2 }
 0x956   :  { %v14472_v5 = vld [vmem:[%s14707_s7 + $0xa8] sm:$0xff] }
 0x95a   :  { %v6997_v7 = vpop.f32.mrf.mxu0  ;;  %v6737_v44 = vpop.f32.mrf.mxu1 }
 0x95b   :  { %v6611_v30 = vpop.f32.mrf.mxu3  ;;  %7444 = vmatpush.bf16.xpose.msra.mxu3 %v14125_v63  ;;  %7032 = vmatmul.bf16.gmra.mxu1 %v14248_v42 }
 0x95d   :  { %v7133_v26 = vpop.f32.mrf.mxu2  ;;  %7284 = vmatmul.bf16.gmra.mxu0 %v14439_v37 }
 0x962   :  { %6870 = vmatmul.bf16.gmra.mxu3 %v15183_v61  ;;  %v6998_v22 = vpop.f32.mrf.mxu0  ;;  %v6738_v27 = vpop.f32.mrf.mxu1  ;;  %v14481_v61 = vld [vmem:[%s14707_s7 + $0x140] sm:$0xff] }
 0x963   :  { %v6612_v52 = vpop.f32.mrf.mxu3 }
 0x964   :  { %7421 = vmatmul.bf16.gmra.mxu2 %v14444_v8 }
 0x967   :  { %v7135_v58 = vpop.f32.mrf.mxu2 }
 0x96a   :  { %v7000_v41 = vpop.f32.mrf.mxu0  ;;  %v6740_v42 = vpop.f32.mrf.mxu1 }
 0x96b   :  { %v6614_v63 = vpop.f32.mrf.mxu3  ;;  %7035 = vmatmul.bf16.gmra.mxu1 %v14268_v47 }
 0x96d   :  { %7287 = vmatmul.bf16.gmra.mxu0 %v14453_v11 }
 0x96f   :  { %v7136_v51 = vpop.f32.mrf.mxu2 }
 0x972   :  { %6873 = vmatmul.bf16.gmra.mxu3 %v15184_v62  ;;  %v7001_v50 = vpop.f32.mrf.mxu0  ;;  %v6741_v29 = vpop.f32.mrf.mxu1  ;;  %v15186_v62 = vshrl.u32 %v14088_v15, 16 }
 0x973   :  { %v6615_v4 = vpop.f32.mrf.mxu3 }
 0x974   :  { %7424 = vmatmul.bf16.gmra.mxu2 %v14458_v45 }
 0x977   :  { %v7138_v24 = vpop.f32.mrf.mxu2 }
 0x97a   :  { %v7003_v30 = vpop.f32.mrf.mxu0  ;;  %v6743_v47 = vpop.f32.mrf.mxu1 }
 0x97b   :  { %v6617_v57 = vpop.f32.mrf.mxu3  ;;  %7038 = vmatmul.bf16.gmra.mxu1 %v14286_v12  ;;  %v14487_v12 = vld [vmem:[%s14707_s7 + $0xb0] sm:$0xff] }
 0x97d   :  { %7290 = vmatmul.bf16.gmra.mxu0 %v14467_v31 }
 0x97f   :  { %v7139_v34 = vpop.f32.mrf.mxu2 }
 0x982   :  { %6876 = vmatmul.bf16.gmra.mxu3 %v15185_v60  ;;  %v7004_v26 = vpop.f32.mrf.mxu0  ;;  %v6744_v7 = vpop.f32.mrf.mxu1 }
 0x983   :  { %v6618_v19 = vpop.f32.mrf.mxu3 }
 0x984   :  { %7427 = vmatmul.bf16.gmra.mxu2 %v14472_v5  ;;  %v14508_v19 = vld [vmem:[%s14707_s7 + $0xb8] sm:$0xff] }
 0x987   :  { %v7141_v52 = vpop.f32.mrf.mxu2 }
 0x98a   :  { %v7267_v58 = vpop.f32.mrf.mxu0  ;;  %v7015_v27 = vpop.f32.mrf.mxu1 }
 0x98b   :  { %v6620_v40 = vpop.f32.mrf.mxu3  ;;  %v7330_v22 = vadd.f32 %v7267_v58, %v14384_v17  ;;  %7302 = vmatmul.bf16.vlgmr.msrb.gmra.mxu1 %v14303_v53  ;;  %v6435_v17 = vrot.slane %v6362_v33, 1  ;;  %v7765_v33 = vld [vmem:[%s14708_s8] sm:$0xff] }
 0x98c   :  { %7770 = vperm.xlu0 %10418, %v7765_v33  }
 0x98d   :  { %7552 = vmatmul.bf16.vlgmr.msra.gmra.mxu0 %v14481_v61  ;;  %v6436_v57 = vor.u32 %v6435_v17, %v15186_v62  ;;  %v14552_v62 = vld [vmem:[%s14707_s7 + $0x208] sm:$0xff] }
 0x98f   :  { %v7142_v63 = vpop.f32.mrf.mxu2  ;;  %v6472_v15 = vsel %vm11822_vm5, %v6436_v57, 0 }
 0x992   :  { %6879 = vmatmul.bf16.gmra.mxu3 %v14157_v16  ;;  %v14493_v41 = vpop.f32.mrf.mxu0  ;;  %v7017_v42 = vpop.f32.mrf.mxu1  ;;  %v14502_v16 = vld [vmem:[%s14707_s7 + $0x148] sm:$0xff] }
 0x993   :  { %v6621_v44 = vpop.f32.mrf.mxu3 }
 0x994   :  { %7430 = vmatmul.bf16.gmra.mxu2 %v14487_v12 }
 0x997   :  { %v7144_v51 = vpop.f32.mrf.mxu2 }
 0x99a   :  { %v7272_v50 = vpop.f32.mrf.mxu0  ;;  %v7020_v34 = vpop.f32.mrf.mxu1 }
 0x99b   :  { %v6623_v4 = vpop.f32.mrf.mxu3  ;;  %v7334_v29 = vadd.f32 %v7272_v50, %v14416_v46  ;;  %7307 = vmatmul.bf16.gmra.mxu1 %v14331_v48 }
 0x99d   :  { %7557 = vmatmul.bf16.gmra.mxu0 %v14502_v16 }
 0x99f   :  { %v7145_v53 = vpop.f32.mrf.mxu2 }
 0x9a2   :  { %7158 = vmatmul.bf16.vlgmr.msrb.gmra.mxu3 %v14177_v49  ;;  %v7274_v32 = vpop.f32.mrf.mxu0  ;;  %v7022_v60 = vpop.f32.mrf.mxu1  ;;  %v7766_v49 = vld [vmem:[%s14708_s8 + $0x8] sm:$0xff] }
 0x9a3   :  { %v6624_v24 = vpop.f32.mrf.mxu3  ;;  %7723 = vmatpush.bf16.xpose.msrb.mxu3 %v6472_v15  ;;  %7775 = vperm.xlu1 %10419, %v7766_v49  }
 0x9a4   :  { %7433 = vmatmul.bf16.gmra.mxu2 %v14508_v19 }
 0x9a7   :  { %v7147_v47 = vpop.f32.mrf.mxu2 }
 0x9aa   :  { %v7276_v7 = vpop.f32.mrf.mxu0  ;;  %v7024_v44 = vpop.f32.mrf.mxu1 }
 0x9ab   :  { %v6856_v46 = vpop.f32.mrf.mxu3  ;;  %7724 = vmatpush.bf16.xpose.msrb.mxu3 %v14317_v6  ;;  %7311 = vmatmul.bf16.gmra.mxu1 %v14362_v14  ;;  %v7767_v6 = vld [vmem:[%s14708_s8 + $0x10] sm:$0xff] }
 0x9ac   :  { %v6884_v30 = vadd.f32 %v6856_v46, %v14350_v25  ;;  %v14530_v25 = vld [vmem:[%s14707_s7 + $0x200] sm:$0xff]  ;;  %7780 = vperm.xlu0 %10418, %v7767_v6  }
 0x9ae   :  { %v14520_v40 = vadd.f32 %v7015_v27, %v6884_v30 }
 0x9af   :  { %v7148_v26 = vpop.f32.mrf.mxu2 }
 0x9b2   :  { %7163 = vmatmul.bf16.gmra.mxu3 %v14208_v55  ;;  %v7277_v4 = vpop.f32.mrf.mxu0 }
 0x9b3   :  { %v6858_v48 = vpop.f32.mrf.mxu3  ;;  %7725 = vmatpush.bf16.xpose.msrb.mxu3 %v14325_v3 }
 0x9b4   :  { %v6886_v52 = vadd.f32 %v6858_v48, %v14364_v1  ;;  %7695 = vmatmul.bf16.vlgmr.msra.gmra.mxu2 %v14530_v25 }
 0x9b6   :  { %v14532_v63 = vadd.f32 %v7017_v42, %v6886_v52  ;;  %v7025_v42 = vpop.f32.mrf.mxu1 }
 0x9b7   :  { %v7410_v27 = vpop.f32.mrf.mxu2 }
 0x9b8   :  { %v14542_v51 = vadd.f32 %v7410_v27, %v7330_v22 }
 0x9ba   :  { %v7279_v3 = vpop.f32.mrf.mxu0 }
 0x9bb   :  { %v6861_v1 = vpop.f32.mrf.mxu3  ;;  %7726 = vmatpush.bf16.xpose.msrb.mxu3 %v14347_v35  ;;  %7314 = vmatmul.bf16.gmra.mxu1 %v14396_v43 }
 0x9bc   :  { %v6888_v58 = vadd.f32 %v6861_v1, %v14382_v39 }
 0x9be   :  { %v14544_v55 = vadd.f32 %v7020_v34, %v6888_v58  ;;  %v7027_v57 = vpop.f32.mrf.mxu1 }
 0x9bf   :  { %v14547_v17 = vpop.f32.mrf.mxu2 }
 0x9c2   :  { %7167 = vmatmul.bf16.gmra.mxu3 %v14233_v13  ;;  %v7280_v22 = vpop.f32.mrf.mxu0 }
 0x9c3   :  { %v6863_v14 = vpop.f32.mrf.mxu3  ;;  %7727 = vmatpush.bf16.xpose.msrb.mxu3 %v14356_v2 }
 0x9c4   :  { %7700 = vmatmul.bf16.gmra.mxu2 %v14552_v62 }
 0x9c6   :  { %v7028_v53 = vpop.f32.mrf.mxu1 }
 0x9c7   :  { %v7415_v35 = vpop.f32.mrf.mxu2 }
 0x9c8   :  { %v14558_v24 = vadd.f32 %v7415_v35, %v7334_v29 }
 0x9ca   :  { %v7282_v15 = vpop.f32.mrf.mxu0 }
 0x9cb   :  { %v6865_v39 = vpop.f32.mrf.mxu3  ;;  %7728 = vmatpush.bf16.xpose.msrb.mxu3 %v14379_v18  ;;  %7317 = vmatmul.bf16.gmra.mxu1 %v14423_v10 }
 0x9ce   :  { %v7030_v33 = vpop.f32.mrf.mxu1 }
 0x9cf   :  { %v7417_v34 = vpop.f32.mrf.mxu2 }
 0x9d2   :  { %7170 = vmatmul.bf16.gmra.mxu3 %v14254_v59  ;;  %v7283_v43 = vpop.f32.mrf.mxu0 }
 0x9d3   :  { %v6866_v50 = vpop.f32.mrf.mxu3  ;;  %7729 = vmatpush.bf16.xpose.msrb.mxu3 %v14390_v28 }
 0x9d6   :  { %v7031_v46 = vpop.f32.mrf.mxu1 }
 0x9d7   :  { %v7419_v2 = vpop.f32.mrf.mxu2 }
 0x9da   :  { %v7285_v47 = vpop.f32.mrf.mxu0 }
 0x9db   :  { %v6868_v13 = vpop.f32.mrf.mxu3  ;;  %7730 = vmatpush.bf16.xpose.msrb.mxu3 %v14413_v56  ;;  %7320 = vmatmul.bf16.gmra.mxu1 %v14439_v37 }
 0x9de   :  { %v7033_v18 = vpop.f32.mrf.mxu1 }
 0x9df   :  { %v7420_v30 = vpop.f32.mrf.mxu2 }
 0x9e2   :  { %7173 = vmatmul.bf16.gmra.mxu3 %v14274_v0  ;;  %v7286_v60 = vpop.f32.mrf.mxu0 }
 0x9e3   :  { %v6869_v29 = vpop.f32.mrf.mxu3 }
 0x9e6   :  { %v7034_v10 = vpop.f32.mrf.mxu1 }
 0x9e7   :  { %v7422_v59 = vpop.f32.mrf.mxu2 }
 0x9ea   :  { %v7288_v48 = vpop.f32.mrf.mxu0 }
 0x9eb   :  { %v6871_v32 = vpop.f32.mrf.mxu3  ;;  %7323 = vmatmul.bf16.gmra.mxu1 %v14453_v11  ;;  %v7858_v48 = vld [vmem:[%s14709_s9 + $0x10] sm:$0x3f] }
 0x9ee   :  { %v7036_v52 = vpop.f32.mrf.mxu1 }
 0x9ef   :  { %v7423_v28 = vpop.f32.mrf.mxu2 }
 0x9f2   :  { %7176 = vmatmul.bf16.gmra.mxu3 %v14292_v9  ;;  %v7289_v7 = vpop.f32.mrf.mxu0 }
 0x9f3   :  { %v6872_v49 = vpop.f32.mrf.mxu3 }
 0x9f6   :  { %v7037_v44 = vpop.f32.mrf.mxu1 }
 0x9f7   :  { %v7425_v26 = vpop.f32.mrf.mxu2 }
 0x9f8   :  { %v7866_v26 = vrot.slane %v7858_v48, 6 }
 0x9fa   :  { %v7291_v1 = vpop.f32.mrf.mxu0 }
 0x9fb   :  { %v6874_v56 = vpop.f32.mrf.mxu3  ;;  %7326 = vmatmul.bf16.gmra.mxu1 %v14467_v31 }
 0x9fe   :  { %v7039_v37 = vpop.f32.mrf.mxu1 }
 0x9ff   :  { %v7426_v0 = vpop.f32.mrf.mxu2 }
 0xa02   :  { %7179 = vmatmul.bf16.gmra.mxu3 %v14309_v20  ;;  %v7292_v4 = vpop.f32.mrf.mxu0 }
 0xa03   :  { %v6875_v6 = vpop.f32.mrf.mxu3 }
 0xa06   :  { %v7040_v42 = vpop.f32.mrf.mxu1 }
 0xa07   :  { %v7428_v27 = vpop.f32.mrf.mxu2 }
 0xa0a   :  { %v7553_v3 = vpop.f32.mrf.mxu0 }
 0xa0b   :  { %v6877_v58 = vpop.f32.mrf.mxu3  ;;  %7588 = vmatmul.bf16.vlgmr.msra.gmra.mxu1 %v14481_v61 }
 0xa0e   :  { %v7303_v11 = vpop.f32.mrf.mxu1 }
 0xa0f   :  { %v7429_v9 = vpop.f32.mrf.mxu2 }
 0xa12   :  { %7182 = vmatmul.bf16.gmra.mxu3 %v14337_v36  ;;  %v7555_v35 = vpop.f32.mrf.mxu0 }
 0xa13   :  { %v6878_v14 = vpop.f32.mrf.mxu3 }
 0xa15   :  { %v14600_v52 = vpop.permute.xlu1 %7775 }
 0xa16   :  { %v14573_v22 = vpop.f32.mrf.mxu1 }
 0xa17   :  { %v7431_v39 = vpop.f32.mrf.mxu2 }
 0xa1a   :  { %v7558_v31 = vpop.f32.mrf.mxu0 }
 0xa1b   :  { %v6880_v57 = vpop.f32.mrf.mxu3  ;;  %7593 = vmatmul.bf16.gmra.mxu1 %v14502_v16  ;;  %v7620_v0 = vadd.f32 %v7558_v31, %v14558_v24 }
 0xa1e   :  { %v7308_v50 = vpop.f32.mrf.mxu1 }
 0xa1f   :  { %v7432_v53 = vpop.f32.mrf.mxu2 }
 0xa22   :  { %7445 = vmatmul.bf16.vlgmr.msra.gmra.mxu3 %v14369_v23  ;;  %v7560_v36 = vpop.f32.mrf.mxu0  ;;  %v7616_v23 = vadd.f32 %v7553_v3, %v14542_v51 }
 0xa23   :  { %v6881_v20 = vpop.f32.mrf.mxu3 }
 0xa26   :  { %v7310_v13 = vpop.f32.mrf.mxu1 }
 0xa27   :  { %v7434_v33 = vpop.f32.mrf.mxu2 }
 0xa2b   :  { %v7159_v34 = vpop.f32.mrf.mxu3 }
 0xa2c   :  { %v7187_v15 = vadd.f32 %v7159_v34, %v14520_v40  ;;  %v14586_v40 = vpop.permute.xlu0 %7770 }
 0xa2e   :  { %v14578_v61 = vadd.f32 %v7303_v11, %v7187_v15  ;;  %v7312_v29 = vpop.f32.mrf.mxu1 }
 0xa2f   :  { %v7435_v46 = vpop.f32.mrf.mxu2 }
 0xa32   :  { %7450 = vmatmul.bf16.gmra.mxu3 %v14403_v38 }
 0xa33   :  { %v7161_v2 = vpop.f32.mrf.mxu3 }
 0xa34   :  { %v14581_v43 = vadd.f32 %v7161_v2, %v14532_v63  ;;  %v7332_v63 = vadd.f32 %v14493_v41, %v14398_v54  ;;  %v14606_v27 = vpop.permute.xlu0 %7780 }
 0xa36   :  { %v7313_v32 = vpop.f32.mrf.mxu1  ;;  %v7475_v10 = vadd.f32 %v14547_v17, %v7332_v63  ;;  %v14622_v63 = vld [vmem:[#allocation2] sm:$0xff] }
 0xa37   :  { %v7696_v47 = vpop.f32.mrf.mxu2 }
 0xa38   :  { %v7759_v18 = vadd.f32 %v7696_v47, %v7616_v23  ;;  %v7618_v49 = vadd.f32 %v7555_v35, %v7475_v10 }
 0xa3a   :  { %v7783_v60 = vadd.f32 %v14586_v40, %v7759_v18 }
 0xa3b   :  { %v7164_v30 = vpop.f32.mrf.mxu3 }
 0xa3c   :  { %v7191_v16 = vadd.f32 %v7164_v30, %v14544_v55  ;;  %v9865_v38 = vmul.f32 -1.442695, %v7783_v60  ;;  %v7856_v55 = vld [vmem:[%s14709_s9] sm:$0xff] }
 0xa3d   :  { %v7865_v56 = vrot.slane %v7856_v55, 6 }
 0xa3e   :  { %v14588_v59 = vadd.f32 %v7308_v50, %v7191_v16  ;;  %10424 = vpow2.f32 %v9865_v38  ;;  %v7315_v41 = vpop.f32.mrf.mxu1 }
 0xa3f   :  { %v7698_v28 = vpop.f32.mrf.mxu2  ;;  %v7867_v1 = vsel %vm7864_vm6, %v7865_v56, %v7866_v26 }
 0xa40   :  { %v7761_v54 = vadd.f32 %v7698_v28, %v7618_v49 }
 0xa42   :  { %v7785_v17 = vadd.f32 %v14600_v52, %v7761_v54  ;;  %7454 = vmatmul.bf16.gmra.mxu3 %v14428_v21 }
 0xa43   :  { %v7166_v51 = vpop.f32.mrf.mxu3 }
 0xa44   :  { %v10425_v7 = vpop.eup %10424  ;;  %v7877_v44 = vmul.f32 1.442695, %v7785_v17  ;;  %v7873_v14 = vmul.f32 %v7867_v1, %v7785_v17 }
 0xa45   :  { %v7795_v6 = vadd.f32 1.0, %v10425_v7 }
 0xa46   :  { %10426 = vpow2.f32 %v7877_v44  ;;  %v7316_v42 = vpop.f32.mrf.mxu1  ;;  %v7875_v57 = vadd.f32 %v7873_v14, %v7856_v55  ;;  %v10213_v14 = vld [vmem:[%s14707_s7 + $0x150] sm:$0xff] }
 0xa47   :  { %10428 = vrcp.f32 %v7795_v6  ;;  %v7701_v58 = vpop.f32.mrf.mxu2  ;;  %v7808_v34 = vand.u32 2147483648, %v7795_v6  ;;  %v7806_v33 = vand.u32 2147483647, %v7795_v6  ;;  %vm7802_vm9 = vweird.f32 %v7795_v6  ;;  %7561 = vmatmul.bf16.gmra.mxu0 %v10213_v14  ;;  %7597 = vmatmul.bf16.gmra.mxu1 %v10213_v14 }
 0xa48   :  { %v7763_v4 = vadd.f32 %v7701_v58, %v7620_v0 }
 0xa49   :  { %v7809_v2 = vor.u32 1.1754944e-38, %v7808_v34  ;;  %vm7807_vm12 = vcmp.eq.f32.partialorder %v7806_v33, 8.507059e+37 }
 0xa4a   :  { %v7787_v9 = vadd.f32 %v14606_v27, %v7763_v4  ;;  %v10221_v4 = vld [vmem:[%s14707_s7 + $0x210] sm:$0xff] }
 0xa4b   :  { %v7168_v37 = vpop.f32.mrf.mxu3  ;;  %7704 = vmatmul.bf16.gmra.mxu2 %v10221_v4 }
 0xa4c   :  { %v10427_v3 = vpop.eup %10426  ;;  %v7881_v21 = vmul.f32 1.442695, %v7787_v9  ;;  %v7889_v29 = vadd.f32 %v7858_v48, %v7787_v9 }
 0xa4d   :  { %v10429_v11 = vpop.eup %10428  ;;  %v7885_v39 = vmul.f32 %v10427_v3, %v7856_v55 }
 0xa4e   :  { %v7798_v24 = vmul.f32 %v10429_v11, %v7795_v6  ;;  %10430 = vpow2.f32 %v7881_v21  ;;  %v7318_v50 = vpop.f32.mrf.mxu1  ;;  %vm7803_vm8 = vweird.f32 %v10429_v11  ;;  %v10222_v21 = vld [vmem:[%s14707_s7 + $0x218] sm:$0xff] }
 0xa4f   :  { %v7894_v20 = vsel %vm7893_vm7, %v7875_v57, %v7885_v39  ;;  %v7703_v53 = vpop.f32.mrf.mxu2  ;;  %vm7804_vm11 = vmor %vm7802_vm9, %vm7803_vm8  ;;  %v10216_v50 = vld [vmem:[%s14707_s7 + $0x168] sm:$0xff] }
 0xa50   :  { %v7799_v31 = vsub.f32 1.0, %v7798_v24  ;;  %7901 = vst [vmem:[%s14710_s10 + $0x10] sm:$0xff] %v7894_v20  ;;  %v10215_v53 = vld [vmem:[%s14707_s7 + $0x160] sm:$0xff] }
 0xa52   :  { %v7800_v15 = vmul.f32 %v10429_v11, %v7799_v31  ;;  %7457 = vmatmul.bf16.gmra.mxu3 %v14444_v8 }
 0xa53   :  { %v7169_v35 = vpop.f32.mrf.mxu3 }
 0xa54   :  { %v10431_v36 = vpop.eup %10430  ;;  %v7801_v13 = vadd.f32 %v10429_v11, %v7800_v15  ;;  %v10225_v15 = vld [vmem:[%s14707_s7 + $0x230] sm:$0xff] }
 0xa55   :  { %v7887_v46 = vmul.f32 %v10431_v36, %v7858_v48  ;;  %v10217_v36 = vld [vmem:[%s14707_s7 + $0x170] sm:$0xff] }
 0xa56   :  { %v7805_v23 = vsel %vm7804_vm11, %v10429_v11, %v7801_v13  ;;  %v7319_v32 = vpop.f32.mrf.mxu1  ;;  %v7333_v11 = vadd.f32 %v14573_v22, %v14581_v43  ;;  %v10223_v22 = vld [vmem:[%s14707_s7 + $0x220] sm:$0xff] }
 0xa57   :  { %v7810_v16 = vsel %vm7807_vm12, %v7809_v2, %v7805_v23  ;;  %v7897_v47 = vsel %vm7896_vm10, %v7887_v46, %v7889_v29  ;;  %v10226_v2 = vld [vmem:[%s14707_s7 + $0x238] sm:$0xff] }
 0xa58   :  { %v7829_v18 = vrot.slane %v7810_v16, 6  ;;  %7891 = vst [vmem:[%s14710_s10] sm:$0xff] %v7810_v16  ;;  %v7899_v8 = vsel %vm7893_vm7, %v7897_v47, 0.0  ;;  %v10218_v29 = vld [vmem:[%s14707_s7 + $0x178] sm:$0xff] }
 0xa59   :  { %7903 = vst [vmem:[%s14710_s10 + $0x20] sm:$0xff] %v7899_v8 }
 0xa5a   :  { %vm7833_vm13 = vcmp.gt.f32.partialorder %v7810_v16, %v7829_v18 }
 0xa5b   :  { %v7171_v30 = vpop.f32.mrf.mxu3  ;;  %v7835_v60 = vsel %vm7833_vm13, 1, %v14622_v63  ;;  %v7837_v10 = vsel %vm7833_vm13, %v7810_v16, %v7829_v18  ;;  %7707 = vmatmul.bf16.gmra.mxu2 %v10222_v21 }
 0xa5c   :  { %v7841_v38 = vrot.slane %v7837_v10, 6  ;;  %v7847_v49 = vrot.slane %v7835_v60, 6 }
 0xa5e   :  { %vm7845_vm14 = vcmp.gt.f32.partialorder %v7810_v16, %v7841_v38  ;;  %v7321_v55 = vpop.f32.mrf.mxu1 }
 0xa5f   :  { %v7849_v28 = vsel %vm7845_vm14, 2, %v7847_v49 }
 0xa60   :  { %7851 = vst.sshfl [vmem:[#allocation1] sm:$0xff pattern:$0x73625140] %v7849_v28 }
 0xa62   :  { %7460 = vmatmul.bf16.gmra.mxu3 %v14458_v45 }
 0xa63   :  { %v7172_v51 = vpop.f32.mrf.mxu3 }
 0xa66   :  { %v7322_v54 = vpop.f32.mrf.mxu1 }
 0xa6b   :  { %v7174_v48 = vpop.f32.mrf.mxu3  ;;  %7710 = vmatmul.bf16.gmra.mxu2 %v10223_v22 }
 0xa6e   :  { %v7324_v56 = vpop.f32.mrf.mxu1 }
 0xa6f   :  { %v7857_v56 = vld [vmem:[%s14709_s9 + $0x8] sm:$0xff] }
 0xa72   :  { %7463 = vmatmul.bf16.gmra.mxu3 %v14472_v5 }
 0xa73   :  { %v7175_v41 = vpop.f32.mrf.mxu3 }
 0xa76   :  { %v7325_v17 = vpop.f32.mrf.mxu1 }
 0xa7b   :  { %v7177_v26 = vpop.f32.mrf.mxu3 }
 0xa7c   :  { %v7859_v26 = vld [vmem:[%s14709_s9 + $0x18] sm:$0x3f] }
 0xa7e   :  { %v7327_v44 = vpop.f32.mrf.mxu1 }
 0xa82   :  { %7466 = vmatmul.bf16.gmra.mxu3 %v14487_v12 }
 0xa83   :  { %v7178_v7 = vpop.f32.mrf.mxu3 }
 0xa86   :  { %v7328_v0 = vpop.f32.mrf.mxu1 }
 0xa87   :  { %v7868_v0 = vrot.slane %v7857_v56, 6 }
 0xa8b   :  { %v7180_v6 = vpop.f32.mrf.mxu3 }
 0xa8e   :  { %v7589_v37 = vpop.f32.mrf.mxu1 }
 0xa92   :  { %7469 = vmatmul.bf16.gmra.mxu3 %v14508_v19 }
 0xa93   :  { %v7181_v1 = vpop.f32.mrf.mxu3 }
 0xa94   :  { %v7869_v1 = vrot.slane %v7859_v26, 6 }
 0xa96   :  { %v7591_v45 = vpop.f32.mrf.mxu1 }
 0xa9b   :  { %v7183_v58 = vpop.f32.mrf.mxu3 }
 0xa9e   :  { %v7594_v42 = vpop.f32.mrf.mxu1 }
 0xaa2   :  { %7731 = vmatmul.bf16.vlgmr.msrb.gmra.mxu3 %v14530_v25  ;;  %v10214_v25 = vld [vmem:[%s14707_s7 + $0x158] sm:$0xff] }
 0xaa3   :  { %v7184_v5 = vpop.f32.mrf.mxu3  ;;  %7564 = vmatmul.bf16.gmra.mxu0 %v10214_v25  ;;  %7600 = vmatmul.bf16.gmra.mxu1 %v10214_v25 }
 0xaa6   :  { %v7596_v9 = vpop.f32.mrf.mxu1 }
 0xaab   :  { %v7446_v12 = vpop.f32.mrf.mxu3 }
 0xaac   :  { %v7474_v19 = vadd.f32 %v7446_v12, %v14578_v61 }
 0xaae   :  { %v7617_v3 = vadd.f32 %v7589_v37, %v7474_v19 }
 0xab2   :  { %7736 = vmatmul.bf16.gmra.mxu3 %v14552_v62 }
 0xab3   :  { %v7448_v57 = vpop.f32.mrf.mxu3  ;;  %7567 = vmatmul.bf16.gmra.mxu0 %v10215_v53  ;;  %7603 = vmatmul.bf16.gmra.mxu1 %v10215_v53 }
 0xab4   :  { %v7476_v39 = vadd.f32 %v7448_v57, %v7333_v11 }
 0xab6   :  { %v7619_v24 = vadd.f32 %v7591_v45, %v7476_v39 }
 0xabb   :  { %v7451_v61 = vpop.f32.mrf.mxu3 }
 0xabc   :  { %v7478_v35 = vadd.f32 %v7451_v61, %v14588_v59  ;;  %v10224_v59 = vld [vmem:[%s14707_s7 + $0x228] sm:$0xff] }
 0xabd   :  { %7713 = vmatmul.bf16.gmra.mxu2 %v10224_v59 }
 0xabe   :  { %v14647_v20 = vadd.f32 %v7594_v42, %v7478_v35 }
 0xac2   :  { %7740 = vmatmul.bf16.gmra.mxu3 %v10221_v4  ;;  %v7870_v4 = vsel %vm7864_vm6, %v7868_v0, %v7869_v1 }
 0xac3   :  { %v7453_v43 = vpop.f32.mrf.mxu3  ;;  %7570 = vmatmul.bf16.gmra.mxu0 %v10216_v50  ;;  %7606 = vmatmul.bf16.gmra.mxu1 %v10216_v50 }
 0xac4   :  { %v7562_v32 = vpop.f32.mrf.mxu0  ;;  %v7598_v10 = vpop.f32.mrf.mxu1 }
 0xacb   :  { %v7455_v62 = vpop.f32.mrf.mxu3 }
 0xacc   :  { %v7563_v51 = vpop.f32.mrf.mxu0  ;;  %v7599_v48 = vpop.f32.mrf.mxu1 }
 0xacd   :  { %7716 = vmatmul.bf16.gmra.mxu2 %v10225_v15 }
 0xace   :  { %v7705_v60 = vpop.f32.mrf.mxu2 }
 0xad2   :  { %7743 = vmatmul.bf16.gmra.mxu3 %v10222_v21 }
 0xad3   :  { %v7456_v31 = vpop.f32.mrf.mxu3  ;;  %7573 = vmatmul.bf16.gmra.mxu0 %v10217_v36  ;;  %7609 = vmatmul.bf16.gmra.mxu1 %v10217_v36 }
 0xad6   :  { %v7706_v28 = vpop.f32.mrf.mxu2 }
 0xadb   :  { %v7458_v34 = vpop.f32.mrf.mxu3 }
 0xadd   :  { %7719 = vmatmul.bf16.gmra.mxu2 %v10226_v2 }
 0xade   :  { %v7708_v44 = vpop.f32.mrf.mxu2 }
 0xae2   :  { %7746 = vmatmul.bf16.gmra.mxu3 %v10223_v22 }
 0xae3   :  { %v7459_v33 = vpop.f32.mrf.mxu3  ;;  %7576 = vmatmul.bf16.gmra.mxu0 %v10218_v29  ;;  %7612 = vmatmul.bf16.gmra.mxu1 %v10218_v29 }
 0xae6   :  { %v7709_v19 = vpop.f32.mrf.mxu2 }
 0xaeb   :  { %v7461_v13 = vpop.f32.mrf.mxu3 }
 0xaee   :  { %v7711_v43 = vpop.f32.mrf.mxu2 }
 0xaf2   :  { %7749 = vmatmul.bf16.gmra.mxu3 %v10224_v59 }
 0xaf3   :  { %v7462_v46 = vpop.f32.mrf.mxu3 }
 0xafb   :  { %v7464_v23 = vpop.f32.mrf.mxu3 }
 0xb02   :  { %7752 = vmatmul.bf16.gmra.mxu3 %v10225_v15 }
 0xb03   :  { %v7465_v30 = vpop.f32.mrf.mxu3 }
 0xb04   :  { %v7712_v30 = vpop.f32.mrf.mxu2 }
 0xb0b   :  { %v7467_v16 = vpop.f32.mrf.mxu3 }
 0xb12   :  { %7755 = vmatmul.bf16.gmra.mxu3 %v10226_v2 }
 0xb13   :  { %v7468_v47 = vpop.f32.mrf.mxu3 }
 0xb1b   :  { %v7470_v18 = vpop.f32.mrf.mxu3 }
 0xb20   :  { %v7565_v7 = vpop.f32.mrf.mxu0 }
 0xb23   :  { %v7471_v8 = vpop.f32.mrf.mxu3 }
 0xb28   :  { %v7566_v12 = vpop.f32.mrf.mxu0 }
 0xb2b   :  { %v7732_v38 = vpop.f32.mrf.mxu3 }
 0xb2c   :  { %v7760_v49 = vadd.f32 %v7732_v38, %v7617_v3 }
 0xb2e   :  { %v7784_v55 = vadd.f32 %v14586_v40, %v7760_v49  ;;  %v7601_v40 = vpop.f32.mrf.mxu1 }
 0xb30   :  { %v9866_v54 = vmul.f32 -1.442695, %v7784_v55  ;;  %v7568_v22 = vpop.f32.mrf.mxu0 }
 0xb32   :  { %10432 = vpow2.f32 %v9866_v54 }
 0xb33   :  { %v7734_v41 = vpop.f32.mrf.mxu3 }
 0xb34   :  { %v7762_v17 = vadd.f32 %v7734_v41, %v7619_v24 }
 0xb36   :  { %v7786_v6 = vadd.f32 %v14600_v52, %v7762_v17  ;;  %v7602_v3 = vpop.f32.mrf.mxu1 }
 0xb38   :  { %v10433_v37 = vpop.eup %10432  ;;  %v7879_v58 = vmul.f32 1.442695, %v7786_v6  ;;  %v7874_v14 = vmul.f32 %v7870_v4, %v7786_v6  ;;  %v7569_v23 = vpop.f32.mrf.mxu0 }
 0xb39   :  { %v7796_v45 = vadd.f32 1.0, %v10433_v37 }
 0xb3a   :  { %10434 = vpow2.f32 %v7879_v58  ;;  %v7876_v57 = vadd.f32 %v7874_v14, %v7857_v56 }
 0xb3b   :  { %10436 = vrcp.f32 %v7796_v45  ;;  %v7737_v5 = vpop.f32.mrf.mxu3  ;;  %v7821_v53 = vand.u32 2147483647, %v7796_v45  ;;  %vm7817_vm0 = vweird.f32 %v7796_v45 }
 0xb3c   :  { %v7764_v42 = vadd.f32 %v7737_v5, %v14647_v20  ;;  %v7823_v20 = vand.u32 2147483648, %v7796_v45 }
 0xb3d   :  { %vm7822_vm2 = vcmp.eq.f32.partialorder %v7821_v53, 8.507059e+37 }
 0xb3e   :  { %v7788_v9 = vadd.f32 %v14606_v27, %v7764_v42  ;;  %v7604_v62 = vpop.f32.mrf.mxu1  ;;  %v7824_v50 = vor.u32 1.1754944e-38, %v7823_v20 }
 0xb40   :  { %v10435_v52 = vpop.eup %10434  ;;  %v7883_v21 = vmul.f32 1.442695, %v7788_v9  ;;  %v7890_v15 = vadd.f32 %v7859_v26, %v7788_v9  ;;  %v7571_v38 = vpop.f32.mrf.mxu0 }
 0xb41   :  { %v10437_v11 = vpop.eup %10436  ;;  %v7886_v39 = vmul.f32 %v10435_v52, %v7857_v56  ;;  %v7714_v49 = vpop.f32.mrf.mxu2 }
 0xb42   :  { %v7813_v24 = vmul.f32 %v10437_v11, %v7796_v45  ;;  %10438 = vpow2.f32 %v7883_v21  ;;  %vm7818_vm15 = vweird.f32 %v10437_v11 }
 0xb43   :  { %v7895_v25 = vsel %vm7893_vm7, %v7876_v57, %v7886_v39  ;;  %v7739_v61 = vpop.f32.mrf.mxu3  ;;  %vm7819_vm1 = vmor %vm7817_vm0, %vm7818_vm15 }
 0xb44   :  { %v7814_v35 = vsub.f32 1.0, %v7813_v24  ;;  %7902 = vst [vmem:[%s14710_s10 + $0x18] sm:$0xff] %v7895_v25 }
 0xb46   :  { %v7815_v27 = vmul.f32 %v10437_v11, %v7814_v35  ;;  %v7605_v16 = vpop.f32.mrf.mxu1 }
 0xb48   :  { %v10439_v59 = vpop.eup %10438  ;;  %v7816_v31 = vadd.f32 %v10437_v11, %v7815_v27  ;;  %v7572_v48 = vpop.f32.mrf.mxu0 }
 0xb49   :  { %v7888_v34 = vmul.f32 %v10439_v59, %v7859_v26  ;;  %v7715_v54 = vpop.f32.mrf.mxu2 }
 0xb4a   :  { %v7820_v33 = vsel %vm7819_vm1, %v10437_v11, %v7816_v31 }
 0xb4b   :  { %v7825_v36 = vsel %vm7822_vm2, %v7824_v50, %v7820_v33  ;;  %v7898_v13 = vsel %vm7896_vm10, %v7888_v34, %v7890_v15  ;;  %v7741_v2 = vpop.f32.mrf.mxu3 }
 0xb4c   :  { %v7830_v46 = vrot.slane %v7825_v36, 6  ;;  %7892 = vst [vmem:[%s14710_s10 + $0x8] sm:$0xff] %v7825_v36  ;;  %v7900_v29 = vsel %vm7893_vm7, %v7898_v13, 0.0 }
 0xb4d   :  { %7904 = vst [vmem:[%s14710_s10 + $0x28] sm:$0xff] %v7900_v29 }
 0xb4e   :  { %vm7834_vm3 = vcmp.gt.f32.partialorder %v7825_v36, %v7830_v46  ;;  %v7607_v51 = vpop.f32.mrf.mxu1 }
 0xb4f   :  { %v7836_v47 = vsel %vm7834_vm3, 1, %v14622_v63  ;;  %v7838_v18 = vsel %vm7834_vm3, %v7825_v36, %v7830_v46 }
 0xb50   :  { %v7842_v8 = vrot.slane %v7838_v18, 6  ;;  %v7848_v32 = vrot.slane %v7836_v47, 6  ;;  %v7574_v56 = vpop.f32.mrf.mxu0 }
 0xb51   :  { %v7717_v26 = vpop.f32.mrf.mxu2 }
 0xb52   :  { %vm7846_vm4 = vcmp.gt.f32.partialorder %v7825_v36, %v7842_v8 }
 0xb53   :  { %v7850_v60 = vsel %vm7846_vm4, 2, %v7848_v32  ;;  %v7742_v10 = vpop.f32.mrf.mxu3 }
 0xb54   :  { %7852 = vst.sshfl [vmem:[#allocation1 + $0x8] sm:$0xff pattern:$0x73625140] %v7850_v60 }
 0xb56   :  { %v7608_v41 = vpop.f32.mrf.mxu1 }
 0xb58   :  { %v7575_v44 = vpop.f32.mrf.mxu0 }
 0xb59   :  { %v7718_v6 = vpop.f32.mrf.mxu2 }
 0xb5b   :  { %v7854_v28 = vld [vmem:[#allocation1 + $0x2] ss:$4 sm:$0xff]  ;;  %v7744_v55 = vpop.f32.mrf.mxu3 }
 0xb5c   :  { %7855 = vst [vmem:[%s14711_s11] sm:$0xf] %v7854_v28 }
 0xb5e   :  { %v7610_v17 = vpop.f32.mrf.mxu1 }
 0xb60   :  { %v7577_v40 = vpop.f32.mrf.mxu0 }
 0xb61   :  { %v7720_v37 = vpop.f32.mrf.mxu2 }
 0xb63   :  { %v7745_v63 = vpop.f32.mrf.mxu3 }
 0xb66   :  { %v7611_v0 = vpop.f32.mrf.mxu1 }
 0xb68   :  { %v7578_v4 = vpop.f32.mrf.mxu0 }
 0xb69   :  { %v7721_v5 = vpop.f32.mrf.mxu2 }
 0xb6b   :  { %v7747_v7 = vpop.f32.mrf.mxu3 }
 0xb6e   :  { %v7613_v58 = vpop.f32.mrf.mxu1 }
 0xb73   :  { %v7748_v1 = vpop.f32.mrf.mxu3 }
 0xb76   :  { %v7614_v42 = vpop.f32.mrf.mxu1 }
 0xb7b   :  { %v7750_v45 = vpop.f32.mrf.mxu3 }
 0xb83   :  { %v7751_v14 = vpop.f32.mrf.mxu3 }
 0xb8b   :  { %v7753_v12 = vpop.f32.mrf.mxu3 }
 0xb93   :  { %v7754_v19 = vpop.f32.mrf.mxu3 }
 0xb9b   :  { %v7756_v9 = vpop.f32.mrf.mxu3 }
 0xba3   :  { %v7757_v3 = vpop.f32.mrf.mxu3 }

</bundles_post_ra>
